<compile_context>
chip_gen: v6e
topology: v6e:2x2x1
jax: 0.10.0
libtpu: 0.0.40
codegen_flags: <defaults>
</compile_context>

<pallas_src>
import functools

import numpy as np
import jax
import jax.numpy as jnp
from jax import lax
from jax.experimental import pallas as pl
from jax.experimental.pallas import tpu as pltpu

INPUT_SIZE = 28
HIDDEN_SIZE = 128     # module's hidden_size
NUM_CLASSES = 10
NUM_LAYERS = 2        # kernel hardcodes the 2-layer stack
OUT_PAD = 128         # lane-dense fc output width (sliced to NUM_CLASSES)


def _lstm_fc_kernel(x_ref, wih0_ref, whh0_ref, b0_ref,
                    w1_ref, b1_ref, wfc_ref, bfc_ref,
                    out_ref,
                    xg_s, hcat_s, c0_s, c1_s,
                    *, T, B, H):
    """x_ref: (T*B, D) time-major, batch-padded. Gate column order is (i,f,o,g)."""

    # ---- hoisted layer-0 input projection: one big matmul for all timesteps ----
    xg_s[...] = (jnp.dot(x_ref[...], wih0_ref[...],
                         preferred_element_type=jnp.float32) + b0_ref[...])

    # ---- init states ----
    hcat_s[...] = jnp.zeros_like(hcat_s)   # [:, :H] = h0, [:, H:] = h1
    c0_s[...] = jnp.zeros_like(c0_s)
    c1_s[...] = jnp.zeros_like(c1_s)

    whh0 = whh0_ref[...]
    w1 = w1_ref[...]
    b1 = b1_ref[...]

    def gates(g, c):
        # columns ordered (i, f, o, g): one wide sigmoid, one tanh
        sig = jax.nn.sigmoid(g[:, :3 * H])
        i = sig[:, 0 * H:1 * H]
        f = sig[:, 1 * H:2 * H]
        o = sig[:, 2 * H:3 * H]
        gg = jnp.tanh(g[:, 3 * H:4 * H])
        c_new = f * c + i * gg
        h_new = o * jnp.tanh(c_new)
        return h_new, c_new

    def step(t, carry):
        row = pl.multiple_of(t * B, B)          # sublane-aligned row offset
        # ---------------- layer 0: recurrent matmul only ----------------
        g0 = xg_s[pl.ds(row, B), :] + jnp.dot(
            hcat_s[:, :H], whh0, preferred_element_type=jnp.float32)
        h0, c0 = gates(g0, c0_s[...])
        c0_s[...] = c0
        hcat_s[:, :H] = h0
        # ---------------- layer 1: single fused matmul on [h0 | h1] -----
        g1 = jnp.dot(hcat_s[...], w1, preferred_element_type=jnp.float32) + b1
        h1, c1 = gates(g1, c1_s[...])
        c1_s[...] = c1
        hcat_s[:, H:2 * H] = h1
        return carry

    lax.fori_loop(0, T, step, 0, unroll=True)

    # ---------------- lane-dense fc head on the last h1 ----------------
    out_ref[...] = (jnp.dot(hcat_s[:, H:2 * H], wfc_ref[...],
                            preferred_element_type=jnp.float32) + bfc_ref[...])


def _prep_params(params):
    """PyTorch-layout params -> kernel layout (transposed, gates reordered to
    (i,f,o,g), biases combined, layer-1 weights stacked, fc padded to 128 lanes)."""
    (w_ih0, w_hh0, b_ih0, b_hh0,
     w_ih1, w_hh1, b_ih1, b_hh1,
     w_fc, b_fc) = params
    H = HIDDEN_SIZE
    C = w_fc.shape[0]
    # PyTorch row order (i, f, g, o) -> kernel order (i, f, o, g)
    perm = jnp.concatenate([jnp.arange(0, H), jnp.arange(H, 2 * H),
                            jnp.arange(3 * H, 4 * H), jnp.arange(2 * H, 3 * H)])
    reorder = lambda w: w[perm]

    wih0 = reorder(w_ih0).T.astype(jnp.float32)                       # (D, 4H)
    whh0 = reorder(w_hh0).T.astype(jnp.float32)                       # (H, 4H)
    b0 = (reorder(b_ih0) + reorder(b_hh0))[None, :].astype(jnp.float32)
    w1 = jnp.concatenate([reorder(w_ih1).T, reorder(w_hh1).T],
                         axis=0).astype(jnp.float32)                  # (2H, 4H)
    b1 = (reorder(b_ih1) + reorder(b_hh1))[None, :].astype(jnp.float32)
    wfc = jnp.zeros((H, OUT_PAD), jnp.float32).at[:, :C].set(w_fc.T)  # (H, 128)
    bfc = jnp.zeros((1, OUT_PAD), jnp.float32).at[0, :C].set(b_fc)    # (1, 128)
    return wih0, whh0, b0, w1, b1, wfc, bfc


def rnn_forward(x, params):
    """x: (B, T, D_in) float32 -> logits (B, NUM_CLASSES)."""
    B, T, D = x.shape
    H, C = HIDDEN_SIZE, NUM_CLASSES
    B_pad = ((B + 7) // 8) * 8            # f32 sublane multiple

    wih0, whh0, b0, w1, b1, wfc, bfc = _prep_params(params)

    # time-major, batch-padded, flattened to (T*B_pad, D) for the hoisted matmul
    x_tm = jnp.transpose(x, (1, 0, 2)).astype(jnp.float32)       # (T, B, D)
    x_tm = jnp.pad(x_tm, ((0, 0), (0, B_pad - B), (0, 0)))
    x2d = x_tm.reshape(T * B_pad, D)

    kernel = functools.partial(_lstm_fc_kernel, T=T, B=B_pad, H=H)

    def full_spec(shape):
        return pl.BlockSpec(shape, lambda i, _n=len(shape): (0,) * _n)

    operands = (x2d, wih0, whh0, b0, w1, b1, wfc, bfc)

    grid_spec = pltpu.PrefetchScalarGridSpec(
        num_scalar_prefetch=0,
        grid=(1,),                                        # single step; loop is in-kernel
        in_specs=[full_spec(a.shape) for a in operands],
        out_specs=full_spec((B_pad, OUT_PAD)),
        scratch_shapes=[
            pltpu.VMEM((T * B_pad, 4 * H), jnp.float32),  # hoisted x @ W_ih0 + b0
            pltpu.VMEM((B_pad, 2 * H), jnp.float32),      # [h0 | h1]
            pltpu.VMEM((B_pad, H), jnp.float32),          # c0
            pltpu.VMEM((B_pad, H), jnp.float32),          # c1
        ],
    )

    out = pl.pallas_call(
        kernel,
        out_shape=jax.ShapeDtypeStruct((B_pad, OUT_PAD), jnp.float32),
        grid_spec=grid_spec,
        compiler_params=pltpu.CompilerParams(
            dimension_semantics=("arbitrary",)),
    )(*operands)
    # TODO(synk): for large production batches add a "parallel" batch grid axis
    # (v7x megacore) and bf16 MXU operands on v6e/v7x; unnecessary at B=2.
    return out[:B, :C]


def make_params(key):
    """Deterministic PyTorch-layout params, uniform(-1/sqrt(H), 1/sqrt(H)) init."""
    H, D, C = HIDDEN_SIZE, INPUT_SIZE, NUM_CLASSES
    bound = 1.0 / np.sqrt(H)
    ks = jax.random.split(key, 10)
    u = lambda k, shape: jax.random.uniform(k, shape, jnp.float32, -bound, bound)
    w_ih0 = u(ks[0], (4 * H, D))
    w_hh0 = u(ks[1], (4 * H, H))
    b_ih0 = u(ks[2], (4 * H,))
    b_hh0 = u(ks[3], (4 * H,))
    w_ih1 = u(ks[4], (4 * H, H))
    w_hh1 = u(ks[5], (4 * H, H))
    b_ih1 = u(ks[6], (4 * H,))
    b_hh1 = u(ks[7], (4 * H,))
    w_fc = u(ks[8], (C, H))
    b_fc = u(ks[9], (C,))
    return (w_ih0, w_hh0, b_ih0, b_hh0,
            w_ih1, w_hh1, b_ih1, b_hh1, w_fc, b_fc)


def rnn_reference(x, params):
    """Pure-JAX reference matching nn.LSTM(batch_first) + nn.Linear exactly."""
    (w_ih0, w_hh0, b_ih0, b_hh0,
     w_ih1, w_hh1, b_ih1, b_hh1, w_fc, b_fc) = params
    B, T, _ = x.shape
    H = HIDDEN_SIZE

    def cell(x_t, h, c, w_ih, w_hh, b_ih, b_hh):
        g = x_t @ w_ih.T + b_ih + h @ w_hh.T + b_hh
        i = jax.nn.sigmoid(g[:, 0 * H:1 * H])
        f = jax.nn.sigmoid(g[:, 1 * H:2 * H])
        gg = jnp.tanh(g[:, 2 * H:3 * H])
        o = jax.nn.sigmoid(g[:, 3 * H:4 * H])
        c_new = f * c + i * gg
        return o * jnp.tanh(c_new), c_new

    h0 = c0 = h1 = c1 = jnp.zeros((B, H), jnp.float32)
    for t in range(T):
        h0, c0 = cell(x[:, t, :], h0, c0, w_ih0, w_hh0, b_ih0, b_hh0)
        h1, c1 = cell(h0, h1, c1, w_ih1, w_hh1, b_ih1, b_hh1)
    return h1 @ w_fc.T + b_fc


if __name__ == "__main__":
    B, T = 2, 8  # small batch / sequence length; feature dim = INPUT_SIZE = 28
    key = jax.random.PRNGKey(0)
    k_x, k_p = jax.random.split(key)
    x = jax.random.normal(k_x, (B, T, INPUT_SIZE), jnp.float32)
    params = make_params(k_p)

    out = jax.block_until_ready(rnn_forward(x, params))
    ref = rnn_reference(x, params)
    np.testing.assert_allclose(np.asarray(out), np.asarray(ref),
                               rtol=1e-4, atol=1e-4)
    print("KERNEL_OK")
</pallas_src>

<mosaic_0001>
module attributes {stable_mosaic.version = 11 : i64} {
  func.func @_lstm_fc_kernel(%arg0: i32, %arg1: memref<64x28xf32, #tpu.memory_space<vmem>>, %arg2: memref<28x512xf32, #tpu.memory_space<vmem>>, %arg3: memref<128x512xf32, #tpu.memory_space<vmem>>, %arg4: memref<1x512xf32, #tpu.memory_space<vmem>>, %arg5: memref<256x512xf32, #tpu.memory_space<vmem>>, %arg6: memref<1x512xf32, #tpu.memory_space<vmem>>, %arg7: memref<128x128xf32, #tpu.memory_space<vmem>>, %arg8: memref<1x128xf32, #tpu.memory_space<vmem>>, %arg9: memref<8x128xf32, #tpu.memory_space<vmem>>, %arg10: memref<64x512xf32, #tpu.memory_space<vmem>>, %arg11: memref<8x256xf32, #tpu.memory_space<vmem>>, %arg12: memref<8x128xf32, #tpu.memory_space<vmem>>, %arg13: memref<8x128xf32, #tpu.memory_space<vmem>>) attributes {dimension_semantics = [#tpu.dimension_semantics<arbitrary>], iteration_bounds = array<i64: 1>, scalar_prefetch = 0 : i64, scratch_operands = 4 : i64, tpu.core_type = #tpu.core_type<tc>, window_params = [{pipeline_mode = #tpu.pipeline_mode<synchronous>, transform_indices = @transform_0, window_bounds = array<i64: 64, 28>}, {pipeline_mode = #tpu.pipeline_mode<synchronous>, transform_indices = @transform_1, window_bounds = array<i64: 28, 512>}, {pipeline_mode = #tpu.pipeline_mode<synchronous>, transform_indices = @transform_2, window_bounds = array<i64: 128, 512>}, {pipeline_mode = #tpu.pipeline_mode<synchronous>, transform_indices = @transform_3, window_bounds = array<i64: 1, 512>}, {pipeline_mode = #tpu.pipeline_mode<synchronous>, transform_indices = @transform_4, window_bounds = array<i64: 256, 512>}, {pipeline_mode = #tpu.pipeline_mode<synchronous>, transform_indices = @transform_5, window_bounds = array<i64: 1, 512>}, {pipeline_mode = #tpu.pipeline_mode<synchronous>, transform_indices = @transform_6, window_bounds = array<i64: 128, 128>}, {pipeline_mode = #tpu.pipeline_mode<synchronous>, transform_indices = @transform_7, window_bounds = array<i64: 1, 128>}, {pipeline_mode = #tpu.pipeline_mode<synchronous>, transform_indices = @transform_8, window_bounds = array<i64: 8, 128>}]} {
    %c0 = arith.constant 0 : index
    %c0_0 = arith.constant 0 : index
    %0 = vector.load %arg1[%c0, %c0_0] : memref<64x28xf32, #tpu.memory_space<vmem>>, vector<64x28xf32>
    %c0_1 = arith.constant 0 : index
    %c0_2 = arith.constant 0 : index
    %1 = vector.load %arg2[%c0_1, %c0_2] : memref<28x512xf32, #tpu.memory_space<vmem>>, vector<28x512xf32>
    %cst = arith.constant dense<0.000000e+00> : vector<64x512xf32>
    %2 = tpu.matmul %0, %1, %cst {dimension_numbers = #tpu.dot_dimension_numbers<[1], [0], [0], [1], [0, 0, 1, 1], [], []>} : vector<64x28xf32>, vector<28x512xf32>, vector<64x512xf32> -> vector<64x512xf32>
    %c0_3 = arith.constant 0 : index
    %c0_4 = arith.constant 0 : index
    %3 = vector.load %arg4[%c0_3, %c0_4] : memref<1x512xf32, #tpu.memory_space<vmem>>, vector<1x512xf32>
    %4 = vector.broadcast %3 : vector<1x512xf32> to vector<64x512xf32>
    %5 = arith.addf %2, %4 : vector<64x512xf32>
    %c0_5 = arith.constant 0 : index
    %c0_6 = arith.constant 0 : index
    %6 = vector.load %arg10[%c0_5, %c0_6] : memref<64x512xf32, #tpu.memory_space<vmem>>, vector<64x512xf32>
    tpu.vector_store %arg10[%c0_5, %c0_6], %5 {strides = array<i32>} : memref<64x512xf32, #tpu.memory_space<vmem>>, vector<64x512xf32>,
    %cst_7 = arith.constant 0.000000e+00 : f32
    %7 = vector.broadcast %cst_7 : f32 to vector<8x256xf32>
    %c0_8 = arith.constant 0 : index
    %c0_9 = arith.constant 0 : index
    %8 = vector.load %arg11[%c0_8, %c0_9] : memref<8x256xf32, #tpu.memory_space<vmem>>, vector<8x256xf32>
    tpu.vector_store %arg11[%c0_8, %c0_9], %7 {strides = array<i32>} : memref<8x256xf32, #tpu.memory_space<vmem>>, vector<8x256xf32>,
    %cst_10 = arith.constant 0.000000e+00 : f32
    %9 = vector.broadcast %cst_10 : f32 to vector<8x128xf32>
    %c0_11 = arith.constant 0 : index
    %c0_12 = arith.constant 0 : index
    %10 = vector.load %arg12[%c0_11, %c0_12] : memref<8x128xf32, #tpu.memory_space<vmem>>, vector<8x128xf32>
    tpu.vector_store %arg12[%c0_11, %c0_12], %9 {strides = array<i32>} : memref<8x128xf32, #tpu.memory_space<vmem>>, vector<8x128xf32>,
    %cst_13 = arith.constant 0.000000e+00 : f32
    %11 = vector.broadcast %cst_13 : f32 to vector<8x128xf32>
    %c0_14 = arith.constant 0 : index
    %c0_15 = arith.constant 0 : index
    %12 = vector.load %arg13[%c0_14, %c0_15] : memref<8x128xf32, #tpu.memory_space<vmem>>, vector<8x128xf32>
    tpu.vector_store %arg13[%c0_14, %c0_15], %11 {strides = array<i32>} : memref<8x128xf32, #tpu.memory_space<vmem>>, vector<8x128xf32>,
    %c0_16 = arith.constant 0 : index
    %c0_17 = arith.constant 0 : index
    %13 = vector.load %arg3[%c0_16, %c0_17] : memref<128x512xf32, #tpu.memory_space<vmem>>, vector<128x512xf32>
    %c0_18 = arith.constant 0 : index
    %c0_19 = arith.constant 0 : index
    %14 = vector.load %arg5[%c0_18, %c0_19] : memref<256x512xf32, #tpu.memory_space<vmem>>, vector<256x512xf32>
    %c0_20 = arith.constant 0 : index
    %c0_21 = arith.constant 0 : index
    %15 = vector.load %arg6[%c0_20, %c0_21] : memref<1x512xf32, #tpu.memory_space<vmem>>, vector<1x512xf32>
    %c0_i32 = arith.constant 0 : i32
    %c8_i32 = arith.constant 8 : i32
    %16 = arith.muli %c0_i32, %c8_i32 : i32
    %17 = tpu.assume_multiple %16, 8 : i32
    %18 = arith.index_cast %17 : i32 to index
    %c0_22 = arith.constant 0 : index
    %19 = vector.load %arg10[%18, %c0_22] : memref<64x512xf32, #tpu.memory_space<vmem>>, vector<8x512xf32>
    %c0_23 = arith.constant 0 : index
    %c0_24 = arith.constant 0 : index
    %20 = vector.load %arg11[%c0_23, %c0_24] : memref<8x256xf32, #tpu.memory_space<vmem>>, vector<8x128xf32>
    %cst_25 = arith.constant dense<0.000000e+00> : vector<8x512xf32>
    %21 = tpu.matmul %20, %13, %cst_25 {dimension_numbers = #tpu.dot_dimension_numbers<[1], [0], [0], [1], [0, 0, 1, 1], [], []>} : vector<8x128xf32>, vector<128x512xf32>, vector<8x512xf32> -> vector<8x512xf32>
    %22 = arith.addf %19, %21 : vector<8x512xf32>
    %c0_26 = arith.constant 0 : index
    %c0_27 = arith.constant 0 : index
    %23 = vector.load %arg12[%c0_26, %c0_27] : memref<8x128xf32, #tpu.memory_space<vmem>>, vector<8x128xf32>
    %24 = vector.extract_strided_slice %22 {offsets = [0, 0], sizes = [8, 384], strides = [1, 1]} : vector<8x512xf32> to vector<8x384xf32>
    %25 = arith.negf %24 : vector<8x384xf32>
    %26 = math.exp %25 : vector<8x384xf32>
    %cst_28 = arith.constant 1.000000e+00 : f32
    %27 = vector.broadcast %cst_28 : f32 to vector<8x384xf32>
    %28 = arith.addf %27, %26 : vector<8x384xf32>
    %29 = arith.divf %27, %28 : vector<8x384xf32>
    %30 = vector.extract_strided_slice %29 {offsets = [0, 0], sizes = [8, 128], strides = [1, 1]} : vector<8x384xf32> to vector<8x128xf32>
    %31 = vector.extract_strided_slice %29 {offsets = [0, 128], sizes = [8, 128], strides = [1, 1]} : vector<8x384xf32> to vector<8x128xf32>
    %32 = vector.extract_strided_slice %29 {offsets = [0, 256], sizes = [8, 128], strides = [1, 1]} : vector<8x384xf32> to vector<8x128xf32>
    %33 = vector.extract_strided_slice %22 {offsets = [0, 384], sizes = [8, 128], strides = [1, 1]} : vector<8x512xf32> to vector<8x128xf32>
    %34 = math.tanh %33 : vector<8x128xf32>
    %35 = arith.mulf %31, %23 : vector<8x128xf32>
    %36 = arith.mulf %30, %34 : vector<8x128xf32>
    %37 = arith.addf %35, %36 : vector<8x128xf32>
    %38 = math.tanh %37 : vector<8x128xf32>
    %39 = arith.mulf %32, %38 : vector<8x128xf32>
    %c0_29 = arith.constant 0 : index
    %c0_30 = arith.constant 0 : index
    %40 = vector.load %arg12[%c0_29, %c0_30] : memref<8x128xf32, #tpu.memory_space<vmem>>, vector<8x128xf32>
    tpu.vector_store %arg12[%c0_29, %c0_30], %37 {strides = array<i32>} : memref<8x128xf32, #tpu.memory_space<vmem>>, vector<8x128xf32>,
    %c0_31 = arith.constant 0 : index
    %c0_32 = arith.constant 0 : index
    %41 = vector.load %arg11[%c0_31, %c0_32] : memref<8x256xf32, #tpu.memory_space<vmem>>, vector<8x128xf32>
    tpu.vector_store %arg11[%c0_31, %c0_32], %39 {strides = array<i32>} : memref<8x256xf32, #tpu.memory_space<vmem>>, vector<8x128xf32>,
    %c0_33 = arith.constant 0 : index
    %c0_34 = arith.constant 0 : index
    %42 = vector.load %arg11[%c0_33, %c0_34] : memref<8x256xf32, #tpu.memory_space<vmem>>, vector<8x256xf32>
    %cst_35 = arith.constant dense<0.000000e+00> : vector<8x512xf32>
    %43 = tpu.matmul %42, %14, %cst_35 {dimension_numbers = #tpu.dot_dimension_numbers<[1], [0], [0], [1], [0, 0, 1, 1], [], []>} : vector<8x256xf32>, vector<256x512xf32>, vector<8x512xf32> -> vector<8x512xf32>
    %44 = vector.broadcast %15 : vector<1x512xf32> to vector<8x512xf32>
    %45 = arith.addf %43, %44 : vector<8x512xf32>
    %c0_36 = arith.constant 0 : index
    %c0_37 = arith.constant 0 : index
    %46 = vector.load %arg13[%c0_36, %c0_37] : memref<8x128xf32, #tpu.memory_space<vmem>>, vector<8x128xf32>
    %47 = vector.extract_strided_slice %45 {offsets = [0, 0], sizes = [8, 384], strides = [1, 1]} : vector<8x512xf32> to vector<8x384xf32>
    %48 = arith.negf %47 : vector<8x384xf32>
    %49 = math.exp %48 : vector<8x384xf32>
    %cst_38 = arith.constant 1.000000e+00 : f32
    %50 = vector.broadcast %cst_38 : f32 to vector<8x384xf32>
    %51 = arith.addf %50, %49 : vector<8x384xf32>
    %52 = arith.divf %50, %51 : vector<8x384xf32>
    %53 = vector.extract_strided_slice %52 {offsets = [0, 0], sizes = [8, 128], strides = [1, 1]} : vector<8x384xf32> to vector<8x128xf32>
    %54 = vector.extract_strided_slice %52 {offsets = [0, 128], sizes = [8, 128], strides = [1, 1]} : vector<8x384xf32> to vector<8x128xf32>
    %55 = vector.extract_strided_slice %52 {offsets = [0, 256], sizes = [8, 128], strides = [1, 1]} : vector<8x384xf32> to vector<8x128xf32>
    %56 = vector.extract_strided_slice %45 {offsets = [0, 384], sizes = [8, 128], strides = [1, 1]} : vector<8x512xf32> to vector<8x128xf32>
    %57 = math.tanh %56 : vector<8x128xf32>
    %58 = arith.mulf %54, %46 : vector<8x128xf32>
    %59 = arith.mulf %53, %57 : vector<8x128xf32>
    %60 = arith.addf %58, %59 : vector<8x128xf32>
    %61 = math.tanh %60 : vector<8x128xf32>
    %62 = arith.mulf %55, %61 : vector<8x128xf32>
    %c0_39 = arith.constant 0 : index
    %c0_40 = arith.constant 0 : index
    %63 = vector.load %arg13[%c0_39, %c0_40] : memref<8x128xf32, #tpu.memory_space<vmem>>, vector<8x128xf32>
    tpu.vector_store %arg13[%c0_39, %c0_40], %60 {strides = array<i32>} : memref<8x128xf32, #tpu.memory_space<vmem>>, vector<8x128xf32>,
    %c0_41 = arith.constant 0 : index
    %c128 = arith.constant 128 : index
    %64 = vector.load %arg11[%c0_41, %c128] : memref<8x256xf32, #tpu.memory_space<vmem>>, vector<8x128xf32>
    tpu.vector_store %arg11[%c0_41, %c128], %62 {strides = array<i32>} : memref<8x256xf32, #tpu.memory_space<vmem>>, vector<8x128xf32>,
    %c1_i32 = arith.constant 1 : i32
    %c8_i32_42 = arith.constant 8 : i32
    %65 = arith.muli %c1_i32, %c8_i32_42 : i32
    %66 = tpu.assume_multiple %65, 8 : i32
    %67 = arith.index_cast %66 : i32 to index
    %c0_43 = arith.constant 0 : index
    %68 = vector.load %arg10[%67, %c0_43] : memref<64x512xf32, #tpu.memory_space<vmem>>, vector<8x512xf32>
    %c0_44 = arith.constant 0 : index
    %c0_45 = arith.constant 0 : index
    %69 = vector.load %arg11[%c0_44, %c0_45] : memref<8x256xf32, #tpu.memory_space<vmem>>, vector<8x128xf32>
    %cst_46 = arith.constant dense<0.000000e+00> : vector<8x512xf32>
    %70 = tpu.matmul %69, %13, %cst_46 {dimension_numbers = #tpu.dot_dimension_numbers<[1], [0], [0], [1], [0, 0, 1, 1], [], []>} : vector<8x128xf32>, vector<128x512xf32>, vector<8x512xf32> -> vector<8x512xf32>
    %71 = arith.addf %68, %70 : vector<8x512xf32>
    %c0_47 = arith.constant 0 : index
    %c0_48 = arith.constant 0 : index
    %72 = vector.load %arg12[%c0_47, %c0_48] : memref<8x128xf32, #tpu.memory_space<vmem>>, vector<8x128xf32>
    %73 = vector.extract_strided_slice %71 {offsets = [0, 0], sizes = [8, 384], strides = [1, 1]} : vector<8x512xf32> to vector<8x384xf32>
    %74 = arith.negf %73 : vector<8x384xf32>
    %75 = math.exp %74 : vector<8x384xf32>
    %cst_49 = arith.constant 1.000000e+00 : f32
    %76 = vector.broadcast %cst_49 : f32 to vector<8x384xf32>
    %77 = arith.addf %76, %75 : vector<8x384xf32>
    %78 = arith.divf %76, %77 : vector<8x384xf32>
    %79 = vector.extract_strided_slice %78 {offsets = [0, 0], sizes = [8, 128], strides = [1, 1]} : vector<8x384xf32> to vector<8x128xf32>
    %80 = vector.extract_strided_slice %78 {offsets = [0, 128], sizes = [8, 128], strides = [1, 1]} : vector<8x384xf32> to vector<8x128xf32>
    %81 = vector.extract_strided_slice %78 {offsets = [0, 256], sizes = [8, 128], strides = [1, 1]} : vector<8x384xf32> to vector<8x128xf32>
    %82 = vector.extract_strided_slice %71 {offsets = [0, 384], sizes = [8, 128], strides = [1, 1]} : vector<8x512xf32> to vector<8x128xf32>
    %83 = math.tanh %82 : vector<8x128xf32>
    %84 = arith.mulf %80, %72 : vector<8x128xf32>
    %85 = arith.mulf %79, %83 : vector<8x128xf32>
    %86 = arith.addf %84, %85 : vector<8x128xf32>
    %87 = math.tanh %86 : vector<8x128xf32>
    %88 = arith.mulf %81, %87 : vector<8x128xf32>
    %c0_50 = arith.constant 0 : index
    %c0_51 = arith.constant 0 : index
    %89 = vector.load %arg12[%c0_50, %c0_51] : memref<8x128xf32, #tpu.memory_space<vmem>>, vector<8x128xf32>
    tpu.vector_store %arg12[%c0_50, %c0_51], %86 {strides = array<i32>} : memref<8x128xf32, #tpu.memory_space<vmem>>, vector<8x128xf32>,
    %c0_52 = arith.constant 0 : index
    %c0_53 = arith.constant 0 : index
    %90 = vector.load %arg11[%c0_52, %c0_53] : memref<8x256xf32, #tpu.memory_space<vmem>>, vector<8x128xf32>
    tpu.vector_store %arg11[%c0_52, %c0_53], %88 {strides = array<i32>} : memref<8x256xf32, #tpu.memory_space<vmem>>, vector<8x128xf32>,
    %c0_54 = arith.constant 0 : index
    %c0_55 = arith.constant 0 : index
    %91 = vector.load %arg11[%c0_54, %c0_55] : memref<8x256xf32, #tpu.memory_space<vmem>>, vector<8x256xf32>
    %cst_56 = arith.constant dense<0.000000e+00> : vector<8x512xf32>
    %92 = tpu.matmul %91, %14, %cst_56 {dimension_numbers = #tpu.dot_dimension_numbers<[1], [0], [0], [1], [0, 0, 1, 1], [], []>} : vector<8x256xf32>, vector<256x512xf32>, vector<8x512xf32> -> vector<8x512xf32>
    %93 = vector.broadcast %15 : vector<1x512xf32> to vector<8x512xf32>
    %94 = arith.addf %92, %93 : vector<8x512xf32>
    %c0_57 = arith.constant 0 : index
    %c0_58 = arith.constant 0 : index
    %95 = vector.load %arg13[%c0_57, %c0_58] : memref<8x128xf32, #tpu.memory_space<vmem>>, vector<8x128xf32>
    %96 = vector.extract_strided_slice %94 {offsets = [0, 0], sizes = [8, 384], strides = [1, 1]} : vector<8x512xf32> to vector<8x384xf32>
    %97 = arith.negf %96 : vector<8x384xf32>
    %98 = math.exp %97 : vector<8x384xf32>
    %cst_59 = arith.constant 1.000000e+00 : f32
    %99 = vector.broadcast %cst_59 : f32 to vector<8x384xf32>
    %100 = arith.addf %99, %98 : vector<8x384xf32>
    %101 = arith.divf %99, %100 : vector<8x384xf32>
    %102 = vector.extract_strided_slice %101 {offsets = [0, 0], sizes = [8, 128], strides = [1, 1]} : vector<8x384xf32> to vector<8x128xf32>
    %103 = vector.extract_strided_slice %101 {offsets = [0, 128], sizes = [8, 128], strides = [1, 1]} : vector<8x384xf32> to vector<8x128xf32>
    %104 = vector.extract_strided_slice %101 {offsets = [0, 256], sizes = [8, 128], strides = [1, 1]} : vector<8x384xf32> to vector<8x128xf32>
    %105 = vector.extract_strided_slice %94 {offsets = [0, 384], sizes = [8, 128], strides = [1, 1]} : vector<8x512xf32> to vector<8x128xf32>
    %106 = math.tanh %105 : vector<8x128xf32>
    %107 = arith.mulf %103, %95 : vector<8x128xf32>
    %108 = arith.mulf %102, %106 : vector<8x128xf32>
    %109 = arith.addf %107, %108 : vector<8x128xf32>
    %110 = math.tanh %109 : vector<8x128xf32>
    %111 = arith.mulf %104, %110 : vector<8x128xf32>
    %c0_60 = arith.constant 0 : index
    %c0_61 = arith.constant 0 : index
    %112 = vector.load %arg13[%c0_60, %c0_61] : memref<8x128xf32, #tpu.memory_space<vmem>>, vector<8x128xf32>
    tpu.vector_store %arg13[%c0_60, %c0_61], %109 {strides = array<i32>} : memref<8x128xf32, #tpu.memory_space<vmem>>, vector<8x128xf32>,
    %c0_62 = arith.constant 0 : index
    %c128_63 = arith.constant 128 : index
    %113 = vector.load %arg11[%c0_62, %c128_63] : memref<8x256xf32, #tpu.memory_space<vmem>>, vector<8x128xf32>
    tpu.vector_store %arg11[%c0_62, %c128_63], %111 {strides = array<i32>} : memref<8x256xf32, #tpu.memory_space<vmem>>, vector<8x128xf32>,
    %c2_i32 = arith.constant 2 : i32
    %c8_i32_64 = arith.constant 8 : i32
    %114 = arith.muli %c2_i32, %c8_i32_64 : i32
    %115 = tpu.assume_multiple %114, 8 : i32
    %116 = arith.index_cast %115 : i32 to index
    %c0_65 = arith.constant 0 : index
    %117 = vector.load %arg10[%116, %c0_65] : memref<64x512xf32, #tpu.memory_space<vmem>>, vector<8x512xf32>
    %c0_66 = arith.constant 0 : index
    %c0_67 = arith.constant 0 : index
    %118 = vector.load %arg11[%c0_66, %c0_67] : memref<8x256xf32, #tpu.memory_space<vmem>>, vector<8x128xf32>
    %cst_68 = arith.constant dense<0.000000e+00> : vector<8x512xf32>
    %119 = tpu.matmul %118, %13, %cst_68 {dimension_numbers = #tpu.dot_dimension_numbers<[1], [0], [0], [1], [0, 0, 1, 1], [], []>} : vector<8x128xf32>, vector<128x512xf32>, vector<8x512xf32> -> vector<8x512xf32>
    %120 = arith.addf %117, %119 : vector<8x512xf32>
    %c0_69 = arith.constant 0 : index
    %c0_70 = arith.constant 0 : index
    %121 = vector.load %arg12[%c0_69, %c0_70] : memref<8x128xf32, #tpu.memory_space<vmem>>, vector<8x128xf32>
    %122 = vector.extract_strided_slice %120 {offsets = [0, 0], sizes = [8, 384], strides = [1, 1]} : vector<8x512xf32> to vector<8x384xf32>
    %123 = arith.negf %122 : vector<8x384xf32>
    %124 = math.exp %123 : vector<8x384xf32>
    %cst_71 = arith.constant 1.000000e+00 : f32
    %125 = vector.broadcast %cst_71 : f32 to vector<8x384xf32>
    %126 = arith.addf %125, %124 : vector<8x384xf32>
    %127 = arith.divf %125, %126 : vector<8x384xf32>
    %128 = vector.extract_strided_slice %127 {offsets = [0, 0], sizes = [8, 128], strides = [1, 1]} : vector<8x384xf32> to vector<8x128xf32>
    %129 = vector.extract_strided_slice %127 {offsets = [0, 128], sizes = [8, 128], strides = [1, 1]} : vector<8x384xf32> to vector<8x128xf32>
    %130 = vector.extract_strided_slice %127 {offsets = [0, 256], sizes = [8, 128], strides = [1, 1]} : vector<8x384xf32> to vector<8x128xf32>
    %131 = vector.extract_strided_slice %120 {offsets = [0, 384], sizes = [8, 128], strides = [1, 1]} : vector<8x512xf32> to vector<8x128xf32>
    %132 = math.tanh %131 : vector<8x128xf32>
    %133 = arith.mulf %129, %121 : vector<8x128xf32>
    %134 = arith.mulf %128, %132 : vector<8x128xf32>
    %135 = arith.addf %133, %134 : vector<8x128xf32>
    %136 = math.tanh %135 : vector<8x128xf32>
    %137 = arith.mulf %130, %136 : vector<8x128xf32>
    %c0_72 = arith.constant 0 : index
    %c0_73 = arith.constant 0 : index
    %138 = vector.load %arg12[%c0_72, %c0_73] : memref<8x128xf32, #tpu.memory_space<vmem>>, vector<8x128xf32>
    tpu.vector_store %arg12[%c0_72, %c0_73], %135 {strides = array<i32>} : memref<8x128xf32, #tpu.memory_space<vmem>>, vector<8x128xf32>,
    %c0_74 = arith.constant 0 : index
    %c0_75 = arith.constant 0 : index
    %139 = vector.load %arg11[%c0_74, %c0_75] : memref<8x256xf32, #tpu.memory_space<vmem>>, vector<8x128xf32>
    tpu.vector_store %arg11[%c0_74, %c0_75], %137 {strides = array<i32>} : memref<8x256xf32, #tpu.memory_space<vmem>>, vector<8x128xf32>,
    %c0_76 = arith.constant 0 : index
    %c0_77 = arith.constant 0 : index
    %140 = vector.load %arg11[%c0_76, %c0_77] : memref<8x256xf32, #tpu.memory_space<vmem>>, vector<8x256xf32>
    %cst_78 = arith.constant dense<0.000000e+00> : vector<8x512xf32>
    %141 = tpu.matmul %140, %14, %cst_78 {dimension_numbers = #tpu.dot_dimension_numbers<[1], [0], [0], [1], [0, 0, 1, 1], [], []>} : vector<8x256xf32>, vector<256x512xf32>, vector<8x512xf32> -> vector<8x512xf32>
    %142 = vector.broadcast %15 : vector<1x512xf32> to vector<8x512xf32>
    %143 = arith.addf %141, %142 : vector<8x512xf32>
    %c0_79 = arith.constant 0 : index
    %c0_80 = arith.constant 0 : index
    %144 = vector.load %arg13[%c0_79, %c0_80] : memref<8x128xf32, #tpu.memory_space<vmem>>, vector<8x128xf32>
    %145 = vector.extract_strided_slice %143 {offsets = [0, 0], sizes = [8, 384], strides = [1, 1]} : vector<8x512xf32> to vector<8x384xf32>
    %146 = arith.negf %145 : vector<8x384xf32>
    %147 = math.exp %146 : vector<8x384xf32>
    %cst_81 = arith.constant 1.000000e+00 : f32
    %148 = vector.broadcast %cst_81 : f32 to vector<8x384xf32>
    %149 = arith.addf %148, %147 : vector<8x384xf32>
    %150 = arith.divf %148, %149 : vector<8x384xf32>
    %151 = vector.extract_strided_slice %150 {offsets = [0, 0], sizes = [8, 128], strides = [1, 1]} : vector<8x384xf32> to vector<8x128xf32>
    %152 = vector.extract_strided_slice %150 {offsets = [0, 128], sizes = [8, 128], strides = [1, 1]} : vector<8x384xf32> to vector<8x128xf32>
    %153 = vector.extract_strided_slice %150 {offsets = [0, 256], sizes = [8, 128], strides = [1, 1]} : vector<8x384xf32> to vector<8x128xf32>
    %154 = vector.extract_strided_slice %143 {offsets = [0, 384], sizes = [8, 128], strides = [1, 1]} : vector<8x512xf32> to vector<8x128xf32>
    %155 = math.tanh %154 : vector<8x128xf32>
    %156 = arith.mulf %152, %144 : vector<8x128xf32>
    %157 = arith.mulf %151, %155 : vector<8x128xf32>
    %158 = arith.addf %156, %157 : vector<8x128xf32>
    %159 = math.tanh %158 : vector<8x128xf32>
    %160 = arith.mulf %153, %159 : vector<8x128xf32>
    %c0_82 = arith.constant 0 : index
    %c0_83 = arith.constant 0 : index
    %161 = vector.load %arg13[%c0_82, %c0_83] : memref<8x128xf32, #tpu.memory_space<vmem>>, vector<8x128xf32>
    tpu.vector_store %arg13[%c0_82, %c0_83], %158 {strides = array<i32>} : memref<8x128xf32, #tpu.memory_space<vmem>>, vector<8x128xf32>,
    %c0_84 = arith.constant 0 : index
    %c128_85 = arith.constant 128 : index
    %162 = vector.load %arg11[%c0_84, %c128_85] : memref<8x256xf32, #tpu.memory_space<vmem>>, vector<8x128xf32>
    tpu.vector_store %arg11[%c0_84, %c128_85], %160 {strides = array<i32>} : memref<8x256xf32, #tpu.memory_space<vmem>>, vector<8x128xf32>,
    %c3_i32 = arith.constant 3 : i32
    %c8_i32_86 = arith.constant 8 : i32
    %163 = arith.muli %c3_i32, %c8_i32_86 : i32
    %164 = tpu.assume_multiple %163, 8 : i32
    %165 = arith.index_cast %164 : i32 to index
    %c0_87 = arith.constant 0 : index
    %166 = vector.load %arg10[%165, %c0_87] : memref<64x512xf32, #tpu.memory_space<vmem>>, vector<8x512xf32>
    %c0_88 = arith.constant 0 : index
    %c0_89 = arith.constant 0 : index
    %167 = vector.load %arg11[%c0_88, %c0_89] : memref<8x256xf32, #tpu.memory_space<vmem>>, vector<8x128xf32>
    %cst_90 = arith.constant dense<0.000000e+00> : vector<8x512xf32>
    %168 = tpu.matmul %167, %13, %cst_90 {dimension_numbers = #tpu.dot_dimension_numbers<[1], [0], [0], [1], [0, 0, 1, 1], [], []>} : vector<8x128xf32>, vector<128x512xf32>, vector<8x512xf32> -> vector<8x512xf32>
    %169 = arith.addf %166, %168 : vector<8x512xf32>
    %c0_91 = arith.constant 0 : index
    %c0_92 = arith.constant 0 : index
    %170 = vector.load %arg12[%c0_91, %c0_92] : memref<8x128xf32, #tpu.memory_space<vmem>>, vector<8x128xf32>
    %171 = vector.extract_strided_slice %169 {offsets = [0, 0], sizes = [8, 384], strides = [1, 1]} : vector<8x512xf32> to vector<8x384xf32>
    %172 = arith.negf %171 : vector<8x384xf32>
    %173 = math.exp %172 : vector<8x384xf32>
    %cst_93 = arith.constant 1.000000e+00 : f32
    %174 = vector.broadcast %cst_93 : f32 to vector<8x384xf32>
    %175 = arith.addf %174, %173 : vector<8x384xf32>
    %176 = arith.divf %174, %175 : vector<8x384xf32>
    %177 = vector.extract_strided_slice %176 {offsets = [0, 0], sizes = [8, 128], strides = [1, 1]} : vector<8x384xf32> to vector<8x128xf32>
    %178 = vector.extract_strided_slice %176 {offsets = [0, 128], sizes = [8, 128], strides = [1, 1]} : vector<8x384xf32> to vector<8x128xf32>
    %179 = vector.extract_strided_slice %176 {offsets = [0, 256], sizes = [8, 128], strides = [1, 1]} : vector<8x384xf32> to vector<8x128xf32>
    %180 = vector.extract_strided_slice %169 {offsets = [0, 384], sizes = [8, 128], strides = [1, 1]} : vector<8x512xf32> to vector<8x128xf32>
    %181 = math.tanh %180 : vector<8x128xf32>
    %182 = arith.mulf %178, %170 : vector<8x128xf32>
    %183 = arith.mulf %177, %181 : vector<8x128xf32>
    %184 = arith.addf %182, %183 : vector<8x128xf32>
    %185 = math.tanh %184 : vector<8x128xf32>
    %186 = arith.mulf %179, %185 : vector<8x128xf32>
    %c0_94 = arith.constant 0 : index
    %c0_95 = arith.constant 0 : index
    %187 = vector.load %arg12[%c0_94, %c0_95] : memref<8x128xf32, #tpu.memory_space<vmem>>, vector<8x128xf32>
    tpu.vector_store %arg12[%c0_94, %c0_95], %184 {strides = array<i32>} : memref<8x128xf32, #tpu.memory_space<vmem>>, vector<8x128xf32>,
    %c0_96 = arith.constant 0 : index
    %c0_97 = arith.constant 0 : index
    %188 = vector.load %arg11[%c0_96, %c0_97] : memref<8x256xf32, #tpu.memory_space<vmem>>, vector<8x128xf32>
    tpu.vector_store %arg11[%c0_96, %c0_97], %186 {strides = array<i32>} : memref<8x256xf32, #tpu.memory_space<vmem>>, vector<8x128xf32>,
    %c0_98 = arith.constant 0 : index
    %c0_99 = arith.constant 0 : index
    %189 = vector.load %arg11[%c0_98, %c0_99] : memref<8x256xf32, #tpu.memory_space<vmem>>, vector<8x256xf32>
    %cst_100 = arith.constant dense<0.000000e+00> : vector<8x512xf32>
    %190 = tpu.matmul %189, %14, %cst_100 {dimension_numbers = #tpu.dot_dimension_numbers<[1], [0], [0], [1], [0, 0, 1, 1], [], []>} : vector<8x256xf32>, vector<256x512xf32>, vector<8x512xf32> -> vector<8x512xf32>
    %191 = vector.broadcast %15 : vector<1x512xf32> to vector<8x512xf32>
    %192 = arith.addf %190, %191 : vector<8x512xf32>
    %c0_101 = arith.constant 0 : index
    %c0_102 = arith.constant 0 : index
    %193 = vector.load %arg13[%c0_101, %c0_102] : memref<8x128xf32, #tpu.memory_space<vmem>>, vector<8x128xf32>
    %194 = vector.extract_strided_slice %192 {offsets = [0, 0], sizes = [8, 384], strides = [1, 1]} : vector<8x512xf32> to vector<8x384xf32>
    %195 = arith.negf %194 : vector<8x384xf32>
    %196 = math.exp %195 : vector<8x384xf32>
    %cst_103 = arith.constant 1.000000e+00 : f32
    %197 = vector.broadcast %cst_103 : f32 to vector<8x384xf32>
    %198 = arith.addf %197, %196 : vector<8x384xf32>
    %199 = arith.divf %197, %198 : vector<8x384xf32>
    %200 = vector.extract_strided_slice %199 {offsets = [0, 0], sizes = [8, 128], strides = [1, 1]} : vector<8x384xf32> to vector<8x128xf32>
    %201 = vector.extract_strided_slice %199 {offsets = [0, 128], sizes = [8, 128], strides = [1, 1]} : vector<8x384xf32> to vector<8x128xf32>
    %202 = vector.extract_strided_slice %199 {offsets = [0, 256], sizes = [8, 128], strides = [1, 1]} : vector<8x384xf32> to vector<8x128xf32>
    %203 = vector.extract_strided_slice %192 {offsets = [0, 384], sizes = [8, 128], strides = [1, 1]} : vector<8x512xf32> to vector<8x128xf32>
    %204 = math.tanh %203 : vector<8x128xf32>
    %205 = arith.mulf %201, %193 : vector<8x128xf32>
    %206 = arith.mulf %200, %204 : vector<8x128xf32>
    %207 = arith.addf %205, %206 : vector<8x128xf32>
    %208 = math.tanh %207 : vector<8x128xf32>
    %209 = arith.mulf %202, %208 : vector<8x128xf32>
    %c0_104 = arith.constant 0 : index
    %c0_105 = arith.constant 0 : index
    %210 = vector.load %arg13[%c0_104, %c0_105] : memref<8x128xf32, #tpu.memory_space<vmem>>, vector<8x128xf32>
    tpu.vector_store %arg13[%c0_104, %c0_105], %207 {strides = array<i32>} : memref<8x128xf32, #tpu.memory_space<vmem>>, vector<8x128xf32>,
    %c0_106 = arith.constant 0 : index
    %c128_107 = arith.constant 128 : index
    %211 = vector.load %arg11[%c0_106, %c128_107] : memref<8x256xf32, #tpu.memory_space<vmem>>, vector<8x128xf32>
    tpu.vector_store %arg11[%c0_106, %c128_107], %209 {strides = array<i32>} : memref<8x256xf32, #tpu.memory_space<vmem>>, vector<8x128xf32>,
    %c4_i32 = arith.constant 4 : i32
    %c8_i32_108 = arith.constant 8 : i32
    %212 = arith.muli %c4_i32, %c8_i32_108 : i32
    %213 = tpu.assume_multiple %212, 8 : i32
    %214 = arith.index_cast %213 : i32 to index
    %c0_109 = arith.constant 0 : index
    %215 = vector.load %arg10[%214, %c0_109] : memref<64x512xf32, #tpu.memory_space<vmem>>, vector<8x512xf32>
    %c0_110 = arith.constant 0 : index
    %c0_111 = arith.constant 0 : index
    %216 = vector.load %arg11[%c0_110, %c0_111] : memref<8x256xf32, #tpu.memory_space<vmem>>, vector<8x128xf32>
    %cst_112 = arith.constant dense<0.000000e+00> : vector<8x512xf32>
    %217 = tpu.matmul %216, %13, %cst_112 {dimension_numbers = #tpu.dot_dimension_numbers<[1], [0], [0], [1], [0, 0, 1, 1], [], []>} : vector<8x128xf32>, vector<128x512xf32>, vector<8x512xf32> -> vector<8x512xf32>
    %218 = arith.addf %215, %217 : vector<8x512xf32>
    %c0_113 = arith.constant 0 : index
    %c0_114 = arith.constant 0 : index
    %219 = vector.load %arg12[%c0_113, %c0_114] : memref<8x128xf32, #tpu.memory_space<vmem>>, vector<8x128xf32>
    %220 = vector.extract_strided_slice %218 {offsets = [0, 0], sizes = [8, 384], strides = [1, 1]} : vector<8x512xf32> to vector<8x384xf32>
    %221 = arith.negf %220 : vector<8x384xf32>
    %222 = math.exp %221 : vector<8x384xf32>
    %cst_115 = arith.constant 1.000000e+00 : f32
    %223 = vector.broadcast %cst_115 : f32 to vector<8x384xf32>
    %224 = arith.addf %223, %222 : vector<8x384xf32>
    %225 = arith.divf %223, %224 : vector<8x384xf32>
    %226 = vector.extract_strided_slice %225 {offsets = [0, 0], sizes = [8, 128], strides = [1, 1]} : vector<8x384xf32> to vector<8x128xf32>
    %227 = vector.extract_strided_slice %225 {offsets = [0, 128], sizes = [8, 128], strides = [1, 1]} : vector<8x384xf32> to vector<8x128xf32>
    %228 = vector.extract_strided_slice %225 {offsets = [0, 256], sizes = [8, 128], strides = [1, 1]} : vector<8x384xf32> to vector<8x128xf32>
    %229 = vector.extract_strided_slice %218 {offsets = [0, 384], sizes = [8, 128], strides = [1, 1]} : vector<8x512xf32> to vector<8x128xf32>
    %230 = math.tanh %229 : vector<8x128xf32>
    %231 = arith.mulf %227, %219 : vector<8x128xf32>
    %232 = arith.mulf %226, %230 : vector<8x128xf32>
    %233 = arith.addf %231, %232 : vector<8x128xf32>
    %234 = math.tanh %233 : vector<8x128xf32>
    %235 = arith.mulf %228, %234 : vector<8x128xf32>
    %c0_116 = arith.constant 0 : index
    %c0_117 = arith.constant 0 : index
    %236 = vector.load %arg12[%c0_116, %c0_117] : memref<8x128xf32, #tpu.memory_space<vmem>>, vector<8x128xf32>
    tpu.vector_store %arg12[%c0_116, %c0_117], %233 {strides = array<i32>} : memref<8x128xf32, #tpu.memory_space<vmem>>, vector<8x128xf32>,
    %c0_118 = arith.constant 0 : index
    %c0_119 = arith.constant 0 : index
    %237 = vector.load %arg11[%c0_118, %c0_119] : memref<8x256xf32, #tpu.memory_space<vmem>>, vector<8x128xf32>
    tpu.vector_store %arg11[%c0_118, %c0_119], %235 {strides = array<i32>} : memref<8x256xf32, #tpu.memory_space<vmem>>, vector<8x128xf32>,
    %c0_120 = arith.constant 0 : index
    %c0_121 = arith.constant 0 : index
    %238 = vector.load %arg11[%c0_120, %c0_121] : memref<8x256xf32, #tpu.memory_space<vmem>>, vector<8x256xf32>
    %cst_122 = arith.constant dense<0.000000e+00> : vector<8x512xf32>
    %239 = tpu.matmul %238, %14, %cst_122 {dimension_numbers = #tpu.dot_dimension_numbers<[1], [0], [0], [1], [0, 0, 1, 1], [], []>} : vector<8x256xf32>, vector<256x512xf32>, vector<8x512xf32> -> vector<8x512xf32>
    %240 = vector.broadcast %15 : vector<1x512xf32> to vector<8x512xf32>
    %241 = arith.addf %239, %240 : vector<8x512xf32>
    %c0_123 = arith.constant 0 : index
    %c0_124 = arith.constant 0 : index
    %242 = vector.load %arg13[%c0_123, %c0_124] : memref<8x128xf32, #tpu.memory_space<vmem>>, vector<8x128xf32>
    %243 = vector.extract_strided_slice %241 {offsets = [0, 0], sizes = [8, 384], strides = [1, 1]} : vector<8x512xf32> to vector<8x384xf32>
    %244 = arith.negf %243 : vector<8x384xf32>
    %245 = math.exp %244 : vector<8x384xf32>
    %cst_125 = arith.constant 1.000000e+00 : f32
    %246 = vector.broadcast %cst_125 : f32 to vector<8x384xf32>
    %247 = arith.addf %246, %245 : vector<8x384xf32>
    %248 = arith.divf %246, %247 : vector<8x384xf32>
    %249 = vector.extract_strided_slice %248 {offsets = [0, 0], sizes = [8, 128], strides = [1, 1]} : vector<8x384xf32> to vector<8x128xf32>
    %250 = vector.extract_strided_slice %248 {offsets = [0, 128], sizes = [8, 128], strides = [1, 1]} : vector<8x384xf32> to vector<8x128xf32>
    %251 = vector.extract_strided_slice %248 {offsets = [0, 256], sizes = [8, 128], strides = [1, 1]} : vector<8x384xf32> to vector<8x128xf32>
    %252 = vector.extract_strided_slice %241 {offsets = [0, 384], sizes = [8, 128], strides = [1, 1]} : vector<8x512xf32> to vector<8x128xf32>
    %253 = math.tanh %252 : vector<8x128xf32>
    %254 = arith.mulf %250, %242 : vector<8x128xf32>
    %255 = arith.mulf %249, %253 : vector<8x128xf32>
    %256 = arith.addf %254, %255 : vector<8x128xf32>
    %257 = math.tanh %256 : vector<8x128xf32>
    %258 = arith.mulf %251, %257 : vector<8x128xf32>
    %c0_126 = arith.constant 0 : index
    %c0_127 = arith.constant 0 : index
    %259 = vector.load %arg13[%c0_126, %c0_127] : memref<8x128xf32, #tpu.memory_space<vmem>>, vector<8x128xf32>
    tpu.vector_store %arg13[%c0_126, %c0_127], %256 {strides = array<i32>} : memref<8x128xf32, #tpu.memory_space<vmem>>, vector<8x128xf32>,
    %c0_128 = arith.constant 0 : index
    %c128_129 = arith.constant 128 : index
    %260 = vector.load %arg11[%c0_128, %c128_129] : memref<8x256xf32, #tpu.memory_space<vmem>>, vector<8x128xf32>
    tpu.vector_store %arg11[%c0_128, %c128_129], %258 {strides = array<i32>} : memref<8x256xf32, #tpu.memory_space<vmem>>, vector<8x128xf32>,
    %c5_i32 = arith.constant 5 : i32
    %c8_i32_130 = arith.constant 8 : i32
    %261 = arith.muli %c5_i32, %c8_i32_130 : i32
    %262 = tpu.assume_multiple %261, 8 : i32
    %263 = arith.index_cast %262 : i32 to index
    %c0_131 = arith.constant 0 : index
    %264 = vector.load %arg10[%263, %c0_131] : memref<64x512xf32, #tpu.memory_space<vmem>>, vector<8x512xf32>
    %c0_132 = arith.constant 0 : index
    %c0_133 = arith.constant 0 : index
    %265 = vector.load %arg11[%c0_132, %c0_133] : memref<8x256xf32, #tpu.memory_space<vmem>>, vector<8x128xf32>
    %cst_134 = arith.constant dense<0.000000e+00> : vector<8x512xf32>
    %266 = tpu.matmul %265, %13, %cst_134 {dimension_numbers = #tpu.dot_dimension_numbers<[1], [0], [0], [1], [0, 0, 1, 1], [], []>} : vector<8x128xf32>, vector<128x512xf32>, vector<8x512xf32> -> vector<8x512xf32>
    %267 = arith.addf %264, %266 : vector<8x512xf32>
    %c0_135 = arith.constant 0 : index
    %c0_136 = arith.constant 0 : index
    %268 = vector.load %arg12[%c0_135, %c0_136] : memref<8x128xf32, #tpu.memory_space<vmem>>, vector<8x128xf32>
    %269 = vector.extract_strided_slice %267 {offsets = [0, 0], sizes = [8, 384], strides = [1, 1]} : vector<8x512xf32> to vector<8x384xf32>
    %270 = arith.negf %269 : vector<8x384xf32>
    %271 = math.exp %270 : vector<8x384xf32>
    %cst_137 = arith.constant 1.000000e+00 : f32
    %272 = vector.broadcast %cst_137 : f32 to vector<8x384xf32>
    %273 = arith.addf %272, %271 : vector<8x384xf32>
    %274 = arith.divf %272, %273 : vector<8x384xf32>
    %275 = vector.extract_strided_slice %274 {offsets = [0, 0], sizes = [8, 128], strides = [1, 1]} : vector<8x384xf32> to vector<8x128xf32>
    %276 = vector.extract_strided_slice %274 {offsets = [0, 128], sizes = [8, 128], strides = [1, 1]} : vector<8x384xf32> to vector<8x128xf32>
    %277 = vector.extract_strided_slice %274 {offsets = [0, 256], sizes = [8, 128], strides = [1, 1]} : vector<8x384xf32> to vector<8x128xf32>
    %278 = vector.extract_strided_slice %267 {offsets = [0, 384], sizes = [8, 128], strides = [1, 1]} : vector<8x512xf32> to vector<8x128xf32>
    %279 = math.tanh %278 : vector<8x128xf32>
    %280 = arith.mulf %276, %268 : vector<8x128xf32>
    %281 = arith.mulf %275, %279 : vector<8x128xf32>
    %282 = arith.addf %280, %281 : vector<8x128xf32>
    %283 = math.tanh %282 : vector<8x128xf32>
    %284 = arith.mulf %277, %283 : vector<8x128xf32>
    %c0_138 = arith.constant 0 : index
    %c0_139 = arith.constant 0 : index
    %285 = vector.load %arg12[%c0_138, %c0_139] : memref<8x128xf32, #tpu.memory_space<vmem>>, vector<8x128xf32>
    tpu.vector_store %arg12[%c0_138, %c0_139], %282 {strides = array<i32>} : memref<8x128xf32, #tpu.memory_space<vmem>>, vector<8x128xf32>,
    %c0_140 = arith.constant 0 : index
    %c0_141 = arith.constant 0 : index
    %286 = vector.load %arg11[%c0_140, %c0_141] : memref<8x256xf32, #tpu.memory_space<vmem>>, vector<8x128xf32>
    tpu.vector_store %arg11[%c0_140, %c0_141], %284 {strides = array<i32>} : memref<8x256xf32, #tpu.memory_space<vmem>>, vector<8x128xf32>,
    %c0_142 = arith.constant 0 : index
    %c0_143 = arith.constant 0 : index
    %287 = vector.load %arg11[%c0_142, %c0_143] : memref<8x256xf32, #tpu.memory_space<vmem>>, vector<8x256xf32>
    %cst_144 = arith.constant dense<0.000000e+00> : vector<8x512xf32>
    %288 = tpu.matmul %287, %14, %cst_144 {dimension_numbers = #tpu.dot_dimension_numbers<[1], [0], [0], [1], [0, 0, 1, 1], [], []>} : vector<8x256xf32>, vector<256x512xf32>, vector<8x512xf32> -> vector<8x512xf32>
    %289 = vector.broadcast %15 : vector<1x512xf32> to vector<8x512xf32>
    %290 = arith.addf %288, %289 : vector<8x512xf32>
    %c0_145 = arith.constant 0 : index
    %c0_146 = arith.constant 0 : index
    %291 = vector.load %arg13[%c0_145, %c0_146] : memref<8x128xf32, #tpu.memory_space<vmem>>, vector<8x128xf32>
    %292 = vector.extract_strided_slice %290 {offsets = [0, 0], sizes = [8, 384], strides = [1, 1]} : vector<8x512xf32> to vector<8x384xf32>
    %293 = arith.negf %292 : vector<8x384xf32>
    %294 = math.exp %293 : vector<8x384xf32>
    %cst_147 = arith.constant 1.000000e+00 : f32
    %295 = vector.broadcast %cst_147 : f32 to vector<8x384xf32>
    %296 = arith.addf %295, %294 : vector<8x384xf32>
    %297 = arith.divf %295, %296 : vector<8x384xf32>
    %298 = vector.extract_strided_slice %297 {offsets = [0, 0], sizes = [8, 128], strides = [1, 1]} : vector<8x384xf32> to vector<8x128xf32>
    %299 = vector.extract_strided_slice %297 {offsets = [0, 128], sizes = [8, 128], strides = [1, 1]} : vector<8x384xf32> to vector<8x128xf32>
    %300 = vector.extract_strided_slice %297 {offsets = [0, 256], sizes = [8, 128], strides = [1, 1]} : vector<8x384xf32> to vector<8x128xf32>
    %301 = vector.extract_strided_slice %290 {offsets = [0, 384], sizes = [8, 128], strides = [1, 1]} : vector<8x512xf32> to vector<8x128xf32>
    %302 = math.tanh %301 : vector<8x128xf32>
    %303 = arith.mulf %299, %291 : vector<8x128xf32>
    %304 = arith.mulf %298, %302 : vector<8x128xf32>
    %305 = arith.addf %303, %304 : vector<8x128xf32>
    %306 = math.tanh %305 : vector<8x128xf32>
    %307 = arith.mulf %300, %306 : vector<8x128xf32>
    %c0_148 = arith.constant 0 : index
    %c0_149 = arith.constant 0 : index
    %308 = vector.load %arg13[%c0_148, %c0_149] : memref<8x128xf32, #tpu.memory_space<vmem>>, vector<8x128xf32>
    tpu.vector_store %arg13[%c0_148, %c0_149], %305 {strides = array<i32>} : memref<8x128xf32, #tpu.memory_space<vmem>>, vector<8x128xf32>,
    %c0_150 = arith.constant 0 : index
    %c128_151 = arith.constant 128 : index
    %309 = vector.load %arg11[%c0_150, %c128_151] : memref<8x256xf32, #tpu.memory_space<vmem>>, vector<8x128xf32>
    tpu.vector_store %arg11[%c0_150, %c128_151], %307 {strides = array<i32>} : memref<8x256xf32, #tpu.memory_space<vmem>>, vector<8x128xf32>,
    %c6_i32 = arith.constant 6 : i32
    %c8_i32_152 = arith.constant 8 : i32
    %310 = arith.muli %c6_i32, %c8_i32_152 : i32
    %311 = tpu.assume_multiple %310, 8 : i32
    %312 = arith.index_cast %311 : i32 to index
    %c0_153 = arith.constant 0 : index
    %313 = vector.load %arg10[%312, %c0_153] : memref<64x512xf32, #tpu.memory_space<vmem>>, vector<8x512xf32>
    %c0_154 = arith.constant 0 : index
    %c0_155 = arith.constant 0 : index
    %314 = vector.load %arg11[%c0_154, %c0_155] : memref<8x256xf32, #tpu.memory_space<vmem>>, vector<8x128xf32>
    %cst_156 = arith.constant dense<0.000000e+00> : vector<8x512xf32>
    %315 = tpu.matmul %314, %13, %cst_156 {dimension_numbers = #tpu.dot_dimension_numbers<[1], [0], [0], [1], [0, 0, 1, 1], [], []>} : vector<8x128xf32>, vector<128x512xf32>, vector<8x512xf32> -> vector<8x512xf32>
    %316 = arith.addf %313, %315 : vector<8x512xf32>
    %c0_157 = arith.constant 0 : index
    %c0_158 = arith.constant 0 : index
    %317 = vector.load %arg12[%c0_157, %c0_158] : memref<8x128xf32, #tpu.memory_space<vmem>>, vector<8x128xf32>
    %318 = vector.extract_strided_slice %316 {offsets = [0, 0], sizes = [8, 384], strides = [1, 1]} : vector<8x512xf32> to vector<8x384xf32>
    %319 = arith.negf %318 : vector<8x384xf32>
    %320 = math.exp %319 : vector<8x384xf32>
    %cst_159 = arith.constant 1.000000e+00 : f32
    %321 = vector.broadcast %cst_159 : f32 to vector<8x384xf32>
    %322 = arith.addf %321, %320 : vector<8x384xf32>
    %323 = arith.divf %321, %322 : vector<8x384xf32>
    %324 = vector.extract_strided_slice %323 {offsets = [0, 0], sizes = [8, 128], strides = [1, 1]} : vector<8x384xf32> to vector<8x128xf32>
    %325 = vector.extract_strided_slice %323 {offsets = [0, 128], sizes = [8, 128], strides = [1, 1]} : vector<8x384xf32> to vector<8x128xf32>
    %326 = vector.extract_strided_slice %323 {offsets = [0, 256], sizes = [8, 128], strides = [1, 1]} : vector<8x384xf32> to vector<8x128xf32>
    %327 = vector.extract_strided_slice %316 {offsets = [0, 384], sizes = [8, 128], strides = [1, 1]} : vector<8x512xf32> to vector<8x128xf32>
    %328 = math.tanh %327 : vector<8x128xf32>
    %329 = arith.mulf %325, %317 : vector<8x128xf32>
    %330 = arith.mulf %324, %328 : vector<8x128xf32>
    %331 = arith.addf %329, %330 : vector<8x128xf32>
    %332 = math.tanh %331 : vector<8x128xf32>
    %333 = arith.mulf %326, %332 : vector<8x128xf32>
    %c0_160 = arith.constant 0 : index
    %c0_161 = arith.constant 0 : index
    %334 = vector.load %arg12[%c0_160, %c0_161] : memref<8x128xf32, #tpu.memory_space<vmem>>, vector<8x128xf32>
    tpu.vector_store %arg12[%c0_160, %c0_161], %331 {strides = array<i32>} : memref<8x128xf32, #tpu.memory_space<vmem>>, vector<8x128xf32>,
    %c0_162 = arith.constant 0 : index
    %c0_163 = arith.constant 0 : index
    %335 = vector.load %arg11[%c0_162, %c0_163] : memref<8x256xf32, #tpu.memory_space<vmem>>, vector<8x128xf32>
    tpu.vector_store %arg11[%c0_162, %c0_163], %333 {strides = array<i32>} : memref<8x256xf32, #tpu.memory_space<vmem>>, vector<8x128xf32>,
    %c0_164 = arith.constant 0 : index
    %c0_165 = arith.constant 0 : index
    %336 = vector.load %arg11[%c0_164, %c0_165] : memref<8x256xf32, #tpu.memory_space<vmem>>, vector<8x256xf32>
    %cst_166 = arith.constant dense<0.000000e+00> : vector<8x512xf32>
    %337 = tpu.matmul %336, %14, %cst_166 {dimension_numbers = #tpu.dot_dimension_numbers<[1], [0], [0], [1], [0, 0, 1, 1], [], []>} : vector<8x256xf32>, vector<256x512xf32>, vector<8x512xf32> -> vector<8x512xf32>
    %338 = vector.broadcast %15 : vector<1x512xf32> to vector<8x512xf32>
    %339 = arith.addf %337, %338 : vector<8x512xf32>
    %c0_167 = arith.constant 0 : index
    %c0_168 = arith.constant 0 : index
    %340 = vector.load %arg13[%c0_167, %c0_168] : memref<8x128xf32, #tpu.memory_space<vmem>>, vector<8x128xf32>
    %341 = vector.extract_strided_slice %339 {offsets = [0, 0], sizes = [8, 384], strides = [1, 1]} : vector<8x512xf32> to vector<8x384xf32>
    %342 = arith.negf %341 : vector<8x384xf32>
    %343 = math.exp %342 : vector<8x384xf32>
    %cst_169 = arith.constant 1.000000e+00 : f32
    %344 = vector.broadcast %cst_169 : f32 to vector<8x384xf32>
    %345 = arith.addf %344, %343 : vector<8x384xf32>
    %346 = arith.divf %344, %345 : vector<8x384xf32>
    %347 = vector.extract_strided_slice %346 {offsets = [0, 0], sizes = [8, 128], strides = [1, 1]} : vector<8x384xf32> to vector<8x128xf32>
    %348 = vector.extract_strided_slice %346 {offsets = [0, 128], sizes = [8, 128], strides = [1, 1]} : vector<8x384xf32> to vector<8x128xf32>
    %349 = vector.extract_strided_slice %346 {offsets = [0, 256], sizes = [8, 128], strides = [1, 1]} : vector<8x384xf32> to vector<8x128xf32>
    %350 = vector.extract_strided_slice %339 {offsets = [0, 384], sizes = [8, 128], strides = [1, 1]} : vector<8x512xf32> to vector<8x128xf32>
    %351 = math.tanh %350 : vector<8x128xf32>
    %352 = arith.mulf %348, %340 : vector<8x128xf32>
    %353 = arith.mulf %347, %351 : vector<8x128xf32>
    %354 = arith.addf %352, %353 : vector<8x128xf32>
    %355 = math.tanh %354 : vector<8x128xf32>
    %356 = arith.mulf %349, %355 : vector<8x128xf32>
    %c0_170 = arith.constant 0 : index
    %c0_171 = arith.constant 0 : index
    %357 = vector.load %arg13[%c0_170, %c0_171] : memref<8x128xf32, #tpu.memory_space<vmem>>, vector<8x128xf32>
    tpu.vector_store %arg13[%c0_170, %c0_171], %354 {strides = array<i32>} : memref<8x128xf32, #tpu.memory_space<vmem>>, vector<8x128xf32>,
    %c0_172 = arith.constant 0 : index
    %c128_173 = arith.constant 128 : index
    %358 = vector.load %arg11[%c0_172, %c128_173] : memref<8x256xf32, #tpu.memory_space<vmem>>, vector<8x128xf32>
    tpu.vector_store %arg11[%c0_172, %c128_173], %356 {strides = array<i32>} : memref<8x256xf32, #tpu.memory_space<vmem>>, vector<8x128xf32>,
    %c7_i32 = arith.constant 7 : i32
    %c8_i32_174 = arith.constant 8 : i32
    %359 = arith.muli %c7_i32, %c8_i32_174 : i32
    %360 = tpu.assume_multiple %359, 8 : i32
    %361 = arith.index_cast %360 : i32 to index
    %c0_175 = arith.constant 0 : index
    %362 = vector.load %arg10[%361, %c0_175] : memref<64x512xf32, #tpu.memory_space<vmem>>, vector<8x512xf32>
    %c0_176 = arith.constant 0 : index
    %c0_177 = arith.constant 0 : index
    %363 = vector.load %arg11[%c0_176, %c0_177] : memref<8x256xf32, #tpu.memory_space<vmem>>, vector<8x128xf32>
    %cst_178 = arith.constant dense<0.000000e+00> : vector<8x512xf32>
    %364 = tpu.matmul %363, %13, %cst_178 {dimension_numbers = #tpu.dot_dimension_numbers<[1], [0], [0], [1], [0, 0, 1, 1], [], []>} : vector<8x128xf32>, vector<128x512xf32>, vector<8x512xf32> -> vector<8x512xf32>
    %365 = arith.addf %362, %364 : vector<8x512xf32>
    %c0_179 = arith.constant 0 : index
    %c0_180 = arith.constant 0 : index
    %366 = vector.load %arg12[%c0_179, %c0_180] : memref<8x128xf32, #tpu.memory_space<vmem>>, vector<8x128xf32>
    %367 = vector.extract_strided_slice %365 {offsets = [0, 0], sizes = [8, 384], strides = [1, 1]} : vector<8x512xf32> to vector<8x384xf32>
    %368 = arith.negf %367 : vector<8x384xf32>
    %369 = math.exp %368 : vector<8x384xf32>
    %cst_181 = arith.constant 1.000000e+00 : f32
    %370 = vector.broadcast %cst_181 : f32 to vector<8x384xf32>
    %371 = arith.addf %370, %369 : vector<8x384xf32>
    %372 = arith.divf %370, %371 : vector<8x384xf32>
    %373 = vector.extract_strided_slice %372 {offsets = [0, 0], sizes = [8, 128], strides = [1, 1]} : vector<8x384xf32> to vector<8x128xf32>
    %374 = vector.extract_strided_slice %372 {offsets = [0, 128], sizes = [8, 128], strides = [1, 1]} : vector<8x384xf32> to vector<8x128xf32>
    %375 = vector.extract_strided_slice %372 {offsets = [0, 256], sizes = [8, 128], strides = [1, 1]} : vector<8x384xf32> to vector<8x128xf32>
    %376 = vector.extract_strided_slice %365 {offsets = [0, 384], sizes = [8, 128], strides = [1, 1]} : vector<8x512xf32> to vector<8x128xf32>
    %377 = math.tanh %376 : vector<8x128xf32>
    %378 = arith.mulf %374, %366 : vector<8x128xf32>
    %379 = arith.mulf %373, %377 : vector<8x128xf32>
    %380 = arith.addf %378, %379 : vector<8x128xf32>
    %381 = math.tanh %380 : vector<8x128xf32>
    %382 = arith.mulf %375, %381 : vector<8x128xf32>
    %c0_182 = arith.constant 0 : index
    %c0_183 = arith.constant 0 : index
    %383 = vector.load %arg12[%c0_182, %c0_183] : memref<8x128xf32, #tpu.memory_space<vmem>>, vector<8x128xf32>
    tpu.vector_store %arg12[%c0_182, %c0_183], %380 {strides = array<i32>} : memref<8x128xf32, #tpu.memory_space<vmem>>, vector<8x128xf32>,
    %c0_184 = arith.constant 0 : index
    %c0_185 = arith.constant 0 : index
    %384 = vector.load %arg11[%c0_184, %c0_185] : memref<8x256xf32, #tpu.memory_space<vmem>>, vector<8x128xf32>
    tpu.vector_store %arg11[%c0_184, %c0_185], %382 {strides = array<i32>} : memref<8x256xf32, #tpu.memory_space<vmem>>, vector<8x128xf32>,
    %c0_186 = arith.constant 0 : index
    %c0_187 = arith.constant 0 : index
    %385 = vector.load %arg11[%c0_186, %c0_187] : memref<8x256xf32, #tpu.memory_space<vmem>>, vector<8x256xf32>
    %cst_188 = arith.constant dense<0.000000e+00> : vector<8x512xf32>
    %386 = tpu.matmul %385, %14, %cst_188 {dimension_numbers = #tpu.dot_dimension_numbers<[1], [0], [0], [1], [0, 0, 1, 1], [], []>} : vector<8x256xf32>, vector<256x512xf32>, vector<8x512xf32> -> vector<8x512xf32>
    %387 = vector.broadcast %15 : vector<1x512xf32> to vector<8x512xf32>
    %388 = arith.addf %386, %387 : vector<8x512xf32>
    %c0_189 = arith.constant 0 : index
    %c0_190 = arith.constant 0 : index
    %389 = vector.load %arg13[%c0_189, %c0_190] : memref<8x128xf32, #tpu.memory_space<vmem>>, vector<8x128xf32>
    %390 = vector.extract_strided_slice %388 {offsets = [0, 0], sizes = [8, 384], strides = [1, 1]} : vector<8x512xf32> to vector<8x384xf32>
    %391 = arith.negf %390 : vector<8x384xf32>
    %392 = math.exp %391 : vector<8x384xf32>
    %cst_191 = arith.constant 1.000000e+00 : f32
    %393 = vector.broadcast %cst_191 : f32 to vector<8x384xf32>
    %394 = arith.addf %393, %392 : vector<8x384xf32>
    %395 = arith.divf %393, %394 : vector<8x384xf32>
    %396 = vector.extract_strided_slice %395 {offsets = [0, 0], sizes = [8, 128], strides = [1, 1]} : vector<8x384xf32> to vector<8x128xf32>
    %397 = vector.extract_strided_slice %395 {offsets = [0, 128], sizes = [8, 128], strides = [1, 1]} : vector<8x384xf32> to vector<8x128xf32>
    %398 = vector.extract_strided_slice %395 {offsets = [0, 256], sizes = [8, 128], strides = [1, 1]} : vector<8x384xf32> to vector<8x128xf32>
    %399 = vector.extract_strided_slice %388 {offsets = [0, 384], sizes = [8, 128], strides = [1, 1]} : vector<8x512xf32> to vector<8x128xf32>
    %400 = math.tanh %399 : vector<8x128xf32>
    %401 = arith.mulf %397, %389 : vector<8x128xf32>
    %402 = arith.mulf %396, %400 : vector<8x128xf32>
    %403 = arith.addf %401, %402 : vector<8x128xf32>
    %404 = math.tanh %403 : vector<8x128xf32>
    %405 = arith.mulf %398, %404 : vector<8x128xf32>
    %c0_192 = arith.constant 0 : index
    %c0_193 = arith.constant 0 : index
    %406 = vector.load %arg13[%c0_192, %c0_193] : memref<8x128xf32, #tpu.memory_space<vmem>>, vector<8x128xf32>
    tpu.vector_store %arg13[%c0_192, %c0_193], %403 {strides = array<i32>} : memref<8x128xf32, #tpu.memory_space<vmem>>, vector<8x128xf32>,
    %c0_194 = arith.constant 0 : index
    %c128_195 = arith.constant 128 : index
    %407 = vector.load %arg11[%c0_194, %c128_195] : memref<8x256xf32, #tpu.memory_space<vmem>>, vector<8x128xf32>
    tpu.vector_store %arg11[%c0_194, %c128_195], %405 {strides = array<i32>} : memref<8x256xf32, #tpu.memory_space<vmem>>, vector<8x128xf32>,
    %c8_i32_196 = arith.constant 8 : i32
    %c0_197 = arith.constant 0 : index
    %c128_198 = arith.constant 128 : index
    %408 = vector.load %arg11[%c0_197, %c128_198] : memref<8x256xf32, #tpu.memory_space<vmem>>, vector<8x128xf32>
    %c0_199 = arith.constant 0 : index
    %c0_200 = arith.constant 0 : index
    %409 = vector.load %arg7[%c0_199, %c0_200] : memref<128x128xf32, #tpu.memory_space<vmem>>, vector<128x128xf32>
    %cst_201 = arith.constant dense<0.000000e+00> : vector<8x128xf32>
    %410 = tpu.matmul %408, %409, %cst_201 {dimension_numbers = #tpu.dot_dimension_numbers<[1], [0], [0], [1], [0, 0, 1, 1], [], []>} : vector<8x128xf32>, vector<128x128xf32>, vector<8x128xf32> -> vector<8x128xf32>
    %c0_202 = arith.constant 0 : index
    %c0_203 = arith.constant 0 : index
    %411 = vector.load %arg8[%c0_202, %c0_203] : memref<1x128xf32, #tpu.memory_space<vmem>>, vector<1x128xf32>
    %412 = vector.broadcast %411 : vector<1x128xf32> to vector<8x128xf32>
    %413 = arith.addf %410, %412 : vector<8x128xf32>
    %c0_204 = arith.constant 0 : index
    %c0_205 = arith.constant 0 : index
    %414 = vector.load %arg9[%c0_204, %c0_205] : memref<8x128xf32, #tpu.memory_space<vmem>>, vector<8x128xf32>
    tpu.vector_store %arg9[%c0_204, %c0_205], %413 {strides = array<i32>} : memref<8x128xf32, #tpu.memory_space<vmem>>, vector<8x128xf32>,
    return
  }
  func.func @transform_0(%arg0: i32) -> (i32, i32) {
    %c0_i32 = arith.constant 0 : i32
    %c0_i32_0 = arith.constant 0 : i32
    %c0_i32_1 = arith.constant 0 : i32
    return %c0_i32, %c0_i32_0 : i32, i32
  }
  func.func @transform_1(%arg0: i32) -> (i32, i32) {
    %c0_i32 = arith.constant 0 : i32
    %c0_i32_0 = arith.constant 0 : i32
    %c0_i32_1 = arith.constant 0 : i32
    return %c0_i32, %c0_i32_0 : i32, i32
  }
  func.func @transform_2(%arg0: i32) -> (i32, i32) {
    %c0_i32 = arith.constant 0 : i32
    %c0_i32_0 = arith.constant 0 : i32
    %c0_i32_1 = arith.constant 0 : i32
    return %c0_i32, %c0_i32_0 : i32, i32
  }
  func.func @transform_3(%arg0: i32) -> (i32, i32) {
    %c0_i32 = arith.constant 0 : i32
    %c0_i32_0 = arith.constant 0 : i32
    %c0_i32_1 = arith.constant 0 : i32
    return %c0_i32, %c0_i32_0 : i32, i32
  }
  func.func @transform_4(%arg0: i32) -> (i32, i32) {
    %c0_i32 = arith.constant 0 : i32
    %c0_i32_0 = arith.constant 0 : i32
    %c0_i32_1 = arith.constant 0 : i32
    return %c0_i32, %c0_i32_0 : i32, i32
  }
  func.func @transform_5(%arg0: i32) -> (i32, i32) {
    %c0_i32 = arith.constant 0 : i32
    %c0_i32_0 = arith.constant 0 : i32
    %c0_i32_1 = arith.constant 0 : i32
    return %c0_i32, %c0_i32_0 : i32, i32
  }
  func.func @transform_6(%arg0: i32) -> (i32, i32) {
    %c0_i32 = arith.constant 0 : i32
    %c0_i32_0 = arith.constant 0 : i32
    %c0_i32_1 = arith.constant 0 : i32
    return %c0_i32, %c0_i32_0 : i32, i32
  }
  func.func @transform_7(%arg0: i32) -> (i32, i32) {
    %c0_i32 = arith.constant 0 : i32
    %c0_i32_0 = arith.constant 0 : i32
    %c0_i32_1 = arith.constant 0 : i32
    return %c0_i32, %c0_i32_0 : i32, i32
  }
  func.func @transform_8(%arg0: i32) -> (i32, i32) {
    %c0_i32 = arith.constant 0 : i32
    %c0_i32_0 = arith.constant 0 : i32
    %c0_i32_1 = arith.constant 0 : i32
    return %c0_i32, %c0_i32_0 : i32, i32
  }
}

</mosaic_0001>

<bundles_post_ra>
// kernel: tpu_custom_call.1
= control target key start
LH: loop header
LB: loop body
LE: loop exit
PB: predicated region body
PF: predicated region fallthrough
CT: control target
= control target key end

     0   :  { %13 = vsyncpa [#allocation7], 0  ;;  %s8119_s0 = inlined_call_operand.vmem [shape: f32[64,28], index: 0, kind: input, shape index: {}]   ;;  %s8120_s1 = inlined_call_operand.hbm [shape: f32[28,512], index: 1, kind: input, shape index: {}]   ;;  %s8121_s2 = inlined_call_operand.hbm [shape: f32[128,512], index: 2, kind: input, shape index: {}]   ;;  %s8122_s3 = inlined_call_operand.vmem [shape: f32[1,512], index: 3, kind: input, shape index: {}]   ;;  %s8123_s4 = inlined_call_operand.hbm [shape: f32[256,512], index: 4, kind: input, shape index: {}]   ;;  %s8124_s5 = inlined_call_operand.vmem [shape: f32[1,512], index: 5, kind: input, shape index: {}]   ;;  %s8125_s6 = inlined_call_operand.hbm [shape: f32[128,128], index: 6, kind: input, shape index: {}]   ;;  %s8126_s7 = inlined_call_operand.vmem [shape: f32[1,128], index: 7, kind: input, shape index: {}]   ;;  %s8127_s8 = inlined_call_operand.hbm [shape: f32[8,128], index: 8, kind: output, shape index: {}]  }
   0x1   :  { %14 = vsyncpa [#allocation10], 0 }
   0x2   :  { %15 = vsyncpa [#allocation13], 0 }
   0x3   :  { %16 = vsyncpa [#allocation8], 0  ;;  %s4670_s27 = smov [#allocation9]   ;;  %s4671_s29 = smov [#allocation6]  }
   0x4   :  { %s36_s28 = sshll.u32 %s4670_s27, 4  ;;  %s24_s30 = sshll.u32 %s4671_s29, 4  ;;  %s37_s28 = int_to_ptr.vmem [resolvable:$true] %s36_s28  ;;  %s25_s30 = int_to_ptr.vmem [resolvable:$true] %s24_s30 }
   0x5   :  { %s4570_s9 = scalar_lea.vmem %s37_s28, 8192  ;;  %p4575_p1 = scmp.lt.s32.totalorder %s37_s28, %s37_s28 }
   0x6   :  { %p4571_p0 = scmp.ne.s32.totalorder %s37_s28, %s4570_s9  ;;  %p4576_p2 = scmp.lt.s32.totalorder %s4570_s9, %s4570_s9 }
   0x8   :  { %p4577_p3 = por %p4576_p2, %p4575_p1 }
   0xa   :  { %p4578_p4 = pnand %p4577_p3, %p4571_p0 }
   0xc   :  { %4581 = shalt.err (!%p4578_p4)
}
   0xd   :  { %s4672_s10 = smov 512   ;;  %s4673_s11 = smov 32  }
   0xe   :  { %42 = dma.hbm_to_vmem [thread:$0]  %s8121_s2, 8192, %s37_s28, [#allocation10], %s4672_s10, %s4672_s10, %s4673_s11  }
   0xf   :  { %s4590_s14 = scalar_lea.vmem %s25_s30, 2048  ;;  %p4595_p6 = scmp.lt.s32.totalorder %s25_s30, %s25_s30 }
  0x10   :  { %p4591_p5 = scmp.ne.s32.totalorder %s25_s30, %s4590_s14  ;;  %p4596_p7 = scmp.lt.s32.totalorder %s4590_s14, %s4590_s14 }
  0x12   :  { %p4597_p8 = por %p4596_p7, %p4595_p6 }
  0x14   :  { %p4598_p9 = pnand %p4597_p8, %p4591_p5 }
  0x16   :  { %4601 = shalt.err (!%p4598_p9)
}
  0x17   :  { %30 = dma.hbm_to_vmem [thread:$0]  %s8120_s1, 2048, %s25_s30, [#allocation7], %s4672_s10, %s4672_s10, %s4673_s11  }
  0x18   :  { %s4674_s17 = smov [#allocation11]   ;;  %s4675_s19 = smov [#allocation12]  }
  0x19   :  { %s50_s18 = sshll.u32 %s4674_s17, 4  ;;  %s64_s20 = sshll.u32 %s4675_s19, 4  ;;  %s51_s18 = int_to_ptr.vmem [resolvable:$true] %s50_s18  ;;  %s65_s20 = int_to_ptr.vmem [resolvable:$true] %s64_s20 }
  0x1a   :  { %s4610_s21 = scalar_lea.vmem %s51_s18, 16384  ;;  %p4615_p11 = scmp.lt.s32.totalorder %s51_s18, %s51_s18 }
  0x1b   :  { %p4611_p10 = scmp.ne.s32.totalorder %s51_s18, %s4610_s21  ;;  %p4616_p12 = scmp.lt.s32.totalorder %s4610_s21, %s4610_s21 }
  0x1d   :  { %p4617_p13 = por %p4616_p12, %p4615_p11 }
  0x1f   :  { %p4618_p0 = pnand %p4617_p13, %p4611_p10 }
  0x21   :  { %4621 = shalt.err (!%p4618_p0)
}
  0x22   :  { %56 = dma.hbm_to_vmem [thread:$0]  %s8123_s4, 16384, %s51_s18, [#allocation10], %s4672_s10, %s4672_s10, %s4673_s11  }
  0x23   :  { %s4630_s23 = scalar_lea.vmem %s65_s20, 2048  ;;  %p4635_p2 = scmp.lt.s32.totalorder %s65_s20, %s65_s20 }
  0x24   :  { %p4631_p1 = scmp.ne.s32.totalorder %s65_s20, %s4630_s23  ;;  %p4636_p3 = scmp.lt.s32.totalorder %s4630_s23, %s4630_s23 }
  0x26   :  { %p4637_p4 = por %p4636_p3, %p4635_p2 }
  0x28   :  { %p4638_p5 = pnand %p4637_p4, %p4631_p1 }
  0x2a   :  { %4641 = shalt.err (!%p4638_p5)
}
  0x2b   :  { %s4676_s1 = smov 128   ;;  %s4677_s24 = smov 8  }
  0x2c   :  { %70 = dma.hbm_to_vmem [thread:$0]  %s8125_s6, 2048, %s65_s20, [#allocation13], %s4676_s1, %s4676_s1, %s4677_s24  }
  0x2d   :  { %4662 = dma.done.wait [#allocation7], 2048  }
  0x2e   :  { %4663 = vsyncadd [#allocation7], 4294965248 }
  0x2f   :  { %4664 = dma.done.wait [#allocation10], 24576  }
  0x30   :  { %4665 = vsyncadd [#allocation10], 4294942720 }
  0x31   :  { %4666 = dma.done.wait [#allocation13], 2048  }
  0x32   :  { %4667 = vsyncadd [#allocation13], 4294965248  ;;  %v8128_v0 = vmov 0.0   ;;  %vm156_vm0 = vcmask 1043456   ;;  %v106_v1 = vld [vmem:[#allocation6 + $0x68] sm:$0xf] }
  0x33   :  { %233 = vmatprep.mubr.f32.mxu0 %v8128_v0  ;;  %346 = vmatprep.mubr.f32.mxu1 %v8128_v0  ;;  %v108_v2 = vld [vmem:[#allocation6 + $0x78] sm:$0xf]  ;;  %v105_v3 = vld [vmem:[#allocation6 + $0x60] sm:$0xf]  ;;  %v107_v4 = vld [vmem:[#allocation6 + $0x70] sm:$0xf] }
  0x34   :  { %3580 = vmatprep.subr.msk.mxu0 %vm156_vm0, %v106_v1  ;;  %3590 = vmatprep.subr.msk.mxu1 %vm156_vm0, %v108_v2  ;;  %v102_v5 = vld [vmem:[#allocation6 + $0x48] sm:$0xff]  ;;  %v104_v6 = vld [vmem:[#allocation6 + $0x58] sm:$0xff]  ;;  %v101_v7 = vld [vmem:[#allocation6 + $0x40] sm:$0xff]  ;;  %vm131_vm1 = vcmask 228352   ;;  %vm4679_vm2 = vmmov 0   ;;  %s4680_s2 = smov [#allocation14]  }
  0x35   :  { %3581 = vmatpush1.msk.msra.mxu0 %vm156_vm0, %v105_v3  ;;  %3591 = vmatpush1.msk.msra.mxu1 %vm156_vm0, %v107_v4  ;;  %v103_v8 = vld [vmem:[#allocation6 + $0x50] sm:$0xff]  ;;  %v98_v9 = vld [vmem:[#allocation6 + $0x28] sm:$0xff]  ;;  %v100_v10 = vld [vmem:[#allocation6 + $0x38] sm:$0xff]  ;;  %s3562_s22 = sshll.u32 %s4680_s2, 4  ;;  %s3563_s22 = int_to_ptr.vmem [resolvable:$true] %s3562_s22 }
  0x36   :  { %195 = vmatprep.subr.mxu0 %v102_v5  ;;  %308 = vmatprep.subr.mxu1 %v104_v6  ;;  %v97_v11 = vld [vmem:[#allocation6 + $0x20] sm:$0xff]  ;;  %v99_v12 = vld [vmem:[#allocation6 + $0x30] sm:$0xff]  ;;  %v94_v13 = vld [vmem:[#allocation6 + $0x8] sm:$0xff]  ;;  %s4642_s23 = scalar_lea.vmem %s3563_s22, 128  ;;  %p4647_p7 = scmp.lt.s32.totalorder %s3563_s22, %s3563_s22 }
  0x37   :  { %196 = vmatpush1.msra.mxu0 %v101_v7  ;;  %309 = vmatpush1.msra.mxu1 %v103_v8  ;;  %v96_v14 = vld [vmem:[#allocation6 + $0x18] sm:$0xff]  ;;  %v93_v15 = vld [vmem:[#allocation6] sm:$0xff]  ;;  %v95_v16 = vld [vmem:[#allocation6 + $0x10] sm:$0xff]  ;;  %p4643_p6 = scmp.ne.s32.totalorder %s3563_s22, %s4642_s23  ;;  %p4648_p8 = scmp.lt.s32.totalorder %s4642_s23, %s4642_s23 }
  0x38   :  { %197 = vmatprep.subr.mxu0 %v98_v9  ;;  %310 = vmatprep.subr.mxu1 %v100_v10  ;;  %v85_v17 = vld [vmem:[%s8119_s0] sm:$0xff]  ;;  %v4743_v18 = vld [vmem:[#allocation9 + $0x1e8] sm:$0xff]  ;;  %v4745_v19 = vld [vmem:[#allocation9 + $0x1f8] sm:$0xff] }
  0x39   :  { %198 = vmatpush1.msra.mxu0 %v97_v11  ;;  %311 = vmatpush1.msra.mxu1 %v99_v12  ;;  %v491_v20 = vld [vmem:[#allocation9 + $0x1e0] sm:$0xff]  ;;  %v493_v21 = vld [vmem:[#allocation9 + $0x1f0] sm:$0xff]  ;;  %v488_v22 = vld [vmem:[#allocation9 + $0x1c8] sm:$0xff]  ;;  %p4649_p9 = por %p4648_p8, %p4647_p7 }
  0x3a   :  { %199 = vmatprep.subr.mxu0 %v94_v13  ;;  %312 = vmatprep.subr.mxu1 %v96_v14  ;;  %v490_v23 = vld [vmem:[#allocation9 + $0x1d8] sm:$0xff]  ;;  %v487_v24 = vld [vmem:[#allocation9 + $0x1c0] sm:$0xff]  ;;  %v489_v25 = vld [vmem:[#allocation9 + $0x1d0] sm:$0xff] }
  0x3b   :  { %200 = vmatpush1.msra.mxu0 %v93_v15  ;;  %313 = vmatpush1.msra.mxu1 %v95_v16  ;;  %v86_v26 = vld [vmem:[%s8119_s0 + $0x8] sm:$0xff]  ;;  %v486_v28 = vld [vmem:[#allocation9 + $0x1b8] sm:$0xff]  ;;  %v483_v29 = vld [vmem:[#allocation9 + $0x1a0] sm:$0xff]  ;;  %p4650_p10 = pnand %p4649_p9, %p4643_p6 }
  0x3c   :  { %3582 = vmatmul.mubr.msk.f32.vlgmr.msra.gmra.mxu0 %vm131_vm1, %v85_v17  ;;  %3592 = vmatmul.mubr.msk.f32.vlgmr.msra.gmra.mxu1 %vm131_vm1, %v85_v17  ;;  %v484_v27 = vld [vmem:[#allocation9 + $0x1a8] sm:$0xff]  ;;  %v485_v30 = vld [vmem:[#allocation9 + $0x1b0] sm:$0xff]  ;;  %v482_v32 = vld [vmem:[#allocation9 + $0x198] sm:$0xff] }
  0x3d   :  { %632 = vmatprep.subr.mxu0 %v4743_v18  ;;  %703 = vmatprep.subr.mxu1 %v4745_v19  ;;  %v480_v31 = vld [vmem:[#allocation9 + $0x188] sm:$0xff]  ;;  %v479_v33 = vld [vmem:[#allocation9 + $0x180] sm:$0xff]  ;;  %v481_v34 = vld [vmem:[#allocation9 + $0x190] sm:$0xff] }
  0x3e   :  { %633 = vmatpush1.msra.mxu0 %v491_v20  ;;  %704 = vmatpush1.msra.mxu1 %v493_v21  ;;  %v87_v35 = vld [vmem:[%s8119_s0 + $0x10] sm:$0xff]  ;;  %v476_v36 = vld [vmem:[#allocation9 + $0x168] sm:$0xff]  ;;  %v478_v37 = vld [vmem:[#allocation9 + $0x178] sm:$0xff] }
  0x3f   :  { %634 = vmatprep.subr.mxu0 %v488_v22  ;;  %705 = vmatprep.subr.mxu1 %v490_v23  ;;  %v475_v38 = vld [vmem:[#allocation9 + $0x160] sm:$0xff]  ;;  %v477_v39 = vld [vmem:[#allocation9 + $0x170] sm:$0xff]  ;;  %v4765_v40 = vld [vmem:[#allocation9 + $0x148] sm:$0xff] }
  0x40   :  { %239 = vmatprep.mubr.f32.mxu0 %v8128_v0  ;;  %352 = vmatprep.mubr.f32.mxu1 %v8128_v0  ;;  %v4767_v41 = vld [vmem:[#allocation9 + $0x158] sm:$0xff]  ;;  %v4769_v42 = vld [vmem:[#allocation9 + $0x140] sm:$0xff]  ;;  %v4771_v43 = vld [vmem:[#allocation9 + $0x150] sm:$0xff] }
  0x41   :  { %635 = vmatpush1.msra.mxu0 %v487_v24  ;;  %706 = vmatpush1.msra.mxu1 %v489_v25  ;;  %v88_v44 = vld [vmem:[%s8119_s0 + $0x18] sm:$0xff]  ;;  %v4780_v45 = vld [vmem:[#allocation9 + $0x128] sm:$0xff]  ;;  %v4786_v47 = vld [vmem:[#allocation9 + $0x120] sm:$0xff] }
  0x42   :  { %3583 = vmatmul.mubr.msk.f32.gmra.mxu0 %vm131_vm1, %v86_v26  ;;  %3593 = vmatmul.mubr.msk.f32.gmra.mxu1 %vm131_vm1, %v86_v26  ;;  %v4782_v46 = vld [vmem:[#allocation9 + $0x138] sm:$0xff]  ;;  %v4788_v48 = vld [vmem:[#allocation9 + $0x130] sm:$0xff]  ;;  %v4792_v49 = vld [vmem:[#allocation9 + $0x108] sm:$0xff] }
  0x43   :  { %636 = vmatprep.subr.mxu0 %v484_v27  ;;  %707 = vmatprep.subr.mxu1 %v486_v28  ;;  %v4794_v50 = vld [vmem:[#allocation9 + $0x118] sm:$0xff]  ;;  %v4800_v51 = vld [vmem:[#allocation9 + $0x100] sm:$0xff]  ;;  %v4802_v52 = vld [vmem:[#allocation9 + $0x110] sm:$0xff] }
  0x44   :  { %637 = vmatpush1.msra.mxu0 %v483_v29  ;;  %708 = vmatpush1.msra.mxu1 %v485_v30  ;;  %v89_v53 = vld [vmem:[%s8119_s0 + $0x20] sm:$0xff]  ;;  %v4811_v54 = vld [vmem:[#allocation9 + $0xe8] sm:$0xff]  ;;  %v4813_v55 = vld [vmem:[#allocation9 + $0xf8] sm:$0xff] }
  0x45   :  { %638 = vmatprep.subr.mxu0 %v480_v31  ;;  %709 = vmatprep.subr.mxu1 %v482_v32  ;;  %v4817_v56 = vld [vmem:[#allocation9 + $0xe0] sm:$0xff]  ;;  %v4819_v57 = vld [vmem:[#allocation9 + $0xf0] sm:$0xff]  ;;  %v4823_v58 = vld [vmem:[#allocation9 + $0xc8] sm:$0xff] }
  0x46   :  { %245 = vmatprep.mubr.f32.mxu0 %v8128_v0  ;;  %358 = vmatprep.mubr.f32.mxu1 %v8128_v0  ;;  %v4825_v59 = vld [vmem:[#allocation9 + $0xd8] sm:$0xff]  ;;  %v4831_v60 = vld [vmem:[#allocation9 + $0xc0] sm:$0xff]  ;;  %v4833_v61 = vld [vmem:[#allocation9 + $0xd0] sm:$0xff] }
  0x47   :  { %639 = vmatpush1.msra.mxu0 %v479_v33  ;;  %710 = vmatpush1.msra.mxu1 %v481_v34  ;;  %v90_v62 = vld [vmem:[%s8119_s0 + $0x28] sm:$0xff]  ;;  %v4844_v1 = vld [vmem:[#allocation9 + $0xb8] sm:$0xff]  ;;  %v4848_v2 = vld [vmem:[#allocation9 + $0xa0] sm:$0xff] }
  0x48   :  { %3584 = vmatmul.mubr.msk.f32.gmra.mxu0 %vm131_vm1, %v87_v35  ;;  %3594 = vmatmul.mubr.msk.f32.gmra.mxu1 %vm131_vm1, %v87_v35  ;;  %v4842_v63 = vld [vmem:[#allocation9 + $0xa8] sm:$0xff]  ;;  %v4850_v3 = vld [vmem:[#allocation9 + $0xb0] sm:$0xff]  ;;  %v4856_v5 = vld [vmem:[#allocation9 + $0x98] sm:$0xff] }
  0x49   :  { %640 = vmatprep.subr.mxu0 %v476_v36  ;;  %711 = vmatprep.subr.mxu1 %v478_v37  ;;  %v4854_v4 = vld [vmem:[#allocation9 + $0x88] sm:$0xff]  ;;  %v4862_v6 = vld [vmem:[#allocation9 + $0x80] sm:$0xff]  ;;  %v4864_v7 = vld [vmem:[#allocation9 + $0x90] sm:$0xff] }
  0x4a   :  { %641 = vmatpush1.msra.mxu0 %v475_v38  ;;  %712 = vmatpush1.msra.mxu1 %v477_v39  ;;  %v91_v8 = vld [vmem:[%s8119_s0 + $0x30] sm:$0xff]  ;;  %v4873_v9 = vld [vmem:[#allocation9 + $0x68] sm:$0xff]  ;;  %v4875_v10 = vld [vmem:[#allocation9 + $0x78] sm:$0xff] }
  0x4b   :  { %642 = vmatprep.subr.mxu0 %v4765_v40  ;;  %713 = vmatprep.subr.mxu1 %v4767_v41  ;;  %v4879_v11 = vld [vmem:[#allocation9 + $0x60] sm:$0xff]  ;;  %v4881_v12 = vld [vmem:[#allocation9 + $0x70] sm:$0xff]  ;;  %v4885_v13 = vld [vmem:[#allocation9 + $0x48] sm:$0xff] }
  0x4c   :  { %251 = vmatprep.mubr.f32.mxu0 %v8128_v0  ;;  %364 = vmatprep.mubr.f32.mxu1 %v8128_v0  ;;  %v4887_v14 = vld [vmem:[#allocation9 + $0x58] sm:$0xff]  ;;  %v4893_v15 = vld [vmem:[#allocation9 + $0x40] sm:$0xff]  ;;  %v4895_v16 = vld [vmem:[#allocation9 + $0x50] sm:$0xff] }
  0x4d   :  { %643 = vmatpush1.msra.mxu0 %v4769_v42  ;;  %714 = vmatpush1.msra.mxu1 %v4771_v43  ;;  %v92_v17 = vld [vmem:[%s8119_s0 + $0x38] sm:$0xff]  ;;  %v4904_v20 = vld [vmem:[#allocation9 + $0x28] sm:$0xff]  ;;  %v4910_v22 = vld [vmem:[#allocation9 + $0x20] sm:$0xff] }
  0x4e   :  { %3585 = vmatmul.mubr.msk.f32.gmra.mxu0 %vm131_vm1, %v88_v44  ;;  %3595 = vmatmul.mubr.msk.f32.gmra.mxu1 %vm131_vm1, %v88_v44  ;;  %v4906_v21 = vld [vmem:[#allocation9 + $0x38] sm:$0xff]  ;;  %v4912_v23 = vld [vmem:[#allocation9 + $0x30] sm:$0xff]  ;;  %v4916_v24 = vld [vmem:[#allocation9 + $0x8] sm:$0xff] }
  0x4f   :  { %644 = vmatprep.subr.mxu0 %v4780_v45  ;;  %715 = vmatprep.subr.mxu1 %v4782_v46  ;;  %v4918_v25 = vld [vmem:[#allocation9 + $0x18] sm:$0xff]  ;;  %v4922_v26 = vld [vmem:[#allocation9] sm:$0xff]  ;;  %v4926_v27 = vld [vmem:[#allocation9 + $0x10] sm:$0xff] }
  0x50   :  { %645 = vmatpush1.msra.mxu0 %v4786_v47  ;;  %716 = vmatpush1.msra.mxu1 %v4788_v48  ;;  %8674 = vst [vmem:[#allocation19_spill] sm:$0xff] %v4918_v25  ;;  %8675 = vst [vmem:[#allocation20_spill] sm:$0xff] %v4922_v26  ;;  %v4938_v28 = vld [vmem:[#allocation11 + $0x1e8] sm:$0xff]  ;;  %v4940_v29 = vld [vmem:[#allocation11 + $0x1f8] sm:$0xff] }
  0x51   :  { %646 = vmatprep.subr.mxu0 %v4792_v49  ;;  %717 = vmatprep.subr.mxu1 %v4794_v50  ;;  %8676 = vst [vmem:[#allocation21_spill] sm:$0xff] %v4926_v27  ;;  %8677 = vst [vmem:[#allocation22_spill] sm:$0xff] %v4938_v28  ;;  %v4942_v30 = vld [vmem:[#allocation11 + $0x1e0] sm:$0xff]  ;;  %v4946_v31 = vld [vmem:[#allocation11 + $0x1f0] sm:$0xff] }
  0x52   :  { %257 = vmatprep.mubr.f32.mxu0 %v8128_v0  ;;  %370 = vmatprep.mubr.f32.mxu1 %v8128_v0  ;;  %8678 = vst [vmem:[#allocation23_spill] sm:$0xff] %v4940_v29  ;;  %8679 = vst [vmem:[#allocation24_spill] sm:$0xff] %v4942_v30  ;;  %v4950_v32 = vld [vmem:[#allocation11 + $0x1c8] sm:$0xff]  ;;  %v4952_v33 = vld [vmem:[#allocation11 + $0x1d8] sm:$0xff] }
  0x53   :  { %647 = vmatpush1.msra.mxu0 %v4800_v51  ;;  %718 = vmatpush1.msra.mxu1 %v4802_v52  ;;  %8680 = vst [vmem:[#allocation25_spill] sm:$0xff] %v4946_v31  ;;  %8681 = vst [vmem:[#allocation26_spill] sm:$0xff] %v4950_v32  ;;  %v4954_v34 = vld [vmem:[#allocation11 + $0x1c0] sm:$0xff]  ;;  %v4958_v35 = vld [vmem:[#allocation11 + $0x1d0] sm:$0xff] }
  0x54   :  { %3586 = vmatmul.mubr.msk.f32.gmra.mxu0 %vm131_vm1, %v89_v53  ;;  %3596 = vmatmul.mubr.msk.f32.gmra.mxu1 %vm131_vm1, %v89_v53  ;;  %8682 = vst [vmem:[#allocation27_spill] sm:$0xff] %v4952_v33  ;;  %8683 = vst [vmem:[#allocation28_spill] sm:$0xff] %v4954_v34  ;;  %v4962_v36 = vld [vmem:[#allocation11 + $0x1a8] sm:$0xff]  ;;  %v4964_v37 = vld [vmem:[#allocation11 + $0x1b8] sm:$0xff] }
  0x55   :  { %648 = vmatprep.subr.mxu0 %v4811_v54  ;;  %719 = vmatprep.subr.mxu1 %v4813_v55  ;;  %8684 = vst [vmem:[#allocation29_spill] sm:$0xff] %v4958_v35  ;;  %8685 = vst [vmem:[#allocation30_spill] sm:$0xff] %v4962_v36  ;;  %v4966_v38 = vld [vmem:[#allocation11 + $0x1a0] sm:$0xff]  ;;  %v4970_v39 = vld [vmem:[#allocation11 + $0x1b0] sm:$0xff] }
  0x56   :  { %649 = vmatpush1.msra.mxu0 %v4817_v56  ;;  %720 = vmatpush1.msra.mxu1 %v4819_v57  ;;  %8686 = vst [vmem:[#allocation31_spill] sm:$0xff] %v4964_v37  ;;  %8687 = vst [vmem:[#allocation32_spill] sm:$0xff] %v4966_v38  ;;  %v4974_v44 = vld [vmem:[#allocation11 + $0x188] sm:$0xff]  ;;  %v4976_v53 = vld [vmem:[#allocation11 + $0x198] sm:$0xff] }
  0x57   :  { %650 = vmatprep.subr.mxu0 %v4823_v58  ;;  %721 = vmatprep.subr.mxu1 %v4825_v59  ;;  %8688 = vst [vmem:[#allocation33_spill] sm:$0xff] %v4970_v39  ;;  %8689 = vst [vmem:[#allocation34_spill] sm:$0xff] %v4974_v44 }
  0x58   :  { %263 = vmatprep.mubr.f32.mxu0 %v8128_v0  ;;  %376 = vmatprep.mubr.f32.mxu1 %v8128_v0  ;;  %8690 = vst [vmem:[#allocation35_spill] sm:$0xff] %v4976_v53 }
  0x59   :  { %651 = vmatpush1.msra.mxu0 %v4831_v60  ;;  %722 = vmatpush1.msra.mxu1 %v4833_v61 }
  0x5a   :  { %3587 = vmatmul.mubr.msk.f32.gmra.mxu0 %vm131_vm1, %v90_v62  ;;  %3597 = vmatmul.mubr.msk.f32.gmra.mxu1 %vm131_vm1, %v90_v62  ;;  %v4978_v62 = vld [vmem:[#allocation11 + $0x180] sm:$0xff] }
  0x5b   :  { %652 = vmatprep.subr.mxu0 %v4842_v63  ;;  %723 = vmatprep.subr.mxu1 %v4844_v1  ;;  %8691 = vst [vmem:[#allocation36_spill] sm:$0xff] %v4978_v62 }
  0x5c   :  { %653 = vmatpush1.msra.mxu0 %v4848_v2  ;;  %724 = vmatpush1.msra.mxu1 %v4850_v3 }
  0x5d   :  { %654 = vmatprep.subr.mxu0 %v4854_v4  ;;  %725 = vmatprep.subr.mxu1 %v4856_v5 }
  0x5e   :  { %269 = vmatprep.mubr.f32.mxu0 %v8128_v0  ;;  %382 = vmatprep.mubr.f32.mxu1 %v8128_v0 }
  0x5f   :  { %655 = vmatpush1.msra.mxu0 %v4862_v6  ;;  %726 = vmatpush1.msra.mxu1 %v4864_v7 }
  0x60   :  { %3588 = vmatmul.mubr.msk.f32.gmra.mxu0 %vm131_vm1, %v91_v8  ;;  %3598 = vmatmul.mubr.msk.f32.gmra.mxu1 %vm131_vm1, %v91_v8  ;;  %v4982_v8 = vld [vmem:[#allocation11 + $0x190] sm:$0xff] }
  0x61   :  { %656 = vmatprep.subr.mxu0 %v4873_v9  ;;  %727 = vmatprep.subr.mxu1 %v4875_v10  ;;  %8692 = vst [vmem:[#allocation37_spill] sm:$0xff] %v4982_v8 }
  0x62   :  { %657 = vmatpush1.msra.mxu0 %v4879_v11  ;;  %728 = vmatpush1.msra.mxu1 %v4881_v12 }
  0x63   :  { %658 = vmatprep.subr.mxu0 %v4885_v13  ;;  %729 = vmatprep.subr.mxu1 %v4887_v14 }
  0x64   :  { %275 = vmatprep.mubr.f32.mxu0 %v8128_v0  ;;  %388 = vmatprep.mubr.f32.mxu1 %v8128_v0 }
  0x65   :  { %659 = vmatpush1.msra.mxu0 %v4893_v15  ;;  %730 = vmatpush1.msra.mxu1 %v4895_v16 }
  0x66   :  { %3589 = vmatmul.mubr.msk.f32.gmra.mxu0 %vm131_vm1, %v92_v17  ;;  %3599 = vmatmul.mubr.msk.f32.gmra.mxu1 %vm131_vm1, %v92_v17  ;;  %v4986_v17 = vld [vmem:[#allocation11 + $0x168] sm:$0xff] }
  0x67   :  { %660 = vmatprep.subr.mxu0 %v4904_v20  ;;  %731 = vmatprep.subr.mxu1 %v4906_v21  ;;  %8693 = vst [vmem:[#allocation38_spill] sm:$0xff] %v4986_v17 }
  0x68   :  { %661 = vmatpush1.msra.mxu0 %v4910_v22  ;;  %732 = vmatpush1.msra.mxu1 %v4912_v23 }
  0x69   :  { %662 = vmatprep.subr.mxu0 %v4916_v24  ;;  %733 = vmatprep.subr.mxu1 %v4918_v25 }
  0x6a   :  { %663 = vmatpush1.msra.mxu0 %v4922_v26  ;;  %696 = vmatprep.mubr.f32.mxu0 %v8128_v0 }
  0x6b   :  { %734 = vmatpush1.msra.mxu1 %v4926_v27  ;;  %767 = vmatprep.mubr.f32.mxu1 %v8128_v0 }
  0x6c   :  { %697 = vmatmul.mubr.f32.vlgmr.msra.gmra.mxu0 %v8128_v0  ;;  %768 = vmatmul.mubr.f32.vlgmr.msra.gmra.mxu1 %v8128_v0 }
  0x6d   :  { %892 = vmatprep.mubr.f32.mxu0 %v8128_v0  ;;  %963 = vmatprep.mubr.f32.mxu1 %v8128_v0  ;;  %v4988_v0 = vld [vmem:[#allocation11 + $0x178] sm:$0xff] }
  0x6e   :  { %828 = vmatprep.subr.mxu0 %v4938_v28  ;;  %899 = vmatprep.subr.mxu1 %v4940_v29  ;;  %8694 = vst [vmem:[#allocation39_spill] sm:$0xff] %v4988_v0 }
  0x6f   :  { %829 = vmatpush1.msra.mxu0 %v4942_v30  ;;  %900 = vmatpush1.msra.mxu1 %v4946_v31 }
  0x70   :  { %830 = vmatprep.subr.mxu0 %v4950_v32  ;;  %901 = vmatprep.subr.mxu1 %v4952_v33 }
  0x71   :  { %831 = vmatpush1.msra.mxu0 %v4954_v34  ;;  %902 = vmatpush1.msra.mxu1 %v4958_v35  ;;  %v5264_v35 = vld [vmem:[#allocation11 + $0x280] sm:$0xff] }
  0x72   :  { %832 = vmatprep.subr.mxu0 %v4962_v36  ;;  %903 = vmatprep.subr.mxu1 %v4964_v37  ;;  %v5240_v37 = vld [vmem:[#allocation11 + $0x2c0] sm:$0xff]  ;;  %v5248_v36 = vld [vmem:[#allocation11 + $0x2b8] sm:$0xff]  ;;  %8787 = vst [vmem:[#allocation132_spill] sm:$0xff] %v5264_v35 }
  0x73   :  { %833 = vmatpush1.msra.mxu0 %v4966_v38  ;;  %904 = vmatpush1.msra.mxu1 %v4970_v39  ;;  %v4992_v39 = vld [vmem:[#allocation11 + $0x160] sm:$0xff]  ;;  %v4994_v38 = vld [vmem:[#allocation11 + $0x170] sm:$0xff]  ;;  %8779 = vst [vmem:[#allocation124_spill] sm:$0xff] %v5240_v37  ;;  %8782 = vst [vmem:[#allocation127_spill] sm:$0xff] %v5248_v36 }
  0x74   :  { %834 = vmatprep.subr.mxu0 %v4974_v44  ;;  %905 = vmatprep.subr.mxu1 %v4976_v53  ;;  %8695 = vst [vmem:[#allocation40_spill] sm:$0xff] %v4992_v39  ;;  %8696 = vst [vmem:[#allocation41_spill] sm:$0xff] %v4994_v38  ;;  %v4998_v53 = vld [vmem:[#allocation11 + $0x148] sm:$0xff]  ;;  %v5232_v44 = vld [vmem:[#allocation11 + $0x2f0] sm:$0xff] }
  0x75   :  { %835 = vmatpush1.msra.mxu0 %v4978_v62  ;;  %906 = vmatpush1.msra.mxu1 %v4982_v8  ;;  %8697 = vst [vmem:[#allocation42_spill] sm:$0xff] %v4998_v53  ;;  %v5000_v62 = vld [vmem:[#allocation11 + $0x158] sm:$0xff]  ;;  %v5004_v8 = vld [vmem:[#allocation11 + $0x140] sm:$0xff]  ;;  %8776 = vst [vmem:[#allocation121_spill] sm:$0xff] %v5232_v44 }
  0x76   :  { %836 = vmatprep.subr.mxu0 %v4986_v17  ;;  %907 = vmatprep.subr.mxu1 %v4988_v0  ;;  %8698 = vst [vmem:[#allocation43_spill] sm:$0xff] %v5000_v62  ;;  %8699 = vst [vmem:[#allocation44_spill] sm:$0xff] %v5004_v8  ;;  %v5006_v17 = vld [vmem:[#allocation11 + $0x150] sm:$0xff]  ;;  %v5010_v0 = vld [vmem:[#allocation11 + $0x128] sm:$0xff] }
  0x77   :  { %837 = vmatpush1.msra.mxu0 %v4992_v39  ;;  %908 = vmatpush1.msra.mxu1 %v4994_v38  ;;  %8700 = vst [vmem:[#allocation45_spill] sm:$0xff] %v5006_v17  ;;  %8701 = vst [vmem:[#allocation46_spill] sm:$0xff] %v5010_v0  ;;  %v5012_v39 = vld [vmem:[#allocation11 + $0x138] sm:$0xff]  ;;  %v5016_v38 = vld [vmem:[#allocation11 + $0x120] sm:$0xff] }
  0x78   :  { %838 = vmatprep.subr.mxu0 %v4998_v53  ;;  %909 = vmatprep.subr.mxu1 %v5000_v62  ;;  %8702 = vst [vmem:[#allocation47_spill] sm:$0xff] %v5012_v39  ;;  %8703 = vst [vmem:[#allocation48_spill] sm:$0xff] %v5016_v38  ;;  %v5018_v53 = vld [vmem:[#allocation11 + $0x130] sm:$0xff]  ;;  %v5022_v62 = vld [vmem:[#allocation11 + $0x108] sm:$0xff] }
  0x79   :  { %839 = vmatpush1.msra.mxu0 %v5004_v8  ;;  %910 = vmatpush1.msra.mxu1 %v5006_v17  ;;  %8704 = vst [vmem:[#allocation49_spill] sm:$0xff] %v5018_v53  ;;  %8705 = vst [vmem:[#allocation50_spill] sm:$0xff] %v5022_v62  ;;  %v5024_v8 = vld [vmem:[#allocation11 + $0x118] sm:$0xff]  ;;  %v5028_v17 = vld [vmem:[#allocation11 + $0x100] sm:$0xff] }
  0x7a   :  { %840 = vmatprep.subr.mxu0 %v5010_v0  ;;  %911 = vmatprep.subr.mxu1 %v5012_v39  ;;  %8706 = vst [vmem:[#allocation51_spill] sm:$0xff] %v5024_v8  ;;  %8707 = vst [vmem:[#allocation52_spill] sm:$0xff] %v5028_v17  ;;  %v5030_v0 = vld [vmem:[#allocation11 + $0x110] sm:$0xff]  ;;  %v5034_v39 = vld [vmem:[#allocation11 + $0xe8] sm:$0xff] }
  0x7b   :  { %841 = vmatpush1.msra.mxu0 %v5016_v38  ;;  %912 = vmatpush1.msra.mxu1 %v5018_v53  ;;  %8708 = vst [vmem:[#allocation53_spill] sm:$0xff] %v5030_v0  ;;  %8709 = vst [vmem:[#allocation54_spill] sm:$0xff] %v5034_v39  ;;  %v5036_v38 = vld [vmem:[#allocation11 + $0xf8] sm:$0xff]  ;;  %v5040_v53 = vld [vmem:[#allocation11 + $0xe0] sm:$0xff] }
  0x7c   :  { %842 = vmatprep.subr.mxu0 %v5022_v62  ;;  %913 = vmatprep.subr.mxu1 %v5024_v8  ;;  %8710 = vst [vmem:[#allocation55_spill] sm:$0xff] %v5036_v38  ;;  %8711 = vst [vmem:[#allocation56_spill] sm:$0xff] %v5040_v53  ;;  %v5042_v62 = vld [vmem:[#allocation11 + $0xf0] sm:$0xff]  ;;  %v5046_v8 = vld [vmem:[#allocation11 + $0xc8] sm:$0xff] }
  0x7d   :  { %843 = vmatpush1.msra.mxu0 %v5028_v17  ;;  %914 = vmatpush1.msra.mxu1 %v5030_v0  ;;  %8712 = vst [vmem:[#allocation57_spill] sm:$0xff] %v5042_v62  ;;  %8713 = vst [vmem:[#allocation58_spill] sm:$0xff] %v5046_v8  ;;  %v5048_v17 = vld [vmem:[#allocation11 + $0xd8] sm:$0xff]  ;;  %v5052_v0 = vld [vmem:[#allocation11 + $0xc0] sm:$0xff] }
  0x7e   :  { %844 = vmatprep.subr.mxu0 %v5034_v39  ;;  %915 = vmatprep.subr.mxu1 %v5036_v38  ;;  %8714 = vst [vmem:[#allocation59_spill] sm:$0xff] %v5048_v17  ;;  %8715 = vst [vmem:[#allocation60_spill] sm:$0xff] %v5052_v0  ;;  %v5054_v39 = vld [vmem:[#allocation11 + $0xd0] sm:$0xff]  ;;  %v5058_v38 = vld [vmem:[#allocation11 + $0xa8] sm:$0xff] }
  0x7f   :  { %845 = vmatpush1.msra.mxu0 %v5040_v53  ;;  %916 = vmatpush1.msra.mxu1 %v5042_v62  ;;  %8716 = vst [vmem:[#allocation61_spill] sm:$0xff] %v5054_v39  ;;  %8717 = vst [vmem:[#allocation62_spill] sm:$0xff] %v5058_v38  ;;  %v5060_v53 = vld [vmem:[#allocation11 + $0xb8] sm:$0xff]  ;;  %v5064_v62 = vld [vmem:[#allocation11 + $0xa0] sm:$0xff] }
  0x80   :  { %846 = vmatprep.subr.mxu0 %v5046_v8  ;;  %917 = vmatprep.subr.mxu1 %v5048_v17  ;;  %8718 = vst [vmem:[#allocation63_spill] sm:$0xff] %v5060_v53  ;;  %8719 = vst [vmem:[#allocation64_spill] sm:$0xff] %v5064_v62  ;;  %v5066_v8 = vld [vmem:[#allocation11 + $0xb0] sm:$0xff]  ;;  %v5070_v17 = vld [vmem:[#allocation11 + $0x88] sm:$0xff] }
  0x81   :  { %847 = vmatpush1.msra.mxu0 %v5052_v0  ;;  %918 = vmatpush1.msra.mxu1 %v5054_v39  ;;  %8720 = vst [vmem:[#allocation65_spill] sm:$0xff] %v5066_v8  ;;  %8721 = vst [vmem:[#allocation66_spill] sm:$0xff] %v5070_v17  ;;  %v5072_v0 = vld [vmem:[#allocation11 + $0x98] sm:$0xff]  ;;  %v5076_v39 = vld [vmem:[#allocation11 + $0x80] sm:$0xff] }
  0x82   :  { %848 = vmatprep.subr.mxu0 %v5058_v38  ;;  %919 = vmatprep.subr.mxu1 %v5060_v53  ;;  %8722 = vst [vmem:[#allocation67_spill] sm:$0xff] %v5072_v0  ;;  %8723 = vst [vmem:[#allocation68_spill] sm:$0xff] %v5076_v39  ;;  %v5078_v38 = vld [vmem:[#allocation11 + $0x90] sm:$0xff]  ;;  %v5082_v53 = vld [vmem:[#allocation11 + $0x68] sm:$0xff] }
  0x83   :  { %849 = vmatpush1.msra.mxu0 %v5064_v62  ;;  %920 = vmatpush1.msra.mxu1 %v5066_v8  ;;  %8724 = vst [vmem:[#allocation69_spill] sm:$0xff] %v5078_v38  ;;  %8725 = vst [vmem:[#allocation70_spill] sm:$0xff] %v5082_v53  ;;  %v5084_v62 = vld [vmem:[#allocation11 + $0x78] sm:$0xff]  ;;  %v5088_v8 = vld [vmem:[#allocation11 + $0x60] sm:$0xff] }
  0x84   :  { %850 = vmatprep.subr.mxu0 %v5070_v17  ;;  %921 = vmatprep.subr.mxu1 %v5072_v0  ;;  %8726 = vst [vmem:[#allocation71_spill] sm:$0xff] %v5084_v62  ;;  %8727 = vst [vmem:[#allocation72_spill] sm:$0xff] %v5088_v8  ;;  %v5090_v17 = vld [vmem:[#allocation11 + $0x70] sm:$0xff]  ;;  %v5094_v0 = vld [vmem:[#allocation11 + $0x48] sm:$0xff] }
  0x85   :  { %851 = vmatpush1.msra.mxu0 %v5076_v39  ;;  %922 = vmatpush1.msra.mxu1 %v5078_v38  ;;  %8728 = vst [vmem:[#allocation73_spill] sm:$0xff] %v5090_v17  ;;  %8729 = vst [vmem:[#allocation74_spill] sm:$0xff] %v5094_v0  ;;  %v5096_v39 = vld [vmem:[#allocation11 + $0x58] sm:$0xff]  ;;  %v5100_v38 = vld [vmem:[#allocation11 + $0x40] sm:$0xff] }
  0x86   :  { %852 = vmatprep.subr.mxu0 %v5082_v53  ;;  %923 = vmatprep.subr.mxu1 %v5084_v62  ;;  %8730 = vst [vmem:[#allocation75_spill] sm:$0xff] %v5096_v39  ;;  %8731 = vst [vmem:[#allocation76_spill] sm:$0xff] %v5100_v38  ;;  %v5102_v53 = vld [vmem:[#allocation11 + $0x50] sm:$0xff]  ;;  %v5106_v62 = vld [vmem:[#allocation11 + $0x28] sm:$0xff] }
  0x87   :  { %853 = vmatpush1.msra.mxu0 %v5088_v8  ;;  %924 = vmatpush1.msra.mxu1 %v5090_v17  ;;  %8732 = vst [vmem:[#allocation77_spill] sm:$0xff] %v5102_v53  ;;  %8733 = vst [vmem:[#allocation78_spill] sm:$0xff] %v5106_v62  ;;  %v5108_v8 = vld [vmem:[#allocation11 + $0x38] sm:$0xff]  ;;  %v5112_v17 = vld [vmem:[#allocation11 + $0x20] sm:$0xff] }
  0x88   :  { %854 = vmatprep.subr.mxu0 %v5094_v0  ;;  %925 = vmatprep.subr.mxu1 %v5096_v39  ;;  %8734 = vst [vmem:[#allocation79_spill] sm:$0xff] %v5108_v8  ;;  %8735 = vst [vmem:[#allocation80_spill] sm:$0xff] %v5112_v17  ;;  %v5114_v0 = vld [vmem:[#allocation11 + $0x30] sm:$0xff]  ;;  %v5118_v39 = vld [vmem:[#allocation11 + $0x8] sm:$0xff] }
  0x89   :  { %855 = vmatpush1.msra.mxu0 %v5100_v38  ;;  %926 = vmatpush1.msra.mxu1 %v5102_v53  ;;  %8736 = vst [vmem:[#allocation81_spill] sm:$0xff] %v5114_v0  ;;  %8737 = vst [vmem:[#allocation82_spill] sm:$0xff] %v5118_v39  ;;  %v5120_v38 = vld [vmem:[#allocation11 + $0x18] sm:$0xff]  ;;  %v5124_v53 = vld [vmem:[#allocation11] sm:$0xff] }
  0x8a   :  { %856 = vmatprep.subr.mxu0 %v5106_v62  ;;  %927 = vmatprep.subr.mxu1 %v5108_v8  ;;  %8738 = vst [vmem:[#allocation83_spill] sm:$0xff] %v5120_v38  ;;  %8739 = vst [vmem:[#allocation84_spill] sm:$0xff] %v5124_v53  ;;  %v5126_v62 = vld [vmem:[#allocation11 + $0x10] sm:$0xff]  ;;  %v5130_v8 = vld [vmem:[#allocation11 + $0x3e8] sm:$0xff] }
  0x8b   :  { %857 = vmatpush1.msra.mxu0 %v5112_v17  ;;  %928 = vmatpush1.msra.mxu1 %v5114_v0  ;;  %8740 = vst [vmem:[#allocation85_spill] sm:$0xff] %v5126_v62  ;;  %8741 = vst [vmem:[#allocation86_spill] sm:$0xff] %v5130_v8  ;;  %v5132_v17 = vld [vmem:[#allocation11 + $0x3f8] sm:$0xff]  ;;  %v5136_v0 = vld [vmem:[#allocation11 + $0x3e0] sm:$0xff] }
  0x8c   :  { %858 = vmatprep.subr.mxu0 %v5118_v39  ;;  %929 = vmatprep.subr.mxu1 %v5120_v38  ;;  %8742 = vst [vmem:[#allocation87_spill] sm:$0xff] %v5132_v17  ;;  %8743 = vst [vmem:[#allocation88_spill] sm:$0xff] %v5136_v0  ;;  %v5138_v39 = vld [vmem:[#allocation11 + $0x3f0] sm:$0xff]  ;;  %v5142_v38 = vld [vmem:[#allocation11 + $0x3c8] sm:$0xff] }
  0x8d   :  { %859 = vmatpush1.msra.mxu0 %v5124_v53  ;;  %930 = vmatpush1.msra.mxu1 %v5126_v62  ;;  %8744 = vst [vmem:[#allocation89_spill] sm:$0xff] %v5138_v39  ;;  %8745 = vst [vmem:[#allocation90_spill] sm:$0xff] %v5142_v38  ;;  %v5144_v53 = vld [vmem:[#allocation11 + $0x3d8] sm:$0xff]  ;;  %v5148_v62 = vld [vmem:[#allocation11 + $0x3c0] sm:$0xff] }
  0x8e   :  { %860 = vmatprep.subr.mxu0 %v5130_v8  ;;  %931 = vmatprep.subr.mxu1 %v5132_v17  ;;  %8746 = vst [vmem:[#allocation91_spill] sm:$0xff] %v5144_v53  ;;  %8747 = vst [vmem:[#allocation92_spill] sm:$0xff] %v5148_v62  ;;  %v5150_v8 = vld [vmem:[#allocation11 + $0x3d0] sm:$0xff]  ;;  %v5154_v17 = vld [vmem:[#allocation11 + $0x3a8] sm:$0xff] }
  0x8f   :  { %861 = vmatpush2.msra.mxu0 %v5136_v0  ;;  %932 = vmatpush2.msra.mxu1 %v5138_v39  ;;  %8748 = vst [vmem:[#allocation93_spill] sm:$0xff] %v5150_v8  ;;  %8749 = vst [vmem:[#allocation94_spill] sm:$0xff] %v5154_v17  ;;  %v5156_v0 = vld [vmem:[#allocation11 + $0x3b8] sm:$0xff]  ;;  %v5160_v39 = vld [vmem:[#allocation11 + $0x3a0] sm:$0xff] }
  0x90   :  { %862 = vmatprep.subr.mxu0 %v5142_v38  ;;  %933 = vmatprep.subr.mxu1 %v5144_v53  ;;  %8750 = vst [vmem:[#allocation95_spill] sm:$0xff] %v5156_v0  ;;  %8751 = vst [vmem:[#allocation96_spill] sm:$0xff] %v5160_v39  ;;  %v5162_v38 = vld [vmem:[#allocation11 + $0x3b0] sm:$0xff]  ;;  %v5166_v53 = vld [vmem:[#allocation11 + $0x388] sm:$0xff] }
  0x91   :  { %863 = vmatpush2.msra.mxu0 %v5148_v62  ;;  %934 = vmatpush2.msra.mxu1 %v5150_v8  ;;  %8752 = vst [vmem:[#allocation97_spill] sm:$0xff] %v5162_v38  ;;  %8753 = vst [vmem:[#allocation98_spill] sm:$0xff] %v5166_v53  ;;  %v5168_v62 = vld [vmem:[#allocation11 + $0x398] sm:$0xff]  ;;  %v5172_v8 = vld [vmem:[#allocation11 + $0x380] sm:$0xff] }
  0x92   :  { %864 = vmatprep.subr.mxu0 %v5154_v17  ;;  %935 = vmatprep.subr.mxu1 %v5156_v0  ;;  %8754 = vst [vmem:[#allocation99_spill] sm:$0xff] %v5168_v62  ;;  %8755 = vst [vmem:[#allocation100_spill] sm:$0xff] %v5172_v8  ;;  %v5174_v17 = vld [vmem:[#allocation11 + $0x390] sm:$0xff]  ;;  %v5178_v0 = vld [vmem:[#allocation11 + $0x368] sm:$0xff] }
  0x93   :  { %865 = vmatpush2.msra.mxu0 %v5160_v39  ;;  %936 = vmatpush2.msra.mxu1 %v5162_v38  ;;  %8756 = vst [vmem:[#allocation101_spill] sm:$0xff] %v5174_v17  ;;  %8757 = vst [vmem:[#allocation102_spill] sm:$0xff] %v5178_v0  ;;  %v5180_v39 = vld [vmem:[#allocation11 + $0x378] sm:$0xff]  ;;  %v5184_v38 = vld [vmem:[#allocation11 + $0x360] sm:$0xff] }
  0x94   :  { %866 = vmatprep.subr.mxu0 %v5166_v53  ;;  %937 = vmatprep.subr.mxu1 %v5168_v62  ;;  %8758 = vst [vmem:[#allocation103_spill] sm:$0xff] %v5180_v39  ;;  %8759 = vst [vmem:[#allocation104_spill] sm:$0xff] %v5184_v38  ;;  %v5186_v53 = vld [vmem:[#allocation11 + $0x370] sm:$0xff]  ;;  %v5190_v62 = vld [vmem:[#allocation11 + $0x348] sm:$0xff] }
  0x95   :  { %867 = vmatpush2.msra.mxu0 %v5172_v8  ;;  %938 = vmatpush2.msra.mxu1 %v5174_v17  ;;  %8760 = vst [vmem:[#allocation105_spill] sm:$0xff] %v5186_v53  ;;  %8761 = vst [vmem:[#allocation106_spill] sm:$0xff] %v5190_v62  ;;  %v5192_v8 = vld [vmem:[#allocation11 + $0x358] sm:$0xff]  ;;  %v5196_v17 = vld [vmem:[#allocation11 + $0x340] sm:$0xff] }
  0x96   :  { %868 = vmatprep.subr.mxu0 %v5178_v0  ;;  %939 = vmatprep.subr.mxu1 %v5180_v39  ;;  %8762 = vst [vmem:[#allocation107_spill] sm:$0xff] %v5192_v8  ;;  %8763 = vst [vmem:[#allocation108_spill] sm:$0xff] %v5196_v17  ;;  %v5198_v0 = vld [vmem:[#allocation11 + $0x350] sm:$0xff]  ;;  %v5202_v39 = vld [vmem:[#allocation11 + $0x328] sm:$0xff] }
  0x97   :  { %869 = vmatpush2.msra.mxu0 %v5184_v38  ;;  %940 = vmatpush2.msra.mxu1 %v5186_v53  ;;  %8764 = vst [vmem:[#allocation109_spill] sm:$0xff] %v5198_v0  ;;  %8765 = vst [vmem:[#allocation110_spill] sm:$0xff] %v5202_v39  ;;  %v5204_v38 = vld [vmem:[#allocation11 + $0x338] sm:$0xff]  ;;  %v5208_v53 = vld [vmem:[#allocation11 + $0x320] sm:$0xff] }
  0x98   :  { %870 = vmatprep.subr.mxu0 %v5190_v62  ;;  %941 = vmatprep.subr.mxu1 %v5192_v8  ;;  %8766 = vst [vmem:[#allocation111_spill] sm:$0xff] %v5204_v38  ;;  %8767 = vst [vmem:[#allocation112_spill] sm:$0xff] %v5208_v53  ;;  %v5210_v62 = vld [vmem:[#allocation11 + $0x330] sm:$0xff]  ;;  %v5214_v8 = vld [vmem:[#allocation11 + $0x308] sm:$0xff] }
  0x99   :  { %871 = vmatpush2.msra.mxu0 %v5196_v17  ;;  %942 = vmatpush2.msra.mxu1 %v5198_v0  ;;  %8768 = vst [vmem:[#allocation113_spill] sm:$0xff] %v5210_v62  ;;  %8769 = vst [vmem:[#allocation114_spill] sm:$0xff] %v5214_v8  ;;  %v5216_v17 = vld [vmem:[#allocation11 + $0x318] sm:$0xff]  ;;  %v5220_v0 = vld [vmem:[#allocation11 + $0x300] sm:$0xff] }
  0x9a   :  { %872 = vmatprep.subr.mxu0 %v5202_v39  ;;  %943 = vmatprep.subr.mxu1 %v5204_v38  ;;  %8770 = vst [vmem:[#allocation115_spill] sm:$0xff] %v5216_v17  ;;  %8771 = vst [vmem:[#allocation116_spill] sm:$0xff] %v5220_v0  ;;  %v5222_v39 = vld [vmem:[#allocation11 + $0x310] sm:$0xff]  ;;  %v5224_v38 = vld [vmem:[#allocation11 + $0x2e8] sm:$0xff] }
  0x9b   :  { %873 = vmatpush2.msra.mxu0 %v5208_v53  ;;  %944 = vmatpush2.msra.mxu1 %v5210_v62  ;;  %8772 = vst [vmem:[#allocation117_spill] sm:$0xff] %v5222_v39  ;;  %8773 = vst [vmem:[#allocation118_spill] sm:$0xff] %v5224_v38  ;;  %v5228_v53 = vld [vmem:[#allocation11 + $0x2f8] sm:$0xff]  ;;  %v5230_v62 = vld [vmem:[#allocation11 + $0x2e0] sm:$0xff] }
  0x9c   :  { %874 = vmatprep.subr.mxu0 %v5214_v8  ;;  %945 = vmatprep.subr.mxu1 %v5216_v17  ;;  %8774 = vst [vmem:[#allocation119_spill] sm:$0xff] %v5228_v53  ;;  %8775 = vst [vmem:[#allocation120_spill] sm:$0xff] %v5230_v62  ;;  %v5236_v17 = vld [vmem:[#allocation11 + $0x2c8] sm:$0xff]  ;;  %v5238_v8 = vld [vmem:[#allocation11 + $0x2d8] sm:$0xff] }
  0x9d   :  { %875 = vmatpush2.msra.mxu0 %v5220_v0  ;;  %946 = vmatpush2.msra.mxu1 %v5222_v39  ;;  %8777 = vst [vmem:[#allocation122_spill] sm:$0xff] %v5236_v17  ;;  %8778 = vst [vmem:[#allocation123_spill] sm:$0xff] %v5238_v8  ;;  %v5244_v39 = vld [vmem:[#allocation11 + $0x2d0] sm:$0xff]  ;;  %v5246_v0 = vld [vmem:[#allocation11 + $0x2a8] sm:$0xff] }
  0x9e   :  { %876 = vmatprep.subr.mxu0 %v5224_v38  ;;  %947 = vmatprep.subr.mxu1 %v5228_v53  ;;  %8780 = vst [vmem:[#allocation125_spill] sm:$0xff] %v5244_v39  ;;  %8781 = vst [vmem:[#allocation126_spill] sm:$0xff] %v5246_v0  ;;  %v5252_v53 = vld [vmem:[#allocation11 + $0x2a0] sm:$0xff]  ;;  %v5254_v38 = vld [vmem:[#allocation11 + $0x2b0] sm:$0xff] }
  0x9f   :  { %877 = vmatpush2.msra.mxu0 %v5230_v62  ;;  %948 = vmatpush2.msra.mxu1 %v5232_v44  ;;  %8783 = vst [vmem:[#allocation128_spill] sm:$0xff] %v5252_v53  ;;  %8784 = vst [vmem:[#allocation129_spill] sm:$0xff] %v5254_v38  ;;  %v5258_v62 = vld [vmem:[#allocation11 + $0x288] sm:$0xff]  ;;  %v5260_v44 = vld [vmem:[#allocation11 + $0x298] sm:$0xff] }
  0xa0   :  { %878 = vmatprep.subr.mxu0 %v5236_v17  ;;  %949 = vmatprep.subr.mxu1 %v5238_v8  ;;  %8785 = vst [vmem:[#allocation130_spill] sm:$0xff] %v5258_v62  ;;  %8786 = vst [vmem:[#allocation131_spill] sm:$0xff] %v5260_v44  ;;  %v5266_v17 = vld [vmem:[#allocation11 + $0x290] sm:$0xff]  ;;  %v5270_v8 = vld [vmem:[#allocation11 + $0x268] sm:$0xff] }
  0xa1   :  { %879 = vmatpush2.msra.mxu0 %v5240_v37  ;;  %950 = vmatpush2.msra.mxu1 %v5244_v39  ;;  %8788 = vst [vmem:[#allocation133_spill] sm:$0xff] %v5266_v17  ;;  %8789 = vst [vmem:[#allocation134_spill] sm:$0xff] %v5270_v8  ;;  %v5272_v37 = vld [vmem:[#allocation11 + $0x278] sm:$0xff]  ;;  %v5276_v39 = vld [vmem:[#allocation11 + $0x260] sm:$0xff] }
  0xa2   :  { %880 = vmatprep.subr.mxu0 %v5246_v0  ;;  %951 = vmatprep.subr.mxu1 %v5248_v36  ;;  %8790 = vst [vmem:[#allocation135_spill] sm:$0xff] %v5272_v37  ;;  %8791 = vst [vmem:[#allocation136_spill] sm:$0xff] %v5276_v39  ;;  %v5278_v0 = vld [vmem:[#allocation11 + $0x270] sm:$0xff]  ;;  %v5282_v36 = vld [vmem:[#allocation11 + $0x248] sm:$0xff] }
  0xa3   :  { %881 = vmatpush2.msra.mxu0 %v5252_v53  ;;  %952 = vmatpush2.msra.mxu1 %v5254_v38  ;;  %8792 = vst [vmem:[#allocation137_spill] sm:$0xff] %v5278_v0  ;;  %8793 = vst [vmem:[#allocation138_spill] sm:$0xff] %v5282_v36  ;;  %v5284_v53 = vld [vmem:[#allocation11 + $0x258] sm:$0xff]  ;;  %v5288_v38 = vld [vmem:[#allocation11 + $0x240] sm:$0xff] }
  0xa4   :  { %882 = vmatprep.subr.mxu0 %v5258_v62  ;;  %953 = vmatprep.subr.mxu1 %v5260_v44  ;;  %8794 = vst [vmem:[#allocation139_spill] sm:$0xff] %v5284_v53  ;;  %8795 = vst [vmem:[#allocation140_spill] sm:$0xff] %v5288_v38  ;;  %v5290_v62 = vld [vmem:[#allocation11 + $0x250] sm:$0xff]  ;;  %v5294_v44 = vld [vmem:[#allocation11 + $0x228] sm:$0xff] }
  0xa5   :  { %883 = vmatpush2.msra.mxu0 %v5264_v35  ;;  %954 = vmatpush2.msra.mxu1 %v5266_v17  ;;  %8796 = vst [vmem:[#allocation141_spill] sm:$0xff] %v5290_v62  ;;  %8797 = vst [vmem:[#allocation142_spill] sm:$0xff] %v5294_v44  ;;  %v5296_v35 = vld [vmem:[#allocation11 + $0x238] sm:$0xff]  ;;  %v5300_v17 = vld [vmem:[#allocation11 + $0x220] sm:$0xff] }
  0xa6   :  { %884 = vmatprep.subr.mxu0 %v5270_v8  ;;  %955 = vmatprep.subr.mxu1 %v5272_v37  ;;  %8798 = vst [vmem:[#allocation143_spill] sm:$0xff] %v5296_v35  ;;  %8799 = vst [vmem:[#allocation144_spill] sm:$0xff] %v5300_v17  ;;  %v5302_v8 = vld [vmem:[#allocation11 + $0x230] sm:$0xff]  ;;  %v5306_v37 = vld [vmem:[#allocation11 + $0x208] sm:$0xff] }
  0xa7   :  { %885 = vmatpush2.msra.mxu0 %v5276_v39  ;;  %956 = vmatpush2.msra.mxu1 %v5278_v0  ;;  %8800 = vst [vmem:[#allocation145_spill] sm:$0xff] %v5302_v8  ;;  %8801 = vst [vmem:[#allocation146_spill] sm:$0xff] %v5306_v37  ;;  %v5308_v39 = vld [vmem:[#allocation11 + $0x218] sm:$0xff]  ;;  %v5312_v0 = vld [vmem:[#allocation11 + $0x200] sm:$0xff] }
  0xa8   :  { %886 = vmatprep.subr.mxu0 %v5282_v36  ;;  %957 = vmatprep.subr.mxu1 %v5284_v53  ;;  %8802 = vst [vmem:[#allocation147_spill] sm:$0xff] %v5308_v39  ;;  %8803 = vst [vmem:[#allocation148_spill] sm:$0xff] %v5312_v0  ;;  %v5314_v36 = vld [vmem:[#allocation11 + $0x210] sm:$0xff] }
  0xa9   :  { %887 = vmatpush2.msra.mxu0 %v5288_v38  ;;  %958 = vmatpush2.msra.mxu1 %v5290_v62  ;;  %8804 = vst [vmem:[#allocation149_spill] sm:$0xff] %v5314_v36 }
  0xaa   :  { %888 = vmatprep.subr.mxu0 %v5294_v44  ;;  %959 = vmatprep.subr.mxu1 %v5296_v35  ;;  %v111_v35 = vlaneseq }
  0xab   :  { %889 = vmatpush2.msra.mxu0 %v5300_v17  ;;  %960 = vmatpush2.msra.mxu1 %v5302_v8 }
  0xac   :  { %890 = vmatprep.subr.mxu0 %v5306_v37  ;;  %961 = vmatprep.subr.mxu1 %v5308_v39  ;;  %v5324_v44 = vshrl.u32 %v111_v35, 7 }
  0xad   :  { %891 = vmatpush2.msra.mxu0 %v5312_v0  ;;  %962 = vmatpush2.msra.mxu1 %v5314_v36  ;;  %v109_v0 = vld [vmem:[%s8122_s3] sm:$0xf] }
  0xae   :  { %1005 = vmatprep.subr.mxu0 %v4743_v18  ;;  %1076 = vmatprep.subr.mxu1 %v4745_v19  ;;  %v8257_v8 = vsub.s32 0, %v5324_v44  ;;  %v8259_v37 = vsub.s32 2, %v5324_v44  ;;  %v8263_v19 = vsub.s32 1, %v5324_v44  ;;  %v8264_v35 = vsub.s32 3, %v5324_v44 }
  0xb0   :  { %v114_v39 = vrot.slane %v109_v0, %v8257_v8  ;;  %v5345_v38 = vrot.slane %v109_v0, %v8259_v37  ;;  %v118_v33 = vrot.slane %v109_v0, %v8263_v19  ;;  %v5351_v32 = vrot.slane %v109_v0, %v8264_v35 }
  0xfc   :  { %v5326_v62 = vpop.f32.mrf.mxu0  ;;  %v5328_v17 = vpop.f32.mrf.mxu1 }
  0xfe   :  { %v5335_v36 = vpop.f32.mrf.mxu0  ;;  %v5337_v18 = vpop.f32.mrf.mxu1 }
 0x102   :  { %v241_v53 = vpop.f32.mrf.mxu0  ;;  %v354_v34 = vpop.f32.mrf.mxu1 }
 0x103   :  { %v5353_v31 = vadd.f32 %v241_v53, %v114_v39  ;;  %v5356_v30 = vadd.f32 %v354_v34, %v5345_v38 }
 0x104   :  { %v243_v29 = vpop.f32.mrf.mxu0  ;;  %v356_v8 = vpop.f32.mrf.mxu1 }
 0x105   :  { %8805 = vst [vmem:[#allocation150_spill] sm:$0xff] %v5353_v31  ;;  %8806 = vst [vmem:[#allocation151_spill] sm:$0xff] %v5356_v30  ;;  %v5358_v28 = vadd.f32 %v243_v29, %v118_v33  ;;  %v5361_v37 = vadd.f32 %v356_v8, %v5351_v32 }
 0x107   :  { %8807 = vst [vmem:[#allocation152_spill] sm:$0xff] %v5358_v28  ;;  %8808 = vst [vmem:[#allocation153_spill] sm:$0xff] %v5361_v37 }
 0x108   :  { %v247_v27 = vpop.f32.mrf.mxu0  ;;  %v360_v26 = vpop.f32.mrf.mxu1 }
 0x109   :  { %v5363_v25 = vadd.f32 %v247_v27, %v114_v39  ;;  %v5366_v19 = vadd.f32 %v360_v26, %v5345_v38 }
 0x10a   :  { %v249_v0 = vpop.f32.mrf.mxu0  ;;  %v362_v53 = vpop.f32.mrf.mxu1 }
 0x10b   :  { %8809 = vst [vmem:[#allocation154_spill] sm:$0xff] %v5363_v25  ;;  %8810 = vst [vmem:[#allocation155_spill] sm:$0xff] %v5366_v19  ;;  %v5368_v35 = vadd.f32 %v249_v0, %v118_v33  ;;  %v5371_v34 = vadd.f32 %v362_v53, %v5351_v32 }
 0x10d   :  { %8811 = vst [vmem:[#allocation156_spill] sm:$0xff] %v5368_v35  ;;  %8812 = vst [vmem:[#allocation157_spill] sm:$0xff] %v5371_v34 }
 0x10e   :  { %v253_v30 = vpop.f32.mrf.mxu0  ;;  %v366_v29 = vpop.f32.mrf.mxu1 }
 0x10f   :  { %v5373_v28 = vadd.f32 %v253_v30, %v114_v39  ;;  %v5376_v8 = vadd.f32 %v366_v29, %v5345_v38 }
 0x110   :  { %v255_v37 = vpop.f32.mrf.mxu0  ;;  %v368_v27 = vpop.f32.mrf.mxu1 }
 0x111   :  { %8813 = vst [vmem:[#allocation158_spill] sm:$0xff] %v5373_v28  ;;  %8814 = vst [vmem:[#allocation159_spill] sm:$0xff] %v5376_v8  ;;  %v5378_v25 = vadd.f32 %v255_v37, %v118_v33  ;;  %v5381_v26 = vadd.f32 %v368_v27, %v5351_v32 }
 0x113   :  { %8815 = vst [vmem:[#allocation160_spill] sm:$0xff] %v5378_v25  ;;  %8816 = vst [vmem:[#allocation161_spill] sm:$0xff] %v5381_v26 }
 0x114   :  { %v259_v19 = vpop.f32.mrf.mxu0  ;;  %v372_v0 = vpop.f32.mrf.mxu1 }
 0x115   :  { %v5383_v35 = vadd.f32 %v259_v19, %v114_v39  ;;  %v5386_v53 = vadd.f32 %v372_v0, %v5345_v38 }
 0x116   :  { %v261_v34 = vpop.f32.mrf.mxu0  ;;  %v374_v30 = vpop.f32.mrf.mxu1 }
 0x117   :  { %8817 = vst [vmem:[#allocation162_spill] sm:$0xff] %v5383_v35  ;;  %8818 = vst [vmem:[#allocation163_spill] sm:$0xff] %v5386_v53  ;;  %v5388_v28 = vadd.f32 %v261_v34, %v118_v33  ;;  %v5391_v29 = vadd.f32 %v374_v30, %v5351_v32 }
 0x119   :  { %8819 = vst [vmem:[#allocation164_spill] sm:$0xff] %v5388_v28  ;;  %8820 = vst [vmem:[#allocation165_spill] sm:$0xff] %v5391_v29 }
 0x11a   :  { %v265_v8 = vpop.f32.mrf.mxu0  ;;  %v378_v37 = vpop.f32.mrf.mxu1 }
 0x11b   :  { %v5393_v25 = vadd.f32 %v265_v8, %v114_v39  ;;  %v5396_v27 = vadd.f32 %v378_v37, %v5345_v38 }
 0x11c   :  { %v267_v26 = vpop.f32.mrf.mxu0  ;;  %v380_v19 = vpop.f32.mrf.mxu1 }
 0x11d   :  { %8821 = vst [vmem:[#allocation166_spill] sm:$0xff] %v5393_v25  ;;  %8822 = vst [vmem:[#allocation167_spill] sm:$0xff] %v5396_v27  ;;  %v5398_v35 = vadd.f32 %v267_v26, %v118_v33  ;;  %v5401_v0 = vadd.f32 %v380_v19, %v5351_v32 }
 0x11f   :  { %8823 = vst [vmem:[#allocation168_spill] sm:$0xff] %v5398_v35  ;;  %8824 = vst [vmem:[#allocation169_spill] sm:$0xff] %v5401_v0 }
 0x120   :  { %v271_v53 = vpop.f32.mrf.mxu0  ;;  %v384_v34 = vpop.f32.mrf.mxu1 }
 0x121   :  { %v5403_v28 = vadd.f32 %v271_v53, %v114_v39  ;;  %v5406_v30 = vadd.f32 %v384_v34, %v5345_v38 }
 0x122   :  { %v273_v29 = vpop.f32.mrf.mxu0  ;;  %v386_v8 = vpop.f32.mrf.mxu1 }
 0x123   :  { %8825 = vst [vmem:[#allocation170_spill] sm:$0xff] %v5403_v28  ;;  %8826 = vst [vmem:[#allocation171_spill] sm:$0xff] %v5406_v30  ;;  %v5408_v25 = vadd.f32 %v273_v29, %v118_v33  ;;  %v5411_v37 = vadd.f32 %v386_v8, %v5351_v32  ;;  %v236_v29 = vadd.f32 %v5326_v62, %v114_v39 }
 0x124   :  { %v238_v8 = vadd.f32 %v5335_v36, %v118_v33 }
 0x125   :  { %8827 = vst [vmem:[#allocation172_spill] sm:$0xff] %v5408_v25  ;;  %8828 = vst [vmem:[#allocation173_spill] sm:$0xff] %v5411_v37 }
 0x126   :  { %v277_v27 = vpop.f32.mrf.mxu0  ;;  %v390_v26 = vpop.f32.mrf.mxu1 }
 0x127   :  { %v5413_v35 = vadd.f32 %v277_v27, %v114_v39  ;;  %v5416_v19 = vadd.f32 %v390_v26, %v5345_v38 }
 0x128   :  { %v279_v0 = vpop.f32.mrf.mxu0  ;;  %v392_v53 = vpop.f32.mrf.mxu1 }
 0x129   :  { %8829 = vst [vmem:[#allocation174_spill] sm:$0xff] %v5413_v35  ;;  %8830 = vst [vmem:[#allocation175_spill] sm:$0xff] %v5416_v19  ;;  %v5418_v28 = vadd.f32 %v279_v0, %v118_v33  ;;  %v5421_v34 = vadd.f32 %v392_v53, %v5351_v32  ;;  %v349_v0 = vadd.f32 %v5328_v17, %v5345_v38 }
 0x12a   :  { %v351_v53 = vadd.f32 %v5337_v18, %v5351_v32 }
 0x12b   :  { %8831 = vst [vmem:[#allocation176_spill] sm:$0xff] %v5418_v28  ;;  %8832 = vst [vmem:[#allocation177_spill] sm:$0xff] %v5421_v34 }
 0x12c   :  { %v698_v30 = vpop.f32.mrf.mxu0  ;;  %v769_v26 = vpop.f32.mrf.mxu1 }
 0x12d   :  { %v774_v37 = vadd.f32 %v698_v30, %v236_v29  ;;  %v776_v19 = vadd.f32 %v769_v26, %v349_v0  ;;  %v5445_v26 = vld [vmem:[#allocation9 + $0x1d8] sm:$0xff]  ;;  %v5448_v0 = vld [vmem:[#allocation9 + $0x1c0] sm:$0xff] }
 0x12e   :  { %v700_v25 = vpop.f32.mrf.mxu0  ;;  %v771_v28 = vpop.f32.mrf.mxu1 }
 0x12f   :  { %v3600_v31 = vmul.f32 -1.442695, %v774_v37  ;;  %v775_v27 = vadd.f32 %v700_v25, %v238_v8  ;;  %v3602_v39 = vmul.f32 -1.442695, %v776_v19  ;;  %v777_v34 = vadd.f32 %v771_v28, %v351_v53  ;;  %v5436_v19 = vld [vmem:[#allocation9 + $0x1e0] sm:$0xff]  ;;  %v5451_v53 = vld [vmem:[#allocation9 + $0x1d0] sm:$0xff] }
 0x131   :  { %3712 = vpow2.f32 %v3600_v31  ;;  %v3601_v35 = vmul.f32 -1.442695, %v775_v27  ;;  %v5442_v27 = vld [vmem:[#allocation9 + $0x1c8] sm:$0xff] }
 0x133   :  { %3714 = vpow2.f32 %v3601_v35 }
 0x134   :  { %3716 = vpow2.f32 %v3602_v39  ;;  %v5454_v39 = vld [vmem:[#allocation9 + $0x1a8] sm:$0xff] }
 0x13e   :  { %v3713_v62 = vpop.eup %3712 }
 0x13f   :  { %v788_v33 = vadd.f32 1.0, %v3713_v62  ;;  %v5457_v62 = vld [vmem:[#allocation9 + $0x1b8] sm:$0xff] }
 0x140   :  { %v3715_v36 = vpop.eup %3714 }
 0x141   :  { %3718 = vrcp.f32 %v788_v33  ;;  %v789_v25 = vadd.f32 1.0, %v3715_v36  ;;  %v3717_v31 = vpop.eup %3716  ;;  %v5460_v33 = vld [vmem:[#allocation9 + $0x1a0] sm:$0xff]  ;;  %v5463_v36 = vld [vmem:[#allocation9 + $0x1b0] sm:$0xff] }
 0x142   :  { %3720 = vtanh.f32 %v777_v34  ;;  %v790_v38 = vadd.f32 1.0, %v3717_v31  ;;  %v5439_v34 = vld [vmem:[#allocation9 + $0x1f0] sm:$0xff]  ;;  %v5469_v31 = vld [vmem:[#allocation9 + $0x198] sm:$0xff] }
 0x143   :  { %3722 = vrcp.f32 %v789_v25  ;;  %v5466_v25 = vld [vmem:[#allocation9 + $0x188] sm:$0xff] }
 0x144   :  { %3724 = vrcp.f32 %v790_v38  ;;  %v5481_v38 = vld [vmem:[#allocation9 + $0x178] sm:$0xff] }
 0x14e   :  { %v3719_v35 = vpop.eup %3718 }
 0x14f   :  { %v3721_v30 = vpop.eup %3720 }
 0x150   :  { %v3723_v37 = vpop.eup %3722  ;;  %v799_v29 = vmul.f32 %v3721_v30, %v3719_v35  ;;  %v5472_v35 = vld [vmem:[#allocation9 + $0x180] sm:$0xff]  ;;  %v5475_v30 = vld [vmem:[#allocation9 + $0x190] sm:$0xff] }
 0x151   :  { %v798_v17 = vmul.f32 0.0, %v3723_v37  ;;  %v3725_v28 = vpop.eup %3724  ;;  %v5478_v37 = vld [vmem:[#allocation9 + $0x168] sm:$0xff] }
 0x153   :  { %v5429_v8 = vadd.f32 %v799_v29, %v798_v17  ;;  %v5484_v17 = vld [vmem:[#allocation9 + $0x160] sm:$0xff]  ;;  %v5487_v29 = vld [vmem:[#allocation9 + $0x170] sm:$0xff] }
 0x155   :  { %3726 = vtanh.f32 %v5429_v8 }
 0x162   :  { %v3727_v32 = vpop.eup %3726 }
 0x163   :  { %v5432_v18 = vmul.f32 %v3727_v32, %v3725_v28  ;;  %v8874_v28 = vld [vmem:[#allocation59_spill] sm:$0xff]  ;;  %v8875_v32 = vld [vmem:[#allocation60_spill] sm:$0xff] }
 0x165   :  { %893 = vmatmul.mubr.f32.vlgmr.msra.gmra.mxu0 %v5432_v18  ;;  %964 = vmatmul.mubr.f32.vlgmr.msra.gmra.mxu1 %v5432_v18 }
 0x166   :  { %1006 = vmatpush1.msra.mxu0 %v5436_v19  ;;  %1077 = vmatpush1.msra.mxu1 %v5439_v34 }
 0x167   :  { %1007 = vmatprep.subr.mxu0 %v5442_v27  ;;  %1078 = vmatprep.subr.mxu1 %v5445_v26 }
 0x168   :  { %1008 = vmatpush1.msra.mxu0 %v5448_v0  ;;  %1079 = vmatpush1.msra.mxu1 %v5451_v53 }
 0x169   :  { %1009 = vmatprep.subr.mxu0 %v5454_v39  ;;  %1080 = vmatprep.subr.mxu1 %v5457_v62 }
 0x16a   :  { %1010 = vmatpush1.msra.mxu0 %v5460_v33  ;;  %1081 = vmatpush1.msra.mxu1 %v5463_v36 }
 0x16b   :  { %1011 = vmatprep.subr.mxu0 %v5466_v25  ;;  %1082 = vmatprep.subr.mxu1 %v5469_v31 }
 0x16c   :  { %1012 = vmatpush1.msra.mxu0 %v5472_v35  ;;  %1083 = vmatpush1.msra.mxu1 %v5475_v30 }
 0x16d   :  { %1013 = vmatprep.subr.mxu0 %v5478_v37  ;;  %1084 = vmatprep.subr.mxu1 %v5481_v38 }
 0x16e   :  { %1014 = vmatpush1.msra.mxu0 %v5484_v17  ;;  %1085 = vmatpush1.msra.mxu1 %v5487_v29 }
 0x16f   :  { %1015 = vmatprep.subr.mxu0 %v4765_v40  ;;  %1086 = vmatprep.subr.mxu1 %v4767_v41  ;;  %v8833_v40 = vld [vmem:[#allocation19_spill] sm:$0xff]  ;;  %v8834_v41 = vld [vmem:[#allocation20_spill] sm:$0xff] }
 0x170   :  { %1016 = vmatpush1.msra.mxu0 %v4769_v42  ;;  %1087 = vmatpush1.msra.mxu1 %v4771_v43  ;;  %v8835_v42 = vmov 0.0   ;;  %v8836_v43 = vld [vmem:[#allocation21_spill] sm:$0xff] }
 0x171   :  { %1017 = vmatprep.subr.mxu0 %v4780_v45  ;;  %1088 = vmatprep.subr.mxu1 %v4782_v46  ;;  %v8837_v45 = vld [vmem:[#allocation22_spill] sm:$0xff]  ;;  %v8838_v46 = vld [vmem:[#allocation23_spill] sm:$0xff] }
 0x172   :  { %1018 = vmatpush1.msra.mxu0 %v4786_v47  ;;  %1089 = vmatpush1.msra.mxu1 %v4788_v48  ;;  %v8839_v47 = vld [vmem:[#allocation24_spill] sm:$0xff]  ;;  %v8840_v48 = vld [vmem:[#allocation25_spill] sm:$0xff] }
 0x173   :  { %1019 = vmatprep.subr.mxu0 %v4792_v49  ;;  %1090 = vmatprep.subr.mxu1 %v4794_v50  ;;  %v8841_v49 = vld [vmem:[#allocation26_spill] sm:$0xff]  ;;  %v8842_v50 = vld [vmem:[#allocation27_spill] sm:$0xff] }
 0x174   :  { %1020 = vmatpush1.msra.mxu0 %v4800_v51  ;;  %1091 = vmatpush1.msra.mxu1 %v4802_v52  ;;  %v8843_v51 = vld [vmem:[#allocation28_spill] sm:$0xff]  ;;  %v8844_v52 = vld [vmem:[#allocation29_spill] sm:$0xff] }
 0x175   :  { %1021 = vmatprep.subr.mxu0 %v4811_v54  ;;  %1092 = vmatprep.subr.mxu1 %v4813_v55  ;;  %v8845_v54 = vld [vmem:[#allocation30_spill] sm:$0xff]  ;;  %v8846_v55 = vld [vmem:[#allocation31_spill] sm:$0xff] }
 0x176   :  { %1022 = vmatpush1.msra.mxu0 %v4817_v56  ;;  %1093 = vmatpush1.msra.mxu1 %v4819_v57  ;;  %v8847_v56 = vld [vmem:[#allocation32_spill] sm:$0xff]  ;;  %v8848_v57 = vld [vmem:[#allocation33_spill] sm:$0xff] }
 0x177   :  { %1023 = vmatprep.subr.mxu0 %v4823_v58  ;;  %1094 = vmatprep.subr.mxu1 %v4825_v59  ;;  %v8849_v58 = vld [vmem:[#allocation34_spill] sm:$0xff]  ;;  %v8850_v59 = vld [vmem:[#allocation35_spill] sm:$0xff] }
 0x178   :  { %1024 = vmatpush1.msra.mxu0 %v4831_v60  ;;  %1095 = vmatpush1.msra.mxu1 %v4833_v61  ;;  %v8851_v60 = vld [vmem:[#allocation36_spill] sm:$0xff]  ;;  %v8852_v61 = vld [vmem:[#allocation37_spill] sm:$0xff] }
 0x179   :  { %1025 = vmatprep.subr.mxu0 %v4842_v63  ;;  %1096 = vmatprep.subr.mxu1 %v4844_v1  ;;  %v8853_v63 = vld [vmem:[#allocation38_spill] sm:$0xff]  ;;  %v8854_v1 = vld [vmem:[#allocation39_spill] sm:$0xff] }
 0x17a   :  { %1026 = vmatpush1.msra.mxu0 %v4848_v2  ;;  %1097 = vmatpush1.msra.mxu1 %v4850_v3  ;;  %v8855_v2 = vld [vmem:[#allocation40_spill] sm:$0xff]  ;;  %v8856_v3 = vld [vmem:[#allocation41_spill] sm:$0xff] }
 0x17b   :  { %1027 = vmatprep.subr.mxu0 %v4854_v4  ;;  %1098 = vmatprep.subr.mxu1 %v4856_v5  ;;  %v8857_v4 = vld [vmem:[#allocation42_spill] sm:$0xff]  ;;  %v8858_v5 = vld [vmem:[#allocation43_spill] sm:$0xff] }
 0x17c   :  { %1028 = vmatpush1.msra.mxu0 %v4862_v6  ;;  %1099 = vmatpush1.msra.mxu1 %v4864_v7  ;;  %v8859_v6 = vld [vmem:[#allocation44_spill] sm:$0xff]  ;;  %v8860_v7 = vld [vmem:[#allocation45_spill] sm:$0xff] }
 0x17d   :  { %1029 = vmatprep.subr.mxu0 %v4873_v9  ;;  %1100 = vmatprep.subr.mxu1 %v4875_v10  ;;  %v8861_v9 = vld [vmem:[#allocation46_spill] sm:$0xff]  ;;  %v8862_v10 = vld [vmem:[#allocation47_spill] sm:$0xff] }
 0x17e   :  { %1030 = vmatpush1.msra.mxu0 %v4879_v11  ;;  %1101 = vmatpush1.msra.mxu1 %v4881_v12  ;;  %v8863_v11 = vld [vmem:[#allocation48_spill] sm:$0xff]  ;;  %v8864_v12 = vld [vmem:[#allocation49_spill] sm:$0xff] }
 0x17f   :  { %1031 = vmatprep.subr.mxu0 %v4885_v13  ;;  %1102 = vmatprep.subr.mxu1 %v4887_v14  ;;  %v8865_v13 = vld [vmem:[#allocation50_spill] sm:$0xff]  ;;  %v8866_v14 = vld [vmem:[#allocation51_spill] sm:$0xff] }
 0x180   :  { %1032 = vmatpush1.msra.mxu0 %v4893_v15  ;;  %1103 = vmatpush1.msra.mxu1 %v4895_v16  ;;  %v8867_v15 = vld [vmem:[#allocation52_spill] sm:$0xff]  ;;  %v8868_v16 = vld [vmem:[#allocation53_spill] sm:$0xff] }
 0x181   :  { %1033 = vmatprep.subr.mxu0 %v4904_v20  ;;  %1104 = vmatprep.subr.mxu1 %v4906_v21  ;;  %v8869_v20 = vld [vmem:[#allocation54_spill] sm:$0xff]  ;;  %v8870_v21 = vld [vmem:[#allocation55_spill] sm:$0xff] }
 0x182   :  { %1034 = vmatpush1.msra.mxu0 %v4910_v22  ;;  %1105 = vmatpush1.msra.mxu1 %v4912_v23  ;;  %v8871_v22 = vld [vmem:[#allocation56_spill] sm:$0xff]  ;;  %v8872_v23 = vld [vmem:[#allocation57_spill] sm:$0xff] }
 0x183   :  { %1035 = vmatprep.subr.mxu0 %v4916_v24  ;;  %1106 = vmatprep.subr.mxu1 %v8833_v40  ;;  %v8873_v24 = vld [vmem:[#allocation58_spill] sm:$0xff] }
 0x184   :  { %1036 = vmatpush1.msra.mxu0 %v8834_v41  ;;  %1069 = vmatprep.mubr.f32.mxu0 %v8835_v42  ;;  %v8877_v40 = vld [vmem:[#allocation62_spill] sm:$0xff]  ;;  %v8878_v41 = vld [vmem:[#allocation63_spill] sm:$0xff] }
 0x185   :  { %1107 = vmatpush1.msra.mxu1 %v8836_v43  ;;  %1140 = vmatprep.mubr.f32.mxu1 %v8835_v42  ;;  %v8879_v43 = vld [vmem:[#allocation64_spill] sm:$0xff] }
 0x186   :  { %1070 = vmatmul.mubr.f32.vlgmr.msra.gmra.mxu0 %v5432_v18  ;;  %1141 = vmatmul.mubr.f32.vlgmr.msra.gmra.mxu1 %v5432_v18  ;;  %v8876_v18 = vld [vmem:[#allocation61_spill] sm:$0xff] }
 0x187   :  { %1180 = vmatprep.subr.mxu0 %v8837_v45  ;;  %1251 = vmatprep.subr.mxu1 %v8838_v46  ;;  %v8880_v45 = vld [vmem:[#allocation65_spill] sm:$0xff]  ;;  %v8881_v46 = vld [vmem:[#allocation66_spill] sm:$0xff] }
 0x188   :  { %1181 = vmatpush1.msra.mxu0 %v8839_v47  ;;  %1252 = vmatpush1.msra.mxu1 %v8840_v48  ;;  %v8882_v47 = vld [vmem:[#allocation67_spill] sm:$0xff]  ;;  %v8883_v48 = vld [vmem:[#allocation68_spill] sm:$0xff] }
 0x189   :  { %1182 = vmatprep.subr.mxu0 %v8841_v49  ;;  %1253 = vmatprep.subr.mxu1 %v8842_v50  ;;  %v8884_v49 = vld [vmem:[#allocation69_spill] sm:$0xff]  ;;  %v8885_v50 = vld [vmem:[#allocation70_spill] sm:$0xff] }
 0x18a   :  { %1183 = vmatpush1.msra.mxu0 %v8843_v51  ;;  %1254 = vmatpush1.msra.mxu1 %v8844_v52  ;;  %v8886_v51 = vld [vmem:[#allocation71_spill] sm:$0xff]  ;;  %v8887_v52 = vld [vmem:[#allocation72_spill] sm:$0xff] }
 0x18b   :  { %1184 = vmatprep.subr.mxu0 %v8845_v54  ;;  %1255 = vmatprep.subr.mxu1 %v8846_v55  ;;  %v8888_v54 = vld [vmem:[#allocation73_spill] sm:$0xff]  ;;  %v8889_v55 = vld [vmem:[#allocation74_spill] sm:$0xff] }
 0x18c   :  { %1185 = vmatpush1.msra.mxu0 %v8847_v56  ;;  %1256 = vmatpush1.msra.mxu1 %v8848_v57  ;;  %v8890_v56 = vld [vmem:[#allocation75_spill] sm:$0xff]  ;;  %v8891_v57 = vld [vmem:[#allocation76_spill] sm:$0xff] }
 0x18d   :  { %1186 = vmatprep.subr.mxu0 %v8849_v58  ;;  %1257 = vmatprep.subr.mxu1 %v8850_v59  ;;  %v8892_v58 = vld [vmem:[#allocation77_spill] sm:$0xff]  ;;  %v8893_v59 = vld [vmem:[#allocation78_spill] sm:$0xff] }
 0x18e   :  { %1187 = vmatpush1.msra.mxu0 %v8851_v60  ;;  %1258 = vmatpush1.msra.mxu1 %v8852_v61  ;;  %v8894_v60 = vld [vmem:[#allocation79_spill] sm:$0xff]  ;;  %v8895_v61 = vld [vmem:[#allocation80_spill] sm:$0xff] }
 0x18f   :  { %1188 = vmatprep.subr.mxu0 %v8853_v63  ;;  %1259 = vmatprep.subr.mxu1 %v8854_v1  ;;  %v8896_v63 = vld [vmem:[#allocation81_spill] sm:$0xff]  ;;  %v8897_v1 = vld [vmem:[#allocation82_spill] sm:$0xff] }
 0x190   :  { %1189 = vmatpush1.msra.mxu0 %v8855_v2  ;;  %1260 = vmatpush1.msra.mxu1 %v8856_v3  ;;  %v8898_v2 = vld [vmem:[#allocation83_spill] sm:$0xff]  ;;  %v8899_v3 = vld [vmem:[#allocation84_spill] sm:$0xff] }
 0x191   :  { %1190 = vmatprep.subr.mxu0 %v8857_v4  ;;  %1261 = vmatprep.subr.mxu1 %v8858_v5  ;;  %v8900_v4 = vld [vmem:[#allocation85_spill] sm:$0xff]  ;;  %v8901_v5 = vld [vmem:[#allocation86_spill] sm:$0xff] }
 0x192   :  { %1191 = vmatpush1.msra.mxu0 %v8859_v6  ;;  %1262 = vmatpush1.msra.mxu1 %v8860_v7  ;;  %v8902_v6 = vld [vmem:[#allocation87_spill] sm:$0xff]  ;;  %v8903_v7 = vld [vmem:[#allocation88_spill] sm:$0xff] }
 0x193   :  { %1192 = vmatprep.subr.mxu0 %v8861_v9  ;;  %1263 = vmatprep.subr.mxu1 %v8862_v10  ;;  %v8904_v9 = vld [vmem:[#allocation89_spill] sm:$0xff]  ;;  %v8905_v10 = vld [vmem:[#allocation90_spill] sm:$0xff] }
 0x194   :  { %1193 = vmatpush1.msra.mxu0 %v8863_v11  ;;  %1264 = vmatpush1.msra.mxu1 %v8864_v12  ;;  %v8906_v11 = vld [vmem:[#allocation91_spill] sm:$0xff]  ;;  %v8907_v12 = vld [vmem:[#allocation92_spill] sm:$0xff] }
 0x195   :  { %1194 = vmatprep.subr.mxu0 %v8865_v13  ;;  %1265 = vmatprep.subr.mxu1 %v8866_v14  ;;  %v8908_v13 = vld [vmem:[#allocation93_spill] sm:$0xff]  ;;  %v8909_v14 = vld [vmem:[#allocation94_spill] sm:$0xff] }
 0x196   :  { %1195 = vmatpush1.msra.mxu0 %v8867_v15  ;;  %1266 = vmatpush1.msra.mxu1 %v8868_v16  ;;  %v8910_v15 = vld [vmem:[#allocation95_spill] sm:$0xff]  ;;  %v8911_v16 = vld [vmem:[#allocation96_spill] sm:$0xff] }
 0x197   :  { %1196 = vmatprep.subr.mxu0 %v8869_v20  ;;  %1267 = vmatprep.subr.mxu1 %v8870_v21  ;;  %v8912_v20 = vld [vmem:[#allocation97_spill] sm:$0xff]  ;;  %v8913_v21 = vld [vmem:[#allocation98_spill] sm:$0xff] }
 0x198   :  { %1197 = vmatpush1.msra.mxu0 %v8871_v22  ;;  %1268 = vmatpush1.msra.mxu1 %v8872_v23  ;;  %v8914_v22 = vld [vmem:[#allocation99_spill] sm:$0xff]  ;;  %v8915_v23 = vld [vmem:[#allocation100_spill] sm:$0xff] }
 0x199   :  { %1198 = vmatprep.subr.mxu0 %v8873_v24  ;;  %1269 = vmatprep.subr.mxu1 %v8874_v28  ;;  %v8916_v24 = vld [vmem:[#allocation101_spill] sm:$0xff]  ;;  %v8917_v28 = vld [vmem:[#allocation102_spill] sm:$0xff] }
 0x19a   :  { %1199 = vmatpush1.msra.mxu0 %v8875_v32  ;;  %1270 = vmatpush1.msra.mxu1 %v8876_v18  ;;  %v8918_v32 = vld [vmem:[#allocation103_spill] sm:$0xff]  ;;  %v8919_v18 = vld [vmem:[#allocation104_spill] sm:$0xff] }
 0x19b   :  { %1200 = vmatprep.subr.mxu0 %v8877_v40  ;;  %1271 = vmatprep.subr.mxu1 %v8878_v41  ;;  %v8920_v40 = vld [vmem:[#allocation105_spill] sm:$0xff]  ;;  %v8921_v41 = vld [vmem:[#allocation106_spill] sm:$0xff] }
 0x19c   :  { %1201 = vmatpush1.msra.mxu0 %v8879_v43  ;;  %1272 = vmatpush1.msra.mxu1 %v8880_v45  ;;  %v8922_v43 = vld [vmem:[#allocation107_spill] sm:$0xff]  ;;  %v8923_v45 = vld [vmem:[#allocation108_spill] sm:$0xff] }
 0x19d   :  { %1202 = vmatprep.subr.mxu0 %v8881_v46  ;;  %1273 = vmatprep.subr.mxu1 %v8882_v47  ;;  %v8924_v46 = vld [vmem:[#allocation109_spill] sm:$0xff]  ;;  %v8925_v47 = vld [vmem:[#allocation110_spill] sm:$0xff] }
 0x19e   :  { %1203 = vmatpush1.msra.mxu0 %v8883_v48  ;;  %1274 = vmatpush1.msra.mxu1 %v8884_v49  ;;  %v8926_v48 = vld [vmem:[#allocation111_spill] sm:$0xff]  ;;  %v8927_v49 = vld [vmem:[#allocation112_spill] sm:$0xff] }
 0x19f   :  { %1204 = vmatprep.subr.mxu0 %v8885_v50  ;;  %1275 = vmatprep.subr.mxu1 %v8886_v51  ;;  %v8928_v50 = vld [vmem:[#allocation113_spill] sm:$0xff]  ;;  %v8929_v51 = vld [vmem:[#allocation114_spill] sm:$0xff] }
 0x1a0   :  { %1205 = vmatpush1.msra.mxu0 %v8887_v52  ;;  %1276 = vmatpush1.msra.mxu1 %v8888_v54  ;;  %v8930_v52 = vld [vmem:[#allocation115_spill] sm:$0xff]  ;;  %v8931_v54 = vld [vmem:[#allocation116_spill] sm:$0xff] }
 0x1a1   :  { %1206 = vmatprep.subr.mxu0 %v8889_v55  ;;  %1277 = vmatprep.subr.mxu1 %v8890_v56  ;;  %v8932_v55 = vld [vmem:[#allocation117_spill] sm:$0xff]  ;;  %v8933_v56 = vld [vmem:[#allocation118_spill] sm:$0xff] }
 0x1a2   :  { %1207 = vmatpush1.msra.mxu0 %v8891_v57  ;;  %1278 = vmatpush1.msra.mxu1 %v8892_v58  ;;  %v8934_v57 = vld [vmem:[#allocation119_spill] sm:$0xff]  ;;  %v8935_v58 = vld [vmem:[#allocation120_spill] sm:$0xff] }
 0x1a3   :  { %1208 = vmatprep.subr.mxu0 %v8893_v59  ;;  %1279 = vmatprep.subr.mxu1 %v8894_v60  ;;  %v8936_v59 = vld [vmem:[#allocation121_spill] sm:$0xff]  ;;  %v8937_v60 = vld [vmem:[#allocation122_spill] sm:$0xff] }
 0x1a4   :  { %1209 = vmatpush1.msra.mxu0 %v8895_v61  ;;  %1280 = vmatpush1.msra.mxu1 %v8896_v63  ;;  %v8938_v61 = vld [vmem:[#allocation123_spill] sm:$0xff]  ;;  %v8939_v63 = vld [vmem:[#allocation124_spill] sm:$0xff] }
 0x1a5   :  { %1210 = vmatprep.subr.mxu0 %v8897_v1  ;;  %1281 = vmatprep.subr.mxu1 %v8898_v2  ;;  %v8940_v1 = vld [vmem:[#allocation125_spill] sm:$0xff]  ;;  %v8941_v2 = vld [vmem:[#allocation126_spill] sm:$0xff] }
 0x1a6   :  { %1211 = vmatpush1.msra.mxu0 %v8899_v3  ;;  %1282 = vmatpush1.msra.mxu1 %v8900_v4  ;;  %v8942_v3 = vld [vmem:[#allocation127_spill] sm:$0xff]  ;;  %v8943_v4 = vld [vmem:[#allocation128_spill] sm:$0xff] }
 0x1a7   :  { %1212 = vmatprep.subr.mxu0 %v8901_v5  ;;  %1283 = vmatprep.subr.mxu1 %v8902_v6  ;;  %v8944_v5 = vld [vmem:[#allocation129_spill] sm:$0xff]  ;;  %v8945_v6 = vld [vmem:[#allocation130_spill] sm:$0xff] }
 0x1a8   :  { %1213 = vmatpush2.msra.mxu0 %v8903_v7  ;;  %1284 = vmatpush2.msra.mxu1 %v8904_v9  ;;  %v8946_v7 = vld [vmem:[#allocation131_spill] sm:$0xff]  ;;  %v8947_v9 = vld [vmem:[#allocation132_spill] sm:$0xff] }
 0x1a9   :  { %1214 = vmatprep.subr.mxu0 %v8905_v10  ;;  %1285 = vmatprep.subr.mxu1 %v8906_v11  ;;  %v8948_v10 = vld [vmem:[#allocation133_spill] sm:$0xff]  ;;  %v8949_v11 = vld [vmem:[#allocation134_spill] sm:$0xff] }
 0x1aa   :  { %1215 = vmatpush2.msra.mxu0 %v8907_v12  ;;  %1286 = vmatpush2.msra.mxu1 %v8908_v13  ;;  %v8950_v12 = vld [vmem:[#allocation135_spill] sm:$0xff]  ;;  %v8951_v13 = vld [vmem:[#allocation136_spill] sm:$0xff] }
 0x1ab   :  { %1216 = vmatprep.subr.mxu0 %v8909_v14  ;;  %1287 = vmatprep.subr.mxu1 %v8910_v15  ;;  %v8952_v14 = vld [vmem:[#allocation137_spill] sm:$0xff]  ;;  %v8953_v15 = vld [vmem:[#allocation138_spill] sm:$0xff] }
 0x1ac   :  { %1217 = vmatpush2.msra.mxu0 %v8911_v16  ;;  %1288 = vmatpush2.msra.mxu1 %v8912_v20  ;;  %v8954_v16 = vld [vmem:[#allocation139_spill] sm:$0xff]  ;;  %v8955_v20 = vld [vmem:[#allocation140_spill] sm:$0xff] }
 0x1ad   :  { %1218 = vmatprep.subr.mxu0 %v8913_v21  ;;  %1289 = vmatprep.subr.mxu1 %v8914_v22  ;;  %v8956_v21 = vld [vmem:[#allocation141_spill] sm:$0xff]  ;;  %v8957_v22 = vld [vmem:[#allocation142_spill] sm:$0xff] }
 0x1ae   :  { %1219 = vmatpush2.msra.mxu0 %v8915_v23  ;;  %1290 = vmatpush2.msra.mxu1 %v8916_v24  ;;  %v8958_v23 = vld [vmem:[#allocation143_spill] sm:$0xff]  ;;  %v8959_v24 = vld [vmem:[#allocation144_spill] sm:$0xff] }
 0x1af   :  { %1220 = vmatprep.subr.mxu0 %v8917_v28  ;;  %1291 = vmatprep.subr.mxu1 %v8918_v32  ;;  %v8960_v28 = vld [vmem:[#allocation145_spill] sm:$0xff]  ;;  %v8961_v32 = vld [vmem:[#allocation146_spill] sm:$0xff] }
 0x1b0   :  { %1221 = vmatpush2.msra.mxu0 %v8919_v18  ;;  %1292 = vmatpush2.msra.mxu1 %v8920_v40  ;;  %v8962_v18 = vld [vmem:[#allocation147_spill] sm:$0xff]  ;;  %v8963_v40 = vld [vmem:[#allocation148_spill] sm:$0xff] }
 0x1b1   :  { %1222 = vmatprep.subr.mxu0 %v8921_v41  ;;  %1293 = vmatprep.subr.mxu1 %v8922_v43  ;;  %v8964_v41 = vld [vmem:[#allocation149_spill] sm:$0xff]  ;;  %v5666_v43 = vld [vmem:[#allocation9 + $0x1e8] sm:$0xff] }
 0x1b2   :  { %1223 = vmatpush2.msra.mxu0 %v8923_v45  ;;  %1294 = vmatpush2.msra.mxu1 %v8924_v46  ;;  %v5669_v45 = vld [vmem:[#allocation9 + $0x1f8] sm:$0xff]  ;;  %v623_v46 = vld [vmem:[%s8124_s5] sm:$0xf] }
 0x1b3   :  { %1224 = vmatprep.subr.mxu0 %v8925_v47  ;;  %1295 = vmatprep.subr.mxu1 %v8926_v48  ;;  %v8965_v47 = vsub.s32 0, %v5324_v44 }
 0x1b4   :  { %1225 = vmatpush2.msra.mxu0 %v8927_v49  ;;  %1296 = vmatpush2.msra.mxu1 %v8928_v50  ;;  %v8967_v49 = vsub.s32 1, %v5324_v44 }
 0x1b5   :  { %1226 = vmatprep.subr.mxu0 %v8929_v51  ;;  %1297 = vmatprep.subr.mxu1 %v8930_v52  ;;  %v5677_v48 = vrot.slane %v623_v46, %v8965_v47 }
 0x1b6   :  { %1227 = vmatpush2.msra.mxu0 %v8931_v54  ;;  %1298 = vmatpush2.msra.mxu1 %v8932_v55  ;;  %v5681_v50 = vrot.slane %v623_v46, %v8967_v49 }
 0x1b7   :  { %1228 = vmatprep.subr.mxu0 %v8933_v56  ;;  %1299 = vmatprep.subr.mxu1 %v8934_v57  ;;  %8966 = vst [vmem:[#allocation19_spill] sm:$0xff] %v5677_v48 }
 0x1b8   :  { %1229 = vmatpush2.msra.mxu0 %v8935_v58  ;;  %1300 = vmatpush2.msra.mxu1 %v8936_v59  ;;  %8968 = vst [vmem:[#allocation20_spill] sm:$0xff] %v5681_v50  ;;  %v8969_v58 = vsub.s32 2, %v5324_v44 }
 0x1b9   :  { %1230 = vmatprep.subr.mxu0 %v8937_v60  ;;  %1301 = vmatprep.subr.mxu1 %v8938_v61 }
 0x1ba   :  { %1231 = vmatpush2.msra.mxu0 %v8939_v63  ;;  %1302 = vmatpush2.msra.mxu1 %v8940_v1  ;;  %v5687_v59 = vrot.slane %v623_v46, %v8969_v58  ;;  %v8971_v63 = vsub.s32 3, %v5324_v44 }
 0x1bb   :  { %1232 = vmatprep.subr.mxu0 %v8941_v2  ;;  %1303 = vmatprep.subr.mxu1 %v8942_v3 }
 0x1bc   :  { %1233 = vmatpush2.msra.mxu0 %v8943_v4  ;;  %1304 = vmatpush2.msra.mxu1 %v8944_v5  ;;  %8970 = vst [vmem:[#allocation21_spill] sm:$0xff] %v5687_v59  ;;  %v5692_v1 = vrot.slane %v623_v46, %v8971_v63 }
 0x1bd   :  { %1234 = vmatprep.subr.mxu0 %v8945_v6  ;;  %1305 = vmatprep.subr.mxu1 %v8946_v7 }
 0x1be   :  { %1235 = vmatpush2.msra.mxu0 %v8947_v9  ;;  %1306 = vmatpush2.msra.mxu1 %v8948_v10  ;;  %8972 = vst [vmem:[#allocation22_spill] sm:$0xff] %v5692_v1 }
 0x1bf   :  { %1236 = vmatprep.subr.mxu0 %v8949_v11  ;;  %1307 = vmatprep.subr.mxu1 %v8950_v12 }
 0x1c0   :  { %1237 = vmatpush2.msra.mxu0 %v8951_v13  ;;  %1308 = vmatpush2.msra.mxu1 %v8952_v14  ;;  %v8973_v13 = vld [vmem:[#allocation150_spill] sm:$0xff] }
 0x1c1   :  { %1238 = vmatprep.subr.mxu0 %v8953_v15  ;;  %1309 = vmatprep.subr.mxu1 %v8954_v16 }
 0x1c2   :  { %1239 = vmatpush2.msra.mxu0 %v8955_v20  ;;  %1310 = vmatpush2.msra.mxu1 %v8956_v21  ;;  %v8974_v21 = vld [vmem:[#allocation152_spill] sm:$0xff] }
 0x1c3   :  { %1240 = vmatprep.subr.mxu0 %v8957_v22  ;;  %1311 = vmatprep.subr.mxu1 %v8958_v23 }
 0x1c4   :  { %1241 = vmatpush2.msra.mxu0 %v8959_v24  ;;  %1312 = vmatpush2.msra.mxu1 %v8960_v28 }
 0x1c5   :  { %1242 = vmatprep.subr.mxu0 %v8961_v32  ;;  %1313 = vmatprep.subr.mxu1 %v8962_v18 }
 0x1c6   :  { %1243 = vmatpush2.msra.mxu0 %v8963_v40  ;;  %1314 = vmatpush2.msra.mxu1 %v8964_v41  ;;  %v8975_v41 = vld [vmem:[#allocation151_spill] sm:$0xff] }
 0x1c7   :  { %1357 = vmatprep.subr.mxu0 %v5666_v43  ;;  %1428 = vmatprep.subr.mxu1 %v5669_v45 }
 0x225   :  { %v894_v51 = vpop.f32.mrf.mxu0  ;;  %v965_v60 = vpop.f32.mrf.mxu1 }
 0x226   :  { %v895_v52 = vadd.f32 %v894_v51, %v5677_v48  ;;  %v966_v61 = vadd.f32 %v965_v60, %v5687_v59  ;;  %v8976_v51 = vld [vmem:[#allocation153_spill] sm:$0xff] }
 0x227   :  { %v896_v54 = vpop.f32.mrf.mxu0  ;;  %v967_v2 = vpop.f32.mrf.mxu1 }
 0x228   :  { %v3603_v55 = vmul.f32 -1.442695, %v895_v52  ;;  %v897_v56 = vadd.f32 %v896_v54, %v5681_v50  ;;  %v3605_v3 = vmul.f32 -1.442695, %v966_v61  ;;  %v968_v5 = vadd.f32 %v967_v2, %v5692_v1 }
 0x22a   :  { %3728 = vpow2.f32 %v3603_v55  ;;  %v3604_v57 = vmul.f32 -1.442695, %v897_v56 }
 0x22c   :  { %3730 = vpow2.f32 %v3604_v57 }
 0x22d   :  { %3732 = vpow2.f32 %v3605_v3 }
 0x237   :  { %v3729_v4 = vpop.eup %3728 }
 0x238   :  { %v980_v6 = vadd.f32 1.0, %v3729_v4 }
 0x239   :  { %v3731_v7 = vpop.eup %3730 }
 0x23a   :  { %3734 = vrcp.f32 %v980_v6  ;;  %v981_v9 = vadd.f32 1.0, %v3731_v7  ;;  %v3733_v10 = vpop.eup %3732 }
 0x23b   :  { %3736 = vtanh.f32 %v968_v5  ;;  %v982_v23 = vadd.f32 1.0, %v3733_v10 }
 0x23c   :  { %3738 = vrcp.f32 %v981_v9 }
 0x246   :  { %v1071_v11 = vpop.f32.mrf.mxu0  ;;  %v1142_v40 = vpop.f32.mrf.mxu1 }
 0x247   :  { %v3735_v12 = vpop.eup %3734  ;;  %v1147_v14 = vadd.f32 %v1071_v11, %v8973_v13  ;;  %v1149_v46 = vadd.f32 %v1142_v40, %v8975_v41  ;;  %v5785_v13 = vld [vmem:[#allocation9 + $0xd0] sm:$0xff]  ;;  %v5824_v41 = vld [vmem:[#allocation9 + $0x48] sm:$0xff] }
 0x248   :  { %v3737_v44 = vpop.eup %3736  ;;  %v1073_v15 = vpop.f32.mrf.mxu0  ;;  %v5821_v40 = vld [vmem:[#allocation9 + $0x70] sm:$0xff] }
 0x249   :  { %v3739_v16 = vpop.eup %3738  ;;  %v3606_v20 = vmul.f32 -1.442695, %v1147_v14  ;;  %v1148_v22 = vadd.f32 %v1073_v15, %v8974_v21  ;;  %v991_v28 = vmul.f32 %v3737_v44, %v3735_v12  ;;  %v1144_v47 = vpop.f32.mrf.mxu1  ;;  %v3608_v49 = vmul.f32 -1.442695, %v1149_v46  ;;  %v5788_v14 = vld [vmem:[#allocation9 + $0xa8] sm:$0xff]  ;;  %v5791_v44 = vld [vmem:[#allocation9 + $0xb8] sm:$0xff] }
 0x24a   :  { %v990_v24 = vmul.f32 0.0, %v3739_v16  ;;  %v1150_v52 = vadd.f32 %v1144_v47, %v8976_v51  ;;  %v5794_v15 = vld [vmem:[#allocation9 + $0xa0] sm:$0xff]  ;;  %v5797_v16 = vld [vmem:[#allocation9 + $0xb0] sm:$0xff]  ;;  %v5803_v21 = vld [vmem:[#allocation9 + $0x98] sm:$0xff] }
 0x24b   :  { %3740 = vpow2.f32 %v3606_v20  ;;  %v3607_v32 = vmul.f32 -1.442695, %v1148_v22  ;;  %v5800_v20 = vld [vmem:[#allocation9 + $0x88] sm:$0xff]  ;;  %v5806_v22 = vld [vmem:[#allocation9 + $0x80] sm:$0xff]  ;;  %v5827_v46 = vld [vmem:[#allocation9 + $0x58] sm:$0xff] }
 0x24c   :  { %v5697_v18 = vadd.f32 %v991_v28, %v990_v24  ;;  %v5812_v24 = vld [vmem:[#allocation9 + $0x68] sm:$0xff]  ;;  %v5815_v28 = vld [vmem:[#allocation9 + $0x78] sm:$0xff]  ;;  %v5830_v47 = vld [vmem:[#allocation9 + $0x40] sm:$0xff] }
 0x24d   :  { %3742 = vpow2.f32 %v3607_v32  ;;  %v5818_v32 = vld [vmem:[#allocation9 + $0x60] sm:$0xff]  ;;  %v5836_v51 = vld [vmem:[#allocation9 + $0x28] sm:$0xff] }
 0x24e   :  { %3744 = vrcp.f32 %v982_v23  ;;  %v5809_v23 = vld [vmem:[#allocation9 + $0x90] sm:$0xff] }
 0x24f   :  { %3746 = vtanh.f32 %v5697_v18 }
 0x250   :  { %3748 = vpow2.f32 %v3608_v49  ;;  %v5833_v49 = vld [vmem:[#allocation9 + $0x50] sm:$0xff] }
 0x251   :  { %3750 = vtanh.f32 %v1150_v52  ;;  %v5839_v52 = vld [vmem:[#allocation9 + $0x38] sm:$0xff] }
 0x258   :  { %v3741_v54 = vpop.eup %3740 }
 0x259   :  { %v1161_v55 = vadd.f32 1.0, %v3741_v54  ;;  %v5842_v54 = vld [vmem:[#allocation9 + $0x20] sm:$0xff] }
 0x25a   :  { %v3743_v56 = vpop.eup %3742 }
 0x25b   :  { %v3745_v57 = vpop.eup %3744  ;;  %3752 = vrcp.f32 %v1161_v55  ;;  %v1162_v58 = vadd.f32 1.0, %v3743_v56  ;;  %v5845_v55 = vld [vmem:[#allocation9 + $0x30] sm:$0xff]  ;;  %v5848_v56 = vld [vmem:[#allocation9 + $0x8] sm:$0xff] }
 0x25c   :  { %v3747_v60 = vpop.eup %3746 }
 0x25d   :  { %3754 = vrcp.f32 %v1162_v58  ;;  %v994_v61 = vmul.f32 %v3747_v60, %v3745_v57  ;;  %v3749_v63 = vpop.eup %3748  ;;  %v5851_v57 = vld [vmem:[#allocation9 + $0x18] sm:$0xff]  ;;  %v5854_v58 = vld [vmem:[#allocation9] sm:$0xff]  ;;  %v5858_v60 = vld [vmem:[#allocation9 + $0x10] sm:$0xff] }
 0x25e   :  { %v3751_v2 = vpop.eup %3750  ;;  %v1163_v6 = vadd.f32 1.0, %v3749_v63  ;;  %8977 = vst [vmem:[#allocation23_spill] sm:$0xff] %v5854_v58  ;;  %8978 = vst [vmem:[#allocation24_spill] sm:$0xff] %v5858_v60  ;;  %v5867_v63 = vld [vmem:[#allocation11 + $0x1f8] sm:$0xff] }
 0x25f   :  { %1244 = vmatprep.mubr.f32.mxu0 %v994_v61  ;;  %1315 = vmatprep.mubr.f32.mxu1 %v994_v61  ;;  %v5864_v61 = vld [vmem:[#allocation11 + $0x1e8] sm:$0xff]  ;;  %8980 = vst [vmem:[#allocation26_spill] sm:$0xff] %v5867_v63 }
 0x260   :  { %3756 = vrcp.f32 %v1163_v6  ;;  %8979 = vst [vmem:[#allocation25_spill] sm:$0xff] %v5864_v61  ;;  %v5882_v6 = vld [vmem:[#allocation11 + $0x1c0] sm:$0xff] }
 0x261   :  { %8985 = vst [vmem:[#allocation31_spill] sm:$0xff] %v5882_v6 }
 0x268   :  { %v3753_v3 = vpop.eup %3752 }
 0x269   :  { %v1172_v4 = vmul.f32 %v3753_v3, %v3751_v2  ;;  %v5870_v2 = vld [vmem:[#allocation11 + $0x1e0] sm:$0xff]  ;;  %v5873_v3 = vld [vmem:[#allocation11 + $0x1f0] sm:$0xff] }
 0x26a   :  { %v3755_v5 = vpop.eup %3754  ;;  %8981 = vst [vmem:[#allocation27_spill] sm:$0xff] %v5870_v2  ;;  %8982 = vst [vmem:[#allocation28_spill] sm:$0xff] %v5873_v3 }
 0x26b   :  { %v1171_v7 = vmul.f32 %v3755_v5, %v5429_v8  ;;  %v5728_v8 = vld [vmem:[#allocation9 + $0x148] sm:$0xff]  ;;  %v5879_v5 = vld [vmem:[#allocation11 + $0x1d8] sm:$0xff] }
 0x26c   :  { %8984 = vst [vmem:[#allocation30_spill] sm:$0xff] %v5879_v5 }
 0x26d   :  { %v5703_v9 = vadd.f32 %v1172_v4, %v1171_v7  ;;  %v3757_v10 = vpop.eup %3756  ;;  %v5876_v4 = vld [vmem:[#allocation11 + $0x1c8] sm:$0xff]  ;;  %v5885_v7 = vld [vmem:[#allocation11 + $0x1d0] sm:$0xff] }
 0x26e   :  { %8983 = vst [vmem:[#allocation29_spill] sm:$0xff] %v5876_v4  ;;  %8986 = vst [vmem:[#allocation32_spill] sm:$0xff] %v5885_v7 }
 0x26f   :  { %3758 = vtanh.f32 %v5703_v9 }
 0x27c   :  { %v3759_v11 = vpop.eup %3758 }
 0x27d   :  { %v5706_v12 = vmul.f32 %v3759_v11, %v3757_v10  ;;  %v5888_v10 = vld [vmem:[#allocation11 + $0x1a8] sm:$0xff]  ;;  %v5891_v11 = vld [vmem:[#allocation11 + $0x1b8] sm:$0xff] }
 0x27e   :  { %8987 = vst [vmem:[#allocation33_spill] sm:$0xff] %v5888_v10  ;;  %8988 = vst [vmem:[#allocation34_spill] sm:$0xff] %v5891_v11 }
 0x27f   :  { %1245 = vmatmul.mubr.f32.vlgmr.msra.gmra.mxu0 %v5706_v12  ;;  %1316 = vmatmul.mubr.f32.vlgmr.msra.gmra.mxu1 %v5706_v12 }
 0x280   :  { %1358 = vmatpush1.msra.mxu0 %v5436_v19  ;;  %1429 = vmatpush1.msra.mxu1 %v5439_v34  ;;  %v5731_v19 = vld [vmem:[#allocation9 + $0x158] sm:$0xff]  ;;  %v5734_v34 = vld [vmem:[#allocation9 + $0x140] sm:$0xff] }
 0x281   :  { %1359 = vmatprep.subr.mxu0 %v5442_v27  ;;  %1430 = vmatprep.subr.mxu1 %v5445_v26  ;;  %v5737_v27 = vld [vmem:[#allocation9 + $0x150] sm:$0xff]  ;;  %v5740_v26 = vld [vmem:[#allocation9 + $0x128] sm:$0xff] }
 0x282   :  { %1360 = vmatpush1.msra.mxu0 %v5448_v0  ;;  %1431 = vmatpush1.msra.mxu1 %v5451_v53  ;;  %v5743_v0 = vld [vmem:[#allocation9 + $0x138] sm:$0xff]  ;;  %v5746_v53 = vld [vmem:[#allocation9 + $0x120] sm:$0xff] }
 0x283   :  { %1361 = vmatprep.subr.mxu0 %v5454_v39  ;;  %1432 = vmatprep.subr.mxu1 %v5457_v62  ;;  %v5749_v39 = vld [vmem:[#allocation9 + $0x130] sm:$0xff]  ;;  %v5752_v62 = vld [vmem:[#allocation9 + $0x108] sm:$0xff] }
 0x284   :  { %1362 = vmatpush1.msra.mxu0 %v5460_v33  ;;  %1433 = vmatpush1.msra.mxu1 %v5463_v36  ;;  %v5755_v33 = vld [vmem:[#allocation9 + $0x118] sm:$0xff]  ;;  %v5758_v36 = vld [vmem:[#allocation9 + $0x100] sm:$0xff] }
 0x285   :  { %1363 = vmatprep.subr.mxu0 %v5466_v25  ;;  %1434 = vmatprep.subr.mxu1 %v5469_v31  ;;  %v5761_v25 = vld [vmem:[#allocation9 + $0x110] sm:$0xff]  ;;  %v5764_v31 = vld [vmem:[#allocation9 + $0xe8] sm:$0xff] }
 0x286   :  { %1364 = vmatpush1.msra.mxu0 %v5472_v35  ;;  %1435 = vmatpush1.msra.mxu1 %v5475_v30  ;;  %v5767_v35 = vld [vmem:[#allocation9 + $0xf8] sm:$0xff]  ;;  %v5770_v30 = vld [vmem:[#allocation9 + $0xe0] sm:$0xff] }
 0x287   :  { %1365 = vmatprep.subr.mxu0 %v5478_v37  ;;  %1436 = vmatprep.subr.mxu1 %v5481_v38  ;;  %v5773_v37 = vld [vmem:[#allocation9 + $0xf0] sm:$0xff]  ;;  %v5776_v38 = vld [vmem:[#allocation9 + $0xc8] sm:$0xff] }
 0x288   :  { %1366 = vmatpush1.msra.mxu0 %v5484_v17  ;;  %1437 = vmatpush1.msra.mxu1 %v5487_v29  ;;  %v5779_v17 = vld [vmem:[#allocation9 + $0xd8] sm:$0xff]  ;;  %v5782_v29 = vld [vmem:[#allocation9 + $0xc0] sm:$0xff] }
 0x289   :  { %1367 = vmatprep.subr.mxu0 %v5728_v8  ;;  %1438 = vmatprep.subr.mxu1 %v5731_v19 }
 0x28a   :  { %1368 = vmatpush1.msra.mxu0 %v5734_v34  ;;  %1439 = vmatpush1.msra.mxu1 %v5737_v27 }
 0x28b   :  { %1369 = vmatprep.subr.mxu0 %v5740_v26  ;;  %1440 = vmatprep.subr.mxu1 %v5743_v0 }
 0x28c   :  { %1370 = vmatpush1.msra.mxu0 %v5746_v53  ;;  %1441 = vmatpush1.msra.mxu1 %v5749_v39 }
 0x28d   :  { %1371 = vmatprep.subr.mxu0 %v5752_v62  ;;  %1442 = vmatprep.subr.mxu1 %v5755_v33 }
 0x28e   :  { %1372 = vmatpush1.msra.mxu0 %v5758_v36  ;;  %1443 = vmatpush1.msra.mxu1 %v5761_v25 }
 0x28f   :  { %1373 = vmatprep.subr.mxu0 %v5764_v31  ;;  %1444 = vmatprep.subr.mxu1 %v5767_v35 }
 0x290   :  { %1374 = vmatpush1.msra.mxu0 %v5770_v30  ;;  %1445 = vmatpush1.msra.mxu1 %v5773_v37 }
 0x291   :  { %1375 = vmatprep.subr.mxu0 %v5776_v38  ;;  %1446 = vmatprep.subr.mxu1 %v5779_v17 }
 0x292   :  { %1376 = vmatpush1.msra.mxu0 %v5782_v29  ;;  %1447 = vmatpush1.msra.mxu1 %v5785_v13 }
 0x293   :  { %1377 = vmatprep.subr.mxu0 %v5788_v14  ;;  %1448 = vmatprep.subr.mxu1 %v5791_v44 }
 0x294   :  { %1378 = vmatpush1.msra.mxu0 %v5794_v15  ;;  %1449 = vmatpush1.msra.mxu1 %v5797_v16 }
 0x295   :  { %1379 = vmatprep.subr.mxu0 %v5800_v20  ;;  %1450 = vmatprep.subr.mxu1 %v5803_v21 }
 0x296   :  { %1380 = vmatpush1.msra.mxu0 %v5806_v22  ;;  %1451 = vmatpush1.msra.mxu1 %v5809_v23 }
 0x297   :  { %1381 = vmatprep.subr.mxu0 %v5812_v24  ;;  %1452 = vmatprep.subr.mxu1 %v5815_v28 }
 0x298   :  { %1382 = vmatpush1.msra.mxu0 %v5818_v32  ;;  %1453 = vmatpush1.msra.mxu1 %v5821_v40 }
 0x299   :  { %1383 = vmatprep.subr.mxu0 %v5824_v41  ;;  %1454 = vmatprep.subr.mxu1 %v5827_v46 }
 0x29a   :  { %1384 = vmatpush1.msra.mxu0 %v5830_v47  ;;  %1455 = vmatpush1.msra.mxu1 %v5833_v49 }
 0x29b   :  { %1385 = vmatprep.subr.mxu0 %v5836_v51  ;;  %1456 = vmatprep.subr.mxu1 %v5839_v52 }
 0x29c   :  { %1386 = vmatpush1.msra.mxu0 %v5842_v54  ;;  %1457 = vmatpush1.msra.mxu1 %v5845_v55 }
 0x29d   :  { %1387 = vmatprep.subr.mxu0 %v5848_v56  ;;  %1458 = vmatprep.subr.mxu1 %v5851_v57 }
 0x29e   :  { %1388 = vmatpush1.msra.mxu0 %v5854_v58  ;;  %1421 = vmatprep.mubr.f32.mxu0 %v8835_v42 }
 0x29f   :  { %1459 = vmatpush1.msra.mxu1 %v5858_v60  ;;  %1492 = vmatprep.mubr.f32.mxu1 %v8835_v42 }
 0x2a0   :  { %1422 = vmatmul.mubr.f32.vlgmr.msra.gmra.mxu0 %v5706_v12  ;;  %1493 = vmatmul.mubr.f32.vlgmr.msra.gmra.mxu1 %v5706_v12  ;;  %v5894_v12 = vld [vmem:[#allocation11 + $0x1a0] sm:$0xff] }
 0x2a1   :  { %1532 = vmatprep.subr.mxu0 %v5864_v61  ;;  %1603 = vmatprep.subr.mxu1 %v5867_v63  ;;  %8989 = vst [vmem:[#allocation35_spill] sm:$0xff] %v5894_v12 }
 0x2a2   :  { %1533 = vmatpush1.msra.mxu0 %v5870_v2  ;;  %1604 = vmatpush1.msra.mxu1 %v5873_v3 }
 0x2a3   :  { %1534 = vmatprep.subr.mxu0 %v5876_v4  ;;  %1605 = vmatprep.subr.mxu1 %v5879_v5  ;;  %v5897_v5 = vld [vmem:[#allocation11 + $0x1b0] sm:$0xff] }
 0x2a4   :  { %1535 = vmatpush1.msra.mxu0 %v5882_v6  ;;  %1606 = vmatpush1.msra.mxu1 %v5885_v7  ;;  %8990 = vst [vmem:[#allocation36_spill] sm:$0xff] %v5897_v5  ;;  %v5900_v6 = vld [vmem:[#allocation11 + $0x188] sm:$0xff]  ;;  %v5903_v7 = vld [vmem:[#allocation11 + $0x198] sm:$0xff] }
 0x2a5   :  { %1536 = vmatprep.subr.mxu0 %v5888_v10  ;;  %1607 = vmatprep.subr.mxu1 %v5891_v11  ;;  %8991 = vst [vmem:[#allocation37_spill] sm:$0xff] %v5900_v6  ;;  %8992 = vst [vmem:[#allocation38_spill] sm:$0xff] %v5903_v7  ;;  %v5906_v10 = vld [vmem:[#allocation11 + $0x180] sm:$0xff]  ;;  %v5909_v11 = vld [vmem:[#allocation11 + $0x190] sm:$0xff] }
 0x2a6   :  { %1537 = vmatpush1.msra.mxu0 %v5894_v12  ;;  %1608 = vmatpush1.msra.mxu1 %v5897_v5  ;;  %8993 = vst [vmem:[#allocation39_spill] sm:$0xff] %v5906_v10  ;;  %8994 = vst [vmem:[#allocation40_spill] sm:$0xff] %v5909_v11  ;;  %v5912_v12 = vld [vmem:[#allocation11 + $0x168] sm:$0xff]  ;;  %v5915_v5 = vld [vmem:[#allocation11 + $0x178] sm:$0xff] }
 0x2a7   :  { %1538 = vmatprep.subr.mxu0 %v5900_v6  ;;  %1609 = vmatprep.subr.mxu1 %v5903_v7  ;;  %8995 = vst [vmem:[#allocation41_spill] sm:$0xff] %v5912_v12  ;;  %8996 = vst [vmem:[#allocation42_spill] sm:$0xff] %v5915_v5  ;;  %v5918_v6 = vld [vmem:[#allocation11 + $0x160] sm:$0xff]  ;;  %v5921_v7 = vld [vmem:[#allocation11 + $0x170] sm:$0xff] }
 0x2a8   :  { %1539 = vmatpush1.msra.mxu0 %v5906_v10  ;;  %1610 = vmatpush1.msra.mxu1 %v5909_v11  ;;  %8997 = vst [vmem:[#allocation43_spill] sm:$0xff] %v5918_v6  ;;  %8998 = vst [vmem:[#allocation44_spill] sm:$0xff] %v5921_v7  ;;  %v5924_v10 = vld [vmem:[#allocation11 + $0x148] sm:$0xff]  ;;  %v5927_v11 = vld [vmem:[#allocation11 + $0x158] sm:$0xff] }
 0x2a9   :  { %1540 = vmatprep.subr.mxu0 %v5912_v12  ;;  %1611 = vmatprep.subr.mxu1 %v5915_v5  ;;  %8999 = vst [vmem:[#allocation45_spill] sm:$0xff] %v5924_v10  ;;  %9000 = vst [vmem:[#allocation46_spill] sm:$0xff] %v5927_v11  ;;  %v5930_v12 = vld [vmem:[#allocation11 + $0x140] sm:$0xff]  ;;  %v5933_v5 = vld [vmem:[#allocation11 + $0x150] sm:$0xff] }
 0x2aa   :  { %1541 = vmatpush1.msra.mxu0 %v5918_v6  ;;  %1612 = vmatpush1.msra.mxu1 %v5921_v7  ;;  %9001 = vst [vmem:[#allocation47_spill] sm:$0xff] %v5930_v12  ;;  %9002 = vst [vmem:[#allocation48_spill] sm:$0xff] %v5933_v5  ;;  %v5936_v6 = vld [vmem:[#allocation11 + $0x128] sm:$0xff]  ;;  %v5939_v7 = vld [vmem:[#allocation11 + $0x138] sm:$0xff] }
 0x2ab   :  { %1542 = vmatprep.subr.mxu0 %v5924_v10  ;;  %1613 = vmatprep.subr.mxu1 %v5927_v11  ;;  %9003 = vst [vmem:[#allocation49_spill] sm:$0xff] %v5936_v6  ;;  %9004 = vst [vmem:[#allocation50_spill] sm:$0xff] %v5939_v7  ;;  %v5942_v10 = vld [vmem:[#allocation11 + $0x120] sm:$0xff]  ;;  %v5945_v11 = vld [vmem:[#allocation11 + $0x130] sm:$0xff] }
 0x2ac   :  { %1543 = vmatpush1.msra.mxu0 %v5930_v12  ;;  %1614 = vmatpush1.msra.mxu1 %v5933_v5  ;;  %9005 = vst [vmem:[#allocation51_spill] sm:$0xff] %v5942_v10  ;;  %9006 = vst [vmem:[#allocation52_spill] sm:$0xff] %v5945_v11  ;;  %v5948_v12 = vld [vmem:[#allocation11 + $0x108] sm:$0xff]  ;;  %v5951_v5 = vld [vmem:[#allocation11 + $0x118] sm:$0xff] }
 0x2ad   :  { %1544 = vmatprep.subr.mxu0 %v5936_v6  ;;  %1615 = vmatprep.subr.mxu1 %v5939_v7  ;;  %9007 = vst [vmem:[#allocation53_spill] sm:$0xff] %v5948_v12  ;;  %9008 = vst [vmem:[#allocation54_spill] sm:$0xff] %v5951_v5  ;;  %v5954_v6 = vld [vmem:[#allocation11 + $0x100] sm:$0xff]  ;;  %v5957_v7 = vld [vmem:[#allocation11 + $0x110] sm:$0xff] }
 0x2ae   :  { %1545 = vmatpush1.msra.mxu0 %v5942_v10  ;;  %1616 = vmatpush1.msra.mxu1 %v5945_v11  ;;  %9009 = vst [vmem:[#allocation55_spill] sm:$0xff] %v5954_v6  ;;  %9010 = vst [vmem:[#allocation56_spill] sm:$0xff] %v5957_v7  ;;  %v5960_v10 = vld [vmem:[#allocation11 + $0xe8] sm:$0xff]  ;;  %v5963_v11 = vld [vmem:[#allocation11 + $0xf8] sm:$0xff] }
 0x2af   :  { %1546 = vmatprep.subr.mxu0 %v5948_v12  ;;  %1617 = vmatprep.subr.mxu1 %v5951_v5  ;;  %9011 = vst [vmem:[#allocation57_spill] sm:$0xff] %v5960_v10  ;;  %9012 = vst [vmem:[#allocation58_spill] sm:$0xff] %v5963_v11  ;;  %v5966_v12 = vld [vmem:[#allocation11 + $0xe0] sm:$0xff]  ;;  %v5969_v5 = vld [vmem:[#allocation11 + $0xf0] sm:$0xff] }
 0x2b0   :  { %1547 = vmatpush1.msra.mxu0 %v5954_v6  ;;  %1618 = vmatpush1.msra.mxu1 %v5957_v7  ;;  %9013 = vst [vmem:[#allocation59_spill] sm:$0xff] %v5966_v12  ;;  %9014 = vst [vmem:[#allocation60_spill] sm:$0xff] %v5969_v5  ;;  %v5972_v6 = vld [vmem:[#allocation11 + $0xc8] sm:$0xff]  ;;  %v5975_v7 = vld [vmem:[#allocation11 + $0xd8] sm:$0xff] }
 0x2b1   :  { %1548 = vmatprep.subr.mxu0 %v5960_v10  ;;  %1619 = vmatprep.subr.mxu1 %v5963_v11  ;;  %9015 = vst [vmem:[#allocation61_spill] sm:$0xff] %v5972_v6  ;;  %9016 = vst [vmem:[#allocation62_spill] sm:$0xff] %v5975_v7  ;;  %v5978_v10 = vld [vmem:[#allocation11 + $0xc0] sm:$0xff]  ;;  %v5981_v11 = vld [vmem:[#allocation11 + $0xd0] sm:$0xff] }
 0x2b2   :  { %1549 = vmatpush1.msra.mxu0 %v5966_v12  ;;  %1620 = vmatpush1.msra.mxu1 %v5969_v5  ;;  %9017 = vst [vmem:[#allocation63_spill] sm:$0xff] %v5978_v10  ;;  %9018 = vst [vmem:[#allocation64_spill] sm:$0xff] %v5981_v11  ;;  %v5984_v12 = vld [vmem:[#allocation11 + $0xa8] sm:$0xff]  ;;  %v5987_v5 = vld [vmem:[#allocation11 + $0xb8] sm:$0xff] }
 0x2b3   :  { %1550 = vmatprep.subr.mxu0 %v5972_v6  ;;  %1621 = vmatprep.subr.mxu1 %v5975_v7  ;;  %9019 = vst [vmem:[#allocation65_spill] sm:$0xff] %v5984_v12  ;;  %9020 = vst [vmem:[#allocation66_spill] sm:$0xff] %v5987_v5  ;;  %v5990_v6 = vld [vmem:[#allocation11 + $0xa0] sm:$0xff]  ;;  %v5993_v7 = vld [vmem:[#allocation11 + $0xb0] sm:$0xff] }
 0x2b4   :  { %1551 = vmatpush1.msra.mxu0 %v5978_v10  ;;  %1622 = vmatpush1.msra.mxu1 %v5981_v11  ;;  %9021 = vst [vmem:[#allocation67_spill] sm:$0xff] %v5990_v6  ;;  %9022 = vst [vmem:[#allocation68_spill] sm:$0xff] %v5993_v7  ;;  %v5996_v10 = vld [vmem:[#allocation11 + $0x88] sm:$0xff]  ;;  %v5999_v11 = vld [vmem:[#allocation11 + $0x98] sm:$0xff] }
 0x2b5   :  { %1552 = vmatprep.subr.mxu0 %v5984_v12  ;;  %1623 = vmatprep.subr.mxu1 %v5987_v5  ;;  %9023 = vst [vmem:[#allocation69_spill] sm:$0xff] %v5996_v10  ;;  %9024 = vst [vmem:[#allocation70_spill] sm:$0xff] %v5999_v11  ;;  %v6002_v12 = vld [vmem:[#allocation11 + $0x80] sm:$0xff]  ;;  %v6005_v5 = vld [vmem:[#allocation11 + $0x90] sm:$0xff] }
 0x2b6   :  { %1553 = vmatpush1.msra.mxu0 %v5990_v6  ;;  %1624 = vmatpush1.msra.mxu1 %v5993_v7  ;;  %9025 = vst [vmem:[#allocation71_spill] sm:$0xff] %v6002_v12  ;;  %9026 = vst [vmem:[#allocation72_spill] sm:$0xff] %v6005_v5  ;;  %v6008_v6 = vld [vmem:[#allocation11 + $0x68] sm:$0xff]  ;;  %v6011_v7 = vld [vmem:[#allocation11 + $0x78] sm:$0xff] }
 0x2b7   :  { %1554 = vmatprep.subr.mxu0 %v5996_v10  ;;  %1625 = vmatprep.subr.mxu1 %v5999_v11  ;;  %9027 = vst [vmem:[#allocation73_spill] sm:$0xff] %v6008_v6  ;;  %9028 = vst [vmem:[#allocation74_spill] sm:$0xff] %v6011_v7  ;;  %v6014_v10 = vld [vmem:[#allocation11 + $0x60] sm:$0xff]  ;;  %v6017_v11 = vld [vmem:[#allocation11 + $0x70] sm:$0xff] }
 0x2b8   :  { %1555 = vmatpush1.msra.mxu0 %v6002_v12  ;;  %1626 = vmatpush1.msra.mxu1 %v6005_v5  ;;  %9029 = vst [vmem:[#allocation75_spill] sm:$0xff] %v6014_v10  ;;  %9030 = vst [vmem:[#allocation76_spill] sm:$0xff] %v6017_v11  ;;  %v6020_v12 = vld [vmem:[#allocation11 + $0x48] sm:$0xff]  ;;  %v6023_v5 = vld [vmem:[#allocation11 + $0x58] sm:$0xff] }
 0x2b9   :  { %1556 = vmatprep.subr.mxu0 %v6008_v6  ;;  %1627 = vmatprep.subr.mxu1 %v6011_v7  ;;  %9031 = vst [vmem:[#allocation77_spill] sm:$0xff] %v6020_v12  ;;  %9032 = vst [vmem:[#allocation78_spill] sm:$0xff] %v6023_v5  ;;  %v6026_v6 = vld [vmem:[#allocation11 + $0x40] sm:$0xff]  ;;  %v6029_v7 = vld [vmem:[#allocation11 + $0x50] sm:$0xff] }
 0x2ba   :  { %1557 = vmatpush1.msra.mxu0 %v6014_v10  ;;  %1628 = vmatpush1.msra.mxu1 %v6017_v11  ;;  %9033 = vst [vmem:[#allocation79_spill] sm:$0xff] %v6026_v6  ;;  %9034 = vst [vmem:[#allocation80_spill] sm:$0xff] %v6029_v7  ;;  %v6032_v10 = vld [vmem:[#allocation11 + $0x28] sm:$0xff]  ;;  %v6035_v11 = vld [vmem:[#allocation11 + $0x38] sm:$0xff] }
 0x2bb   :  { %1558 = vmatprep.subr.mxu0 %v6020_v12  ;;  %1629 = vmatprep.subr.mxu1 %v6023_v5  ;;  %9035 = vst [vmem:[#allocation81_spill] sm:$0xff] %v6032_v10  ;;  %9036 = vst [vmem:[#allocation82_spill] sm:$0xff] %v6035_v11  ;;  %v6038_v12 = vld [vmem:[#allocation11 + $0x20] sm:$0xff]  ;;  %v6041_v5 = vld [vmem:[#allocation11 + $0x30] sm:$0xff] }
 0x2bc   :  { %1559 = vmatpush1.msra.mxu0 %v6026_v6  ;;  %1630 = vmatpush1.msra.mxu1 %v6029_v7  ;;  %9037 = vst [vmem:[#allocation83_spill] sm:$0xff] %v6038_v12  ;;  %9038 = vst [vmem:[#allocation84_spill] sm:$0xff] %v6041_v5  ;;  %v6044_v6 = vld [vmem:[#allocation11 + $0x8] sm:$0xff]  ;;  %v6047_v7 = vld [vmem:[#allocation11 + $0x18] sm:$0xff] }
 0x2bd   :  { %1560 = vmatprep.subr.mxu0 %v6032_v10  ;;  %1631 = vmatprep.subr.mxu1 %v6035_v11  ;;  %9039 = vst [vmem:[#allocation85_spill] sm:$0xff] %v6044_v6  ;;  %9040 = vst [vmem:[#allocation86_spill] sm:$0xff] %v6047_v7  ;;  %v6050_v10 = vld [vmem:[#allocation11] sm:$0xff]  ;;  %v6053_v11 = vld [vmem:[#allocation11 + $0x10] sm:$0xff] }
 0x2be   :  { %1561 = vmatpush1.msra.mxu0 %v6038_v12  ;;  %1632 = vmatpush1.msra.mxu1 %v6041_v5  ;;  %9041 = vst [vmem:[#allocation87_spill] sm:$0xff] %v6050_v10  ;;  %9042 = vst [vmem:[#allocation88_spill] sm:$0xff] %v6053_v11  ;;  %v6056_v12 = vld [vmem:[#allocation11 + $0x3e8] sm:$0xff]  ;;  %v6059_v5 = vld [vmem:[#allocation11 + $0x3f8] sm:$0xff] }
 0x2bf   :  { %1562 = vmatprep.subr.mxu0 %v6044_v6  ;;  %1633 = vmatprep.subr.mxu1 %v6047_v7  ;;  %9043 = vst [vmem:[#allocation89_spill] sm:$0xff] %v6056_v12  ;;  %9044 = vst [vmem:[#allocation90_spill] sm:$0xff] %v6059_v5  ;;  %v6062_v6 = vld [vmem:[#allocation11 + $0x3e0] sm:$0xff]  ;;  %v6065_v7 = vld [vmem:[#allocation11 + $0x3f0] sm:$0xff] }
 0x2c0   :  { %1563 = vmatpush1.msra.mxu0 %v6050_v10  ;;  %1634 = vmatpush1.msra.mxu1 %v6053_v11  ;;  %9045 = vst [vmem:[#allocation91_spill] sm:$0xff] %v6062_v6  ;;  %9046 = vst [vmem:[#allocation92_spill] sm:$0xff] %v6065_v7  ;;  %v6068_v10 = vld [vmem:[#allocation11 + $0x3c8] sm:$0xff]  ;;  %v6071_v11 = vld [vmem:[#allocation11 + $0x3d8] sm:$0xff] }
 0x2c1   :  { %1564 = vmatprep.subr.mxu0 %v6056_v12  ;;  %1635 = vmatprep.subr.mxu1 %v6059_v5  ;;  %9047 = vst [vmem:[#allocation93_spill] sm:$0xff] %v6068_v10  ;;  %9048 = vst [vmem:[#allocation94_spill] sm:$0xff] %v6071_v11  ;;  %v6074_v12 = vld [vmem:[#allocation11 + $0x3c0] sm:$0xff]  ;;  %v6077_v5 = vld [vmem:[#allocation11 + $0x3d0] sm:$0xff] }
 0x2c2   :  { %1565 = vmatpush2.msra.mxu0 %v6062_v6  ;;  %1636 = vmatpush2.msra.mxu1 %v6065_v7  ;;  %9049 = vst [vmem:[#allocation95_spill] sm:$0xff] %v6074_v12  ;;  %9050 = vst [vmem:[#allocation96_spill] sm:$0xff] %v6077_v5  ;;  %v6080_v6 = vld [vmem:[#allocation11 + $0x3a8] sm:$0xff]  ;;  %v6083_v7 = vld [vmem:[#allocation11 + $0x3b8] sm:$0xff] }
 0x2c3   :  { %1566 = vmatprep.subr.mxu0 %v6068_v10  ;;  %1637 = vmatprep.subr.mxu1 %v6071_v11  ;;  %9051 = vst [vmem:[#allocation97_spill] sm:$0xff] %v6080_v6  ;;  %9052 = vst [vmem:[#allocation98_spill] sm:$0xff] %v6083_v7  ;;  %v6086_v10 = vld [vmem:[#allocation11 + $0x3a0] sm:$0xff]  ;;  %v6089_v11 = vld [vmem:[#allocation11 + $0x3b0] sm:$0xff] }
 0x2c4   :  { %1567 = vmatpush2.msra.mxu0 %v6074_v12  ;;  %1638 = vmatpush2.msra.mxu1 %v6077_v5  ;;  %9053 = vst [vmem:[#allocation99_spill] sm:$0xff] %v6086_v10  ;;  %9054 = vst [vmem:[#allocation100_spill] sm:$0xff] %v6089_v11  ;;  %v6092_v12 = vld [vmem:[#allocation11 + $0x388] sm:$0xff]  ;;  %v6095_v5 = vld [vmem:[#allocation11 + $0x398] sm:$0xff] }
 0x2c5   :  { %1568 = vmatprep.subr.mxu0 %v6080_v6  ;;  %1639 = vmatprep.subr.mxu1 %v6083_v7  ;;  %9055 = vst [vmem:[#allocation101_spill] sm:$0xff] %v6092_v12  ;;  %9056 = vst [vmem:[#allocation102_spill] sm:$0xff] %v6095_v5  ;;  %v6098_v6 = vld [vmem:[#allocation11 + $0x380] sm:$0xff]  ;;  %v6101_v7 = vld [vmem:[#allocation11 + $0x390] sm:$0xff] }
 0x2c6   :  { %1569 = vmatpush2.msra.mxu0 %v6086_v10  ;;  %1640 = vmatpush2.msra.mxu1 %v6089_v11  ;;  %9057 = vst [vmem:[#allocation103_spill] sm:$0xff] %v6098_v6  ;;  %9058 = vst [vmem:[#allocation104_spill] sm:$0xff] %v6101_v7  ;;  %v6104_v10 = vld [vmem:[#allocation11 + $0x368] sm:$0xff]  ;;  %v6107_v11 = vld [vmem:[#allocation11 + $0x378] sm:$0xff] }
 0x2c7   :  { %1570 = vmatprep.subr.mxu0 %v6092_v12  ;;  %1641 = vmatprep.subr.mxu1 %v6095_v5  ;;  %9059 = vst [vmem:[#allocation105_spill] sm:$0xff] %v6104_v10  ;;  %9060 = vst [vmem:[#allocation106_spill] sm:$0xff] %v6107_v11  ;;  %v6110_v12 = vld [vmem:[#allocation11 + $0x360] sm:$0xff]  ;;  %v6113_v5 = vld [vmem:[#allocation11 + $0x370] sm:$0xff] }
 0x2c8   :  { %1571 = vmatpush2.msra.mxu0 %v6098_v6  ;;  %1642 = vmatpush2.msra.mxu1 %v6101_v7  ;;  %9061 = vst [vmem:[#allocation107_spill] sm:$0xff] %v6110_v12  ;;  %9062 = vst [vmem:[#allocation108_spill] sm:$0xff] %v6113_v5  ;;  %v6116_v6 = vld [vmem:[#allocation11 + $0x348] sm:$0xff]  ;;  %v6119_v7 = vld [vmem:[#allocation11 + $0x358] sm:$0xff] }
 0x2c9   :  { %1572 = vmatprep.subr.mxu0 %v6104_v10  ;;  %1643 = vmatprep.subr.mxu1 %v6107_v11  ;;  %9063 = vst [vmem:[#allocation109_spill] sm:$0xff] %v6116_v6  ;;  %9064 = vst [vmem:[#allocation110_spill] sm:$0xff] %v6119_v7  ;;  %v6122_v10 = vld [vmem:[#allocation11 + $0x340] sm:$0xff]  ;;  %v6125_v11 = vld [vmem:[#allocation11 + $0x350] sm:$0xff] }
 0x2ca   :  { %1573 = vmatpush2.msra.mxu0 %v6110_v12  ;;  %1644 = vmatpush2.msra.mxu1 %v6113_v5  ;;  %9065 = vst [vmem:[#allocation111_spill] sm:$0xff] %v6122_v10  ;;  %9066 = vst [vmem:[#allocation112_spill] sm:$0xff] %v6125_v11  ;;  %v6128_v12 = vld [vmem:[#allocation11 + $0x328] sm:$0xff]  ;;  %v6131_v5 = vld [vmem:[#allocation11 + $0x338] sm:$0xff] }
 0x2cb   :  { %1574 = vmatprep.subr.mxu0 %v6116_v6  ;;  %1645 = vmatprep.subr.mxu1 %v6119_v7  ;;  %9067 = vst [vmem:[#allocation113_spill] sm:$0xff] %v6128_v12  ;;  %9068 = vst [vmem:[#allocation114_spill] sm:$0xff] %v6131_v5  ;;  %v6134_v6 = vld [vmem:[#allocation11 + $0x320] sm:$0xff]  ;;  %v6137_v7 = vld [vmem:[#allocation11 + $0x330] sm:$0xff] }
 0x2cc   :  { %1575 = vmatpush2.msra.mxu0 %v6122_v10  ;;  %1646 = vmatpush2.msra.mxu1 %v6125_v11  ;;  %9069 = vst [vmem:[#allocation115_spill] sm:$0xff] %v6134_v6  ;;  %9070 = vst [vmem:[#allocation116_spill] sm:$0xff] %v6137_v7  ;;  %v6140_v10 = vld [vmem:[#allocation11 + $0x308] sm:$0xff]  ;;  %v6143_v11 = vld [vmem:[#allocation11 + $0x318] sm:$0xff] }
 0x2cd   :  { %1576 = vmatprep.subr.mxu0 %v6128_v12  ;;  %1647 = vmatprep.subr.mxu1 %v6131_v5  ;;  %9071 = vst [vmem:[#allocation117_spill] sm:$0xff] %v6140_v10  ;;  %9072 = vst [vmem:[#allocation118_spill] sm:$0xff] %v6143_v11  ;;  %v6146_v12 = vld [vmem:[#allocation11 + $0x300] sm:$0xff]  ;;  %v6149_v5 = vld [vmem:[#allocation11 + $0x310] sm:$0xff] }
 0x2ce   :  { %1577 = vmatpush2.msra.mxu0 %v6134_v6  ;;  %1648 = vmatpush2.msra.mxu1 %v6137_v7  ;;  %9073 = vst [vmem:[#allocation119_spill] sm:$0xff] %v6146_v12  ;;  %9074 = vst [vmem:[#allocation120_spill] sm:$0xff] %v6149_v5  ;;  %v6152_v6 = vld [vmem:[#allocation11 + $0x2e8] sm:$0xff]  ;;  %v6155_v7 = vld [vmem:[#allocation11 + $0x2f8] sm:$0xff] }
 0x2cf   :  { %1578 = vmatprep.subr.mxu0 %v6140_v10  ;;  %1649 = vmatprep.subr.mxu1 %v6143_v11  ;;  %9075 = vst [vmem:[#allocation121_spill] sm:$0xff] %v6152_v6  ;;  %9076 = vst [vmem:[#allocation122_spill] sm:$0xff] %v6155_v7  ;;  %v6158_v10 = vld [vmem:[#allocation11 + $0x2e0] sm:$0xff]  ;;  %v6161_v11 = vld [vmem:[#allocation11 + $0x2f0] sm:$0xff] }
 0x2d0   :  { %1579 = vmatpush2.msra.mxu0 %v6146_v12  ;;  %1650 = vmatpush2.msra.mxu1 %v6149_v5  ;;  %9077 = vst [vmem:[#allocation123_spill] sm:$0xff] %v6158_v10  ;;  %9078 = vst [vmem:[#allocation124_spill] sm:$0xff] %v6161_v11  ;;  %v6164_v12 = vld [vmem:[#allocation11 + $0x2c8] sm:$0xff]  ;;  %v6167_v5 = vld [vmem:[#allocation11 + $0x2d8] sm:$0xff] }
 0x2d1   :  { %1580 = vmatprep.subr.mxu0 %v6152_v6  ;;  %1651 = vmatprep.subr.mxu1 %v6155_v7  ;;  %9079 = vst [vmem:[#allocation125_spill] sm:$0xff] %v6164_v12  ;;  %9080 = vst [vmem:[#allocation126_spill] sm:$0xff] %v6167_v5  ;;  %v6170_v6 = vld [vmem:[#allocation11 + $0x2c0] sm:$0xff]  ;;  %v6173_v7 = vld [vmem:[#allocation11 + $0x2d0] sm:$0xff] }
 0x2d2   :  { %1581 = vmatpush2.msra.mxu0 %v6158_v10  ;;  %1652 = vmatpush2.msra.mxu1 %v6161_v11  ;;  %9081 = vst [vmem:[#allocation127_spill] sm:$0xff] %v6170_v6  ;;  %9082 = vst [vmem:[#allocation128_spill] sm:$0xff] %v6173_v7  ;;  %v6176_v10 = vld [vmem:[#allocation11 + $0x2a8] sm:$0xff]  ;;  %v6179_v11 = vld [vmem:[#allocation11 + $0x2b8] sm:$0xff] }
 0x2d3   :  { %1582 = vmatprep.subr.mxu0 %v6164_v12  ;;  %1653 = vmatprep.subr.mxu1 %v6167_v5  ;;  %9083 = vst [vmem:[#allocation129_spill] sm:$0xff] %v6176_v10  ;;  %9084 = vst [vmem:[#allocation130_spill] sm:$0xff] %v6179_v11  ;;  %v6182_v12 = vld [vmem:[#allocation11 + $0x2a0] sm:$0xff]  ;;  %v6185_v5 = vld [vmem:[#allocation11 + $0x2b0] sm:$0xff] }
 0x2d4   :  { %1583 = vmatpush2.msra.mxu0 %v6170_v6  ;;  %1654 = vmatpush2.msra.mxu1 %v6173_v7  ;;  %9085 = vst [vmem:[#allocation131_spill] sm:$0xff] %v6182_v12  ;;  %9086 = vst [vmem:[#allocation132_spill] sm:$0xff] %v6185_v5  ;;  %v6188_v6 = vld [vmem:[#allocation11 + $0x288] sm:$0xff]  ;;  %v6191_v7 = vld [vmem:[#allocation11 + $0x298] sm:$0xff] }
 0x2d5   :  { %1584 = vmatprep.subr.mxu0 %v6176_v10  ;;  %1655 = vmatprep.subr.mxu1 %v6179_v11  ;;  %9087 = vst [vmem:[#allocation133_spill] sm:$0xff] %v6188_v6  ;;  %9088 = vst [vmem:[#allocation134_spill] sm:$0xff] %v6191_v7  ;;  %v6194_v10 = vld [vmem:[#allocation11 + $0x280] sm:$0xff]  ;;  %v6197_v11 = vld [vmem:[#allocation11 + $0x290] sm:$0xff] }
 0x2d6   :  { %1585 = vmatpush2.msra.mxu0 %v6182_v12  ;;  %1656 = vmatpush2.msra.mxu1 %v6185_v5  ;;  %9089 = vst [vmem:[#allocation135_spill] sm:$0xff] %v6194_v10  ;;  %9090 = vst [vmem:[#allocation136_spill] sm:$0xff] %v6197_v11  ;;  %v6200_v12 = vld [vmem:[#allocation11 + $0x268] sm:$0xff]  ;;  %v6203_v5 = vld [vmem:[#allocation11 + $0x278] sm:$0xff] }
 0x2d7   :  { %1586 = vmatprep.subr.mxu0 %v6188_v6  ;;  %1657 = vmatprep.subr.mxu1 %v6191_v7  ;;  %9091 = vst [vmem:[#allocation137_spill] sm:$0xff] %v6200_v12  ;;  %9092 = vst [vmem:[#allocation138_spill] sm:$0xff] %v6203_v5  ;;  %v6206_v6 = vld [vmem:[#allocation11 + $0x260] sm:$0xff]  ;;  %v6209_v7 = vld [vmem:[#allocation11 + $0x270] sm:$0xff] }
 0x2d8   :  { %1587 = vmatpush2.msra.mxu0 %v6194_v10  ;;  %1658 = vmatpush2.msra.mxu1 %v6197_v11  ;;  %9093 = vst [vmem:[#allocation139_spill] sm:$0xff] %v6206_v6  ;;  %9094 = vst [vmem:[#allocation140_spill] sm:$0xff] %v6209_v7  ;;  %v6212_v10 = vld [vmem:[#allocation11 + $0x248] sm:$0xff]  ;;  %v6215_v11 = vld [vmem:[#allocation11 + $0x258] sm:$0xff] }
 0x2d9   :  { %1588 = vmatprep.subr.mxu0 %v6200_v12  ;;  %1659 = vmatprep.subr.mxu1 %v6203_v5  ;;  %9095 = vst [vmem:[#allocation141_spill] sm:$0xff] %v6212_v10  ;;  %9096 = vst [vmem:[#allocation142_spill] sm:$0xff] %v6215_v11  ;;  %v6218_v12 = vld [vmem:[#allocation11 + $0x240] sm:$0xff]  ;;  %v6221_v5 = vld [vmem:[#allocation11 + $0x250] sm:$0xff] }
 0x2da   :  { %1589 = vmatpush2.msra.mxu0 %v6206_v6  ;;  %1660 = vmatpush2.msra.mxu1 %v6209_v7  ;;  %9097 = vst [vmem:[#allocation143_spill] sm:$0xff] %v6218_v12  ;;  %9098 = vst [vmem:[#allocation144_spill] sm:$0xff] %v6221_v5  ;;  %v6224_v6 = vld [vmem:[#allocation11 + $0x228] sm:$0xff]  ;;  %v6227_v7 = vld [vmem:[#allocation11 + $0x238] sm:$0xff] }
 0x2db   :  { %1590 = vmatprep.subr.mxu0 %v6212_v10  ;;  %1661 = vmatprep.subr.mxu1 %v6215_v11  ;;  %9099 = vst [vmem:[#allocation145_spill] sm:$0xff] %v6224_v6  ;;  %9100 = vst [vmem:[#allocation146_spill] sm:$0xff] %v6227_v7  ;;  %v6230_v10 = vld [vmem:[#allocation11 + $0x220] sm:$0xff]  ;;  %v6233_v11 = vld [vmem:[#allocation11 + $0x230] sm:$0xff] }
 0x2dc   :  { %1591 = vmatpush2.msra.mxu0 %v6218_v12  ;;  %1662 = vmatpush2.msra.mxu1 %v6221_v5  ;;  %9101 = vst [vmem:[#allocation147_spill] sm:$0xff] %v6230_v10  ;;  %9102 = vst [vmem:[#allocation148_spill] sm:$0xff] %v6233_v11  ;;  %v6236_v12 = vld [vmem:[#allocation11 + $0x208] sm:$0xff]  ;;  %v6239_v5 = vld [vmem:[#allocation11 + $0x218] sm:$0xff] }
 0x2dd   :  { %1592 = vmatprep.subr.mxu0 %v6224_v6  ;;  %1663 = vmatprep.subr.mxu1 %v6227_v7  ;;  %9103 = vst [vmem:[#allocation149_spill] sm:$0xff] %v6236_v12  ;;  %9104 = vst [vmem:[#allocation150_spill] sm:$0xff] %v6239_v5  ;;  %v6242_v6 = vld [vmem:[#allocation11 + $0x200] sm:$0xff]  ;;  %v6245_v7 = vld [vmem:[#allocation11 + $0x210] sm:$0xff] }
 0x2de   :  { %1593 = vmatpush2.msra.mxu0 %v6230_v10  ;;  %1664 = vmatpush2.msra.mxu1 %v6233_v11  ;;  %9105 = vst [vmem:[#allocation152_spill] sm:$0xff] %v6242_v6  ;;  %9106 = vst [vmem:[#allocation151_spill] sm:$0xff] %v6245_v7 }
 0x2df   :  { %1594 = vmatprep.subr.mxu0 %v6236_v12  ;;  %1665 = vmatprep.subr.mxu1 %v6239_v5 }
 0x2e0   :  { %1595 = vmatpush2.msra.mxu0 %v6242_v6  ;;  %1666 = vmatpush2.msra.mxu1 %v6245_v7 }
 0x2e1   :  { %1709 = vmatprep.subr.mxu0 %v5666_v43  ;;  %1780 = vmatprep.subr.mxu1 %v5669_v45 }
 0x33f   :  { %v1246_v11 = vpop.f32.mrf.mxu0  ;;  %v1317_v2 = vpop.f32.mrf.mxu1 }
 0x340   :  { %v1247_v10 = vadd.f32 %v1246_v11, %v5677_v48  ;;  %v1318_v6 = vadd.f32 %v1317_v2, %v5687_v59 }
 0x341   :  { %v1248_v12 = vpop.f32.mrf.mxu0  ;;  %v1319_v63 = vpop.f32.mrf.mxu1 }
 0x342   :  { %v3609_v4 = vmul.f32 -1.442695, %v1247_v10  ;;  %v1249_v3 = vadd.f32 %v1248_v12, %v5681_v50  ;;  %v3611_v61 = vmul.f32 -1.442695, %v1318_v6  ;;  %v1320_v43 = vadd.f32 %v1319_v63, %v5692_v1  ;;  %v9108_v6 = vld [vmem:[#allocation156_spill] sm:$0xff] }
 0x344   :  { %3760 = vpow2.f32 %v3609_v4  ;;  %v3610_v5 = vmul.f32 -1.442695, %v1249_v3  ;;  %v9107_v3 = vld [vmem:[#allocation154_spill] sm:$0xff] }
 0x346   :  { %3762 = vpow2.f32 %v3610_v5 }
 0x347   :  { %3764 = vpow2.f32 %v3611_v61 }
 0x351   :  { %v3761_v7 = vpop.eup %3760 }
 0x352   :  { %v1332_v60 = vadd.f32 1.0, %v3761_v7 }
 0x353   :  { %v3763_v45 = vpop.eup %3762 }
 0x354   :  { %3766 = vrcp.f32 %v1332_v60  ;;  %v1333_v11 = vadd.f32 1.0, %v3763_v45  ;;  %v3765_v10 = vpop.eup %3764  ;;  %v9109_v45 = vld [vmem:[#allocation155_spill] sm:$0xff] }
 0x355   :  { %3768 = vtanh.f32 %v1320_v43  ;;  %v1334_v58 = vadd.f32 1.0, %v3765_v10 }
 0x356   :  { %3770 = vrcp.f32 %v1333_v11 }
 0x360   :  { %v1423_v12 = vpop.f32.mrf.mxu0  ;;  %v1494_v43 = vpop.f32.mrf.mxu1 }
 0x361   :  { %v3767_v4 = vpop.eup %3766  ;;  %v1499_v5 = vadd.f32 %v1423_v12, %v9107_v3  ;;  %v1501_v11 = vadd.f32 %v1494_v43, %v9109_v45 }
 0x362   :  { %v3769_v50 = vpop.eup %3768  ;;  %v1425_v48 = vpop.f32.mrf.mxu0 }
 0x363   :  { %v3771_v2 = vpop.eup %3770  ;;  %v3612_v59 = vmul.f32 -1.442695, %v1499_v5  ;;  %v1500_v42 = vadd.f32 %v1425_v48, %v9108_v6  ;;  %v1343_v7 = vmul.f32 %v3769_v50, %v3767_v4  ;;  %v1496_v12 = vpop.f32.mrf.mxu1  ;;  %v3614_v3 = vmul.f32 -1.442695, %v1501_v11  ;;  %v9110_v5 = vld [vmem:[#allocation157_spill] sm:$0xff] }
 0x364   :  { %v1342_v63 = vmul.f32 %v3771_v2, %v5697_v18  ;;  %v1502_v1 = vadd.f32 %v1496_v12, %v9110_v5  ;;  %v6273_v5 = vld [vmem:[#allocation9 + $0x1f0] sm:$0xff] }
 0x365   :  { %3772 = vpow2.f32 %v3612_v59  ;;  %v3613_v60 = vmul.f32 -1.442695, %v1500_v42 }
 0x366   :  { %v6257_v61 = vadd.f32 %v1343_v7, %v1342_v63 }
 0x367   :  { %3774 = vpow2.f32 %v3613_v60 }
 0x368   :  { %3776 = vrcp.f32 %v1334_v58 }
 0x369   :  { %3778 = vtanh.f32 %v6257_v61 }
 0x36a   :  { %3780 = vpow2.f32 %v3614_v3  ;;  %v6270_v3 = vld [vmem:[#allocation9 + $0x1e0] sm:$0xff] }
 0x36b   :  { %3782 = vtanh.f32 %v1502_v1 }
 0x372   :  { %v3773_v48 = vpop.eup %3772 }
 0x373   :  { %v1513_v10 = vadd.f32 1.0, %v3773_v48  ;;  %v6279_v48 = vld [vmem:[#allocation9 + $0x1d8] sm:$0xff] }
 0x374   :  { %v3775_v18 = vpop.eup %3774 }
 0x375   :  { %v3777_v50 = vpop.eup %3776  ;;  %3784 = vrcp.f32 %v1513_v10  ;;  %v1514_v42 = vadd.f32 1.0, %v3775_v18  ;;  %v6282_v10 = vld [vmem:[#allocation9 + $0x1c0] sm:$0xff]  ;;  %v6285_v18 = vld [vmem:[#allocation9 + $0x1d0] sm:$0xff] }
 0x376   :  { %v3779_v59 = vpop.eup %3778 }
 0x377   :  { %3786 = vrcp.f32 %v1514_v42  ;;  %v1346_v58 = vmul.f32 %v3779_v59, %v3777_v50  ;;  %v3781_v4 = vpop.eup %3780  ;;  %v6288_v50 = vld [vmem:[#allocation9 + $0x1a8] sm:$0xff]  ;;  %v6291_v42 = vld [vmem:[#allocation9 + $0x1b8] sm:$0xff]  ;;  %v6294_v59 = vld [vmem:[#allocation9 + $0x1a0] sm:$0xff] }
 0x378   :  { %v3783_v2 = vpop.eup %3782  ;;  %v1515_v60 = vadd.f32 1.0, %v3781_v4  ;;  %v6300_v4 = vld [vmem:[#allocation9 + $0x188] sm:$0xff] }
 0x379   :  { %1596 = vmatprep.mubr.f32.mxu0 %v1346_v58  ;;  %1667 = vmatprep.mubr.f32.mxu1 %v1346_v58  ;;  %v6297_v58 = vld [vmem:[#allocation9 + $0x1b0] sm:$0xff] }
 0x37a   :  { %3788 = vrcp.f32 %v1515_v60  ;;  %v6315_v60 = vld [vmem:[#allocation9 + $0x178] sm:$0xff] }
 0x382   :  { %v3785_v6 = vpop.eup %3784 }
 0x383   :  { %v1524_v63 = vmul.f32 %v3785_v6, %v3783_v2  ;;  %v6303_v2 = vld [vmem:[#allocation9 + $0x198] sm:$0xff]  ;;  %v6306_v6 = vld [vmem:[#allocation9 + $0x180] sm:$0xff] }
 0x384   :  { %v3787_v7 = vpop.eup %3786 }
 0x385   :  { %v1523_v43 = vmul.f32 %v3787_v7, %v5703_v9  ;;  %v6276_v9 = vld [vmem:[#allocation9 + $0x1c8] sm:$0xff] }
 0x386   :  { %v6312_v7 = vld [vmem:[#allocation9 + $0x168] sm:$0xff] }
 0x387   :  { %v6263_v45 = vadd.f32 %v1524_v63, %v1523_v43  ;;  %v3789_v1 = vpop.eup %3788  ;;  %v6309_v63 = vld [vmem:[#allocation9 + $0x190] sm:$0xff]  ;;  %v6318_v43 = vld [vmem:[#allocation9 + $0x160] sm:$0xff] }
 0x389   :  { %3790 = vtanh.f32 %v6263_v45 }
 0x396   :  { %v3791_v11 = vpop.eup %3790 }
 0x397   :  { %v6266_v12 = vmul.f32 %v3791_v11, %v3789_v1  ;;  %v6321_v1 = vld [vmem:[#allocation9 + $0x170] sm:$0xff] }
 0x398   :  { %v9153_v11 = vld [vmem:[#allocation64_spill] sm:$0xff] }
 0x399   :  { %1597 = vmatmul.mubr.f32.vlgmr.msra.gmra.mxu0 %v6266_v12  ;;  %1668 = vmatmul.mubr.f32.vlgmr.msra.gmra.mxu1 %v6266_v12 }
 0x39a   :  { %1710 = vmatpush1.msra.mxu0 %v6270_v3  ;;  %1781 = vmatpush1.msra.mxu1 %v6273_v5 }
 0x39b   :  { %1711 = vmatprep.subr.mxu0 %v6276_v9  ;;  %1782 = vmatprep.subr.mxu1 %v6279_v48 }
 0x39c   :  { %1712 = vmatpush1.msra.mxu0 %v6282_v10  ;;  %1783 = vmatpush1.msra.mxu1 %v6285_v18 }
 0x39d   :  { %1713 = vmatprep.subr.mxu0 %v6288_v50  ;;  %1784 = vmatprep.subr.mxu1 %v6291_v42 }
 0x39e   :  { %1714 = vmatpush1.msra.mxu0 %v6294_v59  ;;  %1785 = vmatpush1.msra.mxu1 %v6297_v58 }
 0x39f   :  { %1715 = vmatprep.subr.mxu0 %v6300_v4  ;;  %1786 = vmatprep.subr.mxu1 %v6303_v2 }
 0x3a0   :  { %1716 = vmatpush1.msra.mxu0 %v6306_v6  ;;  %1787 = vmatpush1.msra.mxu1 %v6309_v63 }
 0x3a1   :  { %1717 = vmatprep.subr.mxu0 %v6312_v7  ;;  %1788 = vmatprep.subr.mxu1 %v6315_v60 }
 0x3a2   :  { %1718 = vmatpush1.msra.mxu0 %v6318_v43  ;;  %1789 = vmatpush1.msra.mxu1 %v6321_v1 }
 0x3a3   :  { %1719 = vmatprep.subr.mxu0 %v5728_v8  ;;  %1790 = vmatprep.subr.mxu1 %v5731_v19  ;;  %v9111_v8 = vld [vmem:[#allocation23_spill] sm:$0xff]  ;;  %v9112_v19 = vmov 0.0  }
 0x3a4   :  { %1720 = vmatpush1.msra.mxu0 %v5734_v34  ;;  %1791 = vmatpush1.msra.mxu1 %v5737_v27  ;;  %v9113_v34 = vld [vmem:[#allocation24_spill] sm:$0xff]  ;;  %v9114_v27 = vld [vmem:[#allocation25_spill] sm:$0xff] }
 0x3a5   :  { %1721 = vmatprep.subr.mxu0 %v5740_v26  ;;  %1792 = vmatprep.subr.mxu1 %v5743_v0  ;;  %v9115_v26 = vld [vmem:[#allocation26_spill] sm:$0xff]  ;;  %v9116_v0 = vld [vmem:[#allocation27_spill] sm:$0xff] }
 0x3a6   :  { %1722 = vmatpush1.msra.mxu0 %v5746_v53  ;;  %1793 = vmatpush1.msra.mxu1 %v5749_v39  ;;  %v9117_v53 = vld [vmem:[#allocation28_spill] sm:$0xff]  ;;  %v9118_v39 = vld [vmem:[#allocation29_spill] sm:$0xff] }
 0x3a7   :  { %1723 = vmatprep.subr.mxu0 %v5752_v62  ;;  %1794 = vmatprep.subr.mxu1 %v5755_v33  ;;  %v9119_v62 = vld [vmem:[#allocation30_spill] sm:$0xff]  ;;  %v9120_v33 = vld [vmem:[#allocation31_spill] sm:$0xff] }
 0x3a8   :  { %1724 = vmatpush1.msra.mxu0 %v5758_v36  ;;  %1795 = vmatpush1.msra.mxu1 %v5761_v25  ;;  %v9121_v36 = vld [vmem:[#allocation32_spill] sm:$0xff]  ;;  %v9122_v25 = vld [vmem:[#allocation33_spill] sm:$0xff] }
 0x3a9   :  { %1725 = vmatprep.subr.mxu0 %v5764_v31  ;;  %1796 = vmatprep.subr.mxu1 %v5767_v35  ;;  %v9123_v31 = vld [vmem:[#allocation34_spill] sm:$0xff]  ;;  %v9124_v35 = vld [vmem:[#allocation35_spill] sm:$0xff] }
 0x3aa   :  { %1726 = vmatpush1.msra.mxu0 %v5770_v30  ;;  %1797 = vmatpush1.msra.mxu1 %v5773_v37  ;;  %v9125_v30 = vld [vmem:[#allocation36_spill] sm:$0xff]  ;;  %v9126_v37 = vld [vmem:[#allocation37_spill] sm:$0xff] }
 0x3ab   :  { %1727 = vmatprep.subr.mxu0 %v5776_v38  ;;  %1798 = vmatprep.subr.mxu1 %v5779_v17  ;;  %v9127_v38 = vld [vmem:[#allocation38_spill] sm:$0xff]  ;;  %v9128_v17 = vld [vmem:[#allocation39_spill] sm:$0xff] }
 0x3ac   :  { %1728 = vmatpush1.msra.mxu0 %v5782_v29  ;;  %1799 = vmatpush1.msra.mxu1 %v5785_v13  ;;  %v9129_v29 = vld [vmem:[#allocation40_spill] sm:$0xff]  ;;  %v9130_v13 = vld [vmem:[#allocation41_spill] sm:$0xff] }
 0x3ad   :  { %1729 = vmatprep.subr.mxu0 %v5788_v14  ;;  %1800 = vmatprep.subr.mxu1 %v5791_v44  ;;  %v9131_v14 = vld [vmem:[#allocation42_spill] sm:$0xff]  ;;  %v9132_v44 = vld [vmem:[#allocation43_spill] sm:$0xff] }
 0x3ae   :  { %1730 = vmatpush1.msra.mxu0 %v5794_v15  ;;  %1801 = vmatpush1.msra.mxu1 %v5797_v16  ;;  %v9133_v15 = vld [vmem:[#allocation44_spill] sm:$0xff]  ;;  %v9134_v16 = vld [vmem:[#allocation45_spill] sm:$0xff] }
 0x3af   :  { %1731 = vmatprep.subr.mxu0 %v5800_v20  ;;  %1802 = vmatprep.subr.mxu1 %v5803_v21  ;;  %v9135_v20 = vld [vmem:[#allocation46_spill] sm:$0xff]  ;;  %v9136_v21 = vld [vmem:[#allocation47_spill] sm:$0xff] }
 0x3b0   :  { %1732 = vmatpush1.msra.mxu0 %v5806_v22  ;;  %1803 = vmatpush1.msra.mxu1 %v5809_v23  ;;  %v9137_v22 = vld [vmem:[#allocation48_spill] sm:$0xff]  ;;  %v9138_v23 = vld [vmem:[#allocation49_spill] sm:$0xff] }
 0x3b1   :  { %1733 = vmatprep.subr.mxu0 %v5812_v24  ;;  %1804 = vmatprep.subr.mxu1 %v5815_v28  ;;  %v9139_v24 = vld [vmem:[#allocation50_spill] sm:$0xff]  ;;  %v9140_v28 = vld [vmem:[#allocation51_spill] sm:$0xff] }
 0x3b2   :  { %1734 = vmatpush1.msra.mxu0 %v5818_v32  ;;  %1805 = vmatpush1.msra.mxu1 %v5821_v40  ;;  %v9141_v32 = vld [vmem:[#allocation52_spill] sm:$0xff]  ;;  %v9142_v40 = vld [vmem:[#allocation53_spill] sm:$0xff] }
 0x3b3   :  { %1735 = vmatprep.subr.mxu0 %v5824_v41  ;;  %1806 = vmatprep.subr.mxu1 %v5827_v46  ;;  %v9143_v41 = vld [vmem:[#allocation54_spill] sm:$0xff]  ;;  %v9144_v46 = vld [vmem:[#allocation55_spill] sm:$0xff] }
 0x3b4   :  { %1736 = vmatpush1.msra.mxu0 %v5830_v47  ;;  %1807 = vmatpush1.msra.mxu1 %v5833_v49  ;;  %v9145_v47 = vld [vmem:[#allocation56_spill] sm:$0xff]  ;;  %v9146_v49 = vld [vmem:[#allocation57_spill] sm:$0xff] }
 0x3b5   :  { %1737 = vmatprep.subr.mxu0 %v5836_v51  ;;  %1808 = vmatprep.subr.mxu1 %v5839_v52  ;;  %v9147_v51 = vld [vmem:[#allocation58_spill] sm:$0xff]  ;;  %v9148_v52 = vld [vmem:[#allocation59_spill] sm:$0xff] }
 0x3b6   :  { %1738 = vmatpush1.msra.mxu0 %v5842_v54  ;;  %1809 = vmatpush1.msra.mxu1 %v5845_v55  ;;  %v9149_v54 = vld [vmem:[#allocation60_spill] sm:$0xff]  ;;  %v9150_v55 = vld [vmem:[#allocation61_spill] sm:$0xff] }
 0x3b7   :  { %1739 = vmatprep.subr.mxu0 %v5848_v56  ;;  %1810 = vmatprep.subr.mxu1 %v5851_v57  ;;  %v9151_v56 = vld [vmem:[#allocation62_spill] sm:$0xff]  ;;  %v9152_v57 = vld [vmem:[#allocation63_spill] sm:$0xff] }
 0x3b8   :  { %1740 = vmatpush1.msra.mxu0 %v9111_v8  ;;  %1773 = vmatprep.mubr.f32.mxu0 %v9112_v19  ;;  %v9155_v8 = vld [vmem:[#allocation66_spill] sm:$0xff] }
 0x3b9   :  { %1811 = vmatpush1.msra.mxu1 %v9113_v34  ;;  %1844 = vmatprep.mubr.f32.mxu1 %v9112_v19  ;;  %v9156_v34 = vld [vmem:[#allocation67_spill] sm:$0xff] }
 0x3ba   :  { %1774 = vmatmul.mubr.f32.vlgmr.msra.gmra.mxu0 %v6266_v12  ;;  %1845 = vmatmul.mubr.f32.vlgmr.msra.gmra.mxu1 %v6266_v12  ;;  %v9154_v12 = vld [vmem:[#allocation65_spill] sm:$0xff] }
 0x3bb   :  { %1884 = vmatprep.subr.mxu0 %v9114_v27  ;;  %1955 = vmatprep.subr.mxu1 %v9115_v26  ;;  %v9157_v27 = vld [vmem:[#allocation68_spill] sm:$0xff]  ;;  %v9158_v26 = vld [vmem:[#allocation69_spill] sm:$0xff] }
 0x3bc   :  { %1885 = vmatpush1.msra.mxu0 %v9116_v0  ;;  %1956 = vmatpush1.msra.mxu1 %v9117_v53  ;;  %v9159_v0 = vld [vmem:[#allocation70_spill] sm:$0xff]  ;;  %v9160_v53 = vld [vmem:[#allocation71_spill] sm:$0xff] }
 0x3bd   :  { %1886 = vmatprep.subr.mxu0 %v9118_v39  ;;  %1957 = vmatprep.subr.mxu1 %v9119_v62  ;;  %v9161_v39 = vld [vmem:[#allocation72_spill] sm:$0xff]  ;;  %v9162_v62 = vld [vmem:[#allocation73_spill] sm:$0xff] }
 0x3be   :  { %1887 = vmatpush1.msra.mxu0 %v9120_v33  ;;  %1958 = vmatpush1.msra.mxu1 %v9121_v36  ;;  %v9163_v33 = vld [vmem:[#allocation74_spill] sm:$0xff]  ;;  %v9164_v36 = vld [vmem:[#allocation75_spill] sm:$0xff] }
 0x3bf   :  { %1888 = vmatprep.subr.mxu0 %v9122_v25  ;;  %1959 = vmatprep.subr.mxu1 %v9123_v31  ;;  %v9165_v25 = vld [vmem:[#allocation76_spill] sm:$0xff]  ;;  %v9166_v31 = vld [vmem:[#allocation77_spill] sm:$0xff] }
 0x3c0   :  { %1889 = vmatpush1.msra.mxu0 %v9124_v35  ;;  %1960 = vmatpush1.msra.mxu1 %v9125_v30  ;;  %v9167_v35 = vld [vmem:[#allocation78_spill] sm:$0xff]  ;;  %v9168_v30 = vld [vmem:[#allocation79_spill] sm:$0xff] }
 0x3c1   :  { %1890 = vmatprep.subr.mxu0 %v9126_v37  ;;  %1961 = vmatprep.subr.mxu1 %v9127_v38  ;;  %v9169_v37 = vld [vmem:[#allocation80_spill] sm:$0xff]  ;;  %v9170_v38 = vld [vmem:[#allocation81_spill] sm:$0xff] }
 0x3c2   :  { %1891 = vmatpush1.msra.mxu0 %v9128_v17  ;;  %1962 = vmatpush1.msra.mxu1 %v9129_v29  ;;  %v9171_v17 = vld [vmem:[#allocation82_spill] sm:$0xff]  ;;  %v9172_v29 = vld [vmem:[#allocation83_spill] sm:$0xff] }
 0x3c3   :  { %1892 = vmatprep.subr.mxu0 %v9130_v13  ;;  %1963 = vmatprep.subr.mxu1 %v9131_v14  ;;  %v9173_v13 = vld [vmem:[#allocation84_spill] sm:$0xff]  ;;  %v9174_v14 = vld [vmem:[#allocation85_spill] sm:$0xff] }
 0x3c4   :  { %1893 = vmatpush1.msra.mxu0 %v9132_v44  ;;  %1964 = vmatpush1.msra.mxu1 %v9133_v15  ;;  %v9175_v44 = vld [vmem:[#allocation86_spill] sm:$0xff]  ;;  %v9176_v15 = vld [vmem:[#allocation87_spill] sm:$0xff] }
 0x3c5   :  { %1894 = vmatprep.subr.mxu0 %v9134_v16  ;;  %1965 = vmatprep.subr.mxu1 %v9135_v20  ;;  %v9177_v16 = vld [vmem:[#allocation88_spill] sm:$0xff]  ;;  %v9178_v20 = vld [vmem:[#allocation89_spill] sm:$0xff] }
 0x3c6   :  { %1895 = vmatpush1.msra.mxu0 %v9136_v21  ;;  %1966 = vmatpush1.msra.mxu1 %v9137_v22  ;;  %v9179_v21 = vld [vmem:[#allocation90_spill] sm:$0xff]  ;;  %v9180_v22 = vld [vmem:[#allocation91_spill] sm:$0xff] }
 0x3c7   :  { %1896 = vmatprep.subr.mxu0 %v9138_v23  ;;  %1967 = vmatprep.subr.mxu1 %v9139_v24  ;;  %v9181_v23 = vld [vmem:[#allocation92_spill] sm:$0xff]  ;;  %v9182_v24 = vld [vmem:[#allocation93_spill] sm:$0xff] }
 0x3c8   :  { %1897 = vmatpush1.msra.mxu0 %v9140_v28  ;;  %1968 = vmatpush1.msra.mxu1 %v9141_v32  ;;  %v9183_v28 = vld [vmem:[#allocation94_spill] sm:$0xff]  ;;  %v9184_v32 = vld [vmem:[#allocation95_spill] sm:$0xff] }
 0x3c9   :  { %1898 = vmatprep.subr.mxu0 %v9142_v40  ;;  %1969 = vmatprep.subr.mxu1 %v9143_v41  ;;  %v9185_v40 = vld [vmem:[#allocation96_spill] sm:$0xff]  ;;  %v9186_v41 = vld [vmem:[#allocation97_spill] sm:$0xff] }
 0x3ca   :  { %1899 = vmatpush1.msra.mxu0 %v9144_v46  ;;  %1970 = vmatpush1.msra.mxu1 %v9145_v47  ;;  %v9187_v46 = vld [vmem:[#allocation98_spill] sm:$0xff]  ;;  %v9188_v47 = vld [vmem:[#allocation99_spill] sm:$0xff] }
 0x3cb   :  { %1900 = vmatprep.subr.mxu0 %v9146_v49  ;;  %1971 = vmatprep.subr.mxu1 %v9147_v51  ;;  %v9189_v49 = vld [vmem:[#allocation100_spill] sm:$0xff]  ;;  %v9190_v51 = vld [vmem:[#allocation101_spill] sm:$0xff] }
 0x3cc   :  { %1901 = vmatpush1.msra.mxu0 %v9148_v52  ;;  %1972 = vmatpush1.msra.mxu1 %v9149_v54  ;;  %v9191_v52 = vld [vmem:[#allocation102_spill] sm:$0xff]  ;;  %v9192_v54 = vld [vmem:[#allocation103_spill] sm:$0xff] }
 0x3cd   :  { %1902 = vmatprep.subr.mxu0 %v9150_v55  ;;  %1973 = vmatprep.subr.mxu1 %v9151_v56  ;;  %v9193_v55 = vld [vmem:[#allocation104_spill] sm:$0xff]  ;;  %v9194_v56 = vld [vmem:[#allocation105_spill] sm:$0xff] }
 0x3ce   :  { %1903 = vmatpush1.msra.mxu0 %v9152_v57  ;;  %1974 = vmatpush1.msra.mxu1 %v9153_v11  ;;  %v9195_v57 = vld [vmem:[#allocation106_spill] sm:$0xff]  ;;  %v9196_v11 = vld [vmem:[#allocation107_spill] sm:$0xff] }
 0x3cf   :  { %1904 = vmatprep.subr.mxu0 %v9154_v12  ;;  %1975 = vmatprep.subr.mxu1 %v9155_v8  ;;  %v9197_v12 = vld [vmem:[#allocation108_spill] sm:$0xff]  ;;  %v9198_v8 = vld [vmem:[#allocation109_spill] sm:$0xff] }
 0x3d0   :  { %1905 = vmatpush1.msra.mxu0 %v9156_v34  ;;  %1976 = vmatpush1.msra.mxu1 %v9157_v27  ;;  %v9199_v34 = vld [vmem:[#allocation110_spill] sm:$0xff]  ;;  %v9200_v27 = vld [vmem:[#allocation111_spill] sm:$0xff] }
 0x3d1   :  { %1906 = vmatprep.subr.mxu0 %v9158_v26  ;;  %1977 = vmatprep.subr.mxu1 %v9159_v0  ;;  %v9201_v26 = vld [vmem:[#allocation112_spill] sm:$0xff]  ;;  %v9202_v0 = vld [vmem:[#allocation113_spill] sm:$0xff] }
 0x3d2   :  { %1907 = vmatpush1.msra.mxu0 %v9160_v53  ;;  %1978 = vmatpush1.msra.mxu1 %v9161_v39  ;;  %v9203_v53 = vld [vmem:[#allocation114_spill] sm:$0xff]  ;;  %v9204_v39 = vld [vmem:[#allocation115_spill] sm:$0xff] }
 0x3d3   :  { %1908 = vmatprep.subr.mxu0 %v9162_v62  ;;  %1979 = vmatprep.subr.mxu1 %v9163_v33  ;;  %v9205_v62 = vld [vmem:[#allocation116_spill] sm:$0xff]  ;;  %v9206_v33 = vld [vmem:[#allocation117_spill] sm:$0xff] }
 0x3d4   :  { %1909 = vmatpush1.msra.mxu0 %v9164_v36  ;;  %1980 = vmatpush1.msra.mxu1 %v9165_v25  ;;  %v9207_v36 = vld [vmem:[#allocation118_spill] sm:$0xff]  ;;  %v9208_v25 = vld [vmem:[#allocation119_spill] sm:$0xff] }
 0x3d5   :  { %1910 = vmatprep.subr.mxu0 %v9166_v31  ;;  %1981 = vmatprep.subr.mxu1 %v9167_v35  ;;  %v9209_v31 = vld [vmem:[#allocation120_spill] sm:$0xff]  ;;  %v9210_v35 = vld [vmem:[#allocation121_spill] sm:$0xff] }
 0x3d6   :  { %1911 = vmatpush1.msra.mxu0 %v9168_v30  ;;  %1982 = vmatpush1.msra.mxu1 %v9169_v37  ;;  %v9211_v30 = vld [vmem:[#allocation122_spill] sm:$0xff]  ;;  %v9212_v37 = vld [vmem:[#allocation123_spill] sm:$0xff] }
 0x3d7   :  { %1912 = vmatprep.subr.mxu0 %v9170_v38  ;;  %1983 = vmatprep.subr.mxu1 %v9171_v17  ;;  %v9213_v38 = vld [vmem:[#allocation124_spill] sm:$0xff]  ;;  %v9214_v17 = vld [vmem:[#allocation125_spill] sm:$0xff] }
 0x3d8   :  { %1913 = vmatpush1.msra.mxu0 %v9172_v29  ;;  %1984 = vmatpush1.msra.mxu1 %v9173_v13  ;;  %v9215_v29 = vld [vmem:[#allocation126_spill] sm:$0xff]  ;;  %v9216_v13 = vld [vmem:[#allocation127_spill] sm:$0xff] }
 0x3d9   :  { %1914 = vmatprep.subr.mxu0 %v9174_v14  ;;  %1985 = vmatprep.subr.mxu1 %v9175_v44  ;;  %v9217_v14 = vld [vmem:[#allocation128_spill] sm:$0xff]  ;;  %v9218_v44 = vld [vmem:[#allocation129_spill] sm:$0xff] }
 0x3da   :  { %1915 = vmatpush1.msra.mxu0 %v9176_v15  ;;  %1986 = vmatpush1.msra.mxu1 %v9177_v16  ;;  %v9219_v15 = vld [vmem:[#allocation130_spill] sm:$0xff]  ;;  %v9220_v16 = vld [vmem:[#allocation131_spill] sm:$0xff] }
 0x3db   :  { %1916 = vmatprep.subr.mxu0 %v9178_v20  ;;  %1987 = vmatprep.subr.mxu1 %v9179_v21  ;;  %v9221_v20 = vld [vmem:[#allocation132_spill] sm:$0xff]  ;;  %v9222_v21 = vld [vmem:[#allocation133_spill] sm:$0xff] }
 0x3dc   :  { %1917 = vmatpush2.msra.mxu0 %v9180_v22  ;;  %1988 = vmatpush2.msra.mxu1 %v9181_v23  ;;  %v9223_v22 = vld [vmem:[#allocation134_spill] sm:$0xff]  ;;  %v9224_v23 = vld [vmem:[#allocation135_spill] sm:$0xff] }
 0x3dd   :  { %1918 = vmatprep.subr.mxu0 %v9182_v24  ;;  %1989 = vmatprep.subr.mxu1 %v9183_v28  ;;  %v9225_v24 = vld [vmem:[#allocation136_spill] sm:$0xff]  ;;  %v9226_v28 = vld [vmem:[#allocation137_spill] sm:$0xff] }
 0x3de   :  { %1919 = vmatpush2.msra.mxu0 %v9184_v32  ;;  %1990 = vmatpush2.msra.mxu1 %v9185_v40  ;;  %v9227_v32 = vld [vmem:[#allocation138_spill] sm:$0xff]  ;;  %v9228_v40 = vld [vmem:[#allocation139_spill] sm:$0xff] }
 0x3df   :  { %1920 = vmatprep.subr.mxu0 %v9186_v41  ;;  %1991 = vmatprep.subr.mxu1 %v9187_v46  ;;  %v9229_v41 = vld [vmem:[#allocation140_spill] sm:$0xff]  ;;  %v9230_v46 = vld [vmem:[#allocation141_spill] sm:$0xff] }
 0x3e0   :  { %1921 = vmatpush2.msra.mxu0 %v9188_v47  ;;  %1992 = vmatpush2.msra.mxu1 %v9189_v49  ;;  %v9231_v47 = vld [vmem:[#allocation142_spill] sm:$0xff]  ;;  %v9232_v49 = vld [vmem:[#allocation143_spill] sm:$0xff] }
 0x3e1   :  { %1922 = vmatprep.subr.mxu0 %v9190_v51  ;;  %1993 = vmatprep.subr.mxu1 %v9191_v52  ;;  %v9233_v51 = vld [vmem:[#allocation144_spill] sm:$0xff]  ;;  %v9234_v52 = vld [vmem:[#allocation145_spill] sm:$0xff] }
 0x3e2   :  { %1923 = vmatpush2.msra.mxu0 %v9192_v54  ;;  %1994 = vmatpush2.msra.mxu1 %v9193_v55  ;;  %v9235_v54 = vld [vmem:[#allocation146_spill] sm:$0xff]  ;;  %v9236_v55 = vld [vmem:[#allocation147_spill] sm:$0xff] }
 0x3e3   :  { %1924 = vmatprep.subr.mxu0 %v9194_v56  ;;  %1995 = vmatprep.subr.mxu1 %v9195_v57  ;;  %v9237_v56 = vld [vmem:[#allocation148_spill] sm:$0xff]  ;;  %v9238_v57 = vld [vmem:[#allocation149_spill] sm:$0xff] }
 0x3e4   :  { %1925 = vmatpush2.msra.mxu0 %v9196_v11  ;;  %1996 = vmatpush2.msra.mxu1 %v9197_v12  ;;  %v9239_v11 = vld [vmem:[#allocation150_spill] sm:$0xff]  ;;  %v9240_v12 = vld [vmem:[#allocation152_spill] sm:$0xff] }
 0x3e5   :  { %1926 = vmatprep.subr.mxu0 %v9198_v8  ;;  %1997 = vmatprep.subr.mxu1 %v9199_v34  ;;  %v9241_v8 = vld [vmem:[#allocation151_spill] sm:$0xff] }
 0x3e6   :  { %1927 = vmatpush2.msra.mxu0 %v9200_v27  ;;  %1998 = vmatpush2.msra.mxu1 %v9201_v26  ;;  %v6500_v34 = vld [vmem:[#allocation9 + $0x1e8] sm:$0xff]  ;;  %v6503_v27 = vld [vmem:[#allocation9 + $0x1f8] sm:$0xff] }
 0x3e7   :  { %1928 = vmatprep.subr.mxu0 %v9202_v0  ;;  %1999 = vmatprep.subr.mxu1 %v9203_v53  ;;  %v9242_v0 = vld [vmem:[#allocation19_spill] sm:$0xff] }
 0x3e8   :  { %1929 = vmatpush2.msra.mxu0 %v9204_v39  ;;  %2000 = vmatpush2.msra.mxu1 %v9205_v62 }
 0x3e9   :  { %1930 = vmatprep.subr.mxu0 %v9206_v33  ;;  %2001 = vmatprep.subr.mxu1 %v9207_v36  ;;  %v9243_v33 = vld [vmem:[#allocation20_spill] sm:$0xff] }
 0x3ea   :  { %1931 = vmatpush2.msra.mxu0 %v9208_v25  ;;  %2002 = vmatpush2.msra.mxu1 %v9209_v31 }
 0x3eb   :  { %1932 = vmatprep.subr.mxu0 %v9210_v35  ;;  %2003 = vmatprep.subr.mxu1 %v9211_v30  ;;  %v9244_v35 = vld [vmem:[#allocation21_spill] sm:$0xff] }
 0x3ec   :  { %1933 = vmatpush2.msra.mxu0 %v9212_v37  ;;  %2004 = vmatpush2.msra.mxu1 %v9213_v38 }
 0x3ed   :  { %1934 = vmatprep.subr.mxu0 %v9214_v17  ;;  %2005 = vmatprep.subr.mxu1 %v9215_v29  ;;  %v9245_v29 = vld [vmem:[#allocation22_spill] sm:$0xff] }
 0x3ee   :  { %1935 = vmatpush2.msra.mxu0 %v9216_v13  ;;  %2006 = vmatpush2.msra.mxu1 %v9217_v14 }
 0x3ef   :  { %1936 = vmatprep.subr.mxu0 %v9218_v44  ;;  %2007 = vmatprep.subr.mxu1 %v9219_v15 }
 0x3f0   :  { %1937 = vmatpush2.msra.mxu0 %v9220_v16  ;;  %2008 = vmatpush2.msra.mxu1 %v9221_v20 }
 0x3f1   :  { %1938 = vmatprep.subr.mxu0 %v9222_v21  ;;  %2009 = vmatprep.subr.mxu1 %v9223_v22  ;;  %v9246_v22 = vld [vmem:[#allocation158_spill] sm:$0xff] }
 0x3f2   :  { %1939 = vmatpush2.msra.mxu0 %v9224_v23  ;;  %2010 = vmatpush2.msra.mxu1 %v9225_v24 }
 0x3f3   :  { %1940 = vmatprep.subr.mxu0 %v9226_v28  ;;  %2011 = vmatprep.subr.mxu1 %v9227_v32 }
 0x3f4   :  { %1941 = vmatpush2.msra.mxu0 %v9228_v40  ;;  %2012 = vmatpush2.msra.mxu1 %v9229_v41  ;;  %v9247_v41 = vld [vmem:[#allocation160_spill] sm:$0xff] }
 0x3f5   :  { %1942 = vmatprep.subr.mxu0 %v9230_v46  ;;  %2013 = vmatprep.subr.mxu1 %v9231_v47 }
 0x3f6   :  { %1943 = vmatpush2.msra.mxu0 %v9232_v49  ;;  %2014 = vmatpush2.msra.mxu1 %v9233_v51 }
 0x3f7   :  { %1944 = vmatprep.subr.mxu0 %v9234_v52  ;;  %2015 = vmatprep.subr.mxu1 %v9235_v54 }
 0x3f8   :  { %1945 = vmatpush2.msra.mxu0 %v9236_v55  ;;  %2016 = vmatpush2.msra.mxu1 %v9237_v56  ;;  %v9248_v56 = vld [vmem:[#allocation159_spill] sm:$0xff] }
 0x3f9   :  { %1946 = vmatprep.subr.mxu0 %v9238_v57  ;;  %2017 = vmatprep.subr.mxu1 %v9239_v11 }
 0x3fa   :  { %1947 = vmatpush2.msra.mxu0 %v9240_v12  ;;  %2018 = vmatpush2.msra.mxu1 %v9241_v8  ;;  %v9249_v8 = vld [vmem:[#allocation161_spill] sm:$0xff] }
 0x3fb   :  { %2061 = vmatprep.subr.mxu0 %v6500_v34  ;;  %2132 = vmatprep.subr.mxu1 %v6503_v27 }
 0x459   :  { %v1598_v26 = vpop.f32.mrf.mxu0  ;;  %v1669_v31 = vpop.f32.mrf.mxu1 }
 0x45a   :  { %v1599_v53 = vadd.f32 %v1598_v26, %v9242_v0  ;;  %v1670_v30 = vadd.f32 %v1669_v31, %v9244_v35 }
 0x45b   :  { %v1600_v39 = vpop.f32.mrf.mxu0  ;;  %v1671_v37 = vpop.f32.mrf.mxu1 }
 0x45c   :  { %v3615_v62 = vmul.f32 -1.442695, %v1599_v53  ;;  %v1601_v36 = vadd.f32 %v1600_v39, %v9243_v33  ;;  %v3617_v38 = vmul.f32 -1.442695, %v1670_v30  ;;  %v1672_v13 = vadd.f32 %v1671_v37, %v9245_v29 }
 0x45e   :  { %3792 = vpow2.f32 %v3615_v62  ;;  %v3616_v25 = vmul.f32 -1.442695, %v1601_v36 }
 0x460   :  { %3794 = vpow2.f32 %v3616_v25 }
 0x461   :  { %3796 = vpow2.f32 %v3617_v38 }
 0x46b   :  { %v3793_v17 = vpop.eup %3792 }
 0x46c   :  { %v1684_v14 = vadd.f32 1.0, %v3793_v17 }
 0x46d   :  { %v3795_v44 = vpop.eup %3794 }
 0x46e   :  { %3798 = vrcp.f32 %v1684_v14  ;;  %v1685_v15 = vadd.f32 1.0, %v3795_v44  ;;  %v3797_v16 = vpop.eup %3796 }
 0x46f   :  { %3800 = vtanh.f32 %v1672_v13  ;;  %v1686_v47 = vadd.f32 1.0, %v3797_v16 }
 0x470   :  { %3802 = vrcp.f32 %v1685_v15 }
 0x47a   :  { %v1775_v20 = vpop.f32.mrf.mxu0  ;;  %v1846_v55 = vpop.f32.mrf.mxu1 }
 0x47b   :  { %v3799_v21 = vpop.eup %3798  ;;  %v1851_v23 = vadd.f32 %v1775_v20, %v9246_v22  ;;  %v1853_v57 = vadd.f32 %v1846_v55, %v9248_v56  ;;  %v6601_v22 = vld [vmem:[#allocation9 + $0xd0] sm:$0xff]  ;;  %v6640_v56 = vld [vmem:[#allocation9 + $0x48] sm:$0xff] }
 0x47c   :  { %v3801_v24 = vpop.eup %3800  ;;  %v1777_v28 = vpop.f32.mrf.mxu0  ;;  %v6637_v55 = vld [vmem:[#allocation9 + $0x70] sm:$0xff] }
 0x47d   :  { %v3803_v32 = vpop.eup %3802  ;;  %v3618_v40 = vmul.f32 -1.442695, %v1851_v23  ;;  %v1852_v46 = vadd.f32 %v1777_v28, %v9247_v41  ;;  %v1695_v51 = vmul.f32 %v3801_v24, %v3799_v21  ;;  %v1848_v11 = vpop.f32.mrf.mxu1  ;;  %v3620_v12 = vmul.f32 -1.442695, %v1853_v57  ;;  %v6604_v23 = vld [vmem:[#allocation9 + $0xa8] sm:$0xff]  ;;  %v6607_v24 = vld [vmem:[#allocation9 + $0xb8] sm:$0xff] }
 0x47e   :  { %v1694_v49 = vmul.f32 %v3803_v32, %v6257_v61  ;;  %v1854_v26 = vadd.f32 %v1848_v11, %v9249_v8  ;;  %v6610_v28 = vld [vmem:[#allocation9 + $0xa0] sm:$0xff]  ;;  %v6613_v32 = vld [vmem:[#allocation9 + $0xb0] sm:$0xff]  ;;  %v6619_v41 = vld [vmem:[#allocation9 + $0x98] sm:$0xff] }
 0x47f   :  { %3804 = vpow2.f32 %v3618_v40  ;;  %v3619_v52 = vmul.f32 -1.442695, %v1852_v46  ;;  %v6616_v40 = vld [vmem:[#allocation9 + $0x88] sm:$0xff]  ;;  %v6622_v46 = vld [vmem:[#allocation9 + $0x80] sm:$0xff]  ;;  %v6643_v57 = vld [vmem:[#allocation9 + $0x58] sm:$0xff] }
 0x480   :  { %v6513_v54 = vadd.f32 %v1695_v51, %v1694_v49  ;;  %v6628_v49 = vld [vmem:[#allocation9 + $0x68] sm:$0xff]  ;;  %v6631_v51 = vld [vmem:[#allocation9 + $0x78] sm:$0xff]  ;;  %v6646_v11 = vld [vmem:[#allocation9 + $0x40] sm:$0xff] }
 0x481   :  { %3806 = vpow2.f32 %v3619_v52  ;;  %v6634_v52 = vld [vmem:[#allocation9 + $0x60] sm:$0xff]  ;;  %v6652_v8 = vld [vmem:[#allocation9 + $0x28] sm:$0xff] }
 0x482   :  { %3808 = vrcp.f32 %v1686_v47  ;;  %v6625_v47 = vld [vmem:[#allocation9 + $0x90] sm:$0xff] }
 0x483   :  { %3810 = vtanh.f32 %v6513_v54 }
 0x484   :  { %3812 = vpow2.f32 %v3620_v12  ;;  %v6649_v12 = vld [vmem:[#allocation9 + $0x50] sm:$0xff] }
 0x485   :  { %3814 = vtanh.f32 %v1854_v26  ;;  %v6655_v26 = vld [vmem:[#allocation9 + $0x38] sm:$0xff] }
 0x48c   :  { %v3805_v53 = vpop.eup %3804 }
 0x48d   :  { %v1865_v39 = vadd.f32 1.0, %v3805_v53  ;;  %v6658_v53 = vld [vmem:[#allocation9 + $0x20] sm:$0xff] }
 0x48e   :  { %v3807_v61 = vpop.eup %3806 }
 0x48f   :  { %v3809_v62 = vpop.eup %3808  ;;  %3816 = vrcp.f32 %v1865_v39  ;;  %v1866_v36 = vadd.f32 1.0, %v3807_v61  ;;  %v6661_v39 = vld [vmem:[#allocation9 + $0x30] sm:$0xff]  ;;  %v6664_v61 = vld [vmem:[#allocation9 + $0x8] sm:$0xff] }
 0x490   :  { %v3811_v25 = vpop.eup %3810 }
 0x491   :  { %3818 = vrcp.f32 %v1866_v36  ;;  %v1698_v31 = vmul.f32 %v3811_v25, %v3809_v62  ;;  %v3813_v30 = vpop.eup %3812  ;;  %v6667_v62 = vld [vmem:[#allocation9 + $0x18] sm:$0xff]  ;;  %v6670_v36 = vld [vmem:[#allocation9] sm:$0xff]  ;;  %v6674_v25 = vld [vmem:[#allocation9 + $0x10] sm:$0xff] }
 0x492   :  { %v3815_v37 = vpop.eup %3814  ;;  %v1867_v14 = vadd.f32 1.0, %v3813_v30  ;;  %9250 = vst [vmem:[#allocation153_spill] sm:$0xff] %v6670_v36  ;;  %9251 = vst [vmem:[#allocation154_spill] sm:$0xff] %v6674_v25  ;;  %v6683_v30 = vld [vmem:[#allocation11 + $0x1f8] sm:$0xff] }
 0x493   :  { %1948 = vmatprep.mubr.f32.mxu0 %v1698_v31  ;;  %2019 = vmatprep.mubr.f32.mxu1 %v1698_v31  ;;  %v6680_v31 = vld [vmem:[#allocation11 + $0x1e8] sm:$0xff]  ;;  %9253 = vst [vmem:[#allocation155_spill] sm:$0xff] %v6683_v30 }
 0x494   :  { %3820 = vrcp.f32 %v1867_v14  ;;  %9252 = vst [vmem:[#allocation156_spill] sm:$0xff] %v6680_v31  ;;  %v6698_v14 = vld [vmem:[#allocation11 + $0x1c0] sm:$0xff] }
 0x495   :  { %9258 = vst [vmem:[#allocation26_spill] sm:$0xff] %v6698_v14 }
 0x49c   :  { %v3817_v38 = vpop.eup %3816 }
 0x49d   :  { %v1876_v17 = vmul.f32 %v3817_v38, %v3815_v37  ;;  %v6686_v37 = vld [vmem:[#allocation11 + $0x1e0] sm:$0xff]  ;;  %v6689_v38 = vld [vmem:[#allocation11 + $0x1f0] sm:$0xff] }
 0x49e   :  { %v3819_v13 = vpop.eup %3818  ;;  %9254 = vst [vmem:[#allocation157_spill] sm:$0xff] %v6686_v37  ;;  %9255 = vst [vmem:[#allocation23_spill] sm:$0xff] %v6689_v38 }
 0x49f   :  { %v1875_v44 = vmul.f32 %v3819_v13, %v6263_v45  ;;  %v6544_v45 = vld [vmem:[#allocation9 + $0x148] sm:$0xff]  ;;  %v6695_v13 = vld [vmem:[#allocation11 + $0x1d8] sm:$0xff] }
 0x4a0   :  { %9257 = vst [vmem:[#allocation25_spill] sm:$0xff] %v6695_v13 }
 0x4a1   :  { %v6519_v15 = vadd.f32 %v1876_v17, %v1875_v44  ;;  %v3821_v16 = vpop.eup %3820  ;;  %v6692_v17 = vld [vmem:[#allocation11 + $0x1c8] sm:$0xff]  ;;  %v6701_v44 = vld [vmem:[#allocation11 + $0x1d0] sm:$0xff] }
 0x4a2   :  { %9256 = vst [vmem:[#allocation24_spill] sm:$0xff] %v6692_v17  ;;  %9259 = vst [vmem:[#allocation27_spill] sm:$0xff] %v6701_v44 }
 0x4a3   :  { %3822 = vtanh.f32 %v6519_v15 }
 0x4b0   :  { %v3823_v20 = vpop.eup %3822 }
 0x4b1   :  { %v6522_v21 = vmul.f32 %v3823_v20, %v3821_v16  ;;  %v6704_v16 = vld [vmem:[#allocation11 + $0x1a8] sm:$0xff]  ;;  %v6707_v20 = vld [vmem:[#allocation11 + $0x1b8] sm:$0xff] }
 0x4b2   :  { %9260 = vst [vmem:[#allocation28_spill] sm:$0xff] %v6704_v16  ;;  %9261 = vst [vmem:[#allocation29_spill] sm:$0xff] %v6707_v20 }
 0x4b3   :  { %1949 = vmatmul.mubr.f32.vlgmr.msra.gmra.mxu0 %v6522_v21  ;;  %2020 = vmatmul.mubr.f32.vlgmr.msra.gmra.mxu1 %v6522_v21 }
 0x4b4   :  { %2062 = vmatpush1.msra.mxu0 %v6270_v3  ;;  %2133 = vmatpush1.msra.mxu1 %v6273_v5  ;;  %v6547_v3 = vld [vmem:[#allocation9 + $0x158] sm:$0xff]  ;;  %v6550_v5 = vld [vmem:[#allocation9 + $0x140] sm:$0xff] }
 0x4b5   :  { %2063 = vmatprep.subr.mxu0 %v6276_v9  ;;  %2134 = vmatprep.subr.mxu1 %v6279_v48  ;;  %v6553_v9 = vld [vmem:[#allocation9 + $0x150] sm:$0xff]  ;;  %v6556_v48 = vld [vmem:[#allocation9 + $0x128] sm:$0xff] }
 0x4b6   :  { %2064 = vmatpush1.msra.mxu0 %v6282_v10  ;;  %2135 = vmatpush1.msra.mxu1 %v6285_v18  ;;  %v6559_v10 = vld [vmem:[#allocation9 + $0x138] sm:$0xff]  ;;  %v6562_v18 = vld [vmem:[#allocation9 + $0x120] sm:$0xff] }
 0x4b7   :  { %2065 = vmatprep.subr.mxu0 %v6288_v50  ;;  %2136 = vmatprep.subr.mxu1 %v6291_v42  ;;  %v6565_v50 = vld [vmem:[#allocation9 + $0x130] sm:$0xff]  ;;  %v6568_v42 = vld [vmem:[#allocation9 + $0x108] sm:$0xff] }
 0x4b8   :  { %2066 = vmatpush1.msra.mxu0 %v6294_v59  ;;  %2137 = vmatpush1.msra.mxu1 %v6297_v58  ;;  %v6571_v59 = vld [vmem:[#allocation9 + $0x118] sm:$0xff]  ;;  %v6574_v58 = vld [vmem:[#allocation9 + $0x100] sm:$0xff] }
 0x4b9   :  { %2067 = vmatprep.subr.mxu0 %v6300_v4  ;;  %2138 = vmatprep.subr.mxu1 %v6303_v2  ;;  %v6577_v4 = vld [vmem:[#allocation9 + $0x110] sm:$0xff]  ;;  %v6580_v2 = vld [vmem:[#allocation9 + $0xe8] sm:$0xff] }
 0x4ba   :  { %2068 = vmatpush1.msra.mxu0 %v6306_v6  ;;  %2139 = vmatpush1.msra.mxu1 %v6309_v63  ;;  %v6583_v6 = vld [vmem:[#allocation9 + $0xf8] sm:$0xff]  ;;  %v6586_v63 = vld [vmem:[#allocation9 + $0xe0] sm:$0xff] }
 0x4bb   :  { %2069 = vmatprep.subr.mxu0 %v6312_v7  ;;  %2140 = vmatprep.subr.mxu1 %v6315_v60  ;;  %v6589_v7 = vld [vmem:[#allocation9 + $0xf0] sm:$0xff]  ;;  %v6592_v60 = vld [vmem:[#allocation9 + $0xc8] sm:$0xff] }
 0x4bc   :  { %2070 = vmatpush1.msra.mxu0 %v6318_v43  ;;  %2141 = vmatpush1.msra.mxu1 %v6321_v1  ;;  %v6595_v43 = vld [vmem:[#allocation9 + $0xd8] sm:$0xff]  ;;  %v6598_v1 = vld [vmem:[#allocation9 + $0xc0] sm:$0xff] }
 0x4bd   :  { %2071 = vmatprep.subr.mxu0 %v6544_v45  ;;  %2142 = vmatprep.subr.mxu1 %v6547_v3 }
 0x4be   :  { %2072 = vmatpush1.msra.mxu0 %v6550_v5  ;;  %2143 = vmatpush1.msra.mxu1 %v6553_v9 }
 0x4bf   :  { %2073 = vmatprep.subr.mxu0 %v6556_v48  ;;  %2144 = vmatprep.subr.mxu1 %v6559_v10 }
 0x4c0   :  { %2074 = vmatpush1.msra.mxu0 %v6562_v18  ;;  %2145 = vmatpush1.msra.mxu1 %v6565_v50 }
 0x4c1   :  { %2075 = vmatprep.subr.mxu0 %v6568_v42  ;;  %2146 = vmatprep.subr.mxu1 %v6571_v59 }
 0x4c2   :  { %2076 = vmatpush1.msra.mxu0 %v6574_v58  ;;  %2147 = vmatpush1.msra.mxu1 %v6577_v4 }
 0x4c3   :  { %2077 = vmatprep.subr.mxu0 %v6580_v2  ;;  %2148 = vmatprep.subr.mxu1 %v6583_v6 }
 0x4c4   :  { %2078 = vmatpush1.msra.mxu0 %v6586_v63  ;;  %2149 = vmatpush1.msra.mxu1 %v6589_v7 }
 0x4c5   :  { %2079 = vmatprep.subr.mxu0 %v6592_v60  ;;  %2150 = vmatprep.subr.mxu1 %v6595_v43 }
 0x4c6   :  { %2080 = vmatpush1.msra.mxu0 %v6598_v1  ;;  %2151 = vmatpush1.msra.mxu1 %v6601_v22 }
 0x4c7   :  { %2081 = vmatprep.subr.mxu0 %v6604_v23  ;;  %2152 = vmatprep.subr.mxu1 %v6607_v24 }
 0x4c8   :  { %2082 = vmatpush1.msra.mxu0 %v6610_v28  ;;  %2153 = vmatpush1.msra.mxu1 %v6613_v32 }
 0x4c9   :  { %2083 = vmatprep.subr.mxu0 %v6616_v40  ;;  %2154 = vmatprep.subr.mxu1 %v6619_v41 }
 0x4ca   :  { %2084 = vmatpush1.msra.mxu0 %v6622_v46  ;;  %2155 = vmatpush1.msra.mxu1 %v6625_v47 }
 0x4cb   :  { %2085 = vmatprep.subr.mxu0 %v6628_v49  ;;  %2156 = vmatprep.subr.mxu1 %v6631_v51 }
 0x4cc   :  { %2086 = vmatpush1.msra.mxu0 %v6634_v52  ;;  %2157 = vmatpush1.msra.mxu1 %v6637_v55 }
 0x4cd   :  { %2087 = vmatprep.subr.mxu0 %v6640_v56  ;;  %2158 = vmatprep.subr.mxu1 %v6643_v57 }
 0x4ce   :  { %2088 = vmatpush1.msra.mxu0 %v6646_v11  ;;  %2159 = vmatpush1.msra.mxu1 %v6649_v12 }
 0x4cf   :  { %2089 = vmatprep.subr.mxu0 %v6652_v8  ;;  %2160 = vmatprep.subr.mxu1 %v6655_v26 }
 0x4d0   :  { %2090 = vmatpush1.msra.mxu0 %v6658_v53  ;;  %2161 = vmatpush1.msra.mxu1 %v6661_v39 }
 0x4d1   :  { %2091 = vmatprep.subr.mxu0 %v6664_v61  ;;  %2162 = vmatprep.subr.mxu1 %v6667_v62 }
 0x4d2   :  { %2092 = vmatpush1.msra.mxu0 %v6670_v36  ;;  %2125 = vmatprep.mubr.f32.mxu0 %v9112_v19 }
 0x4d3   :  { %2163 = vmatpush1.msra.mxu1 %v6674_v25  ;;  %2196 = vmatprep.mubr.f32.mxu1 %v9112_v19 }
 0x4d4   :  { %2126 = vmatmul.mubr.f32.vlgmr.msra.gmra.mxu0 %v6522_v21  ;;  %2197 = vmatmul.mubr.f32.vlgmr.msra.gmra.mxu1 %v6522_v21  ;;  %v6710_v21 = vld [vmem:[#allocation11 + $0x1a0] sm:$0xff] }
 0x4d5   :  { %2236 = vmatprep.subr.mxu0 %v6680_v31  ;;  %2307 = vmatprep.subr.mxu1 %v6683_v30  ;;  %9262 = vst [vmem:[#allocation30_spill] sm:$0xff] %v6710_v21 }
 0x4d6   :  { %2237 = vmatpush1.msra.mxu0 %v6686_v37  ;;  %2308 = vmatpush1.msra.mxu1 %v6689_v38 }
 0x4d7   :  { %2238 = vmatprep.subr.mxu0 %v6692_v17  ;;  %2309 = vmatprep.subr.mxu1 %v6695_v13  ;;  %v6713_v13 = vld [vmem:[#allocation11 + $0x1b0] sm:$0xff] }
 0x4d8   :  { %2239 = vmatpush1.msra.mxu0 %v6698_v14  ;;  %2310 = vmatpush1.msra.mxu1 %v6701_v44  ;;  %9263 = vst [vmem:[#allocation31_spill] sm:$0xff] %v6713_v13  ;;  %v6716_v14 = vld [vmem:[#allocation11 + $0x188] sm:$0xff]  ;;  %v6719_v44 = vld [vmem:[#allocation11 + $0x198] sm:$0xff] }
 0x4d9   :  { %2240 = vmatprep.subr.mxu0 %v6704_v16  ;;  %2311 = vmatprep.subr.mxu1 %v6707_v20  ;;  %9264 = vst [vmem:[#allocation32_spill] sm:$0xff] %v6716_v14  ;;  %9265 = vst [vmem:[#allocation33_spill] sm:$0xff] %v6719_v44  ;;  %v6722_v16 = vld [vmem:[#allocation11 + $0x180] sm:$0xff]  ;;  %v6725_v20 = vld [vmem:[#allocation11 + $0x190] sm:$0xff] }
 0x4da   :  { %2241 = vmatpush1.msra.mxu0 %v6710_v21  ;;  %2312 = vmatpush1.msra.mxu1 %v6713_v13  ;;  %9266 = vst [vmem:[#allocation34_spill] sm:$0xff] %v6722_v16  ;;  %9267 = vst [vmem:[#allocation35_spill] sm:$0xff] %v6725_v20  ;;  %v6728_v21 = vld [vmem:[#allocation11 + $0x168] sm:$0xff]  ;;  %v6731_v13 = vld [vmem:[#allocation11 + $0x178] sm:$0xff] }
 0x4db   :  { %2242 = vmatprep.subr.mxu0 %v6716_v14  ;;  %2313 = vmatprep.subr.mxu1 %v6719_v44  ;;  %9268 = vst [vmem:[#allocation36_spill] sm:$0xff] %v6728_v21  ;;  %9269 = vst [vmem:[#allocation37_spill] sm:$0xff] %v6731_v13  ;;  %v6734_v14 = vld [vmem:[#allocation11 + $0x160] sm:$0xff]  ;;  %v6737_v44 = vld [vmem:[#allocation11 + $0x170] sm:$0xff] }
 0x4dc   :  { %2243 = vmatpush1.msra.mxu0 %v6722_v16  ;;  %2314 = vmatpush1.msra.mxu1 %v6725_v20  ;;  %9270 = vst [vmem:[#allocation38_spill] sm:$0xff] %v6734_v14  ;;  %9271 = vst [vmem:[#allocation39_spill] sm:$0xff] %v6737_v44  ;;  %v6740_v16 = vld [vmem:[#allocation11 + $0x148] sm:$0xff]  ;;  %v6743_v20 = vld [vmem:[#allocation11 + $0x158] sm:$0xff] }
 0x4dd   :  { %2244 = vmatprep.subr.mxu0 %v6728_v21  ;;  %2315 = vmatprep.subr.mxu1 %v6731_v13  ;;  %9272 = vst [vmem:[#allocation40_spill] sm:$0xff] %v6740_v16  ;;  %9273 = vst [vmem:[#allocation41_spill] sm:$0xff] %v6743_v20  ;;  %v6746_v21 = vld [vmem:[#allocation11 + $0x140] sm:$0xff]  ;;  %v6749_v13 = vld [vmem:[#allocation11 + $0x150] sm:$0xff] }
 0x4de   :  { %2245 = vmatpush1.msra.mxu0 %v6734_v14  ;;  %2316 = vmatpush1.msra.mxu1 %v6737_v44  ;;  %9274 = vst [vmem:[#allocation42_spill] sm:$0xff] %v6746_v21  ;;  %9275 = vst [vmem:[#allocation43_spill] sm:$0xff] %v6749_v13  ;;  %v6752_v14 = vld [vmem:[#allocation11 + $0x128] sm:$0xff]  ;;  %v6755_v44 = vld [vmem:[#allocation11 + $0x138] sm:$0xff] }
 0x4df   :  { %2246 = vmatprep.subr.mxu0 %v6740_v16  ;;  %2317 = vmatprep.subr.mxu1 %v6743_v20  ;;  %9276 = vst [vmem:[#allocation44_spill] sm:$0xff] %v6752_v14  ;;  %9277 = vst [vmem:[#allocation45_spill] sm:$0xff] %v6755_v44  ;;  %v6758_v16 = vld [vmem:[#allocation11 + $0x120] sm:$0xff]  ;;  %v6761_v20 = vld [vmem:[#allocation11 + $0x130] sm:$0xff] }
 0x4e0   :  { %2247 = vmatpush1.msra.mxu0 %v6746_v21  ;;  %2318 = vmatpush1.msra.mxu1 %v6749_v13  ;;  %9278 = vst [vmem:[#allocation46_spill] sm:$0xff] %v6758_v16  ;;  %9279 = vst [vmem:[#allocation47_spill] sm:$0xff] %v6761_v20  ;;  %v6764_v21 = vld [vmem:[#allocation11 + $0x108] sm:$0xff]  ;;  %v6767_v13 = vld [vmem:[#allocation11 + $0x118] sm:$0xff] }
 0x4e1   :  { %2248 = vmatprep.subr.mxu0 %v6752_v14  ;;  %2319 = vmatprep.subr.mxu1 %v6755_v44  ;;  %9280 = vst [vmem:[#allocation48_spill] sm:$0xff] %v6764_v21  ;;  %9281 = vst [vmem:[#allocation49_spill] sm:$0xff] %v6767_v13  ;;  %v6770_v14 = vld [vmem:[#allocation11 + $0x100] sm:$0xff]  ;;  %v6773_v44 = vld [vmem:[#allocation11 + $0x110] sm:$0xff] }
 0x4e2   :  { %2249 = vmatpush1.msra.mxu0 %v6758_v16  ;;  %2320 = vmatpush1.msra.mxu1 %v6761_v20  ;;  %9282 = vst [vmem:[#allocation50_spill] sm:$0xff] %v6770_v14  ;;  %9283 = vst [vmem:[#allocation51_spill] sm:$0xff] %v6773_v44  ;;  %v6776_v16 = vld [vmem:[#allocation11 + $0xe8] sm:$0xff]  ;;  %v6779_v20 = vld [vmem:[#allocation11 + $0xf8] sm:$0xff] }
 0x4e3   :  { %2250 = vmatprep.subr.mxu0 %v6764_v21  ;;  %2321 = vmatprep.subr.mxu1 %v6767_v13  ;;  %9284 = vst [vmem:[#allocation52_spill] sm:$0xff] %v6776_v16  ;;  %9285 = vst [vmem:[#allocation53_spill] sm:$0xff] %v6779_v20  ;;  %v6782_v21 = vld [vmem:[#allocation11 + $0xe0] sm:$0xff]  ;;  %v6785_v13 = vld [vmem:[#allocation11 + $0xf0] sm:$0xff] }
 0x4e4   :  { %2251 = vmatpush1.msra.mxu0 %v6770_v14  ;;  %2322 = vmatpush1.msra.mxu1 %v6773_v44  ;;  %9286 = vst [vmem:[#allocation54_spill] sm:$0xff] %v6782_v21  ;;  %9287 = vst [vmem:[#allocation55_spill] sm:$0xff] %v6785_v13  ;;  %v6788_v14 = vld [vmem:[#allocation11 + $0xc8] sm:$0xff]  ;;  %v6791_v44 = vld [vmem:[#allocation11 + $0xd8] sm:$0xff] }
 0x4e5   :  { %2252 = vmatprep.subr.mxu0 %v6776_v16  ;;  %2323 = vmatprep.subr.mxu1 %v6779_v20  ;;  %9288 = vst [vmem:[#allocation56_spill] sm:$0xff] %v6788_v14  ;;  %9289 = vst [vmem:[#allocation57_spill] sm:$0xff] %v6791_v44  ;;  %v6794_v16 = vld [vmem:[#allocation11 + $0xc0] sm:$0xff]  ;;  %v6797_v20 = vld [vmem:[#allocation11 + $0xd0] sm:$0xff] }
 0x4e6   :  { %2253 = vmatpush1.msra.mxu0 %v6782_v21  ;;  %2324 = vmatpush1.msra.mxu1 %v6785_v13  ;;  %9290 = vst [vmem:[#allocation58_spill] sm:$0xff] %v6794_v16  ;;  %9291 = vst [vmem:[#allocation59_spill] sm:$0xff] %v6797_v20  ;;  %v6800_v21 = vld [vmem:[#allocation11 + $0xa8] sm:$0xff]  ;;  %v6803_v13 = vld [vmem:[#allocation11 + $0xb8] sm:$0xff] }
 0x4e7   :  { %2254 = vmatprep.subr.mxu0 %v6788_v14  ;;  %2325 = vmatprep.subr.mxu1 %v6791_v44  ;;  %9292 = vst [vmem:[#allocation60_spill] sm:$0xff] %v6800_v21  ;;  %9293 = vst [vmem:[#allocation61_spill] sm:$0xff] %v6803_v13  ;;  %v6806_v14 = vld [vmem:[#allocation11 + $0xa0] sm:$0xff]  ;;  %v6809_v44 = vld [vmem:[#allocation11 + $0xb0] sm:$0xff] }
 0x4e8   :  { %2255 = vmatpush1.msra.mxu0 %v6794_v16  ;;  %2326 = vmatpush1.msra.mxu1 %v6797_v20  ;;  %9294 = vst [vmem:[#allocation62_spill] sm:$0xff] %v6806_v14  ;;  %9295 = vst [vmem:[#allocation63_spill] sm:$0xff] %v6809_v44  ;;  %v6812_v16 = vld [vmem:[#allocation11 + $0x88] sm:$0xff]  ;;  %v6815_v20 = vld [vmem:[#allocation11 + $0x98] sm:$0xff] }
 0x4e9   :  { %2256 = vmatprep.subr.mxu0 %v6800_v21  ;;  %2327 = vmatprep.subr.mxu1 %v6803_v13  ;;  %9296 = vst [vmem:[#allocation64_spill] sm:$0xff] %v6812_v16  ;;  %9297 = vst [vmem:[#allocation65_spill] sm:$0xff] %v6815_v20  ;;  %v6818_v21 = vld [vmem:[#allocation11 + $0x80] sm:$0xff]  ;;  %v6821_v13 = vld [vmem:[#allocation11 + $0x90] sm:$0xff] }
 0x4ea   :  { %2257 = vmatpush1.msra.mxu0 %v6806_v14  ;;  %2328 = vmatpush1.msra.mxu1 %v6809_v44  ;;  %9298 = vst [vmem:[#allocation66_spill] sm:$0xff] %v6818_v21  ;;  %9299 = vst [vmem:[#allocation67_spill] sm:$0xff] %v6821_v13  ;;  %v6824_v14 = vld [vmem:[#allocation11 + $0x68] sm:$0xff]  ;;  %v6827_v44 = vld [vmem:[#allocation11 + $0x78] sm:$0xff] }
 0x4eb   :  { %2258 = vmatprep.subr.mxu0 %v6812_v16  ;;  %2329 = vmatprep.subr.mxu1 %v6815_v20  ;;  %9300 = vst [vmem:[#allocation68_spill] sm:$0xff] %v6824_v14  ;;  %9301 = vst [vmem:[#allocation69_spill] sm:$0xff] %v6827_v44  ;;  %v6830_v16 = vld [vmem:[#allocation11 + $0x60] sm:$0xff]  ;;  %v6833_v20 = vld [vmem:[#allocation11 + $0x70] sm:$0xff] }
 0x4ec   :  { %2259 = vmatpush1.msra.mxu0 %v6818_v21  ;;  %2330 = vmatpush1.msra.mxu1 %v6821_v13  ;;  %9302 = vst [vmem:[#allocation70_spill] sm:$0xff] %v6830_v16  ;;  %9303 = vst [vmem:[#allocation71_spill] sm:$0xff] %v6833_v20  ;;  %v6836_v21 = vld [vmem:[#allocation11 + $0x48] sm:$0xff]  ;;  %v6839_v13 = vld [vmem:[#allocation11 + $0x58] sm:$0xff] }
 0x4ed   :  { %2260 = vmatprep.subr.mxu0 %v6824_v14  ;;  %2331 = vmatprep.subr.mxu1 %v6827_v44  ;;  %9304 = vst [vmem:[#allocation72_spill] sm:$0xff] %v6836_v21  ;;  %9305 = vst [vmem:[#allocation73_spill] sm:$0xff] %v6839_v13  ;;  %v6842_v14 = vld [vmem:[#allocation11 + $0x40] sm:$0xff]  ;;  %v6845_v44 = vld [vmem:[#allocation11 + $0x50] sm:$0xff] }
 0x4ee   :  { %2261 = vmatpush1.msra.mxu0 %v6830_v16  ;;  %2332 = vmatpush1.msra.mxu1 %v6833_v20  ;;  %9306 = vst [vmem:[#allocation74_spill] sm:$0xff] %v6842_v14  ;;  %9307 = vst [vmem:[#allocation75_spill] sm:$0xff] %v6845_v44  ;;  %v6848_v16 = vld [vmem:[#allocation11 + $0x28] sm:$0xff]  ;;  %v6851_v20 = vld [vmem:[#allocation11 + $0x38] sm:$0xff] }
 0x4ef   :  { %2262 = vmatprep.subr.mxu0 %v6836_v21  ;;  %2333 = vmatprep.subr.mxu1 %v6839_v13  ;;  %9308 = vst [vmem:[#allocation76_spill] sm:$0xff] %v6848_v16  ;;  %9309 = vst [vmem:[#allocation77_spill] sm:$0xff] %v6851_v20  ;;  %v6854_v21 = vld [vmem:[#allocation11 + $0x20] sm:$0xff]  ;;  %v6857_v13 = vld [vmem:[#allocation11 + $0x30] sm:$0xff] }
 0x4f0   :  { %2263 = vmatpush1.msra.mxu0 %v6842_v14  ;;  %2334 = vmatpush1.msra.mxu1 %v6845_v44  ;;  %9310 = vst [vmem:[#allocation78_spill] sm:$0xff] %v6854_v21  ;;  %9311 = vst [vmem:[#allocation79_spill] sm:$0xff] %v6857_v13  ;;  %v6860_v14 = vld [vmem:[#allocation11 + $0x8] sm:$0xff]  ;;  %v6863_v44 = vld [vmem:[#allocation11 + $0x18] sm:$0xff] }
 0x4f1   :  { %2264 = vmatprep.subr.mxu0 %v6848_v16  ;;  %2335 = vmatprep.subr.mxu1 %v6851_v20  ;;  %9312 = vst [vmem:[#allocation80_spill] sm:$0xff] %v6860_v14  ;;  %9313 = vst [vmem:[#allocation81_spill] sm:$0xff] %v6863_v44  ;;  %v6866_v16 = vld [vmem:[#allocation11] sm:$0xff]  ;;  %v6869_v20 = vld [vmem:[#allocation11 + $0x10] sm:$0xff] }
 0x4f2   :  { %2265 = vmatpush1.msra.mxu0 %v6854_v21  ;;  %2336 = vmatpush1.msra.mxu1 %v6857_v13  ;;  %9314 = vst [vmem:[#allocation82_spill] sm:$0xff] %v6866_v16  ;;  %9315 = vst [vmem:[#allocation83_spill] sm:$0xff] %v6869_v20  ;;  %v6872_v21 = vld [vmem:[#allocation11 + $0x3e8] sm:$0xff]  ;;  %v6875_v13 = vld [vmem:[#allocation11 + $0x3f8] sm:$0xff] }
 0x4f3   :  { %2266 = vmatprep.subr.mxu0 %v6860_v14  ;;  %2337 = vmatprep.subr.mxu1 %v6863_v44  ;;  %9316 = vst [vmem:[#allocation84_spill] sm:$0xff] %v6872_v21  ;;  %9317 = vst [vmem:[#allocation85_spill] sm:$0xff] %v6875_v13  ;;  %v6878_v14 = vld [vmem:[#allocation11 + $0x3e0] sm:$0xff]  ;;  %v6881_v44 = vld [vmem:[#allocation11 + $0x3f0] sm:$0xff] }
 0x4f4   :  { %2267 = vmatpush1.msra.mxu0 %v6866_v16  ;;  %2338 = vmatpush1.msra.mxu1 %v6869_v20  ;;  %9318 = vst [vmem:[#allocation86_spill] sm:$0xff] %v6878_v14  ;;  %9319 = vst [vmem:[#allocation87_spill] sm:$0xff] %v6881_v44  ;;  %v6884_v16 = vld [vmem:[#allocation11 + $0x3c8] sm:$0xff]  ;;  %v6887_v20 = vld [vmem:[#allocation11 + $0x3d8] sm:$0xff] }
 0x4f5   :  { %2268 = vmatprep.subr.mxu0 %v6872_v21  ;;  %2339 = vmatprep.subr.mxu1 %v6875_v13  ;;  %9320 = vst [vmem:[#allocation88_spill] sm:$0xff] %v6884_v16  ;;  %9321 = vst [vmem:[#allocation89_spill] sm:$0xff] %v6887_v20  ;;  %v6890_v21 = vld [vmem:[#allocation11 + $0x3c0] sm:$0xff]  ;;  %v6893_v13 = vld [vmem:[#allocation11 + $0x3d0] sm:$0xff] }
 0x4f6   :  { %2269 = vmatpush2.msra.mxu0 %v6878_v14  ;;  %2340 = vmatpush2.msra.mxu1 %v6881_v44  ;;  %9322 = vst [vmem:[#allocation90_spill] sm:$0xff] %v6890_v21  ;;  %9323 = vst [vmem:[#allocation91_spill] sm:$0xff] %v6893_v13  ;;  %v6896_v14 = vld [vmem:[#allocation11 + $0x3a8] sm:$0xff]  ;;  %v6899_v44 = vld [vmem:[#allocation11 + $0x3b8] sm:$0xff] }
 0x4f7   :  { %2270 = vmatprep.subr.mxu0 %v6884_v16  ;;  %2341 = vmatprep.subr.mxu1 %v6887_v20  ;;  %9324 = vst [vmem:[#allocation92_spill] sm:$0xff] %v6896_v14  ;;  %9325 = vst [vmem:[#allocation93_spill] sm:$0xff] %v6899_v44  ;;  %v6902_v16 = vld [vmem:[#allocation11 + $0x3a0] sm:$0xff]  ;;  %v6905_v20 = vld [vmem:[#allocation11 + $0x3b0] sm:$0xff] }
 0x4f8   :  { %2271 = vmatpush2.msra.mxu0 %v6890_v21  ;;  %2342 = vmatpush2.msra.mxu1 %v6893_v13  ;;  %9326 = vst [vmem:[#allocation94_spill] sm:$0xff] %v6902_v16  ;;  %9327 = vst [vmem:[#allocation95_spill] sm:$0xff] %v6905_v20  ;;  %v6908_v21 = vld [vmem:[#allocation11 + $0x388] sm:$0xff]  ;;  %v6911_v13 = vld [vmem:[#allocation11 + $0x398] sm:$0xff] }
 0x4f9   :  { %2272 = vmatprep.subr.mxu0 %v6896_v14  ;;  %2343 = vmatprep.subr.mxu1 %v6899_v44  ;;  %9328 = vst [vmem:[#allocation96_spill] sm:$0xff] %v6908_v21  ;;  %9329 = vst [vmem:[#allocation97_spill] sm:$0xff] %v6911_v13  ;;  %v6914_v14 = vld [vmem:[#allocation11 + $0x380] sm:$0xff]  ;;  %v6917_v44 = vld [vmem:[#allocation11 + $0x390] sm:$0xff] }
 0x4fa   :  { %2273 = vmatpush2.msra.mxu0 %v6902_v16  ;;  %2344 = vmatpush2.msra.mxu1 %v6905_v20  ;;  %9330 = vst [vmem:[#allocation98_spill] sm:$0xff] %v6914_v14  ;;  %9331 = vst [vmem:[#allocation99_spill] sm:$0xff] %v6917_v44  ;;  %v6920_v16 = vld [vmem:[#allocation11 + $0x368] sm:$0xff]  ;;  %v6923_v20 = vld [vmem:[#allocation11 + $0x378] sm:$0xff] }
 0x4fb   :  { %2274 = vmatprep.subr.mxu0 %v6908_v21  ;;  %2345 = vmatprep.subr.mxu1 %v6911_v13  ;;  %9332 = vst [vmem:[#allocation100_spill] sm:$0xff] %v6920_v16  ;;  %9333 = vst [vmem:[#allocation101_spill] sm:$0xff] %v6923_v20  ;;  %v6926_v21 = vld [vmem:[#allocation11 + $0x360] sm:$0xff]  ;;  %v6929_v13 = vld [vmem:[#allocation11 + $0x370] sm:$0xff] }
 0x4fc   :  { %2275 = vmatpush2.msra.mxu0 %v6914_v14  ;;  %2346 = vmatpush2.msra.mxu1 %v6917_v44  ;;  %9334 = vst [vmem:[#allocation102_spill] sm:$0xff] %v6926_v21  ;;  %9335 = vst [vmem:[#allocation103_spill] sm:$0xff] %v6929_v13  ;;  %v6932_v14 = vld [vmem:[#allocation11 + $0x348] sm:$0xff]  ;;  %v6935_v44 = vld [vmem:[#allocation11 + $0x358] sm:$0xff] }
 0x4fd   :  { %2276 = vmatprep.subr.mxu0 %v6920_v16  ;;  %2347 = vmatprep.subr.mxu1 %v6923_v20  ;;  %9336 = vst [vmem:[#allocation104_spill] sm:$0xff] %v6932_v14  ;;  %9337 = vst [vmem:[#allocation105_spill] sm:$0xff] %v6935_v44  ;;  %v6938_v16 = vld [vmem:[#allocation11 + $0x340] sm:$0xff]  ;;  %v6941_v20 = vld [vmem:[#allocation11 + $0x350] sm:$0xff] }
 0x4fe   :  { %2277 = vmatpush2.msra.mxu0 %v6926_v21  ;;  %2348 = vmatpush2.msra.mxu1 %v6929_v13  ;;  %9338 = vst [vmem:[#allocation106_spill] sm:$0xff] %v6938_v16  ;;  %9339 = vst [vmem:[#allocation107_spill] sm:$0xff] %v6941_v20  ;;  %v6944_v21 = vld [vmem:[#allocation11 + $0x328] sm:$0xff]  ;;  %v6947_v13 = vld [vmem:[#allocation11 + $0x338] sm:$0xff] }
 0x4ff   :  { %2278 = vmatprep.subr.mxu0 %v6932_v14  ;;  %2349 = vmatprep.subr.mxu1 %v6935_v44  ;;  %9340 = vst [vmem:[#allocation108_spill] sm:$0xff] %v6944_v21  ;;  %9341 = vst [vmem:[#allocation109_spill] sm:$0xff] %v6947_v13  ;;  %v6950_v14 = vld [vmem:[#allocation11 + $0x320] sm:$0xff]  ;;  %v6953_v44 = vld [vmem:[#allocation11 + $0x330] sm:$0xff] }
 0x500   :  { %2279 = vmatpush2.msra.mxu0 %v6938_v16  ;;  %2350 = vmatpush2.msra.mxu1 %v6941_v20  ;;  %9342 = vst [vmem:[#allocation110_spill] sm:$0xff] %v6950_v14  ;;  %9343 = vst [vmem:[#allocation111_spill] sm:$0xff] %v6953_v44  ;;  %v6956_v16 = vld [vmem:[#allocation11 + $0x308] sm:$0xff]  ;;  %v6959_v20 = vld [vmem:[#allocation11 + $0x318] sm:$0xff] }
 0x501   :  { %2280 = vmatprep.subr.mxu0 %v6944_v21  ;;  %2351 = vmatprep.subr.mxu1 %v6947_v13  ;;  %9344 = vst [vmem:[#allocation112_spill] sm:$0xff] %v6956_v16  ;;  %9345 = vst [vmem:[#allocation113_spill] sm:$0xff] %v6959_v20  ;;  %v6962_v21 = vld [vmem:[#allocation11 + $0x300] sm:$0xff]  ;;  %v6965_v13 = vld [vmem:[#allocation11 + $0x310] sm:$0xff] }
 0x502   :  { %2281 = vmatpush2.msra.mxu0 %v6950_v14  ;;  %2352 = vmatpush2.msra.mxu1 %v6953_v44  ;;  %9346 = vst [vmem:[#allocation114_spill] sm:$0xff] %v6962_v21  ;;  %9347 = vst [vmem:[#allocation115_spill] sm:$0xff] %v6965_v13  ;;  %v6968_v14 = vld [vmem:[#allocation11 + $0x2e8] sm:$0xff]  ;;  %v6971_v44 = vld [vmem:[#allocation11 + $0x2f8] sm:$0xff] }
 0x503   :  { %2282 = vmatprep.subr.mxu0 %v6956_v16  ;;  %2353 = vmatprep.subr.mxu1 %v6959_v20  ;;  %9348 = vst [vmem:[#allocation116_spill] sm:$0xff] %v6968_v14  ;;  %9349 = vst [vmem:[#allocation117_spill] sm:$0xff] %v6971_v44  ;;  %v6974_v16 = vld [vmem:[#allocation11 + $0x2e0] sm:$0xff]  ;;  %v6977_v20 = vld [vmem:[#allocation11 + $0x2f0] sm:$0xff] }
 0x504   :  { %2283 = vmatpush2.msra.mxu0 %v6962_v21  ;;  %2354 = vmatpush2.msra.mxu1 %v6965_v13  ;;  %9350 = vst [vmem:[#allocation118_spill] sm:$0xff] %v6974_v16  ;;  %9351 = vst [vmem:[#allocation119_spill] sm:$0xff] %v6977_v20  ;;  %v6980_v21 = vld [vmem:[#allocation11 + $0x2c8] sm:$0xff]  ;;  %v6983_v13 = vld [vmem:[#allocation11 + $0x2d8] sm:$0xff] }
 0x505   :  { %2284 = vmatprep.subr.mxu0 %v6968_v14  ;;  %2355 = vmatprep.subr.mxu1 %v6971_v44  ;;  %9352 = vst [vmem:[#allocation120_spill] sm:$0xff] %v6980_v21  ;;  %9353 = vst [vmem:[#allocation121_spill] sm:$0xff] %v6983_v13  ;;  %v6986_v14 = vld [vmem:[#allocation11 + $0x2c0] sm:$0xff]  ;;  %v6989_v44 = vld [vmem:[#allocation11 + $0x2d0] sm:$0xff] }
 0x506   :  { %2285 = vmatpush2.msra.mxu0 %v6974_v16  ;;  %2356 = vmatpush2.msra.mxu1 %v6977_v20  ;;  %9354 = vst [vmem:[#allocation122_spill] sm:$0xff] %v6986_v14  ;;  %9355 = vst [vmem:[#allocation123_spill] sm:$0xff] %v6989_v44  ;;  %v6992_v16 = vld [vmem:[#allocation11 + $0x2a8] sm:$0xff]  ;;  %v6995_v20 = vld [vmem:[#allocation11 + $0x2b8] sm:$0xff] }
 0x507   :  { %2286 = vmatprep.subr.mxu0 %v6980_v21  ;;  %2357 = vmatprep.subr.mxu1 %v6983_v13  ;;  %9356 = vst [vmem:[#allocation124_spill] sm:$0xff] %v6992_v16  ;;  %9357 = vst [vmem:[#allocation125_spill] sm:$0xff] %v6995_v20  ;;  %v6998_v21 = vld [vmem:[#allocation11 + $0x2a0] sm:$0xff]  ;;  %v7001_v13 = vld [vmem:[#allocation11 + $0x2b0] sm:$0xff] }
 0x508   :  { %2287 = vmatpush2.msra.mxu0 %v6986_v14  ;;  %2358 = vmatpush2.msra.mxu1 %v6989_v44  ;;  %9358 = vst [vmem:[#allocation126_spill] sm:$0xff] %v6998_v21  ;;  %9359 = vst [vmem:[#allocation127_spill] sm:$0xff] %v7001_v13  ;;  %v7004_v14 = vld [vmem:[#allocation11 + $0x288] sm:$0xff]  ;;  %v7007_v44 = vld [vmem:[#allocation11 + $0x298] sm:$0xff] }
 0x509   :  { %2288 = vmatprep.subr.mxu0 %v6992_v16  ;;  %2359 = vmatprep.subr.mxu1 %v6995_v20  ;;  %9360 = vst [vmem:[#allocation128_spill] sm:$0xff] %v7004_v14  ;;  %9361 = vst [vmem:[#allocation129_spill] sm:$0xff] %v7007_v44  ;;  %v7010_v16 = vld [vmem:[#allocation11 + $0x280] sm:$0xff]  ;;  %v7013_v20 = vld [vmem:[#allocation11 + $0x290] sm:$0xff] }
 0x50a   :  { %2289 = vmatpush2.msra.mxu0 %v6998_v21  ;;  %2360 = vmatpush2.msra.mxu1 %v7001_v13  ;;  %9362 = vst [vmem:[#allocation130_spill] sm:$0xff] %v7010_v16  ;;  %9363 = vst [vmem:[#allocation131_spill] sm:$0xff] %v7013_v20  ;;  %v7016_v21 = vld [vmem:[#allocation11 + $0x268] sm:$0xff]  ;;  %v7019_v13 = vld [vmem:[#allocation11 + $0x278] sm:$0xff] }
 0x50b   :  { %2290 = vmatprep.subr.mxu0 %v7004_v14  ;;  %2361 = vmatprep.subr.mxu1 %v7007_v44  ;;  %9364 = vst [vmem:[#allocation132_spill] sm:$0xff] %v7016_v21  ;;  %9365 = vst [vmem:[#allocation133_spill] sm:$0xff] %v7019_v13  ;;  %v7022_v14 = vld [vmem:[#allocation11 + $0x260] sm:$0xff]  ;;  %v7025_v44 = vld [vmem:[#allocation11 + $0x270] sm:$0xff] }
 0x50c   :  { %2291 = vmatpush2.msra.mxu0 %v7010_v16  ;;  %2362 = vmatpush2.msra.mxu1 %v7013_v20  ;;  %9366 = vst [vmem:[#allocation134_spill] sm:$0xff] %v7022_v14  ;;  %9367 = vst [vmem:[#allocation135_spill] sm:$0xff] %v7025_v44  ;;  %v7028_v16 = vld [vmem:[#allocation11 + $0x248] sm:$0xff]  ;;  %v7031_v20 = vld [vmem:[#allocation11 + $0x258] sm:$0xff] }
 0x50d   :  { %2292 = vmatprep.subr.mxu0 %v7016_v21  ;;  %2363 = vmatprep.subr.mxu1 %v7019_v13  ;;  %9368 = vst [vmem:[#allocation136_spill] sm:$0xff] %v7028_v16  ;;  %9369 = vst [vmem:[#allocation137_spill] sm:$0xff] %v7031_v20  ;;  %v7034_v21 = vld [vmem:[#allocation11 + $0x240] sm:$0xff]  ;;  %v7037_v13 = vld [vmem:[#allocation11 + $0x250] sm:$0xff] }
 0x50e   :  { %2293 = vmatpush2.msra.mxu0 %v7022_v14  ;;  %2364 = vmatpush2.msra.mxu1 %v7025_v44  ;;  %9370 = vst [vmem:[#allocation138_spill] sm:$0xff] %v7034_v21  ;;  %9371 = vst [vmem:[#allocation139_spill] sm:$0xff] %v7037_v13  ;;  %v7040_v14 = vld [vmem:[#allocation11 + $0x228] sm:$0xff]  ;;  %v7043_v44 = vld [vmem:[#allocation11 + $0x238] sm:$0xff] }
 0x50f   :  { %2294 = vmatprep.subr.mxu0 %v7028_v16  ;;  %2365 = vmatprep.subr.mxu1 %v7031_v20  ;;  %9372 = vst [vmem:[#allocation140_spill] sm:$0xff] %v7040_v14  ;;  %9373 = vst [vmem:[#allocation141_spill] sm:$0xff] %v7043_v44  ;;  %v7046_v16 = vld [vmem:[#allocation11 + $0x220] sm:$0xff]  ;;  %v7049_v20 = vld [vmem:[#allocation11 + $0x230] sm:$0xff] }
 0x510   :  { %2295 = vmatpush2.msra.mxu0 %v7034_v21  ;;  %2366 = vmatpush2.msra.mxu1 %v7037_v13  ;;  %9374 = vst [vmem:[#allocation142_spill] sm:$0xff] %v7046_v16  ;;  %9375 = vst [vmem:[#allocation143_spill] sm:$0xff] %v7049_v20  ;;  %v7052_v21 = vld [vmem:[#allocation11 + $0x208] sm:$0xff]  ;;  %v7055_v13 = vld [vmem:[#allocation11 + $0x218] sm:$0xff] }
 0x511   :  { %2296 = vmatprep.subr.mxu0 %v7040_v14  ;;  %2367 = vmatprep.subr.mxu1 %v7043_v44  ;;  %9376 = vst [vmem:[#allocation144_spill] sm:$0xff] %v7052_v21  ;;  %9377 = vst [vmem:[#allocation145_spill] sm:$0xff] %v7055_v13  ;;  %v7058_v14 = vld [vmem:[#allocation11 + $0x200] sm:$0xff]  ;;  %v7061_v44 = vld [vmem:[#allocation11 + $0x210] sm:$0xff] }
 0x512   :  { %2297 = vmatpush2.msra.mxu0 %v7046_v16  ;;  %2368 = vmatpush2.msra.mxu1 %v7049_v20  ;;  %9378 = vst [vmem:[#allocation146_spill] sm:$0xff] %v7058_v14  ;;  %9379 = vst [vmem:[#allocation147_spill] sm:$0xff] %v7061_v44 }
 0x513   :  { %2298 = vmatprep.subr.mxu0 %v7052_v21  ;;  %2369 = vmatprep.subr.mxu1 %v7055_v13 }
 0x514   :  { %2299 = vmatpush2.msra.mxu0 %v7058_v14  ;;  %2370 = vmatpush2.msra.mxu1 %v7061_v44 }
 0x515   :  { %2413 = vmatprep.subr.mxu0 %v6500_v34  ;;  %2484 = vmatprep.subr.mxu1 %v6503_v27 }
 0x573   :  { %v1950_v20 = vpop.f32.mrf.mxu0  ;;  %v2021_v37 = vpop.f32.mrf.mxu1 }
 0x574   :  { %v1951_v16 = vadd.f32 %v1950_v20, %v9242_v0  ;;  %v2022_v14 = vadd.f32 %v2021_v37, %v9244_v35 }
 0x575   :  { %v1952_v21 = vpop.f32.mrf.mxu0  ;;  %v2023_v30 = vpop.f32.mrf.mxu1 }
 0x576   :  { %v3621_v17 = vmul.f32 -1.442695, %v1951_v16  ;;  %v1953_v38 = vadd.f32 %v1952_v21, %v9243_v33  ;;  %v3623_v31 = vmul.f32 -1.442695, %v2022_v14  ;;  %v2024_v34 = vadd.f32 %v2023_v30, %v9245_v29  ;;  %v9381_v14 = vld [vmem:[#allocation164_spill] sm:$0xff] }
 0x578   :  { %3824 = vpow2.f32 %v3621_v17  ;;  %v3622_v13 = vmul.f32 -1.442695, %v1953_v38  ;;  %v9380_v38 = vld [vmem:[#allocation162_spill] sm:$0xff] }
 0x57a   :  { %3826 = vpow2.f32 %v3622_v13 }
 0x57b   :  { %3828 = vpow2.f32 %v3623_v31 }
 0x585   :  { %v3825_v44 = vpop.eup %3824 }
 0x586   :  { %v2036_v25 = vadd.f32 1.0, %v3825_v44 }
 0x587   :  { %v3827_v27 = vpop.eup %3826 }
 0x588   :  { %3830 = vrcp.f32 %v2036_v25  ;;  %v2037_v20 = vadd.f32 1.0, %v3827_v27  ;;  %v3829_v16 = vpop.eup %3828  ;;  %v9382_v27 = vld [vmem:[#allocation163_spill] sm:$0xff] }
 0x589   :  { %3832 = vtanh.f32 %v2024_v34  ;;  %v2038_v36 = vadd.f32 1.0, %v3829_v16 }
 0x58a   :  { %3834 = vrcp.f32 %v2037_v20 }
 0x594   :  { %v2127_v21 = vpop.f32.mrf.mxu0  ;;  %v2198_v34 = vpop.f32.mrf.mxu1 }
 0x595   :  { %v3831_v17 = vpop.eup %3830  ;;  %v2203_v13 = vadd.f32 %v2127_v21, %v9380_v38  ;;  %v2205_v20 = vadd.f32 %v2198_v34, %v9382_v27 }
 0x596   :  { %v3833_v33 = vpop.eup %3832  ;;  %v2129_v0 = vpop.f32.mrf.mxu0 }
 0x597   :  { %v3835_v37 = vpop.eup %3834  ;;  %v3624_v35 = vmul.f32 -1.442695, %v2203_v13  ;;  %v2204_v19 = vadd.f32 %v2129_v0, %v9381_v14  ;;  %v2047_v44 = vmul.f32 %v3833_v33, %v3831_v17  ;;  %v2200_v21 = vpop.f32.mrf.mxu1  ;;  %v3626_v38 = vmul.f32 -1.442695, %v2205_v20  ;;  %v9383_v13 = vld [vmem:[#allocation165_spill] sm:$0xff] }
 0x598   :  { %v2046_v30 = vmul.f32 %v3835_v37, %v6513_v54  ;;  %v2206_v29 = vadd.f32 %v2200_v21, %v9383_v13  ;;  %v7089_v13 = vld [vmem:[#allocation9 + $0x1f0] sm:$0xff] }
 0x599   :  { %3836 = vpow2.f32 %v3624_v35  ;;  %v3625_v25 = vmul.f32 -1.442695, %v2204_v19 }
 0x59a   :  { %v7073_v31 = vadd.f32 %v2047_v44, %v2046_v30 }
 0x59b   :  { %3838 = vpow2.f32 %v3625_v25 }
 0x59c   :  { %3840 = vrcp.f32 %v2038_v36 }
 0x59d   :  { %3842 = vtanh.f32 %v7073_v31 }
 0x59e   :  { %3844 = vpow2.f32 %v3626_v38  ;;  %v7086_v38 = vld [vmem:[#allocation9 + $0x1e0] sm:$0xff] }
 0x59f   :  { %3846 = vtanh.f32 %v2206_v29 }
 0x5a6   :  { %v3837_v0 = vpop.eup %3836 }
 0x5a7   :  { %v2217_v16 = vadd.f32 1.0, %v3837_v0  ;;  %v7095_v0 = vld [vmem:[#allocation9 + $0x1d8] sm:$0xff] }
 0x5a8   :  { %v3839_v54 = vpop.eup %3838 }
 0x5a9   :  { %v3841_v33 = vpop.eup %3840  ;;  %3848 = vrcp.f32 %v2217_v16  ;;  %v2218_v19 = vadd.f32 1.0, %v3839_v54  ;;  %v7098_v16 = vld [vmem:[#allocation9 + $0x1c0] sm:$0xff]  ;;  %v7101_v54 = vld [vmem:[#allocation9 + $0x1d0] sm:$0xff] }
 0x5aa   :  { %v3843_v35 = vpop.eup %3842 }
 0x5ab   :  { %3850 = vrcp.f32 %v2218_v19  ;;  %v2050_v36 = vmul.f32 %v3843_v35, %v3841_v33  ;;  %v3845_v17 = vpop.eup %3844  ;;  %v7104_v33 = vld [vmem:[#allocation9 + $0x1a8] sm:$0xff]  ;;  %v7107_v19 = vld [vmem:[#allocation9 + $0x1b8] sm:$0xff]  ;;  %v7110_v35 = vld [vmem:[#allocation9 + $0x1a0] sm:$0xff] }
 0x5ac   :  { %v3847_v37 = vpop.eup %3846  ;;  %v2219_v25 = vadd.f32 1.0, %v3845_v17  ;;  %v7116_v17 = vld [vmem:[#allocation9 + $0x188] sm:$0xff] }
 0x5ad   :  { %2300 = vmatprep.mubr.f32.mxu0 %v2050_v36  ;;  %2371 = vmatprep.mubr.f32.mxu1 %v2050_v36  ;;  %v7113_v36 = vld [vmem:[#allocation9 + $0x1b0] sm:$0xff] }
 0x5ae   :  { %3852 = vrcp.f32 %v2219_v25  ;;  %v7131_v25 = vld [vmem:[#allocation9 + $0x178] sm:$0xff] }
 0x5b6   :  { %v3849_v14 = vpop.eup %3848 }
 0x5b7   :  { %v2228_v30 = vmul.f32 %v3849_v14, %v3847_v37  ;;  %v7119_v37 = vld [vmem:[#allocation9 + $0x198] sm:$0xff]  ;;  %v7122_v14 = vld [vmem:[#allocation9 + $0x180] sm:$0xff] }
 0x5b8   :  { %v3851_v44 = vpop.eup %3850 }
 0x5b9   :  { %v2227_v34 = vmul.f32 %v3851_v44, %v6519_v15  ;;  %v7092_v15 = vld [vmem:[#allocation9 + $0x1c8] sm:$0xff] }
 0x5ba   :  { %v7128_v44 = vld [vmem:[#allocation9 + $0x168] sm:$0xff] }
 0x5bb   :  { %v7079_v27 = vadd.f32 %v2228_v30, %v2227_v34  ;;  %v3853_v29 = vpop.eup %3852  ;;  %v7125_v30 = vld [vmem:[#allocation9 + $0x190] sm:$0xff]  ;;  %v7134_v34 = vld [vmem:[#allocation9 + $0x160] sm:$0xff] }
 0x5bd   :  { %3854 = vtanh.f32 %v7079_v27 }
 0x5ca   :  { %v3855_v20 = vpop.eup %3854 }
 0x5cb   :  { %v7082_v21 = vmul.f32 %v3855_v20, %v3853_v29  ;;  %v7137_v29 = vld [vmem:[#allocation9 + $0x170] sm:$0xff]  ;;  %v9426_v20 = vld [vmem:[#allocation59_spill] sm:$0xff] }
 0x5cd   :  { %2301 = vmatmul.mubr.f32.vlgmr.msra.gmra.mxu0 %v7082_v21  ;;  %2372 = vmatmul.mubr.f32.vlgmr.msra.gmra.mxu1 %v7082_v21 }
 0x5ce   :  { %2414 = vmatpush1.msra.mxu0 %v7086_v38  ;;  %2485 = vmatpush1.msra.mxu1 %v7089_v13 }
 0x5cf   :  { %2415 = vmatprep.subr.mxu0 %v7092_v15  ;;  %2486 = vmatprep.subr.mxu1 %v7095_v0 }
 0x5d0   :  { %2416 = vmatpush1.msra.mxu0 %v7098_v16  ;;  %2487 = vmatpush1.msra.mxu1 %v7101_v54 }
 0x5d1   :  { %2417 = vmatprep.subr.mxu0 %v7104_v33  ;;  %2488 = vmatprep.subr.mxu1 %v7107_v19 }
 0x5d2   :  { %2418 = vmatpush1.msra.mxu0 %v7110_v35  ;;  %2489 = vmatpush1.msra.mxu1 %v7113_v36 }
 0x5d3   :  { %2419 = vmatprep.subr.mxu0 %v7116_v17  ;;  %2490 = vmatprep.subr.mxu1 %v7119_v37 }
 0x5d4   :  { %2420 = vmatpush1.msra.mxu0 %v7122_v14  ;;  %2491 = vmatpush1.msra.mxu1 %v7125_v30 }
 0x5d5   :  { %2421 = vmatprep.subr.mxu0 %v7128_v44  ;;  %2492 = vmatprep.subr.mxu1 %v7131_v25 }
 0x5d6   :  { %2422 = vmatpush1.msra.mxu0 %v7134_v34  ;;  %2493 = vmatpush1.msra.mxu1 %v7137_v29 }
 0x5d7   :  { %2423 = vmatprep.subr.mxu0 %v6544_v45  ;;  %2494 = vmatprep.subr.mxu1 %v6547_v3  ;;  %v9384_v45 = vld [vmem:[#allocation153_spill] sm:$0xff]  ;;  %v9385_v3 = vmov 0.0  }
 0x5d8   :  { %2424 = vmatpush1.msra.mxu0 %v6550_v5  ;;  %2495 = vmatpush1.msra.mxu1 %v6553_v9  ;;  %v9386_v5 = vld [vmem:[#allocation154_spill] sm:$0xff]  ;;  %v9387_v9 = vld [vmem:[#allocation156_spill] sm:$0xff] }
 0x5d9   :  { %2425 = vmatprep.subr.mxu0 %v6556_v48  ;;  %2496 = vmatprep.subr.mxu1 %v6559_v10  ;;  %v9388_v48 = vld [vmem:[#allocation155_spill] sm:$0xff]  ;;  %v9389_v10 = vld [vmem:[#allocation157_spill] sm:$0xff] }
 0x5da   :  { %2426 = vmatpush1.msra.mxu0 %v6562_v18  ;;  %2497 = vmatpush1.msra.mxu1 %v6565_v50  ;;  %v9390_v18 = vld [vmem:[#allocation23_spill] sm:$0xff]  ;;  %v9391_v50 = vld [vmem:[#allocation24_spill] sm:$0xff] }
 0x5db   :  { %2427 = vmatprep.subr.mxu0 %v6568_v42  ;;  %2498 = vmatprep.subr.mxu1 %v6571_v59  ;;  %v9392_v42 = vld [vmem:[#allocation25_spill] sm:$0xff]  ;;  %v9393_v59 = vld [vmem:[#allocation26_spill] sm:$0xff] }
 0x5dc   :  { %2428 = vmatpush1.msra.mxu0 %v6574_v58  ;;  %2499 = vmatpush1.msra.mxu1 %v6577_v4  ;;  %v9394_v58 = vld [vmem:[#allocation27_spill] sm:$0xff]  ;;  %v9395_v4 = vld [vmem:[#allocation28_spill] sm:$0xff] }
 0x5dd   :  { %2429 = vmatprep.subr.mxu0 %v6580_v2  ;;  %2500 = vmatprep.subr.mxu1 %v6583_v6  ;;  %v9396_v2 = vld [vmem:[#allocation29_spill] sm:$0xff]  ;;  %v9397_v6 = vld [vmem:[#allocation30_spill] sm:$0xff] }
 0x5de   :  { %2430 = vmatpush1.msra.mxu0 %v6586_v63  ;;  %2501 = vmatpush1.msra.mxu1 %v6589_v7  ;;  %v9398_v63 = vld [vmem:[#allocation31_spill] sm:$0xff]  ;;  %v9399_v7 = vld [vmem:[#allocation32_spill] sm:$0xff] }
 0x5df   :  { %2431 = vmatprep.subr.mxu0 %v6592_v60  ;;  %2502 = vmatprep.subr.mxu1 %v6595_v43  ;;  %v9400_v60 = vld [vmem:[#allocation33_spill] sm:$0xff]  ;;  %v9401_v43 = vld [vmem:[#allocation34_spill] sm:$0xff] }
 0x5e0   :  { %2432 = vmatpush1.msra.mxu0 %v6598_v1  ;;  %2503 = vmatpush1.msra.mxu1 %v6601_v22  ;;  %v9402_v1 = vld [vmem:[#allocation35_spill] sm:$0xff]  ;;  %v9403_v22 = vld [vmem:[#allocation36_spill] sm:$0xff] }
 0x5e1   :  { %2433 = vmatprep.subr.mxu0 %v6604_v23  ;;  %2504 = vmatprep.subr.mxu1 %v6607_v24  ;;  %v9404_v23 = vld [vmem:[#allocation37_spill] sm:$0xff]  ;;  %v9405_v24 = vld [vmem:[#allocation38_spill] sm:$0xff] }
 0x5e2   :  { %2434 = vmatpush1.msra.mxu0 %v6610_v28  ;;  %2505 = vmatpush1.msra.mxu1 %v6613_v32  ;;  %v9406_v28 = vld [vmem:[#allocation39_spill] sm:$0xff]  ;;  %v9407_v32 = vld [vmem:[#allocation40_spill] sm:$0xff] }
 0x5e3   :  { %2435 = vmatprep.subr.mxu0 %v6616_v40  ;;  %2506 = vmatprep.subr.mxu1 %v6619_v41  ;;  %v9408_v40 = vld [vmem:[#allocation41_spill] sm:$0xff]  ;;  %v9409_v41 = vld [vmem:[#allocation42_spill] sm:$0xff] }
 0x5e4   :  { %2436 = vmatpush1.msra.mxu0 %v6622_v46  ;;  %2507 = vmatpush1.msra.mxu1 %v6625_v47  ;;  %v9410_v46 = vld [vmem:[#allocation43_spill] sm:$0xff]  ;;  %v9411_v47 = vld [vmem:[#allocation44_spill] sm:$0xff] }
 0x5e5   :  { %2437 = vmatprep.subr.mxu0 %v6628_v49  ;;  %2508 = vmatprep.subr.mxu1 %v6631_v51  ;;  %v9412_v49 = vld [vmem:[#allocation45_spill] sm:$0xff]  ;;  %v9413_v51 = vld [vmem:[#allocation46_spill] sm:$0xff] }
 0x5e6   :  { %2438 = vmatpush1.msra.mxu0 %v6634_v52  ;;  %2509 = vmatpush1.msra.mxu1 %v6637_v55  ;;  %v9414_v52 = vld [vmem:[#allocation47_spill] sm:$0xff]  ;;  %v9415_v55 = vld [vmem:[#allocation48_spill] sm:$0xff] }
 0x5e7   :  { %2439 = vmatprep.subr.mxu0 %v6640_v56  ;;  %2510 = vmatprep.subr.mxu1 %v6643_v57  ;;  %v9416_v56 = vld [vmem:[#allocation49_spill] sm:$0xff]  ;;  %v9417_v57 = vld [vmem:[#allocation50_spill] sm:$0xff] }
 0x5e8   :  { %2440 = vmatpush1.msra.mxu0 %v6646_v11  ;;  %2511 = vmatpush1.msra.mxu1 %v6649_v12  ;;  %v9418_v11 = vld [vmem:[#allocation51_spill] sm:$0xff]  ;;  %v9419_v12 = vld [vmem:[#allocation52_spill] sm:$0xff] }
 0x5e9   :  { %2441 = vmatprep.subr.mxu0 %v6652_v8  ;;  %2512 = vmatprep.subr.mxu1 %v6655_v26  ;;  %v9420_v8 = vld [vmem:[#allocation53_spill] sm:$0xff]  ;;  %v9421_v26 = vld [vmem:[#allocation54_spill] sm:$0xff] }
 0x5ea   :  { %2442 = vmatpush1.msra.mxu0 %v6658_v53  ;;  %2513 = vmatpush1.msra.mxu1 %v6661_v39  ;;  %v9422_v53 = vld [vmem:[#allocation55_spill] sm:$0xff]  ;;  %v9423_v39 = vld [vmem:[#allocation56_spill] sm:$0xff] }
 0x5eb   :  { %2443 = vmatprep.subr.mxu0 %v6664_v61  ;;  %2514 = vmatprep.subr.mxu1 %v6667_v62  ;;  %v9424_v61 = vld [vmem:[#allocation57_spill] sm:$0xff]  ;;  %v9425_v62 = vld [vmem:[#allocation58_spill] sm:$0xff] }
 0x5ec   :  { %2444 = vmatpush1.msra.mxu0 %v9384_v45  ;;  %2477 = vmatprep.mubr.f32.mxu0 %v9385_v3  ;;  %v9428_v45 = vld [vmem:[#allocation61_spill] sm:$0xff] }
 0x5ed   :  { %2515 = vmatpush1.msra.mxu1 %v9386_v5  ;;  %2548 = vmatprep.mubr.f32.mxu1 %v9385_v3  ;;  %v9429_v5 = vld [vmem:[#allocation62_spill] sm:$0xff] }
 0x5ee   :  { %2478 = vmatmul.mubr.f32.vlgmr.msra.gmra.mxu0 %v7082_v21  ;;  %2549 = vmatmul.mubr.f32.vlgmr.msra.gmra.mxu1 %v7082_v21  ;;  %v9427_v21 = vld [vmem:[#allocation60_spill] sm:$0xff] }
 0x5ef   :  { %2588 = vmatprep.subr.mxu0 %v9387_v9  ;;  %2659 = vmatprep.subr.mxu1 %v9388_v48  ;;  %v9430_v9 = vld [vmem:[#allocation63_spill] sm:$0xff]  ;;  %v9431_v48 = vld [vmem:[#allocation64_spill] sm:$0xff] }
 0x5f0   :  { %2589 = vmatpush1.msra.mxu0 %v9389_v10  ;;  %2660 = vmatpush1.msra.mxu1 %v9390_v18  ;;  %v9432_v10 = vld [vmem:[#allocation65_spill] sm:$0xff]  ;;  %v9433_v18 = vld [vmem:[#allocation66_spill] sm:$0xff] }
 0x5f1   :  { %2590 = vmatprep.subr.mxu0 %v9391_v50  ;;  %2661 = vmatprep.subr.mxu1 %v9392_v42  ;;  %v9434_v50 = vld [vmem:[#allocation67_spill] sm:$0xff]  ;;  %v9435_v42 = vld [vmem:[#allocation68_spill] sm:$0xff] }
 0x5f2   :  { %2591 = vmatpush1.msra.mxu0 %v9393_v59  ;;  %2662 = vmatpush1.msra.mxu1 %v9394_v58  ;;  %v9436_v59 = vld [vmem:[#allocation69_spill] sm:$0xff]  ;;  %v9437_v58 = vld [vmem:[#allocation70_spill] sm:$0xff] }
 0x5f3   :  { %2592 = vmatprep.subr.mxu0 %v9395_v4  ;;  %2663 = vmatprep.subr.mxu1 %v9396_v2  ;;  %v9438_v4 = vld [vmem:[#allocation71_spill] sm:$0xff]  ;;  %v9439_v2 = vld [vmem:[#allocation72_spill] sm:$0xff] }
 0x5f4   :  { %2593 = vmatpush1.msra.mxu0 %v9397_v6  ;;  %2664 = vmatpush1.msra.mxu1 %v9398_v63  ;;  %v9440_v6 = vld [vmem:[#allocation73_spill] sm:$0xff]  ;;  %v9441_v63 = vld [vmem:[#allocation74_spill] sm:$0xff] }
 0x5f5   :  { %2594 = vmatprep.subr.mxu0 %v9399_v7  ;;  %2665 = vmatprep.subr.mxu1 %v9400_v60  ;;  %v9442_v7 = vld [vmem:[#allocation75_spill] sm:$0xff]  ;;  %v9443_v60 = vld [vmem:[#allocation76_spill] sm:$0xff] }
 0x5f6   :  { %2595 = vmatpush1.msra.mxu0 %v9401_v43  ;;  %2666 = vmatpush1.msra.mxu1 %v9402_v1  ;;  %v9444_v43 = vld [vmem:[#allocation77_spill] sm:$0xff]  ;;  %v9445_v1 = vld [vmem:[#allocation78_spill] sm:$0xff] }
 0x5f7   :  { %2596 = vmatprep.subr.mxu0 %v9403_v22  ;;  %2667 = vmatprep.subr.mxu1 %v9404_v23  ;;  %v9446_v22 = vld [vmem:[#allocation79_spill] sm:$0xff]  ;;  %v9447_v23 = vld [vmem:[#allocation80_spill] sm:$0xff] }
 0x5f8   :  { %2597 = vmatpush1.msra.mxu0 %v9405_v24  ;;  %2668 = vmatpush1.msra.mxu1 %v9406_v28  ;;  %v9448_v24 = vld [vmem:[#allocation81_spill] sm:$0xff]  ;;  %v9449_v28 = vld [vmem:[#allocation82_spill] sm:$0xff] }
 0x5f9   :  { %2598 = vmatprep.subr.mxu0 %v9407_v32  ;;  %2669 = vmatprep.subr.mxu1 %v9408_v40  ;;  %v9450_v32 = vld [vmem:[#allocation83_spill] sm:$0xff]  ;;  %v9451_v40 = vld [vmem:[#allocation84_spill] sm:$0xff] }
 0x5fa   :  { %2599 = vmatpush1.msra.mxu0 %v9409_v41  ;;  %2670 = vmatpush1.msra.mxu1 %v9410_v46  ;;  %v9452_v41 = vld [vmem:[#allocation85_spill] sm:$0xff]  ;;  %v9453_v46 = vld [vmem:[#allocation86_spill] sm:$0xff] }
 0x5fb   :  { %2600 = vmatprep.subr.mxu0 %v9411_v47  ;;  %2671 = vmatprep.subr.mxu1 %v9412_v49  ;;  %v9454_v47 = vld [vmem:[#allocation87_spill] sm:$0xff]  ;;  %v9455_v49 = vld [vmem:[#allocation88_spill] sm:$0xff] }
 0x5fc   :  { %2601 = vmatpush1.msra.mxu0 %v9413_v51  ;;  %2672 = vmatpush1.msra.mxu1 %v9414_v52  ;;  %v9456_v51 = vld [vmem:[#allocation89_spill] sm:$0xff]  ;;  %v9457_v52 = vld [vmem:[#allocation90_spill] sm:$0xff] }
 0x5fd   :  { %2602 = vmatprep.subr.mxu0 %v9415_v55  ;;  %2673 = vmatprep.subr.mxu1 %v9416_v56  ;;  %v9458_v55 = vld [vmem:[#allocation91_spill] sm:$0xff]  ;;  %v9459_v56 = vld [vmem:[#allocation92_spill] sm:$0xff] }
 0x5fe   :  { %2603 = vmatpush1.msra.mxu0 %v9417_v57  ;;  %2674 = vmatpush1.msra.mxu1 %v9418_v11  ;;  %v9460_v57 = vld [vmem:[#allocation93_spill] sm:$0xff]  ;;  %v9461_v11 = vld [vmem:[#allocation94_spill] sm:$0xff] }
 0x5ff   :  { %2604 = vmatprep.subr.mxu0 %v9419_v12  ;;  %2675 = vmatprep.subr.mxu1 %v9420_v8  ;;  %v9462_v12 = vld [vmem:[#allocation95_spill] sm:$0xff]  ;;  %v9463_v8 = vld [vmem:[#allocation96_spill] sm:$0xff] }
 0x600   :  { %2605 = vmatpush1.msra.mxu0 %v9421_v26  ;;  %2676 = vmatpush1.msra.mxu1 %v9422_v53  ;;  %v9464_v26 = vld [vmem:[#allocation97_spill] sm:$0xff]  ;;  %v9465_v53 = vld [vmem:[#allocation98_spill] sm:$0xff] }
 0x601   :  { %2606 = vmatprep.subr.mxu0 %v9423_v39  ;;  %2677 = vmatprep.subr.mxu1 %v9424_v61  ;;  %v9466_v39 = vld [vmem:[#allocation99_spill] sm:$0xff]  ;;  %v9467_v61 = vld [vmem:[#allocation100_spill] sm:$0xff] }
 0x602   :  { %2607 = vmatpush1.msra.mxu0 %v9425_v62  ;;  %2678 = vmatpush1.msra.mxu1 %v9426_v20  ;;  %v9468_v62 = vld [vmem:[#allocation101_spill] sm:$0xff]  ;;  %v9469_v20 = vld [vmem:[#allocation102_spill] sm:$0xff] }
 0x603   :  { %2608 = vmatprep.subr.mxu0 %v9427_v21  ;;  %2679 = vmatprep.subr.mxu1 %v9428_v45  ;;  %v9470_v21 = vld [vmem:[#allocation103_spill] sm:$0xff]  ;;  %v9471_v45 = vld [vmem:[#allocation104_spill] sm:$0xff] }
 0x604   :  { %2609 = vmatpush1.msra.mxu0 %v9429_v5  ;;  %2680 = vmatpush1.msra.mxu1 %v9430_v9  ;;  %v9472_v5 = vld [vmem:[#allocation105_spill] sm:$0xff]  ;;  %v9473_v9 = vld [vmem:[#allocation106_spill] sm:$0xff] }
 0x605   :  { %2610 = vmatprep.subr.mxu0 %v9431_v48  ;;  %2681 = vmatprep.subr.mxu1 %v9432_v10  ;;  %v9474_v48 = vld [vmem:[#allocation107_spill] sm:$0xff]  ;;  %v9475_v10 = vld [vmem:[#allocation108_spill] sm:$0xff] }
 0x606   :  { %2611 = vmatpush1.msra.mxu0 %v9433_v18  ;;  %2682 = vmatpush1.msra.mxu1 %v9434_v50  ;;  %v9476_v18 = vld [vmem:[#allocation109_spill] sm:$0xff]  ;;  %v9477_v50 = vld [vmem:[#allocation110_spill] sm:$0xff] }
 0x607   :  { %2612 = vmatprep.subr.mxu0 %v9435_v42  ;;  %2683 = vmatprep.subr.mxu1 %v9436_v59  ;;  %v9478_v42 = vld [vmem:[#allocation111_spill] sm:$0xff]  ;;  %v9479_v59 = vld [vmem:[#allocation112_spill] sm:$0xff] }
 0x608   :  { %2613 = vmatpush1.msra.mxu0 %v9437_v58  ;;  %2684 = vmatpush1.msra.mxu1 %v9438_v4  ;;  %v9480_v58 = vld [vmem:[#allocation113_spill] sm:$0xff]  ;;  %v9481_v4 = vld [vmem:[#allocation114_spill] sm:$0xff] }
 0x609   :  { %2614 = vmatprep.subr.mxu0 %v9439_v2  ;;  %2685 = vmatprep.subr.mxu1 %v9440_v6  ;;  %v9482_v2 = vld [vmem:[#allocation115_spill] sm:$0xff]  ;;  %v9483_v6 = vld [vmem:[#allocation116_spill] sm:$0xff] }
 0x60a   :  { %2615 = vmatpush1.msra.mxu0 %v9441_v63  ;;  %2686 = vmatpush1.msra.mxu1 %v9442_v7  ;;  %v9484_v63 = vld [vmem:[#allocation117_spill] sm:$0xff]  ;;  %v9485_v7 = vld [vmem:[#allocation118_spill] sm:$0xff] }
 0x60b   :  { %2616 = vmatprep.subr.mxu0 %v9443_v60  ;;  %2687 = vmatprep.subr.mxu1 %v9444_v43  ;;  %v9486_v60 = vld [vmem:[#allocation119_spill] sm:$0xff]  ;;  %v9487_v43 = vld [vmem:[#allocation120_spill] sm:$0xff] }
 0x60c   :  { %2617 = vmatpush1.msra.mxu0 %v9445_v1  ;;  %2688 = vmatpush1.msra.mxu1 %v9446_v22  ;;  %v9488_v1 = vld [vmem:[#allocation121_spill] sm:$0xff]  ;;  %v9489_v22 = vld [vmem:[#allocation122_spill] sm:$0xff] }
 0x60d   :  { %2618 = vmatprep.subr.mxu0 %v9447_v23  ;;  %2689 = vmatprep.subr.mxu1 %v9448_v24  ;;  %v9490_v23 = vld [vmem:[#allocation123_spill] sm:$0xff]  ;;  %v9491_v24 = vld [vmem:[#allocation124_spill] sm:$0xff] }
 0x60e   :  { %2619 = vmatpush1.msra.mxu0 %v9449_v28  ;;  %2690 = vmatpush1.msra.mxu1 %v9450_v32  ;;  %v9492_v28 = vld [vmem:[#allocation125_spill] sm:$0xff]  ;;  %v9493_v32 = vld [vmem:[#allocation126_spill] sm:$0xff] }
 0x60f   :  { %2620 = vmatprep.subr.mxu0 %v9451_v40  ;;  %2691 = vmatprep.subr.mxu1 %v9452_v41  ;;  %v9494_v40 = vld [vmem:[#allocation127_spill] sm:$0xff]  ;;  %v9495_v41 = vld [vmem:[#allocation128_spill] sm:$0xff] }
 0x610   :  { %2621 = vmatpush2.msra.mxu0 %v9453_v46  ;;  %2692 = vmatpush2.msra.mxu1 %v9454_v47  ;;  %v9496_v46 = vld [vmem:[#allocation129_spill] sm:$0xff]  ;;  %v9497_v47 = vld [vmem:[#allocation130_spill] sm:$0xff] }
 0x611   :  { %2622 = vmatprep.subr.mxu0 %v9455_v49  ;;  %2693 = vmatprep.subr.mxu1 %v9456_v51  ;;  %v9498_v49 = vld [vmem:[#allocation131_spill] sm:$0xff]  ;;  %v9499_v51 = vld [vmem:[#allocation132_spill] sm:$0xff] }
 0x612   :  { %2623 = vmatpush2.msra.mxu0 %v9457_v52  ;;  %2694 = vmatpush2.msra.mxu1 %v9458_v55  ;;  %v9500_v52 = vld [vmem:[#allocation133_spill] sm:$0xff]  ;;  %v9501_v55 = vld [vmem:[#allocation134_spill] sm:$0xff] }
 0x613   :  { %2624 = vmatprep.subr.mxu0 %v9459_v56  ;;  %2695 = vmatprep.subr.mxu1 %v9460_v57  ;;  %v9502_v56 = vld [vmem:[#allocation135_spill] sm:$0xff]  ;;  %v9503_v57 = vld [vmem:[#allocation136_spill] sm:$0xff] }
 0x614   :  { %2625 = vmatpush2.msra.mxu0 %v9461_v11  ;;  %2696 = vmatpush2.msra.mxu1 %v9462_v12  ;;  %v9504_v11 = vld [vmem:[#allocation137_spill] sm:$0xff]  ;;  %v9505_v12 = vld [vmem:[#allocation138_spill] sm:$0xff] }
 0x615   :  { %2626 = vmatprep.subr.mxu0 %v9463_v8  ;;  %2697 = vmatprep.subr.mxu1 %v9464_v26  ;;  %v9506_v8 = vld [vmem:[#allocation139_spill] sm:$0xff]  ;;  %v9507_v26 = vld [vmem:[#allocation140_spill] sm:$0xff] }
 0x616   :  { %2627 = vmatpush2.msra.mxu0 %v9465_v53  ;;  %2698 = vmatpush2.msra.mxu1 %v9466_v39  ;;  %v9508_v53 = vld [vmem:[#allocation141_spill] sm:$0xff]  ;;  %v9509_v39 = vld [vmem:[#allocation142_spill] sm:$0xff] }
 0x617   :  { %2628 = vmatprep.subr.mxu0 %v9467_v61  ;;  %2699 = vmatprep.subr.mxu1 %v9468_v62  ;;  %v9510_v61 = vld [vmem:[#allocation143_spill] sm:$0xff]  ;;  %v9511_v62 = vld [vmem:[#allocation144_spill] sm:$0xff] }
 0x618   :  { %2629 = vmatpush2.msra.mxu0 %v9469_v20  ;;  %2700 = vmatpush2.msra.mxu1 %v9470_v21  ;;  %v9512_v20 = vld [vmem:[#allocation145_spill] sm:$0xff]  ;;  %v9513_v21 = vld [vmem:[#allocation146_spill] sm:$0xff] }
 0x619   :  { %2630 = vmatprep.subr.mxu0 %v9471_v45  ;;  %2701 = vmatprep.subr.mxu1 %v9472_v5  ;;  %v9514_v45 = vld [vmem:[#allocation147_spill] sm:$0xff] }
 0x61a   :  { %2631 = vmatpush2.msra.mxu0 %v9473_v9  ;;  %2702 = vmatpush2.msra.mxu1 %v9474_v48  ;;  %v7316_v5 = vld [vmem:[#allocation9 + $0x1e8] sm:$0xff]  ;;  %v7319_v9 = vld [vmem:[#allocation9 + $0x1f8] sm:$0xff] }
 0x61b   :  { %2632 = vmatprep.subr.mxu0 %v9475_v10  ;;  %2703 = vmatprep.subr.mxu1 %v9476_v18  ;;  %v9515_v10 = vld [vmem:[#allocation19_spill] sm:$0xff] }
 0x61c   :  { %2633 = vmatpush2.msra.mxu0 %v9477_v50  ;;  %2704 = vmatpush2.msra.mxu1 %v9478_v42 }
 0x61d   :  { %2634 = vmatprep.subr.mxu0 %v9479_v59  ;;  %2705 = vmatprep.subr.mxu1 %v9480_v58  ;;  %v9516_v59 = vld [vmem:[#allocation20_spill] sm:$0xff] }
 0x61e   :  { %2635 = vmatpush2.msra.mxu0 %v9481_v4  ;;  %2706 = vmatpush2.msra.mxu1 %v9482_v2 }
 0x61f   :  { %2636 = vmatprep.subr.mxu0 %v9483_v6  ;;  %2707 = vmatprep.subr.mxu1 %v9484_v63  ;;  %v9517_v6 = vld [vmem:[#allocation21_spill] sm:$0xff] }
 0x620   :  { %2637 = vmatpush2.msra.mxu0 %v9485_v7  ;;  %2708 = vmatpush2.msra.mxu1 %v9486_v60 }
 0x621   :  { %2638 = vmatprep.subr.mxu0 %v9487_v43  ;;  %2709 = vmatprep.subr.mxu1 %v9488_v1  ;;  %v9518_v1 = vld [vmem:[#allocation22_spill] sm:$0xff] }
 0x622   :  { %2639 = vmatpush2.msra.mxu0 %v9489_v22  ;;  %2710 = vmatpush2.msra.mxu1 %v9490_v23 }
 0x623   :  { %2640 = vmatprep.subr.mxu0 %v9491_v24  ;;  %2711 = vmatprep.subr.mxu1 %v9492_v28 }
 0x624   :  { %2641 = vmatpush2.msra.mxu0 %v9493_v32  ;;  %2712 = vmatpush2.msra.mxu1 %v9494_v40 }
 0x625   :  { %2642 = vmatprep.subr.mxu0 %v9495_v41  ;;  %2713 = vmatprep.subr.mxu1 %v9496_v46  ;;  %v9519_v46 = vld [vmem:[#allocation166_spill] sm:$0xff] }
 0x626   :  { %2643 = vmatpush2.msra.mxu0 %v9497_v47  ;;  %2714 = vmatpush2.msra.mxu1 %v9498_v49 }
 0x627   :  { %2644 = vmatprep.subr.mxu0 %v9499_v51  ;;  %2715 = vmatprep.subr.mxu1 %v9500_v52 }
 0x628   :  { %2645 = vmatpush2.msra.mxu0 %v9501_v55  ;;  %2716 = vmatpush2.msra.mxu1 %v9502_v56  ;;  %v9520_v56 = vld [vmem:[#allocation168_spill] sm:$0xff] }
 0x629   :  { %2646 = vmatprep.subr.mxu0 %v9503_v57  ;;  %2717 = vmatprep.subr.mxu1 %v9504_v11 }
 0x62a   :  { %2647 = vmatpush2.msra.mxu0 %v9505_v12  ;;  %2718 = vmatpush2.msra.mxu1 %v9506_v8 }
 0x62b   :  { %2648 = vmatprep.subr.mxu0 %v9507_v26  ;;  %2719 = vmatprep.subr.mxu1 %v9508_v53 }
 0x62c   :  { %2649 = vmatpush2.msra.mxu0 %v9509_v39  ;;  %2720 = vmatpush2.msra.mxu1 %v9510_v61  ;;  %v9521_v61 = vld [vmem:[#allocation167_spill] sm:$0xff] }
 0x62d   :  { %2650 = vmatprep.subr.mxu0 %v9511_v62  ;;  %2721 = vmatprep.subr.mxu1 %v9512_v20 }
 0x62e   :  { %2651 = vmatpush2.msra.mxu0 %v9513_v21  ;;  %2722 = vmatpush2.msra.mxu1 %v9514_v45  ;;  %v9522_v45 = vld [vmem:[#allocation169_spill] sm:$0xff] }
 0x62f   :  { %2765 = vmatprep.subr.mxu0 %v7316_v5  ;;  %2836 = vmatprep.subr.mxu1 %v7319_v9 }
 0x68d   :  { %v2302_v48 = vpop.f32.mrf.mxu0  ;;  %v2373_v2 = vpop.f32.mrf.mxu1 }
 0x68e   :  { %v2303_v18 = vadd.f32 %v2302_v48, %v9515_v10  ;;  %v2374_v63 = vadd.f32 %v2373_v2, %v9517_v6 }
 0x68f   :  { %v2304_v50 = vpop.f32.mrf.mxu0  ;;  %v2375_v7 = vpop.f32.mrf.mxu1 }
 0x690   :  { %v3627_v42 = vmul.f32 -1.442695, %v2303_v18  ;;  %v2305_v58 = vadd.f32 %v2304_v50, %v9516_v59  ;;  %v3629_v60 = vmul.f32 -1.442695, %v2374_v63  ;;  %v2376_v22 = vadd.f32 %v2375_v7, %v9518_v1 }
 0x692   :  { %3856 = vpow2.f32 %v3627_v42  ;;  %v3628_v4 = vmul.f32 -1.442695, %v2305_v58 }
 0x694   :  { %3858 = vpow2.f32 %v3628_v4 }
 0x695   :  { %3860 = vpow2.f32 %v3629_v60 }
 0x69f   :  { %v3857_v43 = vpop.eup %3856 }
 0x6a0   :  { %v2388_v23 = vadd.f32 1.0, %v3857_v43 }
 0x6a1   :  { %v3859_v24 = vpop.eup %3858 }
 0x6a2   :  { %3862 = vrcp.f32 %v2388_v23  ;;  %v2389_v28 = vadd.f32 1.0, %v3859_v24  ;;  %v3861_v32 = vpop.eup %3860 }
 0x6a3   :  { %3864 = vtanh.f32 %v2376_v22  ;;  %v2390_v11 = vadd.f32 1.0, %v3861_v32 }
 0x6a4   :  { %3866 = vrcp.f32 %v2389_v28 }
 0x6ae   :  { %v2479_v40 = vpop.f32.mrf.mxu0  ;;  %v2550_v39 = vpop.f32.mrf.mxu1 }
 0x6af   :  { %v3863_v41 = vpop.eup %3862  ;;  %v2555_v47 = vadd.f32 %v2479_v40, %v9519_v46  ;;  %v2557_v62 = vadd.f32 %v2550_v39, %v9521_v61  ;;  %v7417_v46 = vld [vmem:[#allocation9 + $0xd0] sm:$0xff]  ;;  %v7456_v61 = vld [vmem:[#allocation9 + $0x48] sm:$0xff] }
 0x6b0   :  { %v3865_v49 = vpop.eup %3864  ;;  %v2481_v51 = vpop.f32.mrf.mxu0  ;;  %v7453_v39 = vld [vmem:[#allocation9 + $0x70] sm:$0xff] }
 0x6b1   :  { %v3867_v52 = vpop.eup %3866  ;;  %v3630_v55 = vmul.f32 -1.442695, %v2555_v47  ;;  %v2556_v57 = vadd.f32 %v2481_v51, %v9520_v56  ;;  %v2399_v8 = vmul.f32 %v3865_v49, %v3863_v41  ;;  %v2552_v20 = vpop.f32.mrf.mxu1  ;;  %v3632_v21 = vmul.f32 -1.442695, %v2557_v62  ;;  %v7420_v47 = vld [vmem:[#allocation9 + $0xa8] sm:$0xff]  ;;  %v7423_v49 = vld [vmem:[#allocation9 + $0xb8] sm:$0xff] }
 0x6b2   :  { %v2398_v12 = vmul.f32 %v3867_v52, %v7073_v31  ;;  %v2558_v48 = vadd.f32 %v2552_v20, %v9522_v45  ;;  %v7426_v51 = vld [vmem:[#allocation9 + $0xa0] sm:$0xff]  ;;  %v7429_v52 = vld [vmem:[#allocation9 + $0xb0] sm:$0xff]  ;;  %v7435_v56 = vld [vmem:[#allocation9 + $0x98] sm:$0xff] }
 0x6b3   :  { %3868 = vpow2.f32 %v3630_v55  ;;  %v3631_v26 = vmul.f32 -1.442695, %v2556_v57  ;;  %v7432_v55 = vld [vmem:[#allocation9 + $0x88] sm:$0xff]  ;;  %v7438_v57 = vld [vmem:[#allocation9 + $0x80] sm:$0xff]  ;;  %v7459_v62 = vld [vmem:[#allocation9 + $0x58] sm:$0xff] }
 0x6b4   :  { %v7329_v53 = vadd.f32 %v2399_v8, %v2398_v12  ;;  %v7444_v12 = vld [vmem:[#allocation9 + $0x68] sm:$0xff]  ;;  %v7447_v8 = vld [vmem:[#allocation9 + $0x78] sm:$0xff]  ;;  %v7462_v20 = vld [vmem:[#allocation9 + $0x40] sm:$0xff] }
 0x6b5   :  { %3870 = vpow2.f32 %v3631_v26  ;;  %v7450_v26 = vld [vmem:[#allocation9 + $0x60] sm:$0xff]  ;;  %v7468_v45 = vld [vmem:[#allocation9 + $0x28] sm:$0xff] }
 0x6b6   :  { %3872 = vrcp.f32 %v2390_v11  ;;  %v7441_v11 = vld [vmem:[#allocation9 + $0x90] sm:$0xff] }
 0x6b7   :  { %3874 = vtanh.f32 %v7329_v53 }
 0x6b8   :  { %3876 = vpow2.f32 %v3632_v21  ;;  %v7465_v21 = vld [vmem:[#allocation9 + $0x50] sm:$0xff] }
 0x6b9   :  { %3878 = vtanh.f32 %v2558_v48  ;;  %v7471_v48 = vld [vmem:[#allocation9 + $0x38] sm:$0xff] }
 0x6c0   :  { %v3869_v18 = vpop.eup %3868 }
 0x6c1   :  { %v2569_v50 = vadd.f32 1.0, %v3869_v18  ;;  %v7474_v18 = vld [vmem:[#allocation9 + $0x20] sm:$0xff] }
 0x6c2   :  { %v3871_v31 = vpop.eup %3870 }
 0x6c3   :  { %v3873_v42 = vpop.eup %3872  ;;  %3880 = vrcp.f32 %v2569_v50  ;;  %v2570_v58 = vadd.f32 1.0, %v3871_v31  ;;  %v7477_v50 = vld [vmem:[#allocation9 + $0x30] sm:$0xff]  ;;  %v7480_v31 = vld [vmem:[#allocation9 + $0x8] sm:$0xff] }
 0x6c4   :  { %v3875_v4 = vpop.eup %3874 }
 0x6c5   :  { %3882 = vrcp.f32 %v2570_v58  ;;  %v2402_v2 = vmul.f32 %v3875_v4, %v3873_v42  ;;  %v3877_v63 = vpop.eup %3876  ;;  %v7483_v42 = vld [vmem:[#allocation9 + $0x18] sm:$0xff]  ;;  %v7486_v58 = vld [vmem:[#allocation9] sm:$0xff]  ;;  %v7490_v4 = vld [vmem:[#allocation9 + $0x10] sm:$0xff] }
 0x6c6   :  { %v3879_v7 = vpop.eup %3878  ;;  %v2571_v23 = vadd.f32 1.0, %v3877_v63  ;;  %9523 = vst [vmem:[#allocation148_spill] sm:$0xff] %v7486_v58  ;;  %9524 = vst [vmem:[#allocation149_spill] sm:$0xff] %v7490_v4  ;;  %v7499_v63 = vld [vmem:[#allocation11 + $0x1f8] sm:$0xff] }
 0x6c7   :  { %2652 = vmatprep.mubr.f32.mxu0 %v2402_v2  ;;  %2723 = vmatprep.mubr.f32.mxu1 %v2402_v2  ;;  %v7496_v2 = vld [vmem:[#allocation11 + $0x1e8] sm:$0xff]  ;;  %9526 = vst [vmem:[#allocation152_spill] sm:$0xff] %v7499_v63 }
 0x6c8   :  { %3884 = vrcp.f32 %v2571_v23  ;;  %9525 = vst [vmem:[#allocation150_spill] sm:$0xff] %v7496_v2  ;;  %v7514_v23 = vld [vmem:[#allocation11 + $0x1c0] sm:$0xff] }
 0x6c9   :  { %9531 = vst [vmem:[#allocation161_spill] sm:$0xff] %v7514_v23 }
 0x6d0   :  { %v3881_v60 = vpop.eup %3880 }
 0x6d1   :  { %v2580_v43 = vmul.f32 %v3881_v60, %v3879_v7  ;;  %v7502_v7 = vld [vmem:[#allocation11 + $0x1e0] sm:$0xff]  ;;  %v7505_v60 = vld [vmem:[#allocation11 + $0x1f0] sm:$0xff] }
 0x6d2   :  { %v3883_v22 = vpop.eup %3882  ;;  %9527 = vst [vmem:[#allocation151_spill] sm:$0xff] %v7502_v7  ;;  %9528 = vst [vmem:[#allocation158_spill] sm:$0xff] %v7505_v60 }
 0x6d3   :  { %v2579_v24 = vmul.f32 %v3883_v22, %v7079_v27  ;;  %v7360_v27 = vld [vmem:[#allocation9 + $0x148] sm:$0xff]  ;;  %v7511_v22 = vld [vmem:[#allocation11 + $0x1d8] sm:$0xff] }
 0x6d4   :  { %9530 = vst [vmem:[#allocation159_spill] sm:$0xff] %v7511_v22 }
 0x6d5   :  { %v7335_v28 = vadd.f32 %v2580_v43, %v2579_v24  ;;  %v3885_v32 = vpop.eup %3884  ;;  %v7508_v43 = vld [vmem:[#allocation11 + $0x1c8] sm:$0xff]  ;;  %v7517_v24 = vld [vmem:[#allocation11 + $0x1d0] sm:$0xff] }
 0x6d6   :  { %9529 = vst [vmem:[#allocation160_spill] sm:$0xff] %v7508_v43  ;;  %9532 = vst [vmem:[#allocation162_spill] sm:$0xff] %v7517_v24 }
 0x6d7   :  { %3886 = vtanh.f32 %v7335_v28 }
 0x6e4   :  { %v3887_v40 = vpop.eup %3886 }
 0x6e5   :  { %v7338_v41 = vmul.f32 %v3887_v40, %v3885_v32  ;;  %v7520_v32 = vld [vmem:[#allocation11 + $0x1a8] sm:$0xff]  ;;  %v7523_v40 = vld [vmem:[#allocation11 + $0x1b8] sm:$0xff] }
 0x6e6   :  { %9533 = vst [vmem:[#allocation164_spill] sm:$0xff] %v7520_v32  ;;  %9534 = vst [vmem:[#allocation163_spill] sm:$0xff] %v7523_v40 }
 0x6e7   :  { %2653 = vmatmul.mubr.f32.vlgmr.msra.gmra.mxu0 %v7338_v41  ;;  %2724 = vmatmul.mubr.f32.vlgmr.msra.gmra.mxu1 %v7338_v41 }
 0x6e8   :  { %2766 = vmatpush1.msra.mxu0 %v7086_v38  ;;  %2837 = vmatpush1.msra.mxu1 %v7089_v13  ;;  %v7363_v38 = vld [vmem:[#allocation9 + $0x158] sm:$0xff]  ;;  %v7366_v13 = vld [vmem:[#allocation9 + $0x140] sm:$0xff] }
 0x6e9   :  { %2767 = vmatprep.subr.mxu0 %v7092_v15  ;;  %2838 = vmatprep.subr.mxu1 %v7095_v0  ;;  %v7369_v15 = vld [vmem:[#allocation9 + $0x150] sm:$0xff]  ;;  %v7372_v0 = vld [vmem:[#allocation9 + $0x128] sm:$0xff] }
 0x6ea   :  { %2768 = vmatpush1.msra.mxu0 %v7098_v16  ;;  %2839 = vmatpush1.msra.mxu1 %v7101_v54  ;;  %v7375_v16 = vld [vmem:[#allocation9 + $0x138] sm:$0xff]  ;;  %v7378_v54 = vld [vmem:[#allocation9 + $0x120] sm:$0xff] }
 0x6eb   :  { %2769 = vmatprep.subr.mxu0 %v7104_v33  ;;  %2840 = vmatprep.subr.mxu1 %v7107_v19  ;;  %v7381_v33 = vld [vmem:[#allocation9 + $0x130] sm:$0xff]  ;;  %v7384_v19 = vld [vmem:[#allocation9 + $0x108] sm:$0xff] }
 0x6ec   :  { %2770 = vmatpush1.msra.mxu0 %v7110_v35  ;;  %2841 = vmatpush1.msra.mxu1 %v7113_v36  ;;  %v7387_v35 = vld [vmem:[#allocation9 + $0x118] sm:$0xff]  ;;  %v7390_v36 = vld [vmem:[#allocation9 + $0x100] sm:$0xff] }
 0x6ed   :  { %2771 = vmatprep.subr.mxu0 %v7116_v17  ;;  %2842 = vmatprep.subr.mxu1 %v7119_v37  ;;  %v7393_v17 = vld [vmem:[#allocation9 + $0x110] sm:$0xff]  ;;  %v7396_v37 = vld [vmem:[#allocation9 + $0xe8] sm:$0xff] }
 0x6ee   :  { %2772 = vmatpush1.msra.mxu0 %v7122_v14  ;;  %2843 = vmatpush1.msra.mxu1 %v7125_v30  ;;  %v7399_v14 = vld [vmem:[#allocation9 + $0xf8] sm:$0xff]  ;;  %v7402_v30 = vld [vmem:[#allocation9 + $0xe0] sm:$0xff] }
 0x6ef   :  { %2773 = vmatprep.subr.mxu0 %v7128_v44  ;;  %2844 = vmatprep.subr.mxu1 %v7131_v25  ;;  %v7405_v44 = vld [vmem:[#allocation9 + $0xf0] sm:$0xff]  ;;  %v7408_v25 = vld [vmem:[#allocation9 + $0xc8] sm:$0xff] }
 0x6f0   :  { %2774 = vmatpush1.msra.mxu0 %v7134_v34  ;;  %2845 = vmatpush1.msra.mxu1 %v7137_v29  ;;  %v7411_v34 = vld [vmem:[#allocation9 + $0xd8] sm:$0xff]  ;;  %v7414_v29 = vld [vmem:[#allocation9 + $0xc0] sm:$0xff] }
 0x6f1   :  { %2775 = vmatprep.subr.mxu0 %v7360_v27  ;;  %2846 = vmatprep.subr.mxu1 %v7363_v38 }
 0x6f2   :  { %2776 = vmatpush1.msra.mxu0 %v7366_v13  ;;  %2847 = vmatpush1.msra.mxu1 %v7369_v15 }
 0x6f3   :  { %2777 = vmatprep.subr.mxu0 %v7372_v0  ;;  %2848 = vmatprep.subr.mxu1 %v7375_v16 }
 0x6f4   :  { %2778 = vmatpush1.msra.mxu0 %v7378_v54  ;;  %2849 = vmatpush1.msra.mxu1 %v7381_v33 }
 0x6f5   :  { %2779 = vmatprep.subr.mxu0 %v7384_v19  ;;  %2850 = vmatprep.subr.mxu1 %v7387_v35 }
 0x6f6   :  { %2780 = vmatpush1.msra.mxu0 %v7390_v36  ;;  %2851 = vmatpush1.msra.mxu1 %v7393_v17 }
 0x6f7   :  { %2781 = vmatprep.subr.mxu0 %v7396_v37  ;;  %2852 = vmatprep.subr.mxu1 %v7399_v14 }
 0x6f8   :  { %2782 = vmatpush1.msra.mxu0 %v7402_v30  ;;  %2853 = vmatpush1.msra.mxu1 %v7405_v44 }
 0x6f9   :  { %2783 = vmatprep.subr.mxu0 %v7408_v25  ;;  %2854 = vmatprep.subr.mxu1 %v7411_v34 }
 0x6fa   :  { %2784 = vmatpush1.msra.mxu0 %v7414_v29  ;;  %2855 = vmatpush1.msra.mxu1 %v7417_v46 }
 0x6fb   :  { %2785 = vmatprep.subr.mxu0 %v7420_v47  ;;  %2856 = vmatprep.subr.mxu1 %v7423_v49 }
 0x6fc   :  { %2786 = vmatpush1.msra.mxu0 %v7426_v51  ;;  %2857 = vmatpush1.msra.mxu1 %v7429_v52 }
 0x6fd   :  { %2787 = vmatprep.subr.mxu0 %v7432_v55  ;;  %2858 = vmatprep.subr.mxu1 %v7435_v56 }
 0x6fe   :  { %2788 = vmatpush1.msra.mxu0 %v7438_v57  ;;  %2859 = vmatpush1.msra.mxu1 %v7441_v11 }
 0x6ff   :  { %2789 = vmatprep.subr.mxu0 %v7444_v12  ;;  %2860 = vmatprep.subr.mxu1 %v7447_v8 }
 0x700   :  { %2790 = vmatpush1.msra.mxu0 %v7450_v26  ;;  %2861 = vmatpush1.msra.mxu1 %v7453_v39 }
 0x701   :  { %2791 = vmatprep.subr.mxu0 %v7456_v61  ;;  %2862 = vmatprep.subr.mxu1 %v7459_v62 }
 0x702   :  { %2792 = vmatpush1.msra.mxu0 %v7462_v20  ;;  %2863 = vmatpush1.msra.mxu1 %v7465_v21 }
 0x703   :  { %2793 = vmatprep.subr.mxu0 %v7468_v45  ;;  %2864 = vmatprep.subr.mxu1 %v7471_v48 }
 0x704   :  { %2794 = vmatpush1.msra.mxu0 %v7474_v18  ;;  %2865 = vmatpush1.msra.mxu1 %v7477_v50 }
 0x705   :  { %2795 = vmatprep.subr.mxu0 %v7480_v31  ;;  %2866 = vmatprep.subr.mxu1 %v7483_v42 }
 0x706   :  { %2796 = vmatpush1.msra.mxu0 %v7486_v58  ;;  %2829 = vmatprep.mubr.f32.mxu0 %v9385_v3 }
 0x707   :  { %2867 = vmatpush1.msra.mxu1 %v7490_v4  ;;  %2900 = vmatprep.mubr.f32.mxu1 %v9385_v3 }
 0x708   :  { %2830 = vmatmul.mubr.f32.vlgmr.msra.gmra.mxu0 %v7338_v41  ;;  %2901 = vmatmul.mubr.f32.vlgmr.msra.gmra.mxu1 %v7338_v41  ;;  %v7526_v41 = vld [vmem:[#allocation11 + $0x1a0] sm:$0xff] }
 0x709   :  { %2940 = vmatprep.subr.mxu0 %v7496_v2  ;;  %3011 = vmatprep.subr.mxu1 %v7499_v63  ;;  %9535 = vst [vmem:[#allocation165_spill] sm:$0xff] %v7526_v41 }
 0x70a   :  { %2941 = vmatpush1.msra.mxu0 %v7502_v7  ;;  %3012 = vmatpush1.msra.mxu1 %v7505_v60 }
 0x70b   :  { %2942 = vmatprep.subr.mxu0 %v7508_v43  ;;  %3013 = vmatprep.subr.mxu1 %v7511_v22  ;;  %v7529_v22 = vld [vmem:[#allocation11 + $0x1b0] sm:$0xff] }
 0x70c   :  { %2943 = vmatpush1.msra.mxu0 %v7514_v23  ;;  %3014 = vmatpush1.msra.mxu1 %v7517_v24  ;;  %9536 = vst [vmem:[#allocation153_spill] sm:$0xff] %v7529_v22  ;;  %v7532_v23 = vld [vmem:[#allocation11 + $0x188] sm:$0xff]  ;;  %v7535_v24 = vld [vmem:[#allocation11 + $0x198] sm:$0xff] }
 0x70d   :  { %2944 = vmatprep.subr.mxu0 %v7520_v32  ;;  %3015 = vmatprep.subr.mxu1 %v7523_v40  ;;  %9537 = vst [vmem:[#allocation154_spill] sm:$0xff] %v7532_v23  ;;  %9538 = vst [vmem:[#allocation156_spill] sm:$0xff] %v7535_v24  ;;  %v7538_v32 = vld [vmem:[#allocation11 + $0x180] sm:$0xff]  ;;  %v7541_v40 = vld [vmem:[#allocation11 + $0x190] sm:$0xff] }
 0x70e   :  { %2945 = vmatpush1.msra.mxu0 %v7526_v41  ;;  %3016 = vmatpush1.msra.mxu1 %v7529_v22  ;;  %9539 = vst [vmem:[#allocation155_spill] sm:$0xff] %v7538_v32  ;;  %9540 = vst [vmem:[#allocation157_spill] sm:$0xff] %v7541_v40  ;;  %v7544_v41 = vld [vmem:[#allocation11 + $0x168] sm:$0xff]  ;;  %v7547_v22 = vld [vmem:[#allocation11 + $0x178] sm:$0xff] }
 0x70f   :  { %2946 = vmatprep.subr.mxu0 %v7532_v23  ;;  %3017 = vmatprep.subr.mxu1 %v7535_v24  ;;  %9541 = vst [vmem:[#allocation23_spill] sm:$0xff] %v7544_v41  ;;  %9542 = vst [vmem:[#allocation24_spill] sm:$0xff] %v7547_v22  ;;  %v7550_v23 = vld [vmem:[#allocation11 + $0x160] sm:$0xff]  ;;  %v7553_v24 = vld [vmem:[#allocation11 + $0x170] sm:$0xff] }
 0x710   :  { %2947 = vmatpush1.msra.mxu0 %v7538_v32  ;;  %3018 = vmatpush1.msra.mxu1 %v7541_v40  ;;  %9543 = vst [vmem:[#allocation25_spill] sm:$0xff] %v7550_v23  ;;  %9544 = vst [vmem:[#allocation26_spill] sm:$0xff] %v7553_v24  ;;  %v7556_v32 = vld [vmem:[#allocation11 + $0x148] sm:$0xff]  ;;  %v7559_v40 = vld [vmem:[#allocation11 + $0x158] sm:$0xff] }
 0x711   :  { %2948 = vmatprep.subr.mxu0 %v7544_v41  ;;  %3019 = vmatprep.subr.mxu1 %v7547_v22  ;;  %9545 = vst [vmem:[#allocation27_spill] sm:$0xff] %v7556_v32  ;;  %9546 = vst [vmem:[#allocation28_spill] sm:$0xff] %v7559_v40  ;;  %v7562_v41 = vld [vmem:[#allocation11 + $0x140] sm:$0xff]  ;;  %v7565_v22 = vld [vmem:[#allocation11 + $0x150] sm:$0xff] }
 0x712   :  { %2949 = vmatpush1.msra.mxu0 %v7550_v23  ;;  %3020 = vmatpush1.msra.mxu1 %v7553_v24  ;;  %9547 = vst [vmem:[#allocation29_spill] sm:$0xff] %v7562_v41  ;;  %9548 = vst [vmem:[#allocation30_spill] sm:$0xff] %v7565_v22  ;;  %v7568_v23 = vld [vmem:[#allocation11 + $0x128] sm:$0xff]  ;;  %v7571_v24 = vld [vmem:[#allocation11 + $0x138] sm:$0xff] }
 0x713   :  { %2950 = vmatprep.subr.mxu0 %v7556_v32  ;;  %3021 = vmatprep.subr.mxu1 %v7559_v40  ;;  %9549 = vst [vmem:[#allocation31_spill] sm:$0xff] %v7568_v23  ;;  %9550 = vst [vmem:[#allocation32_spill] sm:$0xff] %v7571_v24  ;;  %v7574_v32 = vld [vmem:[#allocation11 + $0x120] sm:$0xff]  ;;  %v7577_v40 = vld [vmem:[#allocation11 + $0x130] sm:$0xff] }
 0x714   :  { %2951 = vmatpush1.msra.mxu0 %v7562_v41  ;;  %3022 = vmatpush1.msra.mxu1 %v7565_v22  ;;  %9551 = vst [vmem:[#allocation33_spill] sm:$0xff] %v7574_v32  ;;  %9552 = vst [vmem:[#allocation34_spill] sm:$0xff] %v7577_v40  ;;  %v7580_v41 = vld [vmem:[#allocation11 + $0x108] sm:$0xff]  ;;  %v7583_v22 = vld [vmem:[#allocation11 + $0x118] sm:$0xff] }
 0x715   :  { %2952 = vmatprep.subr.mxu0 %v7568_v23  ;;  %3023 = vmatprep.subr.mxu1 %v7571_v24  ;;  %9553 = vst [vmem:[#allocation35_spill] sm:$0xff] %v7580_v41  ;;  %9554 = vst [vmem:[#allocation36_spill] sm:$0xff] %v7583_v22  ;;  %v7586_v23 = vld [vmem:[#allocation11 + $0x100] sm:$0xff]  ;;  %v7589_v24 = vld [vmem:[#allocation11 + $0x110] sm:$0xff] }
 0x716   :  { %2953 = vmatpush1.msra.mxu0 %v7574_v32  ;;  %3024 = vmatpush1.msra.mxu1 %v7577_v40  ;;  %9555 = vst [vmem:[#allocation37_spill] sm:$0xff] %v7586_v23  ;;  %9556 = vst [vmem:[#allocation38_spill] sm:$0xff] %v7589_v24  ;;  %v7592_v32 = vld [vmem:[#allocation11 + $0xe8] sm:$0xff]  ;;  %v7595_v40 = vld [vmem:[#allocation11 + $0xf8] sm:$0xff] }
 0x717   :  { %2954 = vmatprep.subr.mxu0 %v7580_v41  ;;  %3025 = vmatprep.subr.mxu1 %v7583_v22  ;;  %9557 = vst [vmem:[#allocation39_spill] sm:$0xff] %v7592_v32  ;;  %9558 = vst [vmem:[#allocation40_spill] sm:$0xff] %v7595_v40  ;;  %v7598_v41 = vld [vmem:[#allocation11 + $0xe0] sm:$0xff]  ;;  %v7601_v22 = vld [vmem:[#allocation11 + $0xf0] sm:$0xff] }
 0x718   :  { %2955 = vmatpush1.msra.mxu0 %v7586_v23  ;;  %3026 = vmatpush1.msra.mxu1 %v7589_v24  ;;  %9559 = vst [vmem:[#allocation41_spill] sm:$0xff] %v7598_v41  ;;  %9560 = vst [vmem:[#allocation42_spill] sm:$0xff] %v7601_v22  ;;  %v7604_v23 = vld [vmem:[#allocation11 + $0xc8] sm:$0xff]  ;;  %v7607_v24 = vld [vmem:[#allocation11 + $0xd8] sm:$0xff] }
 0x719   :  { %2956 = vmatprep.subr.mxu0 %v7592_v32  ;;  %3027 = vmatprep.subr.mxu1 %v7595_v40  ;;  %9561 = vst [vmem:[#allocation43_spill] sm:$0xff] %v7604_v23  ;;  %9562 = vst [vmem:[#allocation44_spill] sm:$0xff] %v7607_v24  ;;  %v7610_v32 = vld [vmem:[#allocation11 + $0xc0] sm:$0xff]  ;;  %v7613_v40 = vld [vmem:[#allocation11 + $0xd0] sm:$0xff] }
 0x71a   :  { %2957 = vmatpush1.msra.mxu0 %v7598_v41  ;;  %3028 = vmatpush1.msra.mxu1 %v7601_v22  ;;  %9563 = vst [vmem:[#allocation45_spill] sm:$0xff] %v7610_v32  ;;  %9564 = vst [vmem:[#allocation46_spill] sm:$0xff] %v7613_v40  ;;  %v7616_v41 = vld [vmem:[#allocation11 + $0xa8] sm:$0xff]  ;;  %v7619_v22 = vld [vmem:[#allocation11 + $0xb8] sm:$0xff] }
 0x71b   :  { %2958 = vmatprep.subr.mxu0 %v7604_v23  ;;  %3029 = vmatprep.subr.mxu1 %v7607_v24  ;;  %9565 = vst [vmem:[#allocation47_spill] sm:$0xff] %v7616_v41  ;;  %9566 = vst [vmem:[#allocation48_spill] sm:$0xff] %v7619_v22  ;;  %v7622_v23 = vld [vmem:[#allocation11 + $0xa0] sm:$0xff]  ;;  %v7625_v24 = vld [vmem:[#allocation11 + $0xb0] sm:$0xff] }
 0x71c   :  { %2959 = vmatpush1.msra.mxu0 %v7610_v32  ;;  %3030 = vmatpush1.msra.mxu1 %v7613_v40  ;;  %9567 = vst [vmem:[#allocation49_spill] sm:$0xff] %v7622_v23  ;;  %9568 = vst [vmem:[#allocation50_spill] sm:$0xff] %v7625_v24  ;;  %v7628_v32 = vld [vmem:[#allocation11 + $0x88] sm:$0xff]  ;;  %v7631_v40 = vld [vmem:[#allocation11 + $0x98] sm:$0xff] }
 0x71d   :  { %2960 = vmatprep.subr.mxu0 %v7616_v41  ;;  %3031 = vmatprep.subr.mxu1 %v7619_v22  ;;  %9569 = vst [vmem:[#allocation51_spill] sm:$0xff] %v7628_v32  ;;  %9570 = vst [vmem:[#allocation52_spill] sm:$0xff] %v7631_v40  ;;  %v7634_v41 = vld [vmem:[#allocation11 + $0x80] sm:$0xff]  ;;  %v7637_v22 = vld [vmem:[#allocation11 + $0x90] sm:$0xff] }
 0x71e   :  { %2961 = vmatpush1.msra.mxu0 %v7622_v23  ;;  %3032 = vmatpush1.msra.mxu1 %v7625_v24  ;;  %9571 = vst [vmem:[#allocation53_spill] sm:$0xff] %v7634_v41  ;;  %9572 = vst [vmem:[#allocation54_spill] sm:$0xff] %v7637_v22  ;;  %v7640_v23 = vld [vmem:[#allocation11 + $0x68] sm:$0xff]  ;;  %v7643_v24 = vld [vmem:[#allocation11 + $0x78] sm:$0xff] }
 0x71f   :  { %2962 = vmatprep.subr.mxu0 %v7628_v32  ;;  %3033 = vmatprep.subr.mxu1 %v7631_v40  ;;  %9573 = vst [vmem:[#allocation55_spill] sm:$0xff] %v7640_v23  ;;  %9574 = vst [vmem:[#allocation56_spill] sm:$0xff] %v7643_v24  ;;  %v7646_v32 = vld [vmem:[#allocation11 + $0x60] sm:$0xff]  ;;  %v7649_v40 = vld [vmem:[#allocation11 + $0x70] sm:$0xff] }
 0x720   :  { %2963 = vmatpush1.msra.mxu0 %v7634_v41  ;;  %3034 = vmatpush1.msra.mxu1 %v7637_v22  ;;  %9575 = vst [vmem:[#allocation57_spill] sm:$0xff] %v7646_v32  ;;  %9576 = vst [vmem:[#allocation58_spill] sm:$0xff] %v7649_v40  ;;  %v7652_v41 = vld [vmem:[#allocation11 + $0x48] sm:$0xff]  ;;  %v7655_v22 = vld [vmem:[#allocation11 + $0x58] sm:$0xff] }
 0x721   :  { %2964 = vmatprep.subr.mxu0 %v7640_v23  ;;  %3035 = vmatprep.subr.mxu1 %v7643_v24  ;;  %9577 = vst [vmem:[#allocation59_spill] sm:$0xff] %v7652_v41  ;;  %9578 = vst [vmem:[#allocation60_spill] sm:$0xff] %v7655_v22  ;;  %v7658_v23 = vld [vmem:[#allocation11 + $0x40] sm:$0xff]  ;;  %v7661_v24 = vld [vmem:[#allocation11 + $0x50] sm:$0xff] }
 0x722   :  { %2965 = vmatpush1.msra.mxu0 %v7646_v32  ;;  %3036 = vmatpush1.msra.mxu1 %v7649_v40  ;;  %9579 = vst [vmem:[#allocation61_spill] sm:$0xff] %v7658_v23  ;;  %9580 = vst [vmem:[#allocation62_spill] sm:$0xff] %v7661_v24  ;;  %v7664_v32 = vld [vmem:[#allocation11 + $0x28] sm:$0xff]  ;;  %v7667_v40 = vld [vmem:[#allocation11 + $0x38] sm:$0xff] }
 0x723   :  { %2966 = vmatprep.subr.mxu0 %v7652_v41  ;;  %3037 = vmatprep.subr.mxu1 %v7655_v22  ;;  %9581 = vst [vmem:[#allocation63_spill] sm:$0xff] %v7664_v32  ;;  %9582 = vst [vmem:[#allocation64_spill] sm:$0xff] %v7667_v40  ;;  %v7670_v41 = vld [vmem:[#allocation11 + $0x20] sm:$0xff]  ;;  %v7673_v22 = vld [vmem:[#allocation11 + $0x30] sm:$0xff] }
 0x724   :  { %2967 = vmatpush1.msra.mxu0 %v7658_v23  ;;  %3038 = vmatpush1.msra.mxu1 %v7661_v24  ;;  %9583 = vst [vmem:[#allocation65_spill] sm:$0xff] %v7670_v41  ;;  %9584 = vst [vmem:[#allocation66_spill] sm:$0xff] %v7673_v22  ;;  %v7676_v23 = vld [vmem:[#allocation11 + $0x8] sm:$0xff]  ;;  %v7679_v24 = vld [vmem:[#allocation11 + $0x18] sm:$0xff] }
 0x725   :  { %2968 = vmatprep.subr.mxu0 %v7664_v32  ;;  %3039 = vmatprep.subr.mxu1 %v7667_v40  ;;  %9585 = vst [vmem:[#allocation67_spill] sm:$0xff] %v7676_v23  ;;  %9586 = vst [vmem:[#allocation68_spill] sm:$0xff] %v7679_v24  ;;  %v7682_v32 = vld [vmem:[#allocation11] sm:$0xff]  ;;  %v7685_v40 = vld [vmem:[#allocation11 + $0x10] sm:$0xff] }
 0x726   :  { %2969 = vmatpush1.msra.mxu0 %v7670_v41  ;;  %3040 = vmatpush1.msra.mxu1 %v7673_v22  ;;  %9587 = vst [vmem:[#allocation69_spill] sm:$0xff] %v7682_v32  ;;  %9588 = vst [vmem:[#allocation70_spill] sm:$0xff] %v7685_v40  ;;  %v7688_v41 = vld [vmem:[#allocation11 + $0x3e8] sm:$0xff]  ;;  %v7691_v22 = vld [vmem:[#allocation11 + $0x3f8] sm:$0xff] }
 0x727   :  { %2970 = vmatprep.subr.mxu0 %v7676_v23  ;;  %3041 = vmatprep.subr.mxu1 %v7679_v24  ;;  %9589 = vst [vmem:[#allocation71_spill] sm:$0xff] %v7688_v41  ;;  %9590 = vst [vmem:[#allocation72_spill] sm:$0xff] %v7691_v22  ;;  %v7694_v23 = vld [vmem:[#allocation11 + $0x3e0] sm:$0xff]  ;;  %v7697_v24 = vld [vmem:[#allocation11 + $0x3f0] sm:$0xff] }
 0x728   :  { %2971 = vmatpush1.msra.mxu0 %v7682_v32  ;;  %3042 = vmatpush1.msra.mxu1 %v7685_v40  ;;  %9591 = vst [vmem:[#allocation73_spill] sm:$0xff] %v7694_v23  ;;  %9592 = vst [vmem:[#allocation74_spill] sm:$0xff] %v7697_v24  ;;  %v7700_v32 = vld [vmem:[#allocation11 + $0x3c8] sm:$0xff]  ;;  %v7703_v40 = vld [vmem:[#allocation11 + $0x3d8] sm:$0xff] }
 0x729   :  { %2972 = vmatprep.subr.mxu0 %v7688_v41  ;;  %3043 = vmatprep.subr.mxu1 %v7691_v22  ;;  %9593 = vst [vmem:[#allocation75_spill] sm:$0xff] %v7700_v32  ;;  %9594 = vst [vmem:[#allocation76_spill] sm:$0xff] %v7703_v40  ;;  %v7706_v41 = vld [vmem:[#allocation11 + $0x3c0] sm:$0xff]  ;;  %v7709_v22 = vld [vmem:[#allocation11 + $0x3d0] sm:$0xff] }
 0x72a   :  { %2973 = vmatpush2.msra.mxu0 %v7694_v23  ;;  %3044 = vmatpush2.msra.mxu1 %v7697_v24  ;;  %9595 = vst [vmem:[#allocation77_spill] sm:$0xff] %v7706_v41  ;;  %9596 = vst [vmem:[#allocation78_spill] sm:$0xff] %v7709_v22  ;;  %v7712_v23 = vld [vmem:[#allocation11 + $0x3a8] sm:$0xff]  ;;  %v7715_v24 = vld [vmem:[#allocation11 + $0x3b8] sm:$0xff] }
 0x72b   :  { %2974 = vmatprep.subr.mxu0 %v7700_v32  ;;  %3045 = vmatprep.subr.mxu1 %v7703_v40  ;;  %9597 = vst [vmem:[#allocation79_spill] sm:$0xff] %v7712_v23  ;;  %9598 = vst [vmem:[#allocation80_spill] sm:$0xff] %v7715_v24  ;;  %v7718_v32 = vld [vmem:[#allocation11 + $0x3a0] sm:$0xff]  ;;  %v7721_v40 = vld [vmem:[#allocation11 + $0x3b0] sm:$0xff] }
 0x72c   :  { %2975 = vmatpush2.msra.mxu0 %v7706_v41  ;;  %3046 = vmatpush2.msra.mxu1 %v7709_v22  ;;  %9599 = vst [vmem:[#allocation81_spill] sm:$0xff] %v7718_v32  ;;  %9600 = vst [vmem:[#allocation82_spill] sm:$0xff] %v7721_v40  ;;  %v7724_v41 = vld [vmem:[#allocation11 + $0x388] sm:$0xff]  ;;  %v7727_v22 = vld [vmem:[#allocation11 + $0x398] sm:$0xff] }
 0x72d   :  { %2976 = vmatprep.subr.mxu0 %v7712_v23  ;;  %3047 = vmatprep.subr.mxu1 %v7715_v24  ;;  %9601 = vst [vmem:[#allocation83_spill] sm:$0xff] %v7724_v41  ;;  %9602 = vst [vmem:[#allocation84_spill] sm:$0xff] %v7727_v22  ;;  %v7730_v23 = vld [vmem:[#allocation11 + $0x380] sm:$0xff]  ;;  %v7733_v24 = vld [vmem:[#allocation11 + $0x390] sm:$0xff] }
 0x72e   :  { %2977 = vmatpush2.msra.mxu0 %v7718_v32  ;;  %3048 = vmatpush2.msra.mxu1 %v7721_v40  ;;  %9603 = vst [vmem:[#allocation85_spill] sm:$0xff] %v7730_v23  ;;  %9604 = vst [vmem:[#allocation86_spill] sm:$0xff] %v7733_v24  ;;  %v7736_v32 = vld [vmem:[#allocation11 + $0x368] sm:$0xff]  ;;  %v7739_v40 = vld [vmem:[#allocation11 + $0x378] sm:$0xff] }
 0x72f   :  { %2978 = vmatprep.subr.mxu0 %v7724_v41  ;;  %3049 = vmatprep.subr.mxu1 %v7727_v22  ;;  %9605 = vst [vmem:[#allocation87_spill] sm:$0xff] %v7736_v32  ;;  %9606 = vst [vmem:[#allocation88_spill] sm:$0xff] %v7739_v40  ;;  %v7742_v41 = vld [vmem:[#allocation11 + $0x360] sm:$0xff]  ;;  %v7745_v22 = vld [vmem:[#allocation11 + $0x370] sm:$0xff] }
 0x730   :  { %2979 = vmatpush2.msra.mxu0 %v7730_v23  ;;  %3050 = vmatpush2.msra.mxu1 %v7733_v24  ;;  %9607 = vst [vmem:[#allocation89_spill] sm:$0xff] %v7742_v41  ;;  %9608 = vst [vmem:[#allocation90_spill] sm:$0xff] %v7745_v22  ;;  %v7748_v23 = vld [vmem:[#allocation11 + $0x348] sm:$0xff]  ;;  %v7751_v24 = vld [vmem:[#allocation11 + $0x358] sm:$0xff] }
 0x731   :  { %2980 = vmatprep.subr.mxu0 %v7736_v32  ;;  %3051 = vmatprep.subr.mxu1 %v7739_v40  ;;  %9609 = vst [vmem:[#allocation91_spill] sm:$0xff] %v7748_v23  ;;  %9610 = vst [vmem:[#allocation92_spill] sm:$0xff] %v7751_v24  ;;  %v7754_v32 = vld [vmem:[#allocation11 + $0x340] sm:$0xff]  ;;  %v7757_v40 = vld [vmem:[#allocation11 + $0x350] sm:$0xff] }
 0x732   :  { %2981 = vmatpush2.msra.mxu0 %v7742_v41  ;;  %3052 = vmatpush2.msra.mxu1 %v7745_v22  ;;  %9611 = vst [vmem:[#allocation93_spill] sm:$0xff] %v7754_v32  ;;  %9612 = vst [vmem:[#allocation94_spill] sm:$0xff] %v7757_v40  ;;  %v7760_v41 = vld [vmem:[#allocation11 + $0x328] sm:$0xff]  ;;  %v7763_v22 = vld [vmem:[#allocation11 + $0x338] sm:$0xff] }
 0x733   :  { %2982 = vmatprep.subr.mxu0 %v7748_v23  ;;  %3053 = vmatprep.subr.mxu1 %v7751_v24  ;;  %9613 = vst [vmem:[#allocation95_spill] sm:$0xff] %v7760_v41  ;;  %9614 = vst [vmem:[#allocation96_spill] sm:$0xff] %v7763_v22  ;;  %v7766_v23 = vld [vmem:[#allocation11 + $0x320] sm:$0xff]  ;;  %v7769_v24 = vld [vmem:[#allocation11 + $0x330] sm:$0xff] }
 0x734   :  { %2983 = vmatpush2.msra.mxu0 %v7754_v32  ;;  %3054 = vmatpush2.msra.mxu1 %v7757_v40  ;;  %9615 = vst [vmem:[#allocation97_spill] sm:$0xff] %v7766_v23  ;;  %9616 = vst [vmem:[#allocation98_spill] sm:$0xff] %v7769_v24  ;;  %v7772_v32 = vld [vmem:[#allocation11 + $0x308] sm:$0xff]  ;;  %v7775_v40 = vld [vmem:[#allocation11 + $0x318] sm:$0xff] }
 0x735   :  { %2984 = vmatprep.subr.mxu0 %v7760_v41  ;;  %3055 = vmatprep.subr.mxu1 %v7763_v22  ;;  %9617 = vst [vmem:[#allocation99_spill] sm:$0xff] %v7772_v32  ;;  %9618 = vst [vmem:[#allocation100_spill] sm:$0xff] %v7775_v40  ;;  %v7778_v41 = vld [vmem:[#allocation11 + $0x300] sm:$0xff]  ;;  %v7781_v22 = vld [vmem:[#allocation11 + $0x310] sm:$0xff] }
 0x736   :  { %2985 = vmatpush2.msra.mxu0 %v7766_v23  ;;  %3056 = vmatpush2.msra.mxu1 %v7769_v24  ;;  %9619 = vst [vmem:[#allocation101_spill] sm:$0xff] %v7778_v41  ;;  %9620 = vst [vmem:[#allocation102_spill] sm:$0xff] %v7781_v22  ;;  %v7784_v23 = vld [vmem:[#allocation11 + $0x2e8] sm:$0xff]  ;;  %v7787_v24 = vld [vmem:[#allocation11 + $0x2f8] sm:$0xff] }
 0x737   :  { %2986 = vmatprep.subr.mxu0 %v7772_v32  ;;  %3057 = vmatprep.subr.mxu1 %v7775_v40  ;;  %9621 = vst [vmem:[#allocation103_spill] sm:$0xff] %v7784_v23  ;;  %9622 = vst [vmem:[#allocation104_spill] sm:$0xff] %v7787_v24  ;;  %v7790_v32 = vld [vmem:[#allocation11 + $0x2e0] sm:$0xff]  ;;  %v7793_v40 = vld [vmem:[#allocation11 + $0x2f0] sm:$0xff] }
 0x738   :  { %2987 = vmatpush2.msra.mxu0 %v7778_v41  ;;  %3058 = vmatpush2.msra.mxu1 %v7781_v22  ;;  %9623 = vst [vmem:[#allocation105_spill] sm:$0xff] %v7790_v32  ;;  %9624 = vst [vmem:[#allocation106_spill] sm:$0xff] %v7793_v40  ;;  %v7796_v41 = vld [vmem:[#allocation11 + $0x2c8] sm:$0xff]  ;;  %v7799_v22 = vld [vmem:[#allocation11 + $0x2d8] sm:$0xff] }
 0x739   :  { %2988 = vmatprep.subr.mxu0 %v7784_v23  ;;  %3059 = vmatprep.subr.mxu1 %v7787_v24  ;;  %9625 = vst [vmem:[#allocation107_spill] sm:$0xff] %v7796_v41  ;;  %9626 = vst [vmem:[#allocation108_spill] sm:$0xff] %v7799_v22  ;;  %v7802_v23 = vld [vmem:[#allocation11 + $0x2c0] sm:$0xff]  ;;  %v7805_v24 = vld [vmem:[#allocation11 + $0x2d0] sm:$0xff] }
 0x73a   :  { %2989 = vmatpush2.msra.mxu0 %v7790_v32  ;;  %3060 = vmatpush2.msra.mxu1 %v7793_v40  ;;  %9627 = vst [vmem:[#allocation109_spill] sm:$0xff] %v7802_v23  ;;  %9628 = vst [vmem:[#allocation110_spill] sm:$0xff] %v7805_v24  ;;  %v7808_v32 = vld [vmem:[#allocation11 + $0x2a8] sm:$0xff]  ;;  %v7811_v40 = vld [vmem:[#allocation11 + $0x2b8] sm:$0xff] }
 0x73b   :  { %2990 = vmatprep.subr.mxu0 %v7796_v41  ;;  %3061 = vmatprep.subr.mxu1 %v7799_v22  ;;  %9629 = vst [vmem:[#allocation111_spill] sm:$0xff] %v7808_v32  ;;  %9630 = vst [vmem:[#allocation112_spill] sm:$0xff] %v7811_v40  ;;  %v7814_v41 = vld [vmem:[#allocation11 + $0x2a0] sm:$0xff]  ;;  %v7817_v22 = vld [vmem:[#allocation11 + $0x2b0] sm:$0xff] }
 0x73c   :  { %2991 = vmatpush2.msra.mxu0 %v7802_v23  ;;  %3062 = vmatpush2.msra.mxu1 %v7805_v24  ;;  %9631 = vst [vmem:[#allocation113_spill] sm:$0xff] %v7814_v41  ;;  %9632 = vst [vmem:[#allocation114_spill] sm:$0xff] %v7817_v22  ;;  %v7820_v23 = vld [vmem:[#allocation11 + $0x288] sm:$0xff]  ;;  %v7823_v24 = vld [vmem:[#allocation11 + $0x298] sm:$0xff] }
 0x73d   :  { %2992 = vmatprep.subr.mxu0 %v7808_v32  ;;  %3063 = vmatprep.subr.mxu1 %v7811_v40  ;;  %9633 = vst [vmem:[#allocation115_spill] sm:$0xff] %v7820_v23  ;;  %9634 = vst [vmem:[#allocation116_spill] sm:$0xff] %v7823_v24  ;;  %v7826_v32 = vld [vmem:[#allocation11 + $0x280] sm:$0xff]  ;;  %v7829_v40 = vld [vmem:[#allocation11 + $0x290] sm:$0xff] }
 0x73e   :  { %2993 = vmatpush2.msra.mxu0 %v7814_v41  ;;  %3064 = vmatpush2.msra.mxu1 %v7817_v22  ;;  %9635 = vst [vmem:[#allocation117_spill] sm:$0xff] %v7826_v32  ;;  %9636 = vst [vmem:[#allocation118_spill] sm:$0xff] %v7829_v40  ;;  %v7832_v41 = vld [vmem:[#allocation11 + $0x268] sm:$0xff]  ;;  %v7835_v22 = vld [vmem:[#allocation11 + $0x278] sm:$0xff] }
 0x73f   :  { %2994 = vmatprep.subr.mxu0 %v7820_v23  ;;  %3065 = vmatprep.subr.mxu1 %v7823_v24  ;;  %9637 = vst [vmem:[#allocation119_spill] sm:$0xff] %v7832_v41  ;;  %9638 = vst [vmem:[#allocation120_spill] sm:$0xff] %v7835_v22  ;;  %v7838_v23 = vld [vmem:[#allocation11 + $0x260] sm:$0xff]  ;;  %v7841_v24 = vld [vmem:[#allocation11 + $0x270] sm:$0xff] }
 0x740   :  { %2995 = vmatpush2.msra.mxu0 %v7826_v32  ;;  %3066 = vmatpush2.msra.mxu1 %v7829_v40  ;;  %9639 = vst [vmem:[#allocation121_spill] sm:$0xff] %v7838_v23  ;;  %9640 = vst [vmem:[#allocation122_spill] sm:$0xff] %v7841_v24  ;;  %v7844_v32 = vld [vmem:[#allocation11 + $0x248] sm:$0xff]  ;;  %v7847_v40 = vld [vmem:[#allocation11 + $0x258] sm:$0xff] }
 0x741   :  { %2996 = vmatprep.subr.mxu0 %v7832_v41  ;;  %3067 = vmatprep.subr.mxu1 %v7835_v22  ;;  %9641 = vst [vmem:[#allocation123_spill] sm:$0xff] %v7844_v32  ;;  %9642 = vst [vmem:[#allocation124_spill] sm:$0xff] %v7847_v40  ;;  %v7850_v41 = vld [vmem:[#allocation11 + $0x240] sm:$0xff]  ;;  %v7853_v22 = vld [vmem:[#allocation11 + $0x250] sm:$0xff] }
 0x742   :  { %2997 = vmatpush2.msra.mxu0 %v7838_v23  ;;  %3068 = vmatpush2.msra.mxu1 %v7841_v24  ;;  %9643 = vst [vmem:[#allocation125_spill] sm:$0xff] %v7850_v41  ;;  %9644 = vst [vmem:[#allocation126_spill] sm:$0xff] %v7853_v22  ;;  %v7856_v23 = vld [vmem:[#allocation11 + $0x228] sm:$0xff]  ;;  %v7859_v24 = vld [vmem:[#allocation11 + $0x238] sm:$0xff] }
 0x743   :  { %2998 = vmatprep.subr.mxu0 %v7844_v32  ;;  %3069 = vmatprep.subr.mxu1 %v7847_v40  ;;  %9645 = vst [vmem:[#allocation127_spill] sm:$0xff] %v7856_v23  ;;  %9646 = vst [vmem:[#allocation128_spill] sm:$0xff] %v7859_v24  ;;  %v7862_v32 = vld [vmem:[#allocation11 + $0x220] sm:$0xff]  ;;  %v7865_v40 = vld [vmem:[#allocation11 + $0x230] sm:$0xff] }
 0x744   :  { %2999 = vmatpush2.msra.mxu0 %v7850_v41  ;;  %3070 = vmatpush2.msra.mxu1 %v7853_v22  ;;  %9647 = vst [vmem:[#allocation129_spill] sm:$0xff] %v7862_v32  ;;  %9648 = vst [vmem:[#allocation130_spill] sm:$0xff] %v7865_v40  ;;  %v7868_v41 = vld [vmem:[#allocation11 + $0x208] sm:$0xff]  ;;  %v7871_v22 = vld [vmem:[#allocation11 + $0x218] sm:$0xff] }
 0x745   :  { %3000 = vmatprep.subr.mxu0 %v7856_v23  ;;  %3071 = vmatprep.subr.mxu1 %v7859_v24  ;;  %9649 = vst [vmem:[#allocation131_spill] sm:$0xff] %v7868_v41  ;;  %9650 = vst [vmem:[#allocation132_spill] sm:$0xff] %v7871_v22  ;;  %v7874_v23 = vld [vmem:[#allocation11 + $0x200] sm:$0xff]  ;;  %v7877_v24 = vld [vmem:[#allocation11 + $0x210] sm:$0xff] }
 0x746   :  { %3001 = vmatpush2.msra.mxu0 %v7862_v32  ;;  %3072 = vmatpush2.msra.mxu1 %v7865_v40  ;;  %9651 = vst [vmem:[#allocation133_spill] sm:$0xff] %v7874_v23  ;;  %9652 = vst [vmem:[#allocation134_spill] sm:$0xff] %v7877_v24 }
 0x747   :  { %3002 = vmatprep.subr.mxu0 %v7868_v41  ;;  %3073 = vmatprep.subr.mxu1 %v7871_v22 }
 0x748   :  { %3003 = vmatpush2.msra.mxu0 %v7874_v23  ;;  %3074 = vmatpush2.msra.mxu1 %v7877_v24 }
 0x749   :  { %3117 = vmatprep.subr.mxu0 %v7316_v5  ;;  %3188 = vmatprep.subr.mxu1 %v7319_v9 }
 0x7a7   :  { %v2654_v40 = vpop.f32.mrf.mxu0  ;;  %v2725_v7 = vpop.f32.mrf.mxu1 }
 0x7a8   :  { %v2655_v32 = vadd.f32 %v2654_v40, %v9515_v10  ;;  %v2726_v23 = vadd.f32 %v2725_v7, %v9517_v6 }
 0x7a9   :  { %v2656_v41 = vpop.f32.mrf.mxu0  ;;  %v2727_v63 = vpop.f32.mrf.mxu1 }
 0x7aa   :  { %v3633_v43 = vmul.f32 -1.442695, %v2655_v32  ;;  %v2657_v60 = vadd.f32 %v2656_v41, %v9516_v59  ;;  %v3635_v2 = vmul.f32 -1.442695, %v2726_v23  ;;  %v2728_v5 = vadd.f32 %v2727_v63, %v9518_v1  ;;  %v9654_v23 = vld [vmem:[#allocation172_spill] sm:$0xff] }
 0x7ac   :  { %3888 = vpow2.f32 %v3633_v43  ;;  %v3634_v22 = vmul.f32 -1.442695, %v2657_v60  ;;  %v9653_v60 = vld [vmem:[#allocation170_spill] sm:$0xff] }
 0x7ae   :  { %3890 = vpow2.f32 %v3634_v22 }
 0x7af   :  { %3892 = vpow2.f32 %v3635_v2 }
 0x7b9   :  { %v3889_v24 = vpop.eup %3888 }
 0x7ba   :  { %v2740_v4 = vadd.f32 1.0, %v3889_v24 }
 0x7bb   :  { %v3891_v9 = vpop.eup %3890 }
 0x7bc   :  { %3894 = vrcp.f32 %v2740_v4  ;;  %v2741_v40 = vadd.f32 1.0, %v3891_v9  ;;  %v3893_v32 = vpop.eup %3892  ;;  %v9655_v9 = vld [vmem:[#allocation171_spill] sm:$0xff] }
 0x7bd   :  { %3896 = vtanh.f32 %v2728_v5  ;;  %v2742_v58 = vadd.f32 1.0, %v3893_v32 }
 0x7be   :  { %3898 = vrcp.f32 %v2741_v40 }
 0x7c8   :  { %v2831_v41 = vpop.f32.mrf.mxu0  ;;  %v2902_v5 = vpop.f32.mrf.mxu1 }
 0x7c9   :  { %v3895_v43 = vpop.eup %3894  ;;  %v2907_v22 = vadd.f32 %v2831_v41, %v9653_v60  ;;  %v2909_v40 = vadd.f32 %v2902_v5, %v9655_v9 }
 0x7ca   :  { %v3897_v59 = vpop.eup %3896  ;;  %v2833_v10 = vpop.f32.mrf.mxu0 }
 0x7cb   :  { %v3899_v7 = vpop.eup %3898  ;;  %v3636_v6 = vmul.f32 -1.442695, %v2907_v22  ;;  %v2908_v3 = vadd.f32 %v2833_v10, %v9654_v23  ;;  %v2751_v24 = vmul.f32 %v3897_v59, %v3895_v43  ;;  %v2904_v41 = vpop.f32.mrf.mxu1  ;;  %v3638_v60 = vmul.f32 -1.442695, %v2909_v40  ;;  %v9656_v22 = vld [vmem:[#allocation173_spill] sm:$0xff] }
 0x7cc   :  { %v2750_v63 = vmul.f32 %v3899_v7, %v7329_v53  ;;  %v2910_v1 = vadd.f32 %v2904_v41, %v9656_v22  ;;  %v4545_v22 = vld [vmem:[#allocation9 + $0x1f0] sm:$0xff] }
 0x7cd   :  { %3900 = vpow2.f32 %v3636_v6  ;;  %v3637_v4 = vmul.f32 -1.442695, %v2908_v3 }
 0x7ce   :  { %v7889_v2 = vadd.f32 %v2751_v24, %v2750_v63 }
 0x7cf   :  { %3902 = vpow2.f32 %v3637_v4 }
 0x7d0   :  { %3904 = vrcp.f32 %v2742_v58 }
 0x7d1   :  { %3906 = vtanh.f32 %v7889_v2 }
 0x7d2   :  { %3908 = vpow2.f32 %v3638_v60  ;;  %v4544_v60 = vld [vmem:[#allocation9 + $0x1e0] sm:$0xff] }
 0x7d3   :  { %3910 = vtanh.f32 %v2910_v1 }
 0x7da   :  { %v3901_v10 = vpop.eup %3900 }
 0x7db   :  { %v2921_v32 = vadd.f32 1.0, %v3901_v10  ;;  %v4546_v10 = vld [vmem:[#allocation9 + $0x1c8] sm:$0xff] }
 0x7dc   :  { %v3903_v53 = vpop.eup %3902 }
 0x7dd   :  { %v3905_v59 = vpop.eup %3904  ;;  %3912 = vrcp.f32 %v2921_v32  ;;  %v2922_v3 = vadd.f32 1.0, %v3903_v53  ;;  %v4548_v32 = vld [vmem:[#allocation9 + $0x1c0] sm:$0xff]  ;;  %v4549_v53 = vld [vmem:[#allocation9 + $0x1d0] sm:$0xff] }
 0x7de   :  { %v3907_v6 = vpop.eup %3906 }
 0x7df   :  { %3914 = vrcp.f32 %v2922_v3  ;;  %v2754_v58 = vmul.f32 %v3907_v6, %v3905_v59  ;;  %v3909_v43 = vpop.eup %3908  ;;  %v4550_v59 = vld [vmem:[#allocation9 + $0x1a8] sm:$0xff]  ;;  %v4551_v3 = vld [vmem:[#allocation9 + $0x1b8] sm:$0xff]  ;;  %v4552_v6 = vld [vmem:[#allocation9 + $0x1a0] sm:$0xff] }
 0x7e0   :  { %v3911_v7 = vpop.eup %3910  ;;  %v2923_v4 = vadd.f32 1.0, %v3909_v43  ;;  %v4554_v43 = vld [vmem:[#allocation9 + $0x188] sm:$0xff] }
 0x7e1   :  { %3004 = vmatprep.mubr.f32.mxu0 %v2754_v58  ;;  %3075 = vmatprep.mubr.f32.mxu1 %v2754_v58  ;;  %v4553_v58 = vld [vmem:[#allocation9 + $0x1b0] sm:$0xff] }
 0x7e2   :  { %3916 = vrcp.f32 %v2923_v4  ;;  %v4559_v4 = vld [vmem:[#allocation9 + $0x178] sm:$0xff] }
 0x7ea   :  { %v3913_v23 = vpop.eup %3912 }
 0x7eb   :  { %v2932_v63 = vmul.f32 %v3913_v23, %v3911_v7  ;;  %v4555_v7 = vld [vmem:[#allocation9 + $0x198] sm:$0xff]  ;;  %v4556_v23 = vld [vmem:[#allocation9 + $0x180] sm:$0xff] }
 0x7ec   :  { %v3915_v24 = vpop.eup %3914 }
 0x7ed   :  { %v2931_v5 = vmul.f32 %v3915_v24, %v7335_v28  ;;  %v4547_v28 = vld [vmem:[#allocation9 + $0x1d8] sm:$0xff]  ;;  %v4558_v24 = vld [vmem:[#allocation9 + $0x168] sm:$0xff] }
 0x7ef   :  { %v7895_v9 = vadd.f32 %v2932_v63, %v2931_v5  ;;  %v3917_v1 = vpop.eup %3916  ;;  %v4557_v63 = vld [vmem:[#allocation9 + $0x190] sm:$0xff]  ;;  %v4560_v5 = vld [vmem:[#allocation9 + $0x160] sm:$0xff] }
 0x7f1   :  { %3918 = vtanh.f32 %v7895_v9 }
 0x7fe   :  { %v3919_v40 = vpop.eup %3918 }
 0x7ff   :  { %v7898_v41 = vmul.f32 %v3919_v40, %v3917_v1  ;;  %v4561_v1 = vld [vmem:[#allocation9 + $0x170] sm:$0xff]  ;;  %v9699_v40 = vld [vmem:[#allocation46_spill] sm:$0xff] }
 0x801   :  { %3005 = vmatmul.mubr.f32.vlgmr.msra.gmra.mxu0 %v7898_v41  ;;  %3076 = vmatmul.mubr.f32.vlgmr.msra.gmra.mxu1 %v7898_v41 }
 0x802   :  { %3118 = vmatpush1.msra.mxu0 %v4544_v60  ;;  %3189 = vmatpush1.msra.mxu1 %v4545_v22  ;;  %v9701_v60 = vld [vmem:[#allocation48_spill] sm:$0xff]  ;;  %v9702_v22 = vld [vmem:[#allocation49_spill] sm:$0xff] }
 0x803   :  { %3119 = vmatprep.subr.mxu0 %v4546_v10  ;;  %3190 = vmatprep.subr.mxu1 %v4547_v28  ;;  %v9703_v10 = vld [vmem:[#allocation50_spill] sm:$0xff]  ;;  %v9704_v28 = vld [vmem:[#allocation51_spill] sm:$0xff] }
 0x804   :  { %3120 = vmatpush1.msra.mxu0 %v4548_v32  ;;  %3191 = vmatpush1.msra.mxu1 %v4549_v53  ;;  %v9705_v32 = vld [vmem:[#allocation52_spill] sm:$0xff]  ;;  %v9706_v53 = vld [vmem:[#allocation53_spill] sm:$0xff] }
 0x805   :  { %3121 = vmatprep.subr.mxu0 %v4550_v59  ;;  %3192 = vmatprep.subr.mxu1 %v4551_v3  ;;  %v9707_v59 = vld [vmem:[#allocation54_spill] sm:$0xff]  ;;  %v9708_v3 = vld [vmem:[#allocation55_spill] sm:$0xff] }
 0x806   :  { %3122 = vmatpush1.msra.mxu0 %v4552_v6  ;;  %3193 = vmatpush1.msra.mxu1 %v4553_v58  ;;  %v9709_v6 = vld [vmem:[#allocation56_spill] sm:$0xff]  ;;  %v9710_v58 = vld [vmem:[#allocation57_spill] sm:$0xff] }
 0x807   :  { %3123 = vmatprep.subr.mxu0 %v4554_v43  ;;  %3194 = vmatprep.subr.mxu1 %v4555_v7  ;;  %v9711_v43 = vld [vmem:[#allocation58_spill] sm:$0xff]  ;;  %v9712_v7 = vld [vmem:[#allocation59_spill] sm:$0xff] }
 0x808   :  { %3124 = vmatpush1.msra.mxu0 %v4556_v23  ;;  %3195 = vmatpush1.msra.mxu1 %v4557_v63  ;;  %v9713_v23 = vld [vmem:[#allocation60_spill] sm:$0xff]  ;;  %v9714_v63 = vld [vmem:[#allocation61_spill] sm:$0xff] }
 0x809   :  { %3125 = vmatprep.subr.mxu0 %v4558_v24  ;;  %3196 = vmatprep.subr.mxu1 %v4559_v4  ;;  %v9715_v24 = vld [vmem:[#allocation62_spill] sm:$0xff]  ;;  %v9716_v4 = vld [vmem:[#allocation63_spill] sm:$0xff] }
 0x80a   :  { %3126 = vmatpush1.msra.mxu0 %v4560_v5  ;;  %3197 = vmatpush1.msra.mxu1 %v4561_v1  ;;  %v9717_v5 = vld [vmem:[#allocation64_spill] sm:$0xff]  ;;  %v9718_v1 = vld [vmem:[#allocation65_spill] sm:$0xff] }
 0x80b   :  { %3127 = vmatprep.subr.mxu0 %v7360_v27  ;;  %3198 = vmatprep.subr.mxu1 %v7363_v38  ;;  %v9657_v27 = vld [vmem:[#allocation148_spill] sm:$0xff]  ;;  %v9658_v38 = vmov 0.0  }
 0x80c   :  { %3128 = vmatpush1.msra.mxu0 %v7366_v13  ;;  %3199 = vmatpush1.msra.mxu1 %v7369_v15  ;;  %v9659_v13 = vld [vmem:[#allocation149_spill] sm:$0xff]  ;;  %v9660_v15 = vld [vmem:[#allocation150_spill] sm:$0xff] }
 0x80d   :  { %3129 = vmatprep.subr.mxu0 %v7372_v0  ;;  %3200 = vmatprep.subr.mxu1 %v7375_v16  ;;  %v9661_v0 = vld [vmem:[#allocation152_spill] sm:$0xff]  ;;  %v9662_v16 = vld [vmem:[#allocation151_spill] sm:$0xff] }
 0x80e   :  { %3130 = vmatpush1.msra.mxu0 %v7378_v54  ;;  %3201 = vmatpush1.msra.mxu1 %v7381_v33  ;;  %v9663_v54 = vld [vmem:[#allocation158_spill] sm:$0xff]  ;;  %v9664_v33 = vld [vmem:[#allocation160_spill] sm:$0xff] }
 0x80f   :  { %3131 = vmatprep.subr.mxu0 %v7384_v19  ;;  %3202 = vmatprep.subr.mxu1 %v7387_v35  ;;  %v9665_v19 = vld [vmem:[#allocation159_spill] sm:$0xff]  ;;  %v9666_v35 = vld [vmem:[#allocation161_spill] sm:$0xff] }
 0x810   :  { %3132 = vmatpush1.msra.mxu0 %v7390_v36  ;;  %3203 = vmatpush1.msra.mxu1 %v7393_v17  ;;  %v9667_v36 = vld [vmem:[#allocation162_spill] sm:$0xff]  ;;  %v9668_v17 = vld [vmem:[#allocation164_spill] sm:$0xff] }
 0x811   :  { %3133 = vmatprep.subr.mxu0 %v7396_v37  ;;  %3204 = vmatprep.subr.mxu1 %v7399_v14  ;;  %v9669_v37 = vld [vmem:[#allocation163_spill] sm:$0xff]  ;;  %v9670_v14 = vld [vmem:[#allocation165_spill] sm:$0xff] }
 0x812   :  { %3134 = vmatpush1.msra.mxu0 %v7402_v30  ;;  %3205 = vmatpush1.msra.mxu1 %v7405_v44  ;;  %v9671_v30 = vld [vmem:[#allocation153_spill] sm:$0xff]  ;;  %v9672_v44 = vld [vmem:[#allocation154_spill] sm:$0xff] }
 0x813   :  { %3135 = vmatprep.subr.mxu0 %v7408_v25  ;;  %3206 = vmatprep.subr.mxu1 %v7411_v34  ;;  %v9673_v25 = vld [vmem:[#allocation156_spill] sm:$0xff]  ;;  %v9674_v34 = vld [vmem:[#allocation155_spill] sm:$0xff] }
 0x814   :  { %3136 = vmatpush1.msra.mxu0 %v7414_v29  ;;  %3207 = vmatpush1.msra.mxu1 %v7417_v46  ;;  %v9675_v29 = vld [vmem:[#allocation157_spill] sm:$0xff]  ;;  %v9676_v46 = vld [vmem:[#allocation23_spill] sm:$0xff] }
 0x815   :  { %3137 = vmatprep.subr.mxu0 %v7420_v47  ;;  %3208 = vmatprep.subr.mxu1 %v7423_v49  ;;  %v9677_v47 = vld [vmem:[#allocation24_spill] sm:$0xff]  ;;  %v9678_v49 = vld [vmem:[#allocation25_spill] sm:$0xff] }
 0x816   :  { %3138 = vmatpush1.msra.mxu0 %v7426_v51  ;;  %3209 = vmatpush1.msra.mxu1 %v7429_v52  ;;  %v9679_v51 = vld [vmem:[#allocation26_spill] sm:$0xff]  ;;  %v9680_v52 = vld [vmem:[#allocation27_spill] sm:$0xff] }
 0x817   :  { %3139 = vmatprep.subr.mxu0 %v7432_v55  ;;  %3210 = vmatprep.subr.mxu1 %v7435_v56  ;;  %v9681_v55 = vld [vmem:[#allocation28_spill] sm:$0xff]  ;;  %v9682_v56 = vld [vmem:[#allocation29_spill] sm:$0xff] }
 0x818   :  { %3140 = vmatpush1.msra.mxu0 %v7438_v57  ;;  %3211 = vmatpush1.msra.mxu1 %v7441_v11  ;;  %v9683_v57 = vld [vmem:[#allocation30_spill] sm:$0xff]  ;;  %v9684_v11 = vld [vmem:[#allocation31_spill] sm:$0xff] }
 0x819   :  { %3141 = vmatprep.subr.mxu0 %v7444_v12  ;;  %3212 = vmatprep.subr.mxu1 %v7447_v8  ;;  %v9685_v12 = vld [vmem:[#allocation32_spill] sm:$0xff]  ;;  %v9686_v8 = vld [vmem:[#allocation33_spill] sm:$0xff] }
 0x81a   :  { %3142 = vmatpush1.msra.mxu0 %v7450_v26  ;;  %3213 = vmatpush1.msra.mxu1 %v7453_v39  ;;  %v9687_v26 = vld [vmem:[#allocation34_spill] sm:$0xff]  ;;  %v9688_v39 = vld [vmem:[#allocation35_spill] sm:$0xff] }
 0x81b   :  { %3143 = vmatprep.subr.mxu0 %v7456_v61  ;;  %3214 = vmatprep.subr.mxu1 %v7459_v62  ;;  %v9689_v61 = vld [vmem:[#allocation36_spill] sm:$0xff]  ;;  %v9690_v62 = vld [vmem:[#allocation37_spill] sm:$0xff] }
 0x81c   :  { %3144 = vmatpush1.msra.mxu0 %v7462_v20  ;;  %3215 = vmatpush1.msra.mxu1 %v7465_v21  ;;  %v9691_v20 = vld [vmem:[#allocation38_spill] sm:$0xff]  ;;  %v9692_v21 = vld [vmem:[#allocation39_spill] sm:$0xff] }
 0x81d   :  { %3145 = vmatprep.subr.mxu0 %v7468_v45  ;;  %3216 = vmatprep.subr.mxu1 %v7471_v48  ;;  %v9693_v45 = vld [vmem:[#allocation40_spill] sm:$0xff]  ;;  %v9694_v48 = vld [vmem:[#allocation41_spill] sm:$0xff] }
 0x81e   :  { %3146 = vmatpush1.msra.mxu0 %v7474_v18  ;;  %3217 = vmatpush1.msra.mxu1 %v7477_v50  ;;  %v9695_v18 = vld [vmem:[#allocation42_spill] sm:$0xff]  ;;  %v9696_v50 = vld [vmem:[#allocation43_spill] sm:$0xff] }
 0x81f   :  { %3147 = vmatprep.subr.mxu0 %v7480_v31  ;;  %3218 = vmatprep.subr.mxu1 %v7483_v42  ;;  %v9697_v31 = vld [vmem:[#allocation44_spill] sm:$0xff]  ;;  %v9698_v42 = vld [vmem:[#allocation45_spill] sm:$0xff] }
 0x820   :  { %3148 = vmatpush1.msra.mxu0 %v9657_v27  ;;  %3181 = vmatprep.mubr.f32.mxu0 %v9658_v38  ;;  %v9719_v27 = vld [vmem:[#allocation66_spill] sm:$0xff] }
 0x821   :  { %3219 = vmatpush1.msra.mxu1 %v9659_v13  ;;  %3252 = vmatprep.mubr.f32.mxu1 %v9658_v38  ;;  %v9720_v13 = vld [vmem:[#allocation67_spill] sm:$0xff] }
 0x822   :  { %3182 = vmatmul.mubr.f32.vlgmr.msra.gmra.mxu0 %v7898_v41  ;;  %3253 = vmatmul.mubr.f32.vlgmr.msra.gmra.mxu1 %v7898_v41  ;;  %v9700_v41 = vld [vmem:[#allocation47_spill] sm:$0xff] }
 0x823   :  { %3292 = vmatprep.subr.mxu0 %v9660_v15  ;;  %3363 = vmatprep.subr.mxu1 %v9661_v0  ;;  %v9721_v15 = vld [vmem:[#allocation68_spill] sm:$0xff]  ;;  %v9722_v0 = vld [vmem:[#allocation69_spill] sm:$0xff] }
 0x824   :  { %3293 = vmatpush1.msra.mxu0 %v9662_v16  ;;  %3364 = vmatpush1.msra.mxu1 %v9663_v54  ;;  %v9723_v16 = vld [vmem:[#allocation70_spill] sm:$0xff]  ;;  %v9724_v54 = vld [vmem:[#allocation71_spill] sm:$0xff] }
 0x825   :  { %3294 = vmatprep.subr.mxu0 %v9664_v33  ;;  %3365 = vmatprep.subr.mxu1 %v9665_v19  ;;  %v9725_v33 = vld [vmem:[#allocation72_spill] sm:$0xff]  ;;  %v9726_v19 = vld [vmem:[#allocation73_spill] sm:$0xff] }
 0x826   :  { %3295 = vmatpush1.msra.mxu0 %v9666_v35  ;;  %3366 = vmatpush1.msra.mxu1 %v9667_v36  ;;  %v9727_v35 = vld [vmem:[#allocation74_spill] sm:$0xff]  ;;  %v9728_v36 = vld [vmem:[#allocation75_spill] sm:$0xff] }
 0x827   :  { %3296 = vmatprep.subr.mxu0 %v9668_v17  ;;  %3367 = vmatprep.subr.mxu1 %v9669_v37  ;;  %v9729_v17 = vld [vmem:[#allocation76_spill] sm:$0xff]  ;;  %v9730_v37 = vld [vmem:[#allocation77_spill] sm:$0xff] }
 0x828   :  { %3297 = vmatpush1.msra.mxu0 %v9670_v14  ;;  %3368 = vmatpush1.msra.mxu1 %v9671_v30  ;;  %v9731_v14 = vld [vmem:[#allocation78_spill] sm:$0xff]  ;;  %v9732_v30 = vld [vmem:[#allocation79_spill] sm:$0xff] }
 0x829   :  { %3298 = vmatprep.subr.mxu0 %v9672_v44  ;;  %3369 = vmatprep.subr.mxu1 %v9673_v25  ;;  %v9733_v44 = vld [vmem:[#allocation80_spill] sm:$0xff]  ;;  %v9734_v25 = vld [vmem:[#allocation81_spill] sm:$0xff] }
 0x82a   :  { %3299 = vmatpush1.msra.mxu0 %v9674_v34  ;;  %3370 = vmatpush1.msra.mxu1 %v9675_v29  ;;  %v9735_v34 = vld [vmem:[#allocation82_spill] sm:$0xff]  ;;  %v9736_v29 = vld [vmem:[#allocation83_spill] sm:$0xff] }
 0x82b   :  { %3300 = vmatprep.subr.mxu0 %v9676_v46  ;;  %3371 = vmatprep.subr.mxu1 %v9677_v47  ;;  %v9737_v46 = vld [vmem:[#allocation84_spill] sm:$0xff]  ;;  %v9738_v47 = vld [vmem:[#allocation85_spill] sm:$0xff] }
 0x82c   :  { %3301 = vmatpush1.msra.mxu0 %v9678_v49  ;;  %3372 = vmatpush1.msra.mxu1 %v9679_v51  ;;  %v9739_v49 = vld [vmem:[#allocation86_spill] sm:$0xff]  ;;  %v9740_v51 = vld [vmem:[#allocation87_spill] sm:$0xff] }
 0x82d   :  { %3302 = vmatprep.subr.mxu0 %v9680_v52  ;;  %3373 = vmatprep.subr.mxu1 %v9681_v55  ;;  %v9741_v52 = vld [vmem:[#allocation88_spill] sm:$0xff]  ;;  %v9742_v55 = vld [vmem:[#allocation89_spill] sm:$0xff] }
 0x82e   :  { %3303 = vmatpush1.msra.mxu0 %v9682_v56  ;;  %3374 = vmatpush1.msra.mxu1 %v9683_v57  ;;  %v9743_v56 = vld [vmem:[#allocation90_spill] sm:$0xff]  ;;  %v9744_v57 = vld [vmem:[#allocation91_spill] sm:$0xff] }
 0x82f   :  { %3304 = vmatprep.subr.mxu0 %v9684_v11  ;;  %3375 = vmatprep.subr.mxu1 %v9685_v12  ;;  %v9745_v11 = vld [vmem:[#allocation92_spill] sm:$0xff]  ;;  %v9746_v12 = vld [vmem:[#allocation93_spill] sm:$0xff] }
 0x830   :  { %3305 = vmatpush1.msra.mxu0 %v9686_v8  ;;  %3376 = vmatpush1.msra.mxu1 %v9687_v26  ;;  %v9747_v8 = vld [vmem:[#allocation94_spill] sm:$0xff]  ;;  %v9748_v26 = vld [vmem:[#allocation95_spill] sm:$0xff] }
 0x831   :  { %3306 = vmatprep.subr.mxu0 %v9688_v39  ;;  %3377 = vmatprep.subr.mxu1 %v9689_v61  ;;  %v9749_v39 = vld [vmem:[#allocation96_spill] sm:$0xff]  ;;  %v9750_v61 = vld [vmem:[#allocation97_spill] sm:$0xff] }
 0x832   :  { %3307 = vmatpush1.msra.mxu0 %v9690_v62  ;;  %3378 = vmatpush1.msra.mxu1 %v9691_v20  ;;  %v9751_v62 = vld [vmem:[#allocation98_spill] sm:$0xff]  ;;  %v9752_v20 = vld [vmem:[#allocation99_spill] sm:$0xff] }
 0x833   :  { %3308 = vmatprep.subr.mxu0 %v9692_v21  ;;  %3379 = vmatprep.subr.mxu1 %v9693_v45  ;;  %v9753_v21 = vld [vmem:[#allocation100_spill] sm:$0xff]  ;;  %v9754_v45 = vld [vmem:[#allocation101_spill] sm:$0xff] }
 0x834   :  { %3309 = vmatpush1.msra.mxu0 %v9694_v48  ;;  %3380 = vmatpush1.msra.mxu1 %v9695_v18  ;;  %v9755_v48 = vld [vmem:[#allocation102_spill] sm:$0xff]  ;;  %v9756_v18 = vld [vmem:[#allocation103_spill] sm:$0xff] }
 0x835   :  { %3310 = vmatprep.subr.mxu0 %v9696_v50  ;;  %3381 = vmatprep.subr.mxu1 %v9697_v31  ;;  %v9757_v50 = vld [vmem:[#allocation104_spill] sm:$0xff]  ;;  %v9758_v31 = vld [vmem:[#allocation105_spill] sm:$0xff] }
 0x836   :  { %3311 = vmatpush1.msra.mxu0 %v9698_v42  ;;  %3382 = vmatpush1.msra.mxu1 %v9699_v40  ;;  %v9759_v42 = vld [vmem:[#allocation106_spill] sm:$0xff]  ;;  %v9760_v40 = vld [vmem:[#allocation107_spill] sm:$0xff] }
 0x837   :  { %3312 = vmatprep.subr.mxu0 %v9700_v41  ;;  %3383 = vmatprep.subr.mxu1 %v9701_v60  ;;  %v9761_v41 = vld [vmem:[#allocation108_spill] sm:$0xff]  ;;  %v9762_v60 = vld [vmem:[#allocation109_spill] sm:$0xff] }
 0x838   :  { %3313 = vmatpush1.msra.mxu0 %v9702_v22  ;;  %3384 = vmatpush1.msra.mxu1 %v9703_v10  ;;  %v9763_v22 = vld [vmem:[#allocation110_spill] sm:$0xff]  ;;  %v9764_v10 = vld [vmem:[#allocation111_spill] sm:$0xff] }
 0x839   :  { %3314 = vmatprep.subr.mxu0 %v9704_v28  ;;  %3385 = vmatprep.subr.mxu1 %v9705_v32  ;;  %v9765_v28 = vld [vmem:[#allocation112_spill] sm:$0xff]  ;;  %v9766_v32 = vld [vmem:[#allocation113_spill] sm:$0xff] }
 0x83a   :  { %3315 = vmatpush1.msra.mxu0 %v9706_v53  ;;  %3386 = vmatpush1.msra.mxu1 %v9707_v59  ;;  %v9767_v53 = vld [vmem:[#allocation114_spill] sm:$0xff]  ;;  %v9768_v59 = vld [vmem:[#allocation115_spill] sm:$0xff] }
 0x83b   :  { %3316 = vmatprep.subr.mxu0 %v9708_v3  ;;  %3387 = vmatprep.subr.mxu1 %v9709_v6  ;;  %v9769_v3 = vld [vmem:[#allocation116_spill] sm:$0xff]  ;;  %v9770_v6 = vld [vmem:[#allocation117_spill] sm:$0xff] }
 0x83c   :  { %3317 = vmatpush1.msra.mxu0 %v9710_v58  ;;  %3388 = vmatpush1.msra.mxu1 %v9711_v43  ;;  %v9771_v58 = vld [vmem:[#allocation118_spill] sm:$0xff]  ;;  %v9772_v43 = vld [vmem:[#allocation119_spill] sm:$0xff] }
 0x83d   :  { %3318 = vmatprep.subr.mxu0 %v9712_v7  ;;  %3389 = vmatprep.subr.mxu1 %v9713_v23  ;;  %v9773_v7 = vld [vmem:[#allocation120_spill] sm:$0xff]  ;;  %v9774_v23 = vld [vmem:[#allocation121_spill] sm:$0xff] }
 0x83e   :  { %3319 = vmatpush1.msra.mxu0 %v9714_v63  ;;  %3390 = vmatpush1.msra.mxu1 %v9715_v24  ;;  %v9775_v63 = vld [vmem:[#allocation122_spill] sm:$0xff]  ;;  %v9776_v24 = vld [vmem:[#allocation123_spill] sm:$0xff] }
 0x83f   :  { %3320 = vmatprep.subr.mxu0 %v9716_v4  ;;  %3391 = vmatprep.subr.mxu1 %v9717_v5  ;;  %v9777_v4 = vld [vmem:[#allocation124_spill] sm:$0xff]  ;;  %v9778_v5 = vld [vmem:[#allocation125_spill] sm:$0xff] }
 0x840   :  { %3321 = vmatpush1.msra.mxu0 %v9718_v1  ;;  %3392 = vmatpush1.msra.mxu1 %v9719_v27  ;;  %v9779_v1 = vld [vmem:[#allocation126_spill] sm:$0xff]  ;;  %v9780_v27 = vld [vmem:[#allocation127_spill] sm:$0xff] }
 0x841   :  { %3322 = vmatprep.subr.mxu0 %v9720_v13  ;;  %3393 = vmatprep.subr.mxu1 %v9721_v15  ;;  %v9781_v13 = vld [vmem:[#allocation128_spill] sm:$0xff]  ;;  %v9782_v15 = vld [vmem:[#allocation129_spill] sm:$0xff] }
 0x842   :  { %3323 = vmatpush1.msra.mxu0 %v9722_v0  ;;  %3394 = vmatpush1.msra.mxu1 %v9723_v16  ;;  %v9783_v0 = vld [vmem:[#allocation130_spill] sm:$0xff]  ;;  %v9784_v16 = vld [vmem:[#allocation131_spill] sm:$0xff] }
 0x843   :  { %3324 = vmatprep.subr.mxu0 %v9724_v54  ;;  %3395 = vmatprep.subr.mxu1 %v9725_v33  ;;  %v9785_v54 = vld [vmem:[#allocation132_spill] sm:$0xff]  ;;  %v9786_v33 = vld [vmem:[#allocation133_spill] sm:$0xff] }
 0x844   :  { %3325 = vmatpush2.msra.mxu0 %v9726_v19  ;;  %3396 = vmatpush2.msra.mxu1 %v9727_v35  ;;  %v9787_v19 = vld [vmem:[#allocation134_spill] sm:$0xff] }
 0x845   :  { %3326 = vmatprep.subr.mxu0 %v9728_v36  ;;  %3397 = vmatprep.subr.mxu1 %v9729_v17  ;;  %v9788_v36 = vld [vmem:[#allocation19_spill] sm:$0xff] }
 0x846   :  { %3327 = vmatpush2.msra.mxu0 %v9730_v37  ;;  %3398 = vmatpush2.msra.mxu1 %v9731_v14 }
 0x847   :  { %3328 = vmatprep.subr.mxu0 %v9732_v30  ;;  %3399 = vmatprep.subr.mxu1 %v9733_v44  ;;  %v9789_v30 = vld [vmem:[#allocation20_spill] sm:$0xff] }
 0x848   :  { %3329 = vmatpush2.msra.mxu0 %v9734_v25  ;;  %3400 = vmatpush2.msra.mxu1 %v9735_v34 }
 0x849   :  { %3330 = vmatprep.subr.mxu0 %v9736_v29  ;;  %3401 = vmatprep.subr.mxu1 %v9737_v46  ;;  %v9790_v29 = vld [vmem:[#allocation21_spill] sm:$0xff] }
 0x84a   :  { %3331 = vmatpush2.msra.mxu0 %v9738_v47  ;;  %3402 = vmatpush2.msra.mxu1 %v9739_v49 }
 0x84b   :  { %3332 = vmatprep.subr.mxu0 %v9740_v51  ;;  %3403 = vmatprep.subr.mxu1 %v9741_v52  ;;  %v9791_v52 = vld [vmem:[#allocation22_spill] sm:$0xff] }
 0x84c   :  { %3333 = vmatpush2.msra.mxu0 %v9742_v55  ;;  %3404 = vmatpush2.msra.mxu1 %v9743_v56 }
 0x84d   :  { %3334 = vmatprep.subr.mxu0 %v9744_v57  ;;  %3405 = vmatprep.subr.mxu1 %v9745_v11 }
 0x84e   :  { %3335 = vmatpush2.msra.mxu0 %v9746_v12  ;;  %3406 = vmatpush2.msra.mxu1 %v9747_v8 }
 0x84f   :  { %3336 = vmatprep.subr.mxu0 %v9748_v26  ;;  %3407 = vmatprep.subr.mxu1 %v9749_v39  ;;  %v9792_v39 = vld [vmem:[#allocation174_spill] sm:$0xff] }
 0x850   :  { %3337 = vmatpush2.msra.mxu0 %v9750_v61  ;;  %3408 = vmatpush2.msra.mxu1 %v9751_v62 }
 0x851   :  { %3338 = vmatprep.subr.mxu0 %v9752_v20  ;;  %3409 = vmatprep.subr.mxu1 %v9753_v21 }
 0x852   :  { %3339 = vmatpush2.msra.mxu0 %v9754_v45  ;;  %3410 = vmatpush2.msra.mxu1 %v9755_v48  ;;  %v9793_v48 = vld [vmem:[#allocation176_spill] sm:$0xff] }
 0x853   :  { %3340 = vmatprep.subr.mxu0 %v9756_v18  ;;  %3411 = vmatprep.subr.mxu1 %v9757_v50 }
 0x854   :  { %3341 = vmatpush2.msra.mxu0 %v9758_v31  ;;  %3412 = vmatpush2.msra.mxu1 %v9759_v42 }
 0x855   :  { %3342 = vmatprep.subr.mxu0 %v9760_v40  ;;  %3413 = vmatprep.subr.mxu1 %v9761_v41 }
 0x856   :  { %3343 = vmatpush2.msra.mxu0 %v9762_v60  ;;  %3414 = vmatpush2.msra.mxu1 %v9763_v22  ;;  %v9794_v22 = vld [vmem:[#allocation175_spill] sm:$0xff] }
 0x857   :  { %3344 = vmatprep.subr.mxu0 %v9764_v10  ;;  %3415 = vmatprep.subr.mxu1 %v9765_v28 }
 0x858   :  { %3345 = vmatpush2.msra.mxu0 %v9766_v32  ;;  %3416 = vmatpush2.msra.mxu1 %v9767_v53  ;;  %v9795_v53 = vld [vmem:[#allocation177_spill] sm:$0xff] }
 0x859   :  { %3346 = vmatprep.subr.mxu0 %v9768_v59  ;;  %3417 = vmatprep.subr.mxu1 %v9769_v3 }
 0x85a   :  { %3347 = vmatpush2.msra.mxu0 %v9770_v6  ;;  %3418 = vmatpush2.msra.mxu1 %v9771_v58 }
 0x85b   :  { %3348 = vmatprep.subr.mxu0 %v9772_v43  ;;  %3419 = vmatprep.subr.mxu1 %v9773_v7 }
 0x85c   :  { %3349 = vmatpush2.msra.mxu0 %v9774_v23  ;;  %3420 = vmatpush2.msra.mxu1 %v9775_v63 }
 0x85d   :  { %3350 = vmatprep.subr.mxu0 %v9776_v24  ;;  %3421 = vmatprep.subr.mxu1 %v9777_v4 }
 0x85e   :  { %3351 = vmatpush2.msra.mxu0 %v9778_v5  ;;  %3422 = vmatpush2.msra.mxu1 %v9779_v1 }
 0x85f   :  { %3352 = vmatprep.subr.mxu0 %v9780_v27  ;;  %3423 = vmatprep.subr.mxu1 %v9781_v13 }
 0x860   :  { %3353 = vmatpush2.msra.mxu0 %v9782_v15  ;;  %3424 = vmatpush2.msra.mxu1 %v9783_v0 }
 0x861   :  { %3354 = vmatprep.subr.mxu0 %v9784_v16  ;;  %3425 = vmatprep.subr.mxu1 %v9785_v54 }
 0x862   :  { %3355 = vmatpush2.msra.mxu0 %v9786_v33  ;;  %3426 = vmatpush2.msra.mxu1 %v9787_v19  ;;  %v3477_v33 = vld [vmem:[#allocation12 + $0x78] sm:$0xff]  ;;  %v3476_v19 = vld [vmem:[#allocation12 + $0x70] sm:$0xff] }
 0x863   :  { %3666 = vmatprep.subr.mxu0 %v9658_v38 }
 0x8c1   :  { %v3006_v35 = vpop.f32.mrf.mxu0  ;;  %v3077_v34 = vpop.f32.mrf.mxu1 }
 0x8c2   :  { %v3007_v17 = vadd.f32 %v3006_v35, %v9788_v36  ;;  %v3078_v46 = vadd.f32 %v3077_v34, %v9790_v29  ;;  %v3475_v35 = vld [vmem:[#allocation12 + $0x68] sm:$0xff]  ;;  %v3468_v34 = vld [vmem:[#allocation12 + $0x30] sm:$0xff] }
 0x8c3   :  { %v3008_v37 = vpop.f32.mrf.mxu0  ;;  %v3079_v47 = vpop.f32.mrf.mxu1 }
 0x8c4   :  { %v3639_v14 = vmul.f32 -1.442695, %v3007_v17  ;;  %v3009_v44 = vadd.f32 %v3008_v37, %v9789_v30  ;;  %v3641_v49 = vmul.f32 -1.442695, %v3078_v46  ;;  %v3080_v55 = vadd.f32 %v3079_v47, %v9791_v52  ;;  %v3473_v17 = vld [vmem:[#allocation12 + $0x58] sm:$0xff]  ;;  %v3472_v37 = vld [vmem:[#allocation12 + $0x50] sm:$0xff] }
 0x8c5   :  { %v3467_v46 = vld [vmem:[#allocation12 + $0x28] sm:$0xff]  ;;  %v3466_v47 = vld [vmem:[#allocation12 + $0x20] sm:$0xff] }
 0x8c6   :  { %3920 = vpow2.f32 %v3639_v14  ;;  %v3640_v25 = vmul.f32 -1.442695, %v3009_v44  ;;  %v3471_v14 = vld [vmem:[#allocation12 + $0x48] sm:$0xff]  ;;  %v3470_v44 = vld [vmem:[#allocation12 + $0x40] sm:$0xff] }
 0x8c8   :  { %3922 = vpow2.f32 %v3640_v25  ;;  %v3469_v25 = vld [vmem:[#allocation12 + $0x38] sm:$0xff] }
 0x8c9   :  { %3924 = vpow2.f32 %v3641_v49  ;;  %v3465_v49 = vld [vmem:[#allocation12 + $0x18] sm:$0xff] }
 0x8d3   :  { %v3921_v51 = vpop.eup %3920 }
 0x8d4   :  { %v3092_v56 = vadd.f32 1.0, %v3921_v51  ;;  %v3464_v51 = vld [vmem:[#allocation12 + $0x10] sm:$0xff] }
 0x8d5   :  { %v3923_v57 = vpop.eup %3922 }
 0x8d6   :  { %3926 = vrcp.f32 %v3092_v56  ;;  %v3093_v11 = vadd.f32 1.0, %v3923_v57  ;;  %v3925_v12 = vpop.eup %3924  ;;  %v3462_v56 = vld [vmem:[#allocation12] sm:$0xff] }
 0x8d7   :  { %3928 = vtanh.f32 %v3080_v55  ;;  %v3094_v50 = vadd.f32 1.0, %v3925_v12  ;;  %v3463_v55 = vld [vmem:[#allocation12 + $0x8] sm:$0xff] }
 0x8d8   :  { %3930 = vrcp.f32 %v3093_v11 }
 0x8e2   :  { %v3183_v8 = vpop.f32.mrf.mxu0  ;;  %v3254_v60 = vpop.f32.mrf.mxu1 }
 0x8e3   :  { %v3927_v26 = vpop.eup %3926  ;;  %v3259_v61 = vadd.f32 %v3183_v8, %v9792_v39  ;;  %v3261_v10 = vadd.f32 %v3254_v60, %v9794_v22 }
 0x8e4   :  { %v3929_v62 = vpop.eup %3928  ;;  %v3185_v20 = vpop.f32.mrf.mxu0 }
 0x8e5   :  { %v3931_v21 = vpop.eup %3930  ;;  %v3642_v45 = vmul.f32 -1.442695, %v3259_v61  ;;  %v3260_v18 = vadd.f32 %v3185_v20, %v9793_v48  ;;  %v3103_v42 = vmul.f32 %v3929_v62, %v3927_v26  ;;  %v3256_v28 = vpop.f32.mrf.mxu1  ;;  %v3644_v32 = vmul.f32 -1.442695, %v3261_v10 }
 0x8e6   :  { %v3102_v31 = vmul.f32 %v3931_v21, %v7889_v2  ;;  %v3262_v59 = vadd.f32 %v3256_v28, %v9795_v53 }
 0x8e7   :  { %3932 = vpow2.f32 %v3642_v45  ;;  %v3643_v40 = vmul.f32 -1.442695, %v3260_v18 }
 0x8e8   :  { %v8086_v41 = vadd.f32 %v3103_v42, %v3102_v31 }
 0x8e9   :  { %3934 = vpow2.f32 %v3643_v40 }
 0x8ea   :  { %3936 = vrcp.f32 %v3094_v50 }
 0x8eb   :  { %3938 = vtanh.f32 %v8086_v41 }
 0x8ec   :  { %3940 = vpow2.f32 %v3644_v32  ;;  %v3648_v32 = vld [vmem:[%s8126_s7] ss:$0 sm:$0xff] }
 0x8ed   :  { %3942 = vtanh.f32 %v3262_v59 }
 0x8f4   :  { %v3933_v3 = vpop.eup %3932 }
 0x8f5   :  { %v3273_v6 = vadd.f32 1.0, %v3933_v3 }
 0x8f6   :  { %v3935_v2 = vpop.eup %3934 }
 0x8f7   :  { %v3937_v58 = vpop.eup %3936  ;;  %3944 = vrcp.f32 %v3273_v6  ;;  %v3274_v43 = vadd.f32 1.0, %v3935_v2 }
 0x8f8   :  { %v3939_v7 = vpop.eup %3938 }
 0x8f9   :  { %3946 = vrcp.f32 %v3274_v43  ;;  %v3106_v23 = vmul.f32 %v3939_v7, %v3937_v58  ;;  %v3941_v63 = vpop.eup %3940 }
 0x8fa   :  { %v3943_v24 = vpop.eup %3942  ;;  %v3275_v27 = vadd.f32 1.0, %v3941_v63 }
 0x8fb   :  { %3356 = vmatprep.mubr.f32.mxu0 %v3106_v23  ;;  %3427 = vmatprep.mubr.f32.mxu1 %v3106_v23 }
 0x8fc   :  { %3948 = vrcp.f32 %v3275_v27 }
 0x904   :  { %v3945_v4 = vpop.eup %3944 }
 0x905   :  { %v3284_v5 = vmul.f32 %v3945_v4, %v3943_v24 }
 0x906   :  { %v3947_v1 = vpop.eup %3946 }
 0x907   :  { %v3283_v13 = vmul.f32 %v3947_v1, %v7895_v9  ;;  %v3474_v9 = vld [vmem:[#allocation12 + $0x60] sm:$0xff] }
 0x909   :  { %v3285_v15 = vadd.f32 %v3284_v5, %v3283_v13  ;;  %v3949_v0 = vpop.eup %3948 }
 0x90b   :  { %3950 = vtanh.f32 %v3285_v15 }
 0x918   :  { %v3951_v16 = vpop.eup %3950 }
 0x919   :  { %v3287_v54 = vmul.f32 %v3951_v16, %v3949_v0 }
 0x91b   :  { %3357 = vmatmul.mubr.f32.vlgmr.msra.gmra.mxu0 %v3287_v54  ;;  %3428 = vmatmul.mubr.f32.vlgmr.msra.gmra.mxu1 %v3287_v54 }
 0x91c   :  { %3667 = vmatpush3.msra.mxu0 %v3477_v33  ;;  %3698 = vmatprep.mubr.msk.f32.mxu0 %vm4679_vm2, %v9658_v38 }
 0x91d   :  { %3668 = vmatprep.subr.mxu0 %v9658_v38 }
 0x91e   :  { %3669 = vmatpush3.msra.mxu0 %v3476_v19 }
 0x91f   :  { %3670 = vmatprep.subr.mxu0 %v9658_v38 }
 0x920   :  { %3671 = vmatpush3.msra.mxu0 %v3475_v35 }
 0x921   :  { %3672 = vmatprep.subr.mxu0 %v9658_v38 }
 0x922   :  { %3673 = vmatpush3.msra.mxu0 %v3474_v9 }
 0x923   :  { %3674 = vmatprep.subr.mxu0 %v9658_v38 }
 0x924   :  { %3675 = vmatpush3.msra.mxu0 %v3473_v17 }
 0x925   :  { %3676 = vmatprep.subr.mxu0 %v9658_v38 }
 0x926   :  { %3677 = vmatpush3.msra.mxu0 %v3472_v37 }
 0x927   :  { %3678 = vmatprep.subr.mxu0 %v9658_v38 }
 0x928   :  { %3679 = vmatpush3.msra.mxu0 %v3471_v14 }
 0x929   :  { %3680 = vmatprep.subr.mxu0 %v9658_v38 }
 0x92a   :  { %3681 = vmatpush3.msra.mxu0 %v3470_v44 }
 0x92b   :  { %3682 = vmatprep.subr.mxu0 %v9658_v38 }
 0x92c   :  { %3683 = vmatpush3.msra.mxu0 %v3469_v25 }
 0x92d   :  { %3684 = vmatprep.subr.mxu0 %v9658_v38 }
 0x92e   :  { %3685 = vmatpush3.msra.mxu0 %v3468_v34 }
 0x92f   :  { %3686 = vmatprep.subr.mxu0 %v9658_v38 }
 0x930   :  { %3687 = vmatpush3.msra.mxu0 %v3467_v46 }
 0x931   :  { %3688 = vmatprep.subr.mxu0 %v9658_v38 }
 0x932   :  { %3689 = vmatpush3.msra.mxu0 %v3466_v47 }
 0x933   :  { %3690 = vmatprep.subr.mxu0 %v9658_v38 }
 0x934   :  { %3691 = vmatpush3.msra.mxu0 %v3465_v49 }
 0x935   :  { %3692 = vmatprep.subr.mxu0 %v9658_v38 }
 0x936   :  { %3693 = vmatpush3.msra.mxu0 %v3464_v51 }
 0x937   :  { %3694 = vmatprep.subr.mxu0 %v9658_v38 }
 0x938   :  { %3695 = vmatpush3.msra.mxu0 %v3463_v55 }
 0x939   :  { %3696 = vmatprep.subr.mxu0 %v9658_v38 }
 0x93a   :  { %3697 = vmatpush3.msra.mxu0 %v3462_v56 }
 0x9db   :  { %v3358_v57 = vpop.f32.mrf.mxu0  ;;  %v3429_v61 = vpop.f32.mrf.mxu1 }
 0x9dc   :  { %v3359_v11 = vadd.f32 %v3358_v57, %v9788_v36  ;;  %v3430_v62 = vadd.f32 %v3429_v61, %v9790_v29 }
 0x9dd   :  { %v3360_v12 = vpop.f32.mrf.mxu0  ;;  %v3431_v20 = vpop.f32.mrf.mxu1 }
 0x9de   :  { %v3645_v8 = vmul.f32 -1.442695, %v3359_v11  ;;  %v3361_v26 = vadd.f32 %v3360_v12, %v9789_v30  ;;  %v3647_v21 = vmul.f32 -1.442695, %v3430_v62  ;;  %v3432_v48 = vadd.f32 %v3431_v20, %v9791_v52 }
 0x9e0   :  { %3952 = vpow2.f32 %v3645_v8  ;;  %v3646_v39 = vmul.f32 -1.442695, %v3361_v26 }
 0x9e2   :  { %3954 = vpow2.f32 %v3646_v39 }
 0x9e3   :  { %3956 = vpow2.f32 %v3647_v21 }
 0x9ed   :  { %v3953_v45 = vpop.eup %3952 }
 0x9ee   :  { %v3444_v38 = vadd.f32 1.0, %v3953_v45 }
 0x9ef   :  { %v3955_v18 = vpop.eup %3954 }
 0x9f0   :  { %3958 = vrcp.f32 %v3444_v38  ;;  %v3445_v36 = vadd.f32 1.0, %v3955_v18  ;;  %v3957_v50 = vpop.eup %3956 }
 0x9f1   :  { %3960 = vtanh.f32 %v3432_v48  ;;  %v3446_v40 = vadd.f32 1.0, %v3957_v50 }
 0x9f2   :  { %3962 = vrcp.f32 %v3445_v36 }
 0x9f3   :  { %3964 = vrcp.f32 %v3446_v40 }
 0x9fd   :  { %v3959_v30 = vpop.eup %3958 }
 0x9fe   :  { %v3961_v31 = vpop.eup %3960 }
 0x9ff   :  { %v3963_v42 = vpop.eup %3962  ;;  %v3455_v29 = vmul.f32 %v3961_v31, %v3959_v30 }
 0xa00   :  { %v3454_v60 = vmul.f32 %v3963_v42, %v8086_v41  ;;  %v3965_v10 = vpop.eup %3964 }
 0xa02   :  { %v3456_v22 = vadd.f32 %v3455_v29, %v3454_v60 }
 0xa04   :  { %3966 = vtanh.f32 %v3456_v22 }
 0xa11   :  { %v3967_v52 = vpop.eup %3966 }
 0xa12   :  { %v3458_v28 = vmul.f32 %v3967_v52, %v3965_v10 }
 0xa14   :  { %3699 = vmatmul.mubr.f32.vlgmr.msra.gmra.mxu0 %v3458_v28 }
 0xad4   :  { %v3551_v53 = vpop.f32.mrf.mxu0 }
 0xad5   :  { %v3552_v59 = vadd.f32 %v3648_v32, %v3551_v53 }
 0xad6   :  { %v3700_v3 = vpop.f32.mrf.mxu0 }
 0xad7   :  { %3555 = vst [vmem:[#allocation14] sm:$0xff] %v3552_v59 }
 0xad8   :  { %4653 = shalt.err (!%p4650_p10)
}
 0xad9   :  { %3565 = dma.vmem_to_hbm [thread:$0]  %s3563_s22, 128, %s8127_s8, [#allocation8]  }
 0xada   :  { %4668 = dma.done.wait [#allocation8], 128  }
 0xadb   :  { %4669 = vsyncadd [#allocation8], 4294967168 }
 0xadc   :  { %3569 = vsyncpa [#allocation7], 1 }
 0xadd   :  { %3570 = vsyncpa [#allocation10], 1 }
 0xade   :  { %3571 = vsyncpa [#allocation13], 1 }
 0xadf   :  { %3572 = vsyncpa [#allocation8], 1 }

</bundles_post_ra>
